<compile_context>
chip_gen: v5e
topology: v5e:2x2
jax: 0.10.0
libtpu: 0.0.40
codegen_flags: <defaults>
</compile_context>

<pallas_src>
import jax
import jax.numpy as jnp
from jax.experimental import pallas as pl
from jax.experimental.pallas import tpu as pltpu

EPS = 1e-5
LANE = 128


def _round_up(x, m):
    return (x + m - 1) // m * m


def _pick_row_tile(rows):
    for t in (1024, 512, 256, 128, 64, 32, 16):
        if rows % t == 0 and rows // t >= 2:
            return t
    return rows


# ---------------------------------------------------------------------------
# Pass 1: 1x1 conv (x @ w1) + per-tile statistics for bn1.
# ---------------------------------------------------------------------------
def _conv1x1_stats_kernel(x_ref, w_ref, h_ref, st_ref):
    x = x_ref[...].astype(jnp.bfloat16)
    h = jnp.dot(x, w_ref[...], preferred_element_type=jnp.float32)
    h_ref[...] = h.astype(h_ref.dtype)
    s = jnp.sum(h, axis=0, keepdims=True)
    ss = jnp.sum(h * h, axis=0, keepdims=True)
    st_ref[0] = jnp.concatenate([s, ss], axis=0)


# ---------------------------------------------------------------------------
# Pass 2: bn1 + ReLU + 3x3 conv (pad=1, stride=1) + statistics for bn2.
# One image per grid step; halo handled by a zero-padded VMEM slab.
# ---------------------------------------------------------------------------
def _conv3x3_kernel(h1_ref, w_ref, sc_ref, sh_ref, h2_ref, st_ref,
                    slab_ref, acc_ref):
    _, H, W, C = h1_ref.shape
    sc = sc_ref[...].reshape(1, 1, C)
    sh = sh_ref[...].reshape(1, 1, C)
    a = jnp.maximum(h1_ref[0].astype(jnp.float32) * sc + sh, 0.0)

    # Zero-padded halo slab written once (spatial "SAME" padding, no concats).
    slab_ref[...] = jnp.zeros(slab_ref.shape, slab_ref.dtype)
    slab_ref[pl.ds(1, H), pl.ds(1, W), :] = a.astype(slab_ref.dtype)

    # 9-tap accumulation into a VMEM f32 accumulator (MXU, K = C lanes).
    acc_ref[...] = jnp.zeros(acc_ref.shape, acc_ref.dtype)
    for dy in range(3):
        for dx in range(3):
            patch = slab_ref[pl.ds(dy, H), pl.ds(dx, W), :]
            acc_ref[...] += jnp.dot(patch.reshape(H * W, C), w_ref[dy, dx],
                                    preferred_element_type=jnp.float32)

    h2 = acc_ref[...]
    h2_ref[0] = h2.reshape(H, W, C).astype(h2_ref.dtype)
    s = jnp.sum(h2, axis=0, keepdims=True)
    ss = jnp.sum(h2 * h2, axis=0, keepdims=True)
    st_ref[0] = jnp.concatenate([s, ss], axis=0)


# ---------------------------------------------------------------------------
# Pass 3: bn2 + ReLU + 1x1 conv (expand x4) + statistics for bn3.
# ---------------------------------------------------------------------------
def _bn_relu_conv1x1_kernel(h2_ref, w_ref, sc_ref, sh_ref, h3_ref, st_ref):
    b = jnp.maximum(h2_ref[...].astype(jnp.float32) * sc_ref[...] + sh_ref[...],
                    0.0)
    h3 = jnp.dot(b.astype(jnp.bfloat16), w_ref[...],
                 preferred_element_type=jnp.float32)
    h3_ref[...] = h3
    s = jnp.sum(h3, axis=0, keepdims=True)
    ss = jnp.sum(h3 * h3, axis=0, keepdims=True)
    st_ref[0] = jnp.concatenate([s, ss], axis=0)


# ---------------------------------------------------------------------------
# Pass 4: bn3 + residual add + ReLU (lane-dense f32 epilogue).
# ---------------------------------------------------------------------------
def _bn_add_relu_kernel(h3_ref, x_ref, sc_ref, sh_ref, o_ref):
    y = h3_ref[...] * sc_ref[...] + sh_ref[...] + x_ref[...]
    o_ref[...] = jnp.maximum(y, 0.0)


# ---------------------------------------------------------------------------
# Wrapper
# ---------------------------------------------------------------------------
def _finalize_bn(partial, gamma_p, beta_p, count):
    """Turn accumulated (sum, sum_sq) partials into per-channel scale/shift."""
    s = jnp.sum(partial[:, 0, :], axis=0)
    ss = jnp.sum(partial[:, 1, :], axis=0)
    mean = s / count
    var = jnp.maximum(ss / count - mean * mean, 0.0)   # biased variance
    scale = gamma_p * jax.lax.rsqrt(var + EPS)
    shift = beta_p - mean * scale
    return scale.reshape(1, -1), shift.reshape(1, -1)


def _compiler_params():
    return pltpu.CompilerParams(
        dimension_semantics=("parallel",),
        vmem_limit_bytes=32 * 1024 * 1024,   # safe on v5e/v6e/v7x
    )


def bottleneck_forward(x_nchw, params):
    """x_nchw: (N, Cin, H, W) with Cin == planes * 4 (stride=1, no downsample)."""
    N, Cin, H, W = x_nchw.shape
    P = params["w1"].shape[1]
    Cout = params["w3"].shape[1]
    assert Cout == Cin, "identity residual requires inplanes == planes*4"

    Cp = _round_up(Cin, LANE)      # padded in/out channels
    Pp = _round_up(P, LANE)        # padded bottleneck channels
    R = N * H * W
    TR = _pick_row_tile(R)
    T = R // TR

    f32, bf16 = jnp.float32, jnp.bfloat16
    cp = _compiler_params()

    # ---- wrapper-side layout plumbing: NCHW -> lane-dense padded NHWC rows --
    x = jnp.transpose(x_nchw, (0, 2, 3, 1)).astype(f32)
    x = jnp.pad(x, ((0, 0), (0, 0), (0, 0), (0, Cp - Cin)))
    x2d = x.reshape(R, Cp)

    w1 = jnp.pad(params["w1"], ((0, Cp - Cin), (0, Pp - P))).astype(bf16)
    w2 = jnp.pad(params["w2"],
                 ((0, 0), (0, 0), (0, Pp - P), (0, Pp - P))).astype(bf16)
    w3 = jnp.pad(params["w3"], ((0, Pp - P), (0, Cp - Cout))).astype(bf16)
    g1 = jnp.pad(params["g1"].reshape(-1), (0, Pp - P))
    b1 = jnp.pad(params["b1"].reshape(-1), (0, Pp - P))
    g2 = jnp.pad(params["g2"].reshape(-1), (0, Pp - P))
    b2 = jnp.pad(params["b2"].reshape(-1), (0, Pp - P))
    g3 = jnp.pad(params["g3"].reshape(-1), (0, Cp - Cout))
    b3 = jnp.pad(params["b3"].reshape(-1), (0, Cp - Cout))

    # ---- pass 1: conv1 (1x1) + bn1 statistics -------------------------------
    h1_2d, st1 = pl.pallas_call(
        _conv1x1_stats_kernel,
        out_shape=(jax.ShapeDtypeStruct((R, Pp), bf16),
                   jax.ShapeDtypeStruct((T, 2, Pp), f32)),
        grid=(T,),
        in_specs=[pl.BlockSpec((TR, Cp), lambda i: (i, 0)),
                  pl.BlockSpec((Cp, Pp), lambda i: (0, 0))],
        out_specs=(pl.BlockSpec((TR, Pp), lambda i: (i, 0)),
                   pl.BlockSpec((1, 2, Pp), lambda i: (i, 0, 0))),
        compiler_params=cp,
    )(x2d, w1)
    sc1, sh1 = _finalize_bn(st1, g1, b1, R)

    # ---- pass 2: bn1 + relu + conv2 (3x3) + bn2 statistics ------------------
    h1_img = h1_2d.reshape(N, H, W, Pp)
    h2_img, st2 = pl.pallas_call(
        _conv3x3_kernel,
        out_shape=(jax.ShapeDtypeStruct((N, H, W, Pp), bf16),
                   jax.ShapeDtypeStruct((N, 2, Pp), f32)),
        grid=(N,),
        in_specs=[pl.BlockSpec((1, H, W, Pp), lambda n: (n, 0, 0, 0)),
                  pl.BlockSpec((3, 3, Pp, Pp), lambda n: (0, 0, 0, 0)),
                  pl.BlockSpec((1, Pp), lambda n: (0, 0)),
                  pl.BlockSpec((1, Pp), lambda n: (0, 0))],
        out_specs=(pl.BlockSpec((1, H, W, Pp), lambda n: (n, 0, 0, 0)),
                   pl.BlockSpec((1, 2, Pp), lambda n: (n, 0, 0))),
        scratch_shapes=[pltpu.VMEM((H + 2, W + 2, Pp), bf16),
                        pltpu.VMEM((H * W, Pp), f32)],
        compiler_params=cp,
    )(h1_img, w2, sc1, sh1)
    sc2, sh2 = _finalize_bn(st2, g2, b2, R)

    # ---- pass 3: bn2 + relu + conv3 (1x1 expand) + bn3 statistics -----------
    h2_2d = h2_img.reshape(R, Pp)
    h3_2d, st3 = pl.pallas_call(
        _bn_relu_conv1x1_kernel,
        out_shape=(jax.ShapeDtypeStruct((R, Cp), f32),
                   jax.ShapeDtypeStruct((T, 2, Cp), f32)),
        grid=(T,),
        in_specs=[pl.BlockSpec((TR, Pp), lambda i: (i, 0)),
                  pl.BlockSpec((Pp, Cp), lambda i: (0, 0)),
                  pl.BlockSpec((1, Pp), lambda i: (0, 0)),
                  pl.BlockSpec((1, Pp), lambda i: (0, 0))],
        out_specs=(pl.BlockSpec((TR, Cp), lambda i: (i, 0)),
                   pl.BlockSpec((1, 2, Cp), lambda i: (i, 0, 0))),
        compiler_params=cp,
    )(h2_2d, w3, sc2, sh2)
    sc3, sh3 = _finalize_bn(st3, g3, b3, R)

    # ---- pass 4: bn3 + residual + relu (output aliases the residual buffer) -
    out2d = pl.pallas_call(
        _bn_add_relu_kernel,
        out_shape=jax.ShapeDtypeStruct((R, Cp), f32),
        grid=(T,),
        in_specs=[pl.BlockSpec((TR, Cp), lambda i: (i, 0)),
                  pl.BlockSpec((TR, Cp), lambda i: (i, 0)),
                  pl.BlockSpec((1, Cp), lambda i: (0, 0)),
                  pl.BlockSpec((1, Cp), lambda i: (0, 0))],
        out_specs=pl.BlockSpec((TR, Cp), lambda i: (i, 0)),
        input_output_aliases={1: 0},
        compiler_params=cp,
    )(h3_2d, x2d, sc3, sh3)

    out = out2d.reshape(N, H, W, Cp)[..., :Cout]
    return jnp.transpose(out, (0, 3, 1, 2))           # back to NCHW


# ---------------------------------------------------------------------------
# Parameters + pure-JAX reference
# ---------------------------------------------------------------------------
def make_params(key, inplanes, planes):
    ks = jax.random.split(key, 9)
    return {
        # 1x1 convs stored as (in, out); 3x3 stored as (kh, kw, in, out) = HWIO.
        "w1": 0.1 * jax.random.normal(ks[0], (inplanes, planes), jnp.float32),
        "g1": 1.0 + 0.1 * jax.random.normal(ks[1], (1, planes), jnp.float32),
        "b1": 0.1 * jax.random.normal(ks[2], (1, planes), jnp.float32),
        "w2": 0.1 * jax.random.normal(ks[3], (3, 3, planes, planes), jnp.float32),
        "g2": 1.0 + 0.1 * jax.random.normal(ks[4], (1, planes), jnp.float32),
        "b2": 0.1 * jax.random.normal(ks[5], (1, planes), jnp.float32),
        "w3": 0.1 * jax.random.normal(ks[6], (planes, planes * 4), jnp.float32),
        "g3": 1.0 + 0.1 * jax.random.normal(ks[7], (1, planes * 4), jnp.float32),
        "b3": 0.1 * jax.random.normal(ks[8], (1, planes * 4), jnp.float32),
    }


def reference_forward(x_nchw, params):
    """Pure-JAX reference (same math, independent conv op for the 3x3)."""
    x = jnp.transpose(x_nchw, (0, 2, 3, 1)).astype(jnp.float32)

    def bn(y, g, b):
        mu = jnp.mean(y, axis=(0, 1, 2), keepdims=True)
        var = jnp.mean((y - mu) ** 2, axis=(0, 1, 2), keepdims=True)
        return ((y - mu) * jax.lax.rsqrt(var + EPS)
                * g.reshape(1, 1, 1, -1) + b.reshape(1, 1, 1, -1))

    h = jnp.einsum("nhwc,cp->nhwp", x, params["w1"],
                   precision=jax.lax.Precision.HIGHEST)
    h = jnp.maximum(bn(h, params["g1"], params["b1"]), 0.0)
    h = jax.lax.conv_general_dilated(
        h, params["w2"], (1, 1), "SAME",
        dimension_numbers=("NHWC", "HWIO", "NHWC"),
        precision=jax.lax.Precision.HIGHEST)
    h = jnp.maximum(bn(h, params["g2"], params["b2"]), 0.0)
    h = jnp.einsum("nhwp,pq->nhwq", h, params["w3"],
                   precision=jax.lax.Precision.HIGHEST)
    h = bn(h, params["g3"], params["b3"])
    out = jnp.maximum(h + x, 0.0)
    return jnp.transpose(out, (0, 3, 1, 2))


if __name__ == "__main__":
    key = jax.random.PRNGKey(0)
    k_x, k_p = jax.random.split(key)

    planes = 8
    inplanes = planes * 4          # required for the identity residual path
    N, H, W = 2, 16, 16

    x = jax.random.normal(k_x, (N, inplanes, H, W), jnp.float32)   # NCHW
    params = make_params(k_p, inplanes, planes)

    fwd = jax.jit(bottleneck_forward)
    out = jax.block_until_ready(fwd(x, params))

    ref = jax.block_until_ready(reference_forward(x, params))
    assert out.shape == (N, inplanes, H, W)
    # bf16 MXU operands (f32 accumulation) are intentional per perf guidance;
    # tolerance reflects that (reference uses Precision.HIGHEST f32).
    assert jnp.allclose(out, ref, atol=3e-2, rtol=3e-2), \
        f"max err {float(jnp.max(jnp.abs(out - ref)))}"

    print("KERNEL_OK")
</pallas_src>

<mosaic_0001>
module attributes {stable_mosaic.version = 11 : i64} {
  func.func @_conv1x1_stats_kernel(%arg0: i32, %arg1: memref<256x128xf32, #tpu.memory_space<vmem>>, %arg2: memref<128x128xbf16, #tpu.memory_space<vmem>>, %arg3: memref<256x128xbf16, #tpu.memory_space<vmem>>, %arg4: memref<1x2x128xf32, #tpu.memory_space<vmem>>) attributes {dimension_semantics = [#tpu.dimension_semantics<parallel>], iteration_bounds = array<i64: 2>, scalar_prefetch = 0 : i64, scratch_operands = 0 : i64, tpu.core_type = #tpu.core_type<tc>, window_params = [{transform_indices = @transform_0, window_bounds = array<i64: 256, 128>}, {pipeline_mode = #tpu.pipeline_mode<synchronous>, transform_indices = @transform_1, window_bounds = array<i64: 128, 128>}, {transform_indices = @transform_2, window_bounds = array<i64: 256, 128>}, {transform_indices = @transform_3, window_bounds = array<i64: 1, 2, 128>}]} {
    %c0 = arith.constant 0 : index
    %c0_0 = arith.constant 0 : index
    %0 = vector.load %arg1[%c0, %c0_0] : memref<256x128xf32, #tpu.memory_space<vmem>>, vector<256x128xf32>
    %1 = arith.truncf %0 : vector<256x128xf32> to vector<256x128xbf16>
    %c0_1 = arith.constant 0 : index
    %c0_2 = arith.constant 0 : index
    %2 = vector.load %arg2[%c0_1, %c0_2] : memref<128x128xbf16, #tpu.memory_space<vmem>>, vector<128x128xbf16>
    %cst = arith.constant dense<0.000000e+00> : vector<256x128xf32>
    %3 = tpu.matmul %1, %2, %cst {dimension_numbers = #tpu.dot_dimension_numbers<[1], [0], [0], [1], [0, 0, 1, 1], [], []>} : vector<256x128xbf16>, vector<128x128xbf16>, vector<256x128xf32> -> vector<256x128xf32>
    %4 = arith.truncf %3 : vector<256x128xf32> to vector<256x128xbf16>
    %c0_3 = arith.constant 0 : index
    %c0_4 = arith.constant 0 : index
    %5 = vector.load %arg3[%c0_3, %c0_4] : memref<256x128xbf16, #tpu.memory_space<vmem>>, vector<256x128xbf16>
    tpu.vector_store %arg3[%c0_3, %c0_4], %4 {strides = array<i32>} : memref<256x128xbf16, #tpu.memory_space<vmem>>, vector<256x128xbf16>,
    %cst_5 = arith.constant dense<0.000000e+00> : vector<128xf32>
    %6 = vector.multi_reduction <add>, %3, %cst_5 [0] : vector<256x128xf32> to vector<128xf32>
    %7 = vector.shape_cast %6 : vector<128xf32> to vector<1x128xf32>
    %8 = arith.mulf %3, %3 : vector<256x128xf32>
    %cst_6 = arith.constant dense<0.000000e+00> : vector<128xf32>
    %9 = vector.multi_reduction <add>, %8, %cst_6 [0] : vector<256x128xf32> to vector<128xf32>
    %10 = vector.shape_cast %9 : vector<128xf32> to vector<1x128xf32>
    %11 = tpu.concatenate %7, %10 in 0 : vector<1x128xf32>, vector<1x128xf32> -> vector<2x128xf32>
    %c0_7 = arith.constant 0 : index
    %c0_8 = arith.constant 0 : index
    %c0_9 = arith.constant 0 : index
    %12 = vector.load %arg4[%c0_7, %c0_8, %c0_9] : memref<1x2x128xf32, #tpu.memory_space<vmem>>, vector<1x2x128xf32>
    %13 = vector.shape_cast %12 : vector<1x2x128xf32> to vector<2x128xf32>
    %14 = vector.shape_cast %11 : vector<2x128xf32> to vector<1x2x128xf32>
    tpu.vector_store %arg4[%c0_7, %c0_8, %c0_9], %14 {strides = array<i32>} : memref<1x2x128xf32, #tpu.memory_space<vmem>>, vector<1x2x128xf32>,
    return
  }
  func.func @transform_0(%arg0: i32) -> (i32, i32) {
    %c0_i32 = arith.constant 0 : i32
    %c0_i32_0 = arith.constant 0 : i32
    return %arg0, %c0_i32 : i32, i32
  }
  func.func @transform_1(%arg0: i32) -> (i32, i32) {
    %c0_i32 = arith.constant 0 : i32
    %c0_i32_0 = arith.constant 0 : i32
    %c0_i32_1 = arith.constant 0 : i32
    return %c0_i32, %c0_i32_0 : i32, i32
  }
  func.func @transform_2(%arg0: i32) -> (i32, i32) {
    %c0_i32 = arith.constant 0 : i32
    %c0_i32_0 = arith.constant 0 : i32
    return %arg0, %c0_i32 : i32, i32
  }
  func.func @transform_3(%arg0: i32) -> (i32, i32, i32) {
    %c0_i32 = arith.constant 0 : i32
    %c0_i32_0 = arith.constant 0 : i32
    %c0_i32_1 = arith.constant 0 : i32
    return %arg0, %c0_i32, %c0_i32_0 : i32, i32, i32
  }
}

module attributes {stable_mosaic.version = 11 : i64} {
  func.func @_conv3x3_kernel(%arg0: i32, %arg1: memref<1x16x16x128xbf16, #tpu.memory_space<vmem>>, %arg2: memref<3x3x128x128xbf16, #tpu.memory_space<vmem>>, %arg3: memref<1x128xf32, #tpu.memory_space<vmem>>, %arg4: memref<1x128xf32, #tpu.memory_space<vmem>>, %arg5: memref<1x16x16x128xbf16, #tpu.memory_space<vmem>>, %arg6: memref<1x2x128xf32, #tpu.memory_space<vmem>>, %arg7: memref<18x18x128xbf16, #tpu.memory_space<vmem>>, %arg8: memref<256x128xf32, #tpu.memory_space<vmem>>) attributes {dimension_semantics = [#tpu.dimension_semantics<parallel>], iteration_bounds = array<i64: 2>, scalar_prefetch = 0 : i64, scratch_operands = 2 : i64, tpu.core_type = #tpu.core_type<tc>, window_params = [{transform_indices = @transform_0, window_bounds = array<i64: 1, 16, 16, 128>}, {pipeline_mode = #tpu.pipeline_mode<synchronous>, transform_indices = @transform_1, window_bounds = array<i64: 3, 3, 128, 128>}, {pipeline_mode = #tpu.pipeline_mode<synchronous>, transform_indices = @transform_2, window_bounds = array<i64: 1, 128>}, {pipeline_mode = #tpu.pipeline_mode<synchronous>, transform_indices = @transform_3, window_bounds = array<i64: 1, 128>}, {transform_indices = @transform_4, window_bounds = array<i64: 1, 16, 16, 128>}, {transform_indices = @transform_5, window_bounds = array<i64: 1, 2, 128>}]} {
    %c0 = arith.constant 0 : index
    %c0_0 = arith.constant 0 : index
    %0 = vector.load %arg3[%c0, %c0_0] : memref<1x128xf32, #tpu.memory_space<vmem>>, vector<1x128xf32>
    %1 = vector.shape_cast %0 : vector<1x128xf32> to vector<1x1x128xf32>
    %c0_1 = arith.constant 0 : index
    %c0_2 = arith.constant 0 : index
    %2 = vector.load %arg4[%c0_1, %c0_2] : memref<1x128xf32, #tpu.memory_space<vmem>>, vector<1x128xf32>
    %3 = vector.shape_cast %2 : vector<1x128xf32> to vector<1x1x128xf32>
    %c0_3 = arith.constant 0 : index
    %c0_4 = arith.constant 0 : index
    %c0_5 = arith.constant 0 : index
    %c0_6 = arith.constant 0 : index
    %4 = vector.load %arg1[%c0_3, %c0_4, %c0_5, %c0_6] : memref<1x16x16x128xbf16, #tpu.memory_space<vmem>>, vector<1x16x16x128xbf16>
    %5 = vector.shape_cast %4 : vector<1x16x16x128xbf16> to vector<16x16x128xbf16>
    %6 = arith.extf %5 : vector<16x16x128xbf16> to vector<16x16x128xf32>
    %7 = vector.broadcast %1 : vector<1x1x128xf32> to vector<16x16x128xf32>
    %8 = arith.mulf %6, %7 : vector<16x16x128xf32>
    %9 = vector.broadcast %3 : vector<1x1x128xf32> to vector<16x16x128xf32>
    %10 = arith.addf %8, %9 : vector<16x16x128xf32>
    %cst = arith.constant 0.000000e+00 : f32
    %11 = vector.broadcast %cst : f32 to vector<16x16x128xf32>
    %12 = arith.maximumf %10, %11 : vector<16x16x128xf32>
    %cst_7 = arith.constant 0.000000e+00 : bf16
    %13 = vector.broadcast %cst_7 : bf16 to vector<18x18x128xbf16>
    %c0_8 = arith.constant 0 : index
    %c0_9 = arith.constant 0 : index
    %c0_10 = arith.constant 0 : index
    %14 = vector.load %arg7[%c0_8, %c0_9, %c0_10] : memref<18x18x128xbf16, #tpu.memory_space<vmem>>, vector<18x18x128xbf16>
    tpu.vector_store %arg7[%c0_8, %c0_9, %c0_10], %13 {strides = array<i32>} : memref<18x18x128xbf16, #tpu.memory_space<vmem>>, vector<18x18x128xbf16>,
    %15 = arith.truncf %12 : vector<16x16x128xf32> to vector<16x16x128xbf16>
    %c1 = arith.constant 1 : index
    %c1_11 = arith.constant 1 : index
    %c0_12 = arith.constant 0 : index
    %16 = vector.load %arg7[%c1, %c1_11, %c0_12] : memref<18x18x128xbf16, #tpu.memory_space<vmem>>, vector<16x16x128xbf16>
    tpu.vector_store %arg7[%c1, %c1_11, %c0_12], %15 {strides = array<i32>} : memref<18x18x128xbf16, #tpu.memory_space<vmem>>, vector<16x16x128xbf16>,
    %cst_13 = arith.constant 0.000000e+00 : f32
    %17 = vector.broadcast %cst_13 : f32 to vector<256x128xf32>
    %c0_14 = arith.constant 0 : index
    %c0_15 = arith.constant 0 : index
    %18 = vector.load %arg8[%c0_14, %c0_15] : memref<256x128xf32, #tpu.memory_space<vmem>>, vector<256x128xf32>
    tpu.vector_store %arg8[%c0_14, %c0_15], %17 {strides = array<i32>} : memref<256x128xf32, #tpu.memory_space<vmem>>, vector<256x128xf32>,
    %c0_16 = arith.constant 0 : index
    %c0_17 = arith.constant 0 : index
    %c0_18 = arith.constant 0 : index
    %19 = vector.load %arg7[%c0_16, %c0_17, %c0_18] : memref<18x18x128xbf16, #tpu.memory_space<vmem>>, vector<16x16x128xbf16>
    %c0_19 = arith.constant 0 : index
    %c0_20 = arith.constant 0 : index
    %20 = vector.load %arg8[%c0_19, %c0_20] : memref<256x128xf32, #tpu.memory_space<vmem>>, vector<256x128xf32>
    %21 = vector.shape_cast %19 : vector<16x16x128xbf16> to vector<256x128xbf16>
    %c0_21 = arith.constant 0 : index
    %c0_22 = arith.constant 0 : index
    %c0_23 = arith.constant 0 : index
    %c0_24 = arith.constant 0 : index
    %22 = vector.load %arg2[%c0_21, %c0_22, %c0_23, %c0_24] : memref<3x3x128x128xbf16, #tpu.memory_space<vmem>>, vector<1x1x128x128xbf16>
    %23 = vector.shape_cast %22 : vector<1x1x128x128xbf16> to vector<128x128xbf16>
    %cst_25 = arith.constant dense<0.000000e+00> : vector<256x128xf32>
    %24 = tpu.matmul %21, %23, %cst_25 {dimension_numbers = #tpu.dot_dimension_numbers<[1], [0], [0], [1], [0, 0, 1, 1], [], []>} : vector<256x128xbf16>, vector<128x128xbf16>, vector<256x128xf32> -> vector<256x128xf32>
    %25 = arith.addf %20, %24 : vector<256x128xf32>
    %c0_26 = arith.constant 0 : index
    %c0_27 = arith.constant 0 : index
    %26 = vector.load %arg8[%c0_26, %c0_27] : memref<256x128xf32, #tpu.memory_space<vmem>>, vector<256x128xf32>
    tpu.vector_store %arg8[%c0_26, %c0_27], %25 {strides = array<i32>} : memref<256x128xf32, #tpu.memory_space<vmem>>, vector<256x128xf32>,
    %c0_28 = arith.constant 0 : index
    %c1_29 = arith.constant 1 : index
    %c0_30 = arith.constant 0 : index
    %27 = vector.load %arg7[%c0_28, %c1_29, %c0_30] : memref<18x18x128xbf16, #tpu.memory_space<vmem>>, vector<16x16x128xbf16>
    %c0_31 = arith.constant 0 : index
    %c0_32 = arith.constant 0 : index
    %28 = vector.load %arg8[%c0_31, %c0_32] : memref<256x128xf32, #tpu.memory_space<vmem>>, vector<256x128xf32>
    %29 = vector.shape_cast %27 : vector<16x16x128xbf16> to vector<256x128xbf16>
    %c0_33 = arith.constant 0 : index
    %c1_34 = arith.constant 1 : index
    %c0_35 = arith.constant 0 : index
    %c0_36 = arith.constant 0 : index
    %30 = vector.load %arg2[%c0_33, %c1_34, %c0_35, %c0_36] : memref<3x3x128x128xbf16, #tpu.memory_space<vmem>>, vector<1x1x128x128xbf16>
    %31 = vector.shape_cast %30 : vector<1x1x128x128xbf16> to vector<128x128xbf16>
    %cst_37 = arith.constant dense<0.000000e+00> : vector<256x128xf32>
    %32 = tpu.matmul %29, %31, %cst_37 {dimension_numbers = #tpu.dot_dimension_numbers<[1], [0], [0], [1], [0, 0, 1, 1], [], []>} : vector<256x128xbf16>, vector<128x128xbf16>, vector<256x128xf32> -> vector<256x128xf32>
    %33 = arith.addf %28, %32 : vector<256x128xf32>
    %c0_38 = arith.constant 0 : index
    %c0_39 = arith.constant 0 : index
    %34 = vector.load %arg8[%c0_38, %c0_39] : memref<256x128xf32, #tpu.memory_space<vmem>>, vector<256x128xf32>
    tpu.vector_store %arg8[%c0_38, %c0_39], %33 {strides = array<i32>} : memref<256x128xf32, #tpu.memory_space<vmem>>, vector<256x128xf32>,
    %c0_40 = arith.constant 0 : index
    %c2 = arith.constant 2 : index
    %c0_41 = arith.constant 0 : index
    %35 = vector.load %arg7[%c0_40, %c2, %c0_41] : memref<18x18x128xbf16, #tpu.memory_space<vmem>>, vector<16x16x128xbf16>
    %c0_42 = arith.constant 0 : index
    %c0_43 = arith.constant 0 : index
    %36 = vector.load %arg8[%c0_42, %c0_43] : memref<256x128xf32, #tpu.memory_space<vmem>>, vector<256x128xf32>
    %37 = vector.shape_cast %35 : vector<16x16x128xbf16> to vector<256x128xbf16>
    %c0_44 = arith.constant 0 : index
    %c2_45 = arith.constant 2 : index
    %c0_46 = arith.constant 0 : index
    %c0_47 = arith.constant 0 : index
    %38 = vector.load %arg2[%c0_44, %c2_45, %c0_46, %c0_47] : memref<3x3x128x128xbf16, #tpu.memory_space<vmem>>, vector<1x1x128x128xbf16>
    %39 = vector.shape_cast %38 : vector<1x1x128x128xbf16> to vector<128x128xbf16>
    %cst_48 = arith.constant dense<0.000000e+00> : vector<256x128xf32>
    %40 = tpu.matmul %37, %39, %cst_48 {dimension_numbers = #tpu.dot_dimension_numbers<[1], [0], [0], [1], [0, 0, 1, 1], [], []>} : vector<256x128xbf16>, vector<128x128xbf16>, vector<256x128xf32> -> vector<256x128xf32>
    %41 = arith.addf %36, %40 : vector<256x128xf32>
    %c0_49 = arith.constant 0 : index
    %c0_50 = arith.constant 0 : index
    %42 = vector.load %arg8[%c0_49, %c0_50] : memref<256x128xf32, #tpu.memory_space<vmem>>, vector<256x128xf32>
    tpu.vector_store %arg8[%c0_49, %c0_50], %41 {strides = array<i32>} : memref<256x128xf32, #tpu.memory_space<vmem>>, vector<256x128xf32>,
    %c1_51 = arith.constant 1 : index
    %c0_52 = arith.constant 0 : index
    %c0_53 = arith.constant 0 : index
    %43 = vector.load %arg7[%c1_51, %c0_52, %c0_53] : memref<18x18x128xbf16, #tpu.memory_space<vmem>>, vector<16x16x128xbf16>
    %c0_54 = arith.constant 0 : index
    %c0_55 = arith.constant 0 : index
    %44 = vector.load %arg8[%c0_54, %c0_55] : memref<256x128xf32, #tpu.memory_space<vmem>>, vector<256x128xf32>
    %45 = vector.shape_cast %43 : vector<16x16x128xbf16> to vector<256x128xbf16>
    %c1_56 = arith.constant 1 : index
    %c0_57 = arith.constant 0 : index
    %c0_58 = arith.constant 0 : index
    %c0_59 = arith.constant 0 : index
    %46 = vector.load %arg2[%c1_56, %c0_57, %c0_58, %c0_59] : memref<3x3x128x128xbf16, #tpu.memory_space<vmem>>, vector<1x1x128x128xbf16>
    %47 = vector.shape_cast %46 : vector<1x1x128x128xbf16> to vector<128x128xbf16>
    %cst_60 = arith.constant dense<0.000000e+00> : vector<256x128xf32>
    %48 = tpu.matmul %45, %47, %cst_60 {dimension_numbers = #tpu.dot_dimension_numbers<[1], [0], [0], [1], [0, 0, 1, 1], [], []>} : vector<256x128xbf16>, vector<128x128xbf16>, vector<256x128xf32> -> vector<256x128xf32>
    %49 = arith.addf %44, %48 : vector<256x128xf32>
    %c0_61 = arith.constant 0 : index
    %c0_62 = arith.constant 0 : index
    %50 = vector.load %arg8[%c0_61, %c0_62] : memref<256x128xf32, #tpu.memory_space<vmem>>, vector<256x128xf32>
    tpu.vector_store %arg8[%c0_61, %c0_62], %49 {strides = array<i32>} : memref<256x128xf32, #tpu.memory_space<vmem>>, vector<256x128xf32>,
    %c1_63 = arith.constant 1 : index
    %c1_64 = arith.constant 1 : index
    %c0_65 = arith.constant 0 : index
    %51 = vector.load %arg7[%c1_63, %c1_64, %c0_65] : memref<18x18x128xbf16, #tpu.memory_space<vmem>>, vector<16x16x128xbf16>
    %c0_66 = arith.constant 0 : index
    %c0_67 = arith.constant 0 : index
    %52 = vector.load %arg8[%c0_66, %c0_67] : memref<256x128xf32, #tpu.memory_space<vmem>>, vector<256x128xf32>
    %53 = vector.shape_cast %51 : vector<16x16x128xbf16> to vector<256x128xbf16>
    %c1_68 = arith.constant 1 : index
    %c1_69 = arith.constant 1 : index
    %c0_70 = arith.constant 0 : index
    %c0_71 = arith.constant 0 : index
    %54 = vector.load %arg2[%c1_68, %c1_69, %c0_70, %c0_71] : memref<3x3x128x128xbf16, #tpu.memory_space<vmem>>, vector<1x1x128x128xbf16>
    %55 = vector.shape_cast %54 : vector<1x1x128x128xbf16> to vector<128x128xbf16>
    %cst_72 = arith.constant dense<0.000000e+00> : vector<256x128xf32>
    %56 = tpu.matmul %53, %55, %cst_72 {dimension_numbers = #tpu.dot_dimension_numbers<[1], [0], [0], [1], [0, 0, 1, 1], [], []>} : vector<256x128xbf16>, vector<128x128xbf16>, vector<256x128xf32> -> vector<256x128xf32>
    %57 = arith.addf %52, %56 : vector<256x128xf32>
    %c0_73 = arith.constant 0 : index
    %c0_74 = arith.constant 0 : index
    %58 = vector.load %arg8[%c0_73, %c0_74] : memref<256x128xf32, #tpu.memory_space<vmem>>, vector<256x128xf32>
    tpu.vector_store %arg8[%c0_73, %c0_74], %57 {strides = array<i32>} : memref<256x128xf32, #tpu.memory_space<vmem>>, vector<256x128xf32>,
    %c1_75 = arith.constant 1 : index
    %c2_76 = arith.constant 2 : index
    %c0_77 = arith.constant 0 : index
    %59 = vector.load %arg7[%c1_75, %c2_76, %c0_77] : memref<18x18x128xbf16, #tpu.memory_space<vmem>>, vector<16x16x128xbf16>
    %c0_78 = arith.constant 0 : index
    %c0_79 = arith.constant 0 : index
    %60 = vector.load %arg8[%c0_78, %c0_79] : memref<256x128xf32, #tpu.memory_space<vmem>>, vector<256x128xf32>
    %61 = vector.shape_cast %59 : vector<16x16x128xbf16> to vector<256x128xbf16>
    %c1_80 = arith.constant 1 : index
    %c2_81 = arith.constant 2 : index
    %c0_82 = arith.constant 0 : index
    %c0_83 = arith.constant 0 : index
    %62 = vector.load %arg2[%c1_80, %c2_81, %c0_82, %c0_83] : memref<3x3x128x128xbf16, #tpu.memory_space<vmem>>, vector<1x1x128x128xbf16>
    %63 = vector.shape_cast %62 : vector<1x1x128x128xbf16> to vector<128x128xbf16>
    %cst_84 = arith.constant dense<0.000000e+00> : vector<256x128xf32>
    %64 = tpu.matmul %61, %63, %cst_84 {dimension_numbers = #tpu.dot_dimension_numbers<[1], [0], [0], [1], [0, 0, 1, 1], [], []>} : vector<256x128xbf16>, vector<128x128xbf16>, vector<256x128xf32> -> vector<256x128xf32>
    %65 = arith.addf %60, %64 : vector<256x128xf32>
    %c0_85 = arith.constant 0 : index
    %c0_86 = arith.constant 0 : index
    %66 = vector.load %arg8[%c0_85, %c0_86] : memref<256x128xf32, #tpu.memory_space<vmem>>, vector<256x128xf32>
    tpu.vector_store %arg8[%c0_85, %c0_86], %65 {strides = array<i32>} : memref<256x128xf32, #tpu.memory_space<vmem>>, vector<256x128xf32>,
    %c2_87 = arith.constant 2 : index
    %c0_88 = arith.constant 0 : index
    %c0_89 = arith.constant 0 : index
    %67 = vector.load %arg7[%c2_87, %c0_88, %c0_89] : memref<18x18x128xbf16, #tpu.memory_space<vmem>>, vector<16x16x128xbf16>
    %c0_90 = arith.constant 0 : index
    %c0_91 = arith.constant 0 : index
    %68 = vector.load %arg8[%c0_90, %c0_91] : memref<256x128xf32, #tpu.memory_space<vmem>>, vector<256x128xf32>
    %69 = vector.shape_cast %67 : vector<16x16x128xbf16> to vector<256x128xbf16>
    %c2_92 = arith.constant 2 : index
    %c0_93 = arith.constant 0 : index
    %c0_94 = arith.constant 0 : index
    %c0_95 = arith.constant 0 : index
    %70 = vector.load %arg2[%c2_92, %c0_93, %c0_94, %c0_95] : memref<3x3x128x128xbf16, #tpu.memory_space<vmem>>, vector<1x1x128x128xbf16>
    %71 = vector.shape_cast %70 : vector<1x1x128x128xbf16> to vector<128x128xbf16>
    %cst_96 = arith.constant dense<0.000000e+00> : vector<256x128xf32>
    %72 = tpu.matmul %69, %71, %cst_96 {dimension_numbers = #tpu.dot_dimension_numbers<[1], [0], [0], [1], [0, 0, 1, 1], [], []>} : vector<256x128xbf16>, vector<128x128xbf16>, vector<256x128xf32> -> vector<256x128xf32>
    %73 = arith.addf %68, %72 : vector<256x128xf32>
    %c0_97 = arith.constant 0 : index
    %c0_98 = arith.constant 0 : index
    %74 = vector.load %arg8[%c0_97, %c0_98] : memref<256x128xf32, #tpu.memory_space<vmem>>, vector<256x128xf32>
    tpu.vector_store %arg8[%c0_97, %c0_98], %73 {strides = array<i32>} : memref<256x128xf32, #tpu.memory_space<vmem>>, vector<256x128xf32>,
    %c2_99 = arith.constant 2 : index
    %c1_100 = arith.constant 1 : index
    %c0_101 = arith.constant 0 : index
    %75 = vector.load %arg7[%c2_99, %c1_100, %c0_101] : memref<18x18x128xbf16, #tpu.memory_space<vmem>>, vector<16x16x128xbf16>
    %c0_102 = arith.constant 0 : index
    %c0_103 = arith.constant 0 : index
    %76 = vector.load %arg8[%c0_102, %c0_103] : memref<256x128xf32, #tpu.memory_space<vmem>>, vector<256x128xf32>
    %77 = vector.shape_cast %75 : vector<16x16x128xbf16> to vector<256x128xbf16>
    %c2_104 = arith.constant 2 : index
    %c1_105 = arith.constant 1 : index
    %c0_106 = arith.constant 0 : index
    %c0_107 = arith.constant 0 : index
    %78 = vector.load %arg2[%c2_104, %c1_105, %c0_106, %c0_107] : memref<3x3x128x128xbf16, #tpu.memory_space<vmem>>, vector<1x1x128x128xbf16>
    %79 = vector.shape_cast %78 : vector<1x1x128x128xbf16> to vector<128x128xbf16>
    %cst_108 = arith.constant dense<0.000000e+00> : vector<256x128xf32>
    %80 = tpu.matmul %77, %79, %cst_108 {dimension_numbers = #tpu.dot_dimension_numbers<[1], [0], [0], [1], [0, 0, 1, 1], [], []>} : vector<256x128xbf16>, vector<128x128xbf16>, vector<256x128xf32> -> vector<256x128xf32>
    %81 = arith.addf %76, %80 : vector<256x128xf32>
    %c0_109 = arith.constant 0 : index
    %c0_110 = arith.constant 0 : index
    %82 = vector.load %arg8[%c0_109, %c0_110] : memref<256x128xf32, #tpu.memory_space<vmem>>, vector<256x128xf32>
    tpu.vector_store %arg8[%c0_109, %c0_110], %81 {strides = array<i32>} : memref<256x128xf32, #tpu.memory_space<vmem>>, vector<256x128xf32>,
    %c2_111 = arith.constant 2 : index
    %c2_112 = arith.constant 2 : index
    %c0_113 = arith.constant 0 : index
    %83 = vector.load %arg7[%c2_111, %c2_112, %c0_113] : memref<18x18x128xbf16, #tpu.memory_space<vmem>>, vector<16x16x128xbf16>
    %c0_114 = arith.constant 0 : index
    %c0_115 = arith.constant 0 : index
    %84 = vector.load %arg8[%c0_114, %c0_115] : memref<256x128xf32, #tpu.memory_space<vmem>>, vector<256x128xf32>
    %85 = vector.shape_cast %83 : vector<16x16x128xbf16> to vector<256x128xbf16>
    %c2_116 = arith.constant 2 : index
    %c2_117 = arith.constant 2 : index
    %c0_118 = arith.constant 0 : index
    %c0_119 = arith.constant 0 : index
    %86 = vector.load %arg2[%c2_116, %c2_117, %c0_118, %c0_119] : memref<3x3x128x128xbf16, #tpu.memory_space<vmem>>, vector<1x1x128x128xbf16>
    %87 = vector.shape_cast %86 : vector<1x1x128x128xbf16> to vector<128x128xbf16>
    %cst_120 = arith.constant dense<0.000000e+00> : vector<256x128xf32>
    %88 = tpu.matmul %85, %87, %cst_120 {dimension_numbers = #tpu.dot_dimension_numbers<[1], [0], [0], [1], [0, 0, 1, 1], [], []>} : vector<256x128xbf16>, vector<128x128xbf16>, vector<256x128xf32> -> vector<256x128xf32>
    %89 = arith.addf %84, %88 : vector<256x128xf32>
    %c0_121 = arith.constant 0 : index
    %c0_122 = arith.constant 0 : index
    %90 = vector.load %arg8[%c0_121, %c0_122] : memref<256x128xf32, #tpu.memory_space<vmem>>, vector<256x128xf32>
    tpu.vector_store %arg8[%c0_121, %c0_122], %89 {strides = array<i32>} : memref<256x128xf32, #tpu.memory_space<vmem>>, vector<256x128xf32>,
    %c0_123 = arith.constant 0 : index
    %c0_124 = arith.constant 0 : index
    %91 = vector.load %arg8[%c0_123, %c0_124] : memref<256x128xf32, #tpu.memory_space<vmem>>, vector<256x128xf32>
    %92 = vector.shape_cast %91 : vector<256x128xf32> to vector<16x16x128xf32>
    %93 = arith.truncf %92 : vector<16x16x128xf32> to vector<16x16x128xbf16>
    %c0_125 = arith.constant 0 : index
    %c0_126 = arith.constant 0 : index
    %c0_127 = arith.constant 0 : index
    %c0_128 = arith.constant 0 : index
    %94 = vector.load %arg5[%c0_125, %c0_126, %c0_127, %c0_128] : memref<1x16x16x128xbf16, #tpu.memory_space<vmem>>, vector<1x16x16x128xbf16>
    %95 = vector.shape_cast %94 : vector<1x16x16x128xbf16> to vector<16x16x128xbf16>
    %96 = vector.shape_cast %93 : vector<16x16x128xbf16> to vector<1x16x16x128xbf16>
    tpu.vector_store %arg5[%c0_125, %c0_126, %c0_127, %c0_128], %96 {strides = array<i32>} : memref<1x16x16x128xbf16, #tpu.memory_space<vmem>>, vector<1x16x16x128xbf16>,
    %cst_129 = arith.constant dense<0.000000e+00> : vector<128xf32>
    %97 = vector.multi_reduction <add>, %91, %cst_129 [0] : vector<256x128xf32> to vector<128xf32>
    %98 = vector.shape_cast %97 : vector<128xf32> to vector<1x128xf32>
    %99 = arith.mulf %91, %91 : vector<256x128xf32>
    %cst_130 = arith.constant dense<0.000000e+00> : vector<128xf32>
    %100 = vector.multi_reduction <add>, %99, %cst_130 [0] : vector<256x128xf32> to vector<128xf32>
    %101 = vector.shape_cast %100 : vector<128xf32> to vector<1x128xf32>
    %102 = tpu.concatenate %98, %101 in 0 : vector<1x128xf32>, vector<1x128xf32> -> vector<2x128xf32>
    %c0_131 = arith.constant 0 : index
    %c0_132 = arith.constant 0 : index
    %c0_133 = arith.constant 0 : index
    %103 = vector.load %arg6[%c0_131, %c0_132, %c0_133] : memref<1x2x128xf32, #tpu.memory_space<vmem>>, vector<1x2x128xf32>
    %104 = vector.shape_cast %103 : vector<1x2x128xf32> to vector<2x128xf32>
    %105 = vector.shape_cast %102 : vector<2x128xf32> to vector<1x2x128xf32>
    tpu.vector_store %arg6[%c0_131, %c0_132, %c0_133], %105 {strides = array<i32>} : memref<1x2x128xf32, #tpu.memory_space<vmem>>, vector<1x2x128xf32>,
    return
  }
  func.func @transform_0(%arg0: i32) -> (i32, i32, i32, i32) {
    %c0_i32 = arith.constant 0 : i32
    %c0_i32_0 = arith.constant 0 : i32
    %c0_i32_1 = arith.constant 0 : i32
    %c0_i32_2 = arith.constant 0 : i32
    return %arg0, %c0_i32, %c0_i32_0, %c0_i32_1 : i32, i32, i32, i32
  }
  func.func @transform_1(%arg0: i32) -> (i32, i32, i32, i32) {
    %c0_i32 = arith.constant 0 : i32
    %c0_i32_0 = arith.constant 0 : i32
    %c0_i32_1 = arith.constant 0 : i32
    %c0_i32_2 = arith.constant 0 : i32
    %c0_i32_3 = arith.constant 0 : i32
    return %c0_i32, %c0_i32_0, %c0_i32_1, %c0_i32_2 : i32, i32, i32, i32
  }
  func.func @transform_2(%arg0: i32) -> (i32, i32) {
    %c0_i32 = arith.constant 0 : i32
    %c0_i32_0 = arith.constant 0 : i32
    %c0_i32_1 = arith.constant 0 : i32
    return %c0_i32, %c0_i32_0 : i32, i32
  }
  func.func @transform_3(%arg0: i32) -> (i32, i32) {
    %c0_i32 = arith.constant 0 : i32
    %c0_i32_0 = arith.constant 0 : i32
    %c0_i32_1 = arith.constant 0 : i32
    return %c0_i32, %c0_i32_0 : i32, i32
  }
  func.func @transform_4(%arg0: i32) -> (i32, i32, i32, i32) {
    %c0_i32 = arith.constant 0 : i32
    %c0_i32_0 = arith.constant 0 : i32
    %c0_i32_1 = arith.constant 0 : i32
    %c0_i32_2 = arith.constant 0 : i32
    return %arg0, %c0_i32, %c0_i32_0, %c0_i32_1 : i32, i32, i32, i32
  }
  func.func @transform_5(%arg0: i32) -> (i32, i32, i32) {
    %c0_i32 = arith.constant 0 : i32
    %c0_i32_0 = arith.constant 0 : i32
    %c0_i32_1 = arith.constant 0 : i32
    return %arg0, %c0_i32, %c0_i32_0 : i32, i32, i32
  }
}

module attributes {stable_mosaic.version = 11 : i64} {
  func.func @_bn_relu_conv1x1_kernel(%arg0: i32, %arg1: memref<256x128xbf16, #tpu.memory_space<vmem>>, %arg2: memref<128x128xbf16, #tpu.memory_space<vmem>>, %arg3: memref<1x128xf32, #tpu.memory_space<vmem>>, %arg4: memref<1x128xf32, #tpu.memory_space<vmem>>, %arg5: memref<256x128xf32, #tpu.memory_space<vmem>>, %arg6: memref<1x2x128xf32, #tpu.memory_space<vmem>>) attributes {dimension_semantics = [#tpu.dimension_semantics<parallel>], iteration_bounds = array<i64: 2>, scalar_prefetch = 0 : i64, scratch_operands = 0 : i64, tpu.core_type = #tpu.core_type<tc>, window_params = [{transform_indices = @transform_0, window_bounds = array<i64: 256, 128>}, {pipeline_mode = #tpu.pipeline_mode<synchronous>, transform_indices = @transform_1, window_bounds = array<i64: 128, 128>}, {pipeline_mode = #tpu.pipeline_mode<synchronous>, transform_indices = @transform_2, window_bounds = array<i64: 1, 128>}, {pipeline_mode = #tpu.pipeline_mode<synchronous>, transform_indices = @transform_3, window_bounds = array<i64: 1, 128>}, {transform_indices = @transform_4, window_bounds = array<i64: 256, 128>}, {transform_indices = @transform_5, window_bounds = array<i64: 1, 2, 128>}]} {
    %c0 = arith.constant 0 : index
    %c0_0 = arith.constant 0 : index
    %0 = vector.load %arg1[%c0, %c0_0] : memref<256x128xbf16, #tpu.memory_space<vmem>>, vector<256x128xbf16>
    %1 = arith.extf %0 : vector<256x128xbf16> to vector<256x128xf32>
    %c0_1 = arith.constant 0 : index
    %c0_2 = arith.constant 0 : index
    %2 = vector.load %arg3[%c0_1, %c0_2] : memref<1x128xf32, #tpu.memory_space<vmem>>, vector<1x128xf32>
    %3 = vector.broadcast %2 : vector<1x128xf32> to vector<256x128xf32>
    %4 = arith.mulf %1, %3 : vector<256x128xf32>
    %c0_3 = arith.constant 0 : index
    %c0_4 = arith.constant 0 : index
    %5 = vector.load %arg4[%c0_3, %c0_4] : memref<1x128xf32, #tpu.memory_space<vmem>>, vector<1x128xf32>
    %6 = vector.broadcast %5 : vector<1x128xf32> to vector<256x128xf32>
    %7 = arith.addf %4, %6 : vector<256x128xf32>
    %cst = arith.constant 0.000000e+00 : f32
    %8 = vector.broadcast %cst : f32 to vector<256x128xf32>
    %9 = arith.maximumf %7, %8 : vector<256x128xf32>
    %10 = arith.truncf %9 : vector<256x128xf32> to vector<256x128xbf16>
    %c0_5 = arith.constant 0 : index
    %c0_6 = arith.constant 0 : index
    %11 = vector.load %arg2[%c0_5, %c0_6] : memref<128x128xbf16, #tpu.memory_space<vmem>>, vector<128x128xbf16>
    %cst_7 = arith.constant dense<0.000000e+00> : vector<256x128xf32>
    %12 = tpu.matmul %10, %11, %cst_7 {dimension_numbers = #tpu.dot_dimension_numbers<[1], [0], [0], [1], [0, 0, 1, 1], [], []>} : vector<256x128xbf16>, vector<128x128xbf16>, vector<256x128xf32> -> vector<256x128xf32>
    %c0_8 = arith.constant 0 : index
    %c0_9 = arith.constant 0 : index
    %13 = vector.load %arg5[%c0_8, %c0_9] : memref<256x128xf32, #tpu.memory_space<vmem>>, vector<256x128xf32>
    tpu.vector_store %arg5[%c0_8, %c0_9], %12 {strides = array<i32>} : memref<256x128xf32, #tpu.memory_space<vmem>>, vector<256x128xf32>,
    %cst_10 = arith.constant dense<0.000000e+00> : vector<128xf32>
    %14 = vector.multi_reduction <add>, %12, %cst_10 [0] : vector<256x128xf32> to vector<128xf32>
    %15 = vector.shape_cast %14 : vector<128xf32> to vector<1x128xf32>
    %16 = arith.mulf %12, %12 : vector<256x128xf32>
    %cst_11 = arith.constant dense<0.000000e+00> : vector<128xf32>
    %17 = vector.multi_reduction <add>, %16, %cst_11 [0] : vector<256x128xf32> to vector<128xf32>
    %18 = vector.shape_cast %17 : vector<128xf32> to vector<1x128xf32>
    %19 = tpu.concatenate %15, %18 in 0 : vector<1x128xf32>, vector<1x128xf32> -> vector<2x128xf32>
    %c0_12 = arith.constant 0 : index
    %c0_13 = arith.constant 0 : index
    %c0_14 = arith.constant 0 : index
    %20 = vector.load %arg6[%c0_12, %c0_13, %c0_14] : memref<1x2x128xf32, #tpu.memory_space<vmem>>, vector<1x2x128xf32>
    %21 = vector.shape_cast %20 : vector<1x2x128xf32> to vector<2x128xf32>
    %22 = vector.shape_cast %19 : vector<2x128xf32> to vector<1x2x128xf32>
    tpu.vector_store %arg6[%c0_12, %c0_13, %c0_14], %22 {strides = array<i32>} : memref<1x2x128xf32, #tpu.memory_space<vmem>>, vector<1x2x128xf32>,
    return
  }
  func.func @transform_0(%arg0: i32) -> (i32, i32) {
    %c0_i32 = arith.constant 0 : i32
    %c0_i32_0 = arith.constant 0 : i32
    return %arg0, %c0_i32 : i32, i32
  }
  func.func @transform_1(%arg0: i32) -> (i32, i32) {
    %c0_i32 = arith.constant 0 : i32
    %c0_i32_0 = arith.constant 0 : i32
    %c0_i32_1 = arith.constant 0 : i32
    return %c0_i32, %c0_i32_0 : i32, i32
  }
  func.func @transform_2(%arg0: i32) -> (i32, i32) {
    %c0_i32 = arith.constant 0 : i32
    %c0_i32_0 = arith.constant 0 : i32
    %c0_i32_1 = arith.constant 0 : i32
    return %c0_i32, %c0_i32_0 : i32, i32
  }
  func.func @transform_3(%arg0: i32) -> (i32, i32) {
    %c0_i32 = arith.constant 0 : i32
    %c0_i32_0 = arith.constant 0 : i32
    %c0_i32_1 = arith.constant 0 : i32
    return %c0_i32, %c0_i32_0 : i32, i32
  }
  func.func @transform_4(%arg0: i32) -> (i32, i32) {
    %c0_i32 = arith.constant 0 : i32
    %c0_i32_0 = arith.constant 0 : i32
    return %arg0, %c0_i32 : i32, i32
  }
  func.func @transform_5(%arg0: i32) -> (i32, i32, i32) {
    %c0_i32 = arith.constant 0 : i32
    %c0_i32_0 = arith.constant 0 : i32
    %c0_i32_1 = arith.constant 0 : i32
    return %arg0, %c0_i32, %c0_i32_0 : i32, i32, i32
  }
}

module attributes {stable_mosaic.version = 11 : i64} {
  func.func @_bn_add_relu_kernel(%arg0: i32, %arg1: memref<256x128xf32, #tpu.memory_space<vmem>>, %arg2: memref<256x128xf32, #tpu.memory_space<vmem>>, %arg3: memref<1x128xf32, #tpu.memory_space<vmem>>, %arg4: memref<1x128xf32, #tpu.memory_space<vmem>>, %arg5: memref<256x128xf32, #tpu.memory_space<vmem>>) attributes {dimension_semantics = [#tpu.dimension_semantics<parallel>], iteration_bounds = array<i64: 2>, scalar_prefetch = 0 : i64, scratch_operands = 0 : i64, tpu.core_type = #tpu.core_type<tc>, window_params = [{transform_indices = @transform_0, window_bounds = array<i64: 256, 128>}, {transform_indices = @transform_1, window_bounds = array<i64: 256, 128>}, {pipeline_mode = #tpu.pipeline_mode<synchronous>, transform_indices = @transform_2, window_bounds = array<i64: 1, 128>}, {pipeline_mode = #tpu.pipeline_mode<synchronous>, transform_indices = @transform_3, window_bounds = array<i64: 1, 128>}, {transform_indices = @transform_4, window_bounds = array<i64: 256, 128>}]} {
    %c0 = arith.constant 0 : index
    %c0_0 = arith.constant 0 : index
    %0 = vector.load %arg1[%c0, %c0_0] : memref<256x128xf32, #tpu.memory_space<vmem>>, vector<256x128xf32>
    %c0_1 = arith.constant 0 : index
    %c0_2 = arith.constant 0 : index
    %1 = vector.load %arg3[%c0_1, %c0_2] : memref<1x128xf32, #tpu.memory_space<vmem>>, vector<1x128xf32>
    %2 = vector.broadcast %1 : vector<1x128xf32> to vector<256x128xf32>
    %3 = arith.mulf %0, %2 : vector<256x128xf32>
    %c0_3 = arith.constant 0 : index
    %c0_4 = arith.constant 0 : index
    %4 = vector.load %arg4[%c0_3, %c0_4] : memref<1x128xf32, #tpu.memory_space<vmem>>, vector<1x128xf32>
    %5 = vector.broadcast %4 : vector<1x128xf32> to vector<256x128xf32>
    %6 = arith.addf %3, %5 : vector<256x128xf32>
    %c0_5 = arith.constant 0 : index
    %c0_6 = arith.constant 0 : index
    %7 = vector.load %arg2[%c0_5, %c0_6] : memref<256x128xf32, #tpu.memory_space<vmem>>, vector<256x128xf32>
    %8 = arith.addf %6, %7 : vector<256x128xf32>
    %cst = arith.constant 0.000000e+00 : f32
    %9 = vector.broadcast %cst : f32 to vector<256x128xf32>
    %10 = arith.maximumf %8, %9 : vector<256x128xf32>
    %c0_7 = arith.constant 0 : index
    %c0_8 = arith.constant 0 : index
    %11 = vector.load %arg5[%c0_7, %c0_8] : memref<256x128xf32, #tpu.memory_space<vmem>>, vector<256x128xf32>
    tpu.vector_store %arg5[%c0_7, %c0_8], %10 {strides = array<i32>} : memref<256x128xf32, #tpu.memory_space<vmem>>, vector<256x128xf32>,
    return
  }
  func.func @transform_0(%arg0: i32) -> (i32, i32) {
    %c0_i32 = arith.constant 0 : i32
    %c0_i32_0 = arith.constant 0 : i32
    return %arg0, %c0_i32 : i32, i32
  }
  func.func @transform_1(%arg0: i32) -> (i32, i32) {
    %c0_i32 = arith.constant 0 : i32
    %c0_i32_0 = arith.constant 0 : i32
    return %arg0, %c0_i32 : i32, i32
  }
  func.func @transform_2(%arg0: i32) -> (i32, i32) {
    %c0_i32 = arith.constant 0 : i32
    %c0_i32_0 = arith.constant 0 : i32
    %c0_i32_1 = arith.constant 0 : i32
    return %c0_i32, %c0_i32_0 : i32, i32
  }
  func.func @transform_3(%arg0: i32) -> (i32, i32) {
    %c0_i32 = arith.constant 0 : i32
    %c0_i32_0 = arith.constant 0 : i32
    %c0_i32_1 = arith.constant 0 : i32
    return %c0_i32, %c0_i32_0 : i32, i32
  }
  func.func @transform_4(%arg0: i32) -> (i32, i32) {
    %c0_i32 = arith.constant 0 : i32
    %c0_i32_0 = arith.constant 0 : i32
    return %arg0, %c0_i32 : i32, i32
  }
}

</mosaic_0001>

<bundles_post_ra>
// kernel: bottleneck_forward.7
= control target key start
LH: loop header
LB: loop body
LE: loop exit
PB: predicated region body
PF: predicated region fallthrough
CT: control target
= control target key end

     0   :  { %s579_s15 = smov 0   ;;  %s847_s0 = inlined_call_operand.vmem [shape: f32[512,128], index: 0, kind: input, shape index: {}]   ;;  %s848_s1 = inlined_call_operand.vmem [shape: f32[512,128], index: 1, kind: input, shape index: {}, may-alias: {1,4}]   ;;  %s849_s2 = inlined_call_operand.vmem [shape: f32[1,128], index: 2, kind: input, shape index: {}]   ;;  %s850_s3 = inlined_call_operand.vmem [shape: f32[1,128], index: 3, kind: input, shape index: {}]   ;;  %s851_s4 = inlined_call_operand.vmem [shape: f32[512,128], index: 4, kind: output, shape index: {}, may-alias: {1,4}]  }
   0x1 LB: > { %s523_s16 = sadd.s32 4294967295, %s552_s15   ;;  %p527_p0 = scmp.ge.s32.totalorder %s552_s15, 1  ;;  %s552_s15 = sphi %s579_s15, %s14_s15  }
   0x2   : > { %p174_p1 = scmp.lt.s32.totalorder %s552_s15, 3 }
   0x4   : > { %p175_p2 = pnand %p527_p0, %p174_p1 }
   0x5   : > { %s528_s17 = sshll.u32 (!%p175_p2), %s523_s16, 5 }
   0x6   : > { %178 = sbr.rel (%p175_p2) target bundleno = 65 (0x41), region = 36  ;;  %p206_p3 = scmp.lt.s32.totalorder (!%p175_p2), %s528_s17, 63 }
   0xb   : > { %s853_s17 = smov (!%p206_p3, %s528_s17), 63  ;;  %v590_v0 = vld [vmem:[%s849_s2] ss:$0 sm:$0xff] }
   0xc   : > { %s529_s20 = sshll.u32 %s853_s17, 3  ;;  %v605_v1 = vld [vmem:[%s850_s3] ss:$0 sm:$0xff] }
   0xd   : > { %s595_s23 = scalar_lea.vmem %s847_s0, %s529_s20  ;;  %s600_s26 = scalar_lea.vmem %s848_s1, %s529_s20 }
   0xe   : > { %v223_v2 = vld [vmem:[%s595_s23] sm:$0xff]  ;;  %s614_s5 = scalar_lea.vmem %s851_s4, %s529_s20  ;;  %v328_v8 = vld [vmem:[%s600_s26 + $0x8] sm:$0xff]  ;;  %v329_v9 = vld [vmem:[%s600_s26 + $0x10] sm:$0xff] }
   0xf   : > { %v259_v3 = vmul.f32 %v590_v0, %v223_v2  ;;  %v327_v4 = vld [vmem:[%s600_s26] sm:$0xff]  ;;  %v330_v10 = vld [vmem:[%s600_s26 + $0x18] sm:$0xff]  ;;  %v332_v12 = vld [vmem:[%s600_s26 + $0x28] sm:$0xff] }
  0x10   : > { %v331_v11 = vld [vmem:[%s600_s26 + $0x20] sm:$0xff]  ;;  %v333_v13 = vld [vmem:[%s600_s26 + $0x30] sm:$0xff]  ;;  %v334_v14 = vld [vmem:[%s600_s26 + $0x38] sm:$0xff] }
  0x11   : > { %v295_v5 = vadd.f32 %v605_v1, %v259_v3  ;;  %v624_v15 = vld [vmem:[%s600_s26 + $0x40] sm:$0xff]  ;;  %v627_v16 = vld [vmem:[%s600_s26 + $0x48] sm:$0xff]  ;;  %v630_v17 = vld [vmem:[%s600_s26 + $0x50] sm:$0xff] }
  0x12   : > { %v633_v18 = vld [vmem:[%s600_s26 + $0x58] sm:$0xff]  ;;  %v636_v19 = vld [vmem:[%s600_s26 + $0x60] sm:$0xff]  ;;  %v639_v20 = vld [vmem:[%s600_s26 + $0x68] sm:$0xff] }
  0x13   : > { %v359_v6 = vadd.f32 %v327_v4, %v295_v5  ;;  %v642_v21 = vld [vmem:[%s600_s26 + $0x70] sm:$0xff]  ;;  %v645_v22 = vld [vmem:[%s600_s26 + $0x78] sm:$0xff]  ;;  %v648_v23 = vld [vmem:[%s600_s26 + $0x80] sm:$0xff] }
  0x14   : > { %v651_v24 = vld [vmem:[%s600_s26 + $0x88] sm:$0xff]  ;;  %v654_v25 = vld [vmem:[%s600_s26 + $0x90] sm:$0xff]  ;;  %v657_v26 = vld [vmem:[%s600_s26 + $0x98] sm:$0xff] }
  0x15   : > { %v391_v7 = vmax.f32 %v359_v6, 0.0  ;;  %v660_v27 = vld [vmem:[%s600_s26 + $0xa0] sm:$0xff]  ;;  %v663_v28 = vld [vmem:[%s600_s26 + $0xa8] sm:$0xff]  ;;  %v666_v29 = vld [vmem:[%s600_s26 + $0xb0] sm:$0xff] }
  0x16   : > { %v669_v30 = vld [vmem:[%s600_s26 + $0xb8] sm:$0xff]  ;;  %v672_v31 = vld [vmem:[%s600_s26 + $0xc0] sm:$0xff]  ;;  %v675_v32 = vld [vmem:[%s600_s26 + $0xc8] sm:$0xff] }
  0x17   : > { %v678_v33 = vld [vmem:[%s600_s26 + $0xd0] sm:$0xff]  ;;  %v681_v34 = vld [vmem:[%s600_s26 + $0xd8] sm:$0xff]  ;;  %v684_v35 = vld [vmem:[%s600_s26 + $0xe0] sm:$0xff] }
  0x18   : > { %v687_v36 = vld [vmem:[%s600_s26 + $0xe8] sm:$0xff]  ;;  %v690_v37 = vld [vmem:[%s600_s26 + $0xf0] sm:$0xff]  ;;  %v693_v38 = vld [vmem:[%s600_s26 + $0xf8] sm:$0xff] }
  0x19   : > { %423 = vst [vmem:[%s614_s5] sm:$0xff] %v391_v7  ;;  %v224_v39 = vld [vmem:[%s595_s23 + $0x8] sm:$0xff]  ;;  %v225_v40 = vld [vmem:[%s595_s23 + $0x10] sm:$0xff]  ;;  %v226_v41 = vld [vmem:[%s595_s23 + $0x18] sm:$0xff] }
  0x1a   : > { %v260_v42 = vmul.f32 %v590_v0, %v224_v39  ;;  %v261_v43 = vmul.f32 %v590_v0, %v225_v40  ;;  %v262_v44 = vmul.f32 %v590_v0, %v226_v41  ;;  %v227_v45 = vld [vmem:[%s595_s23 + $0x20] sm:$0xff]  ;;  %v228_v46 = vld [vmem:[%s595_s23 + $0x28] sm:$0xff]  ;;  %v229_v47 = vld [vmem:[%s595_s23 + $0x30] sm:$0xff] }
  0x1b   : > { %v263_v48 = vmul.f32 %v590_v0, %v227_v45  ;;  %v264_v49 = vmul.f32 %v590_v0, %v228_v46  ;;  %v265_v50 = vmul.f32 %v590_v0, %v229_v47  ;;  %v230_v51 = vld [vmem:[%s595_s23 + $0x38] sm:$0xff]  ;;  %v231_v52 = vld [vmem:[%s595_s23 + $0x40] sm:$0xff]  ;;  %v232_v7 = vld [vmem:[%s595_s23 + $0x48] sm:$0xff] }
  0x1c   : > { %v296_v53 = vadd.f32 %v605_v1, %v260_v42  ;;  %v297_v54 = vadd.f32 %v605_v1, %v261_v43  ;;  %v298_v55 = vadd.f32 %v605_v1, %v262_v44  ;;  %v266_v56 = vmul.f32 %v590_v0, %v230_v51  ;;  %v233_v39 = vld [vmem:[%s595_s23 + $0x50] sm:$0xff]  ;;  %v234_v40 = vld [vmem:[%s595_s23 + $0x58] sm:$0xff]  ;;  %v235_v43 = vld [vmem:[%s595_s23 + $0x60] sm:$0xff] }
  0x1d   : > { %v299_v57 = vadd.f32 %v605_v1, %v263_v48  ;;  %v300_v58 = vadd.f32 %v605_v1, %v264_v49  ;;  %v301_v59 = vadd.f32 %v605_v1, %v265_v50  ;;  %v267_v60 = vmul.f32 %v590_v0, %v231_v52  ;;  %v237_v44 = vld [vmem:[%s595_s23 + $0x70] sm:$0xff]  ;;  %v238_v46 = vld [vmem:[%s595_s23 + $0x78] sm:$0xff] }
  0x1e   : > { %v360_v61 = vadd.f32 %v328_v8, %v296_v53  ;;  %v361_v62 = vadd.f32 %v329_v9, %v297_v54  ;;  %v362_v63 = vadd.f32 %v330_v10, %v298_v55  ;;  %v302_v2 = vadd.f32 %v605_v1, %v266_v56  ;;  %v236_v10 = vld [vmem:[%s595_s23 + $0x68] sm:$0xff] }
  0x1f   : > { %v363_v3 = vadd.f32 %v331_v11, %v299_v57  ;;  %v364_v4 = vadd.f32 %v332_v12, %v300_v58  ;;  %v365_v5 = vadd.f32 %v333_v13, %v301_v59  ;;  %v303_v6 = vadd.f32 %v605_v1, %v267_v60 }
  0x20   : > { %v392_v41 = vmax.f32 %v360_v61, 0.0  ;;  %v393_v42 = vmax.f32 %v361_v62, 0.0  ;;  %v394_v8 = vmax.f32 %v362_v63, 0.0  ;;  %v366_v9 = vadd.f32 %v334_v14, %v302_v2  ;;  %v239_v14 = vld [vmem:[%s595_s23 + $0x80] sm:$0xff] }
  0x21   : > { %v395_v45 = vmax.f32 %v363_v3, 0.0  ;;  %v396_v11 = vmax.f32 %v364_v4, 0.0  ;;  %v397_v12 = vmax.f32 %v365_v5, 0.0  ;;  %v367_v13 = vadd.f32 %v624_v15, %v303_v6  ;;  %v240_v4 = vld [vmem:[%s595_s23 + $0x88] sm:$0xff] }
  0x22   : > { %424 = vst [vmem:[%s614_s5 + $0x8] sm:$0xff] %v392_v41  ;;  %v398_v47 = vmax.f32 %v366_v9, 0.0  ;;  %v268_v48 = vmul.f32 %v590_v0, %v232_v7  ;;  %v269_v49 = vmul.f32 %v590_v0, %v233_v39  ;;  %v270_v50 = vmul.f32 %v590_v0, %v234_v40  ;;  %v245_v9 = vld [vmem:[%s595_s23 + $0xb0] sm:$0xff] }
  0x23   : > { %425 = vst [vmem:[%s614_s5 + $0x10] sm:$0xff] %v393_v42  ;;  %v399_v51 = vmax.f32 %v367_v13, 0.0  ;;  %v271_v52 = vmul.f32 %v590_v0, %v235_v43  ;;  %v272_v53 = vmul.f32 %v590_v0, %v236_v10  ;;  %v273_v15 = vmul.f32 %v590_v0, %v237_v44  ;;  %v246_v44 = vld [vmem:[%s595_s23 + $0xb8] sm:$0xff] }
  0x24   : > { %426 = vst [vmem:[%s614_s5 + $0x18] sm:$0xff] %v394_v8  ;;  %v304_v54 = vadd.f32 %v605_v1, %v268_v48  ;;  %v305_v55 = vadd.f32 %v605_v1, %v269_v49  ;;  %v306_v56 = vadd.f32 %v605_v1, %v270_v50  ;;  %v274_v57 = vmul.f32 %v590_v0, %v238_v46 }
  0x25   : > { %427 = vst [vmem:[%s614_s5 + $0x20] sm:$0xff] %v395_v45  ;;  %v307_v58 = vadd.f32 %v605_v1, %v271_v52  ;;  %v308_v59 = vadd.f32 %v605_v1, %v272_v53  ;;  %v309_v60 = vadd.f32 %v605_v1, %v273_v15  ;;  %v275_v61 = vmul.f32 %v590_v0, %v239_v14 }
  0x26   : > { %428 = vst [vmem:[%s614_s5 + $0x28] sm:$0xff] %v396_v11  ;;  %v368_v62 = vadd.f32 %v627_v16, %v304_v54  ;;  %v369_v63 = vadd.f32 %v630_v17, %v305_v55  ;;  %v370_v2 = vadd.f32 %v633_v18, %v306_v56  ;;  %v310_v3 = vadd.f32 %v605_v1, %v274_v57  ;;  %v241_v16 = vld [vmem:[%s595_s23 + $0x90] sm:$0xff]  ;;  %v242_v17 = vld [vmem:[%s595_s23 + $0x98] sm:$0xff]  ;;  %v243_v18 = vld [vmem:[%s595_s23 + $0xa0] sm:$0xff] }
  0x27   : > { %429 = vst [vmem:[%s614_s5 + $0x30] sm:$0xff] %v397_v12  ;;  %v371_v5 = vadd.f32 %v636_v19, %v307_v58  ;;  %v372_v6 = vadd.f32 %v639_v20, %v308_v59  ;;  %v373_v7 = vadd.f32 %v642_v21, %v309_v60  ;;  %v311_v39 = vadd.f32 %v605_v1, %v275_v61  ;;  %v244_v19 = vld [vmem:[%s595_s23 + $0xa8] sm:$0xff] }
  0x28   : > { %430 = vst [vmem:[%s614_s5 + $0x38] sm:$0xff] %v398_v47  ;;  %v400_v40 = vmax.f32 %v368_v62, 0.0  ;;  %v401_v41 = vmax.f32 %v369_v63, 0.0  ;;  %v402_v42 = vmax.f32 %v370_v2, 0.0  ;;  %v374_v8 = vadd.f32 %v645_v22, %v310_v3  ;;  %v247_v22 = vld [vmem:[%s595_s23 + $0xc0] sm:$0xff]  ;;  %v248_v59 = vld [vmem:[%s595_s23 + $0xc8] sm:$0xff] }
  0x29   : > { %431 = vst [vmem:[%s614_s5 + $0x40] sm:$0xff] %v399_v51  ;;  %v403_v20 = vmax.f32 %v371_v5, 0.0  ;;  %v404_v21 = vmax.f32 %v372_v6, 0.0  ;;  %v405_v43 = vmax.f32 %v373_v7, 0.0  ;;  %v375_v10 = vadd.f32 %v648_v23, %v311_v39  ;;  %v250_v63 = vld [vmem:[%s595_s23 + $0xd8] sm:$0xff]  ;;  %v252_v6 = vld [vmem:[%s595_s23 + $0xe8] sm:$0xff] }
  0x2a   : > { %432 = vst [vmem:[%s614_s5 + $0x48] sm:$0xff] %v400_v40  ;;  %v406_v45 = vmax.f32 %v374_v8, 0.0  ;;  %v276_v11 = vmul.f32 %v590_v0, %v240_v4  ;;  %v277_v12 = vmul.f32 %v590_v0, %v241_v16  ;;  %v278_v13 = vmul.f32 %v590_v0, %v242_v17  ;;  %v254_v39 = vld [vmem:[%s595_s23 + $0xf8] sm:$0xff] }
  0x2b   : > { %433 = vst [vmem:[%s614_s5 + $0x50] sm:$0xff] %v401_v41  ;;  %v407_v46 = vmax.f32 %v375_v10, 0.0  ;;  %v279_v47 = vmul.f32 %v590_v0, %v243_v18  ;;  %v280_v48 = vmul.f32 %v590_v0, %v244_v19  ;;  %v281_v23 = vmul.f32 %v590_v0, %v245_v9 }
  0x2c   : > { %434 = vst [vmem:[%s614_s5 + $0x58] sm:$0xff] %v402_v42  ;;  %v312_v49 = vadd.f32 %v605_v1, %v276_v11  ;;  %v313_v50 = vadd.f32 %v605_v1, %v277_v12  ;;  %v314_v14 = vadd.f32 %v605_v1, %v278_v13  ;;  %v282_v51 = vmul.f32 %v590_v0, %v246_v44 }
  0x2d   : > { %435 = vst [vmem:[%s614_s5 + $0x60] sm:$0xff] %v403_v20  ;;  %v315_v52 = vadd.f32 %v605_v1, %v279_v47  ;;  %v316_v53 = vadd.f32 %v605_v1, %v280_v48  ;;  %v317_v15 = vadd.f32 %v605_v1, %v281_v23  ;;  %v283_v54 = vmul.f32 %v590_v0, %v247_v22 }
  0x2e   : > { %436 = vst [vmem:[%s614_s5 + $0x68] sm:$0xff] %v404_v21  ;;  %v376_v55 = vadd.f32 %v651_v24, %v312_v49  ;;  %v377_v56 = vadd.f32 %v654_v25, %v313_v50  ;;  %v378_v57 = vadd.f32 %v657_v26, %v314_v14  ;;  %v318_v58 = vadd.f32 %v605_v1, %v282_v51  ;;  %v249_v25 = vld [vmem:[%s595_s23 + $0xd0] sm:$0xff]  ;;  %v251_v26 = vld [vmem:[%s595_s23 + $0xe0] sm:$0xff] }
  0x2f   : > { %437 = vst [vmem:[%s614_s5 + $0x70] sm:$0xff] %v405_v43  ;;  %v379_v60 = vadd.f32 %v660_v27, %v315_v52  ;;  %v380_v61 = vadd.f32 %v663_v28, %v316_v53  ;;  %v381_v62 = vadd.f32 %v666_v29, %v317_v15  ;;  %v319_v24 = vadd.f32 %v605_v1, %v283_v54  ;;  %v253_v27 = vld [vmem:[%s595_s23 + $0xf0] sm:$0xff] }
  0x30   : > { %438 = vst [vmem:[%s614_s5 + $0x78] sm:$0xff] %v406_v45  ;;  %v408_v2 = vmax.f32 %v376_v55, 0.0  ;;  %v409_v3 = vmax.f32 %v377_v56, 0.0  ;;  %v410_v4 = vmax.f32 %v378_v57, 0.0  ;;  %v382_v5 = vadd.f32 %v669_v30, %v318_v58 }
  0x31   : > { %439 = vst [vmem:[%s614_s5 + $0x80] sm:$0xff] %v407_v46  ;;  %v411_v28 = vmax.f32 %v379_v60, 0.0  ;;  %v412_v29 = vmax.f32 %v380_v61, 0.0  ;;  %v383_v7 = vadd.f32 %v672_v31, %v319_v24  ;;  %v413_v16 = vmax.f32 %v381_v62, 0.0 }
  0x32   : > { %440 = vst [vmem:[%s614_s5 + $0x88] sm:$0xff] %v408_v2  ;;  %v284_v17 = vmul.f32 %v590_v0, %v248_v59  ;;  %v285_v18 = vmul.f32 %v590_v0, %v249_v25  ;;  %v286_v40 = vmul.f32 %v590_v0, %v250_v63  ;;  %v414_v30 = vmax.f32 %v382_v5, 0.0 }
  0x33   : > { %441 = vst [vmem:[%s614_s5 + $0x90] sm:$0xff] %v409_v3  ;;  %v287_v41 = vmul.f32 %v590_v0, %v251_v26  ;;  %v288_v42 = vmul.f32 %v590_v0, %v252_v6  ;;  %v289_v8 = vmul.f32 %v590_v0, %v253_v27  ;;  %v290_v20 = vmul.f32 %v590_v0, %v254_v39 }
  0x34   : > { %442 = vst [vmem:[%s614_s5 + $0x98] sm:$0xff] %v410_v4  ;;  %v320_v31 = vadd.f32 %v605_v1, %v284_v17  ;;  %v321_v19 = vadd.f32 %v605_v1, %v285_v18  ;;  %v322_v9 = vadd.f32 %v605_v1, %v286_v40  ;;  %v415_v21 = vmax.f32 %v383_v7, 0.0 }
  0x35   : > { %443 = vst [vmem:[%s614_s5 + $0xa0] sm:$0xff] %v411_v28  ;;  %v323_v43 = vadd.f32 %v605_v1, %v287_v41  ;;  %v324_v10 = vadd.f32 %v605_v1, %v288_v42  ;;  %v325_v44 = vadd.f32 %v605_v1, %v289_v8  ;;  %v326_v0 = vadd.f32 %v605_v1, %v290_v20 }
  0x36   : > { %444 = vst [vmem:[%s614_s5 + $0xa8] sm:$0xff] %v412_v29  ;;  %v384_v45 = vadd.f32 %v675_v32, %v320_v31  ;;  %v385_v11 = vadd.f32 %v678_v33, %v321_v19  ;;  %v386_v12 = vadd.f32 %v681_v34, %v322_v9 }
  0x37   : > { %445 = vst [vmem:[%s614_s5 + $0xb0] sm:$0xff] %v413_v16  ;;  %v387_v13 = vadd.f32 %v684_v35, %v323_v43  ;;  %v388_v22 = vadd.f32 %v687_v36, %v324_v10  ;;  %v389_v46 = vadd.f32 %v690_v37, %v325_v44  ;;  %v390_v34 = vadd.f32 %v693_v38, %v326_v0 }
  0x38   : > { %446 = vst [vmem:[%s614_s5 + $0xb8] sm:$0xff] %v414_v30  ;;  %v416_v32 = vmax.f32 %v384_v45, 0.0  ;;  %v417_v33 = vmax.f32 %v385_v11, 0.0  ;;  %v418_v47 = vmax.f32 %v386_v12, 0.0 }
  0x39   : > { %447 = vst [vmem:[%s614_s5 + $0xc0] sm:$0xff] %v415_v21  ;;  %v419_v1 = vmax.f32 %v387_v13, 0.0  ;;  %v420_v48 = vmax.f32 %v388_v22, 0.0  ;;  %v421_v35 = vmax.f32 %v389_v46, 0.0  ;;  %v422_v23 = vmax.f32 %v390_v34, 0.0 }
  0x3a   : > { %448 = vst [vmem:[%s614_s5 + $0xc8] sm:$0xff] %v416_v32 }
  0x3b   : > { %449 = vst [vmem:[%s614_s5 + $0xd0] sm:$0xff] %v417_v33 }
  0x3c   : > { %450 = vst [vmem:[%s614_s5 + $0xd8] sm:$0xff] %v418_v47 }
  0x3d   : > { %451 = vst [vmem:[%s614_s5 + $0xe0] sm:$0xff] %v419_v1 }
  0x3e   : > { %452 = vst [vmem:[%s614_s5 + $0xe8] sm:$0xff] %v420_v48 }
  0x3f   : > { %453 = vst [vmem:[%s614_s5 + $0xf0] sm:$0xff] %v421_v35 }
  0x40   : > { %454 = vst [vmem:[%s614_s5 + $0xf8] sm:$0xff] %v422_v23 }
  0x41 PF: > { %s14_s15 = sadd.s32 1, %s552_s15  }
  0x42   : > { %p11_p4 = scmp.ge.s32.totalorder %s14_s15, 4  }
  0x44   :  { %13 = sbr.rel (!%p11_p4) target bundleno = 1 (0x1), region = 69 }

// kernel: bottleneck_forward.4
= control target key start
LH: loop header
LB: loop body
LE: loop exit
PB: predicated region body
PF: predicated region fallthrough
CT: control target
= control target key end

     0   :  { %s853_s12 = smov 0   ;;  %s1072_s0 = inlined_call_operand.vmem [shape: f32[512,128], index: 0, kind: input, shape index: {}]   ;;  %s1073_s1 = inlined_call_operand.vmem [shape: bf16[128,128], index: 1, kind: input, shape index: {}]   ;;  %s1074_s2 = inlined_call_operand.vmem [shape: bf16[512,128], index: 2, kind: output, shape index: {0}]   ;;  %s1075_s3 = inlined_call_operand.vmem [shape: f32[2,2,128], index: 3, kind: output, shape index: {1}]  }
   0x1 LB: > { %s859_s13 = sadd.s32 4294967295, %s831_s12   ;;  %p650_p0 = scmp.ge.s32.totalorder %s831_s12, 1  ;;  %s831_s12 = sphi %s853_s12, %s14_s12  }
   0x2   : > { %p141_p1 = scmp.lt.s32.totalorder %s831_s12, 3 }
   0x4   : > { %p142_p2 = pnand %p650_p0, %p141_p1 }
   0x5   : > { %s651_s20 = sshll.u32 (!%p142_p2), %s859_s13, 5  ;;  %p181_p4 = scmp.lt.s32.totalorder (!%p142_p2), %s859_s13, 1 }
   0x6   : > { %145 = sbr.rel (%p142_p2) target bundleno = 291 (0x123), region = 28  ;;  %p170_p3 = scmp.lt.s32.totalorder (!%p142_p2), %s651_s20, 63 }
   0xb   : > { %v697_v0 = vld [vmem:[%s1073_s1 + $0x38] sm:$0xff]  ;;  %v696_v1 = vld [vmem:[%s1073_s1 + $0x30] sm:$0xff]  ;;  %v695_v2 = vld [vmem:[%s1073_s1 + $0x28] sm:$0xff]  ;;  %s1077_s20 = smov (!%p170_p3, %s651_s20), 63  ;;  %s1079_s13 = smov (!%p181_p4, %s859_s13), 1  ;;  %vm556_vm0 = vcmask 1040384  }
   0xc   : > { %297 = vmatpush.bf16.msra.mxu0 %v697_v0  ;;  %793 = vmatpush.bf16.msra.mxu1 %v697_v0  ;;  %v694_v3 = vld [vmem:[%s1073_s1 + $0x20] sm:$0xff]  ;;  %v693_v4 = vld [vmem:[%s1073_s1 + $0x18] sm:$0xff]  ;;  %v692_v5 = vld [vmem:[%s1073_s1 + $0x10] sm:$0xff]  ;;  %s652_s27 = sshll.u32 %s1077_s20, 3  ;;  %s654_s8 = sshll.u32 %s1077_s20, 2 }
   0xd   : > { %794 = vmatpush.bf16.msra.mxu2 %v697_v0  ;;  %795 = vmatpush.bf16.msra.mxu3 %v697_v0  ;;  %v691_v6 = vld [vmem:[%s1073_s1 + $0x8] sm:$0xff]  ;;  %s891_s5 = scalar_lea.vmem %s1072_s0, %s652_s27  ;;  %v690_v7 = vld [vmem:[%s1073_s1] sm:$0xff]  ;;  %s936_s11 = scalar_lea.vmem %s1074_s2, %s654_s8 }
   0xe   : > { %v185_v8 = vld [vmem:[%s891_s5] sm:$0xff]  ;;  %v186_v9 = vld [vmem:[%s891_s5 + $0x8] sm:$0xff]  ;;  %v187_v20 = vld [vmem:[%s891_s5 + $0x10] sm:$0xff]  ;;  %s655_s14 = sshll.u32 %s1079_s13, 1 }
   0xf   : > { %v193_v10 = vld [vmem:[%s891_s5 + $0x40] sm:$0xff]  ;;  %v194_v11 = vld [vmem:[%s891_s5 + $0x48] sm:$0xff]  ;;  %v217_v14 = vpack.c.bf16 %v186_v9, %v185_v8  ;;  %v188_v21 = vld [vmem:[%s891_s5 + $0x18] sm:$0xff]  ;;  %s184_s17 = scalar_lea.vmem %s1075_s3, %s655_s14 }
  0x10   : > { %298 = vmatpush.bf16.msra.mxu0 %v696_v1  ;;  %796 = vmatpush.bf16.msra.mxu1 %v696_v1  ;;  %v201_v12 = vld [vmem:[%s891_s5 + $0x80] sm:$0xff]  ;;  %v202_v13 = vld [vmem:[%s891_s5 + $0x88] sm:$0xff]  ;;  %v221_v15 = vpack.c.bf16 %v194_v11, %v193_v10  ;;  %v195_v22 = vld [vmem:[%s891_s5 + $0x50] sm:$0xff]  ;;  %v218_v26 = vpack.c.bf16 %v188_v21, %v187_v20 }
  0x11   : > { %797 = vmatpush.bf16.msra.mxu2 %v696_v1  ;;  %798 = vmatpush.bf16.msra.mxu3 %v696_v1  ;;  %v225_v16 = vpack.c.bf16 %v202_v13, %v201_v12  ;;  %v209_v17 = vld [vmem:[%s891_s5 + $0xc0] sm:$0xff]  ;;  %v210_v18 = vld [vmem:[%s891_s5 + $0xc8] sm:$0xff]  ;;  %v196_v23 = vld [vmem:[%s891_s5 + $0x58] sm:$0xff] }
  0x12   : > { %v229_v19 = vpack.c.bf16 %v210_v18, %v209_v17  ;;  %v203_v24 = vld [vmem:[%s891_s5 + $0x90] sm:$0xff]  ;;  %v204_v25 = vld [vmem:[%s891_s5 + $0x98] sm:$0xff]  ;;  %v222_v27 = vpack.c.bf16 %v196_v23, %v195_v22  ;;  %v189_v32 = vld [vmem:[%s891_s5 + $0x20] sm:$0xff] }
  0x13   : > { %v226_v28 = vpack.c.bf16 %v204_v25, %v203_v24  ;;  %v211_v29 = vld [vmem:[%s891_s5 + $0xd0] sm:$0xff]  ;;  %v212_v30 = vld [vmem:[%s891_s5 + $0xd8] sm:$0xff]  ;;  %v190_v33 = vld [vmem:[%s891_s5 + $0x28] sm:$0xff] }
  0x14   : > { %299 = vmatpush.bf16.msra.mxu0 %v695_v2  ;;  %799 = vmatpush.bf16.msra.mxu1 %v695_v2  ;;  %v230_v31 = vpack.c.bf16 %v212_v30, %v211_v29  ;;  %v197_v34 = vld [vmem:[%s891_s5 + $0x60] sm:$0xff]  ;;  %v198_v35 = vld [vmem:[%s891_s5 + $0x68] sm:$0xff]  ;;  %v219_v38 = vpack.c.bf16 %v190_v33, %v189_v32  ;;  %v191_v44 = vld [vmem:[%s891_s5 + $0x30] sm:$0xff] }
  0x15   : > { %800 = vmatpush.bf16.msra.mxu2 %v695_v2  ;;  %801 = vmatpush.bf16.msra.mxu3 %v695_v2  ;;  %v205_v36 = vld [vmem:[%s891_s5 + $0xa0] sm:$0xff]  ;;  %v206_v37 = vld [vmem:[%s891_s5 + $0xa8] sm:$0xff]  ;;  %v223_v39 = vpack.c.bf16 %v198_v35, %v197_v34  ;;  %v192_v45 = vld [vmem:[%s891_s5 + $0x38] sm:$0xff] }
  0x16   : > { %v213_v40 = vld [vmem:[%s891_s5 + $0xe0] sm:$0xff]  ;;  %v214_v41 = vld [vmem:[%s891_s5 + $0xe8] sm:$0xff]  ;;  %v227_v42 = vpack.c.bf16 %v206_v37, %v205_v36  ;;  %v199_v46 = vld [vmem:[%s891_s5 + $0x70] sm:$0xff]  ;;  %v220_v50 = vpack.c.bf16 %v192_v45, %v191_v44 }
  0x17   : > { %v231_v43 = vpack.c.bf16 %v214_v41, %v213_v40  ;;  %v200_v47 = vld [vmem:[%s891_s5 + $0x78] sm:$0xff]  ;;  %v207_v48 = vld [vmem:[%s891_s5 + $0xb0] sm:$0xff] }
  0x18   : > { %300 = vmatpush.bf16.msra.mxu0 %v694_v3  ;;  %802 = vmatpush.bf16.msra.mxu1 %v694_v3  ;;  %v208_v49 = vld [vmem:[%s891_s5 + $0xb8] sm:$0xff]  ;;  %v224_v51 = vpack.c.bf16 %v200_v47, %v199_v46  ;;  %v215_v52 = vld [vmem:[%s891_s5 + $0xf0] sm:$0xff] }
  0x19   : > { %803 = vmatpush.bf16.msra.mxu2 %v694_v3  ;;  %804 = vmatpush.bf16.msra.mxu3 %v694_v3  ;;  %v216_v53 = vld [vmem:[%s891_s5 + $0xf8] sm:$0xff]  ;;  %v228_v54 = vpack.c.bf16 %v208_v49, %v207_v48 }
  0x1a   : > { %v232_v55 = vpack.c.bf16 %v216_v53, %v215_v52 }
  0x1c   : > { %301 = vmatpush.bf16.msra.mxu0 %v693_v4  ;;  %805 = vmatpush.bf16.msra.mxu1 %v693_v4 }
  0x1d   : > { %806 = vmatpush.bf16.msra.mxu2 %v693_v4  ;;  %807 = vmatpush.bf16.msra.mxu3 %v693_v4 }
  0x20   : > { %302 = vmatpush.bf16.msra.mxu0 %v692_v5  ;;  %808 = vmatpush.bf16.msra.mxu1 %v692_v5 }
  0x21   : > { %809 = vmatpush.bf16.msra.mxu2 %v692_v5  ;;  %810 = vmatpush.bf16.msra.mxu3 %v692_v5 }
  0x24   : > { %303 = vmatpush.bf16.msra.mxu0 %v691_v6  ;;  %811 = vmatpush.bf16.msra.mxu1 %v691_v6 }
  0x25   : > { %812 = vmatpush.bf16.msra.mxu2 %v691_v6  ;;  %813 = vmatpush.bf16.msra.mxu3 %v691_v6 }
  0x28   : > { %304 = vmatpush.bf16.msra.mxu0 %v690_v7  ;;  %814 = vmatpush.bf16.msra.mxu1 %v690_v7 }
  0x29   : > { %815 = vmatpush.bf16.msra.mxu2 %v690_v7  ;;  %816 = vmatpush.bf16.msra.mxu3 %v690_v7 }
  0x2b   : > { %305 = vmatmul.bf16.vlgmr.msra.gmra.mxu0 %v217_v14  ;;  %325 = vmatmul.bf16.vlgmr.msra.gmra.mxu1 %v221_v15 }
  0x2c   : > { %345 = vmatmul.bf16.vlgmr.msra.gmra.mxu2 %v225_v16  ;;  %365 = vmatmul.bf16.vlgmr.msra.gmra.mxu3 %v229_v19 }
  0x3b   : > { %310 = vmatmul.bf16.gmra.mxu0 %v218_v26  ;;  %330 = vmatmul.bf16.gmra.mxu1 %v222_v27 }
  0x3c   : > { %350 = vmatmul.bf16.gmra.mxu2 %v226_v28  ;;  %370 = vmatmul.bf16.gmra.mxu3 %v230_v31 }
  0x4b   : > { %315 = vmatmul.bf16.gmra.mxu0 %v219_v38  ;;  %335 = vmatmul.bf16.gmra.mxu1 %v223_v39 }
  0x4c   : > { %355 = vmatmul.bf16.gmra.mxu2 %v227_v42  ;;  %375 = vmatmul.bf16.gmra.mxu3 %v231_v43 }
  0x5b   : > { %320 = vmatmul.bf16.gmra.mxu0 %v220_v50  ;;  %340 = vmatmul.bf16.gmra.mxu1 %v224_v51 }
  0x5c   : > { %360 = vmatmul.bf16.gmra.mxu2 %v228_v54  ;;  %380 = vmatmul.bf16.gmra.mxu3 %v232_v55 }
  0xa8   : > { %v306_v56 = vpop.f32.mrf.mxu0  ;;  %v928_v57 = vpop.f32.mrf.mxu1 }
  0xa9   : > { %v487_v25 = vmul.f32 %v306_v56, %v306_v56 }
  0xaf   : > { %v931_v58 = vpop.f32.mrf.mxu2  ;;  %v942_v63 = vpop.f32.mrf.mxu3 }
  0xb0   : > { %v308_v59 = vpop.f32.mrf.mxu0  ;;  %v938_v60 = vpop.f32.mrf.mxu1 }
  0xb1   : > { %v701_v61 = vpack.c.bf16 %v308_v59, %v306_v56  ;;  %v721_v62 = vpack.c.bf16 %v938_v60, %v928_v57  ;;  %v488_v24 = vmul.f32 %v308_v59, %v308_v59  ;;  %v450_v27 = vadd.f32 %v308_v59, %v306_v56 }
  0xb2   : > { %v495_v59 = vmul.f32 %v928_v57, %v928_v57 }
  0xb3   : > { %702 = vst [vmem:[%s936_s11] sm:$0xff] %v701_v61   ;;  %v519_v28 = vadd.f32 %v488_v24, %v487_v25 }
  0xb4   : > { %781 = vst [vmem:[%s936_s11 + $0x20] sm:$0xff] %v721_v62  }
  0xb7   : > { %v946_v0 = vpop.f32.mrf.mxu2  ;;  %v952_v4 = vpop.f32.mrf.mxu3 }
  0xb8   : > { %v311_v1 = vpop.f32.mrf.mxu0  ;;  %v948_v2 = vpop.f32.mrf.mxu1  ;;  %v741_v3 = vpack.c.bf16 %v946_v0, %v931_v58  ;;  %v761_v5 = vpack.c.bf16 %v952_v4, %v942_v63 }
  0xb9   : > { %v489_v26 = vmul.f32 %v311_v1, %v311_v1  ;;  %v451_v30 = vadd.f32 %v450_v27, %v311_v1 }
  0xba   : > { %785 = vst [vmem:[%s936_s11 + $0x40] sm:$0xff] %v741_v3  }
  0xbb   : > { %789 = vst [vmem:[%s936_s11 + $0x60] sm:$0xff] %v761_v5   ;;  %v520_v32 = vadd.f32 %v519_v28, %v489_v26 }
  0xbf   : > { %v958_v6 = vpop.f32.mrf.mxu2  ;;  %v964_v11 = vpop.f32.mrf.mxu3 }
  0xc0   : > { %v313_v7 = vpop.f32.mrf.mxu0  ;;  %v960_v8 = vpop.f32.mrf.mxu1 }
  0xc1   : > { %v706_v9 = vpack.c.bf16 %v313_v7, %v311_v1  ;;  %v726_v10 = vpack.c.bf16 %v960_v8, %v948_v2  ;;  %v490_v29 = vmul.f32 %v313_v7, %v313_v7  ;;  %v452_v37 = vadd.f32 %v451_v30, %v313_v7 }
  0xc2   : > { %v496_v1 = vmul.f32 %v938_v60, %v938_v60  ;;  %v497_v7 = vmul.f32 %v948_v2, %v948_v2 }
  0xc3   : > { %778 = vst [vmem:[%s936_s11 + $0x8] sm:$0xff] %v706_v9   ;;  %v521_v39 = vadd.f32 %v520_v32, %v490_v29 }
  0xc4   : > { %782 = vst [vmem:[%s936_s11 + $0x28] sm:$0xff] %v726_v10  }
  0xc7   : > { %v968_v12 = vpop.f32.mrf.mxu2  ;;  %v974_v16 = vpop.f32.mrf.mxu3 }
  0xc8   : > { %v316_v13 = vpop.f32.mrf.mxu0  ;;  %v970_v14 = vpop.f32.mrf.mxu1  ;;  %v746_v15 = vpack.c.bf16 %v968_v12, %v958_v6  ;;  %v766_v17 = vpack.c.bf16 %v974_v16, %v964_v11 }
  0xc9   : > { %v491_v33 = vmul.f32 %v316_v13, %v316_v13  ;;  %v453_v42 = vadd.f32 %v452_v37, %v316_v13  ;;  %v504_v37 = vmul.f32 %v946_v0, %v946_v0 }
  0xca   : > { %786 = vst [vmem:[%s936_s11 + $0x48] sm:$0xff] %v746_v15  }
  0xcb   : > { %790 = vst [vmem:[%s936_s11 + $0x68] sm:$0xff] %v766_v17   ;;  %v522_v43 = vadd.f32 %v521_v39, %v491_v33 }
  0xcf   : > { %v980_v18 = vpop.f32.mrf.mxu2  ;;  %v986_v23 = vpop.f32.mrf.mxu3 }
  0xd0   : > { %v318_v19 = vpop.f32.mrf.mxu0  ;;  %v982_v20 = vpop.f32.mrf.mxu1 }
  0xd1   : > { %v711_v21 = vpack.c.bf16 %v318_v19, %v316_v13  ;;  %v731_v22 = vpack.c.bf16 %v982_v20, %v970_v14  ;;  %v492_v40 = vmul.f32 %v318_v19, %v318_v19  ;;  %v454_v45 = vadd.f32 %v453_v42, %v318_v19 }
  0xd2   : > { %v506_v42 = vmul.f32 %v968_v12, %v968_v12 }
  0xd3   : > { %779 = vst [vmem:[%s936_s11 + $0x10] sm:$0xff] %v711_v21   ;;  %v523_v46 = vadd.f32 %v522_v43, %v492_v40 }
  0xd4   : > { %783 = vst [vmem:[%s936_s11 + $0x30] sm:$0xff] %v731_v22   ;;  %v499_v22 = vmul.f32 %v970_v14, %v970_v14 }
  0xd7   : > { %v990_v31 = vpop.f32.mrf.mxu2  ;;  %v994_v38 = vpop.f32.mrf.mxu3 }
  0xd8   : > { %v321_v34 = vpop.f32.mrf.mxu0  ;;  %v341_v35 = vpop.f32.mrf.mxu1  ;;  %v751_v36 = vpack.c.bf16 %v990_v31, %v980_v18  ;;  %v771_v41 = vpack.c.bf16 %v994_v38, %v986_v23 }
  0xd9   : > { %v493_v44 = vmul.f32 %v321_v34, %v321_v34  ;;  %v455_v47 = vadd.f32 %v454_v45, %v321_v34  ;;  %v501_v29 = vmul.f32 %v341_v35, %v341_v35 }
  0xda   : > { %787 = vst [vmem:[%s936_s11 + $0x50] sm:$0xff] %v751_v36  }
  0xdb   : > { %791 = vst [vmem:[%s936_s11 + $0x70] sm:$0xff] %v771_v41   ;;  %v524_v49 = vadd.f32 %v523_v46, %v493_v44 }
  0xdf   : > { %v361_v48 = vpop.f32.mrf.mxu2  ;;  %v1000_v56 = vpop.f32.mrf.mxu3 }
  0xe0   : > { %v323_v50 = vpop.f32.mrf.mxu0  ;;  %v343_v51 = vpop.f32.mrf.mxu1 }
  0xe1   : > { %v716_v52 = vpack.c.bf16 %v323_v50, %v321_v34  ;;  %v456_v53 = vadd.f32 %v455_v47, %v323_v50  ;;  %v494_v54 = vmul.f32 %v323_v50, %v323_v50  ;;  %v736_v55 = vpack.c.bf16 %v343_v51, %v341_v35 }
  0xe2   : > { %v502_v33 = vmul.f32 %v343_v51, %v343_v51  ;;  %v503_v34 = vmul.f32 %v931_v58, %v931_v58  ;;  %v508_v47 = vmul.f32 %v990_v31, %v990_v31 }
  0xe3   : > { %780 = vst [vmem:[%s936_s11 + $0x18] sm:$0xff] %v716_v52   ;;  %v457_v61 = vadd.f32 %v456_v53, %v928_v57  ;;  %v525_v62 = vadd.f32 %v524_v49, %v494_v54  ;;  %v498_v57 = vmul.f32 %v960_v8, %v960_v8 }
  0xe4   : > { %784 = vst [vmem:[%s936_s11 + $0x38] sm:$0xff] %v736_v55  }
  0xe5   : > { %v458_v3 = vadd.f32 %v457_v61, %v938_v60  ;;  %v526_v5 = vadd.f32 %v525_v62, %v495_v59 }
  0xe7   : > { %v459_v9 = vadd.f32 %v458_v3, %v948_v2  ;;  %v527_v10 = vadd.f32 %v526_v5, %v496_v1  ;;  %v363_v13 = vpop.f32.mrf.mxu2  ;;  %v383_v21 = vpop.f32.mrf.mxu3  ;;  %v500_v2 = vmul.f32 %v982_v20, %v982_v20  ;;  %v514_v3 = vmul.f32 %v974_v16, %v974_v16 }
  0xe8   : > { %v756_v15 = vpack.c.bf16 %v363_v13, %v361_v48  ;;  %v776_v60 = vpack.c.bf16 %v383_v21, %v1000_v56  ;;  %v510_v54 = vmul.f32 %v363_v13, %v363_v13 }
  0xe9   : > { %v528_v17 = vadd.f32 %v527_v10, %v497_v7  ;;  %v460_v19 = vadd.f32 %v459_v9, %v960_v8  ;;  %v515_v7 = vmul.f32 %v986_v23, %v986_v23 }
  0xea   : > { %788 = vst [vmem:[%s936_s11 + $0x58] sm:$0xff] %v756_v15  }
  0xeb   : > { %v461_v24 = vadd.f32 %v460_v19, %v970_v14  ;;  %v529_v25 = vadd.f32 %v528_v17, %v498_v57  ;;  %792 = vst [vmem:[%s936_s11 + $0x78] sm:$0xff] %v776_v60   ;;  %v517_v17 = vmul.f32 %v1000_v56, %v1000_v56  ;;  %v518_v60 = vmul.f32 %v383_v21, %v383_v21 }
  0xed   : > { %v462_v26 = vadd.f32 %v461_v24, %v982_v20  ;;  %v530_v27 = vadd.f32 %v529_v25, %v499_v22  ;;  %v505_v20 = vmul.f32 %v958_v6, %v958_v6 }
  0xef   : > { %v463_v28 = vadd.f32 %v462_v26, %v341_v35  ;;  %v531_v8 = vadd.f32 %v530_v27, %v500_v2 }
  0xf1   : > { %v532_v30 = vadd.f32 %v531_v8, %v501_v29  ;;  %v464_v32 = vadd.f32 %v463_v28, %v343_v51  ;;  %v509_v51 = vmul.f32 %v361_v48, %v361_v48 }
  0xf3   : > { %v465_v36 = vadd.f32 %v464_v32, %v931_v58  ;;  %v533_v14 = vadd.f32 %v532_v30, %v502_v33  ;;  %v507_v58 = vmul.f32 %v980_v18, %v980_v18 }
  0xf5   : > { %v466_v39 = vadd.f32 %v465_v36, %v946_v0  ;;  %v534_v40 = vadd.f32 %v533_v14, %v503_v34 }
  0xf7   : > { %v467_v35 = vadd.f32 %v466_v39, %v958_v6  ;;  %v535_v41 = vadd.f32 %v534_v40, %v504_v37 }
  0xf9   : > { %v536_v43 = vadd.f32 %v535_v41, %v505_v20  ;;  %v468_v44 = vadd.f32 %v467_v35, %v968_v12  ;;  %v511_v12 = vmul.f32 %v942_v63, %v942_v63 }
  0xfb   : > { %v469_v45 = vadd.f32 %v468_v44, %v980_v18  ;;  %v537_v46 = vadd.f32 %v536_v43, %v506_v42  ;;  %v512_v18 = vmul.f32 %v952_v4, %v952_v4 }
  0xfd   : > { %v470_v0 = vadd.f32 %v469_v45, %v990_v31  ;;  %v538_v49 = vadd.f32 %v537_v46, %v507_v58  ;;  %v513_v31 = vmul.f32 %v964_v11, %v964_v11 }
  0xff   : > { %v539_v6 = vadd.f32 %v538_v49, %v508_v47  ;;  %v471_v50 = vadd.f32 %v470_v0, %v361_v48 }
 0x101   : > { %v540_v52 = vadd.f32 %v539_v6, %v509_v51  ;;  %v472_v53 = vadd.f32 %v471_v50, %v363_v13 }
 0x103   : > { %v473_v55 = vadd.f32 %v472_v53, %v942_v63  ;;  %v541_v59 = vadd.f32 %v540_v52, %v510_v54 }
 0x105   : > { %v474_v61 = vadd.f32 %v473_v55, %v952_v4  ;;  %v542_v62 = vadd.f32 %v541_v59, %v511_v12 }
 0x107   : > { %v475_v48 = vadd.f32 %v474_v61, %v964_v11  ;;  %v543_v1 = vadd.f32 %v542_v62, %v512_v18  ;;  %v516_v11 = vmul.f32 %v994_v38, %v994_v38 }
 0x109   : > { %v544_v5 = vadd.f32 %v543_v1, %v513_v31  ;;  %v476_v63 = vadd.f32 %v475_v48, %v974_v16 }
 0x10b   : > { %v477_v9 = vadd.f32 %v476_v63, %v986_v23  ;;  %v545_v4 = vadd.f32 %v544_v5, %v514_v3 }
 0x10d   : > { %v478_v10 = vadd.f32 %v477_v9, %v994_v38  ;;  %v546_v13 = vadd.f32 %v545_v4, %v515_v7 }
 0x10f   : > { %v547_v15 = vadd.f32 %v546_v13, %v516_v11  ;;  %v479_v57 = vadd.f32 %v478_v10, %v1000_v56 }
 0x111   : > { %v548_v16 = vadd.f32 %v547_v15, %v517_v17  ;;  %v480_v19 = vadd.f32 %v479_v57, %v383_v21 }
 0x113   : > { %v481_v22 = vrot.slane %v480_v19, 4  ;;  %v549_v24 = vadd.f32 %v548_v16, %v518_v60 }
 0x115   : > { %v482_v23 = vadd.f32 %v481_v22, %v480_v19  ;;  %v550_v25 = vrot.slane %v549_v24, 4 }
 0x117   : > { %v483_v2 = vrot.slane %v482_v23, 2  ;;  %v551_v26 = vadd.f32 %v550_v25, %v549_v24 }
 0x119   : > { %v484_v27 = vadd.f32 %v483_v2, %v482_v23  ;;  %v552_v38 = vrot.slane %v551_v26, 2 }
 0x11b   : > { %v485_v28 = vrot.slane %v484_v27, 1  ;;  %v553_v29 = vadd.f32 %v552_v38, %v551_v26 }
 0x11d   : > { %v554_v8 = vrot.slane %v553_v29, 1  ;;  %v486_v56 = vadd.f32 %v485_v28, %v484_v27 }
 0x11f   : > { %v555_v21 = vadd.f32 %v554_v8, %v553_v29 }
 0x121   : > { %v557_v30 = vsel %vm556_vm0, %v486_v56, %v555_v21 }
 0x122   : > { %558 = vst [vmem:[%s184_s17] sm:$0x3] %v557_v30 }
 0x123 PF: > { %s14_s12 = sadd.s32 1, %s831_s12  }
 0x124   : > { %p11_p5 = scmp.ge.s32.totalorder %s14_s12, 4  }
 0x126   :  { %13 = sbr.rel (!%p11_p5) target bundleno = 1 (0x1), region = 70 }

// kernel: bottleneck_forward.6
= control target key start
LH: loop header
LB: loop body
LE: loop exit
PB: predicated region body
PF: predicated region fallthrough
CT: control target
= control target key end

     0   :  { %s1007_s18 = smov 0   ;;  %s1300_s0 = inlined_call_operand.vmem [shape: bf16[512,128], index: 0, kind: input, shape index: {}]   ;;  %s1301_s1 = inlined_call_operand.vmem [shape: bf16[128,128], index: 1, kind: input, shape index: {}]   ;;  %s1302_s2 = inlined_call_operand.vmem [shape: f32[1,128], index: 2, kind: input, shape index: {}]   ;;  %s1303_s3 = inlined_call_operand.vmem [shape: f32[1,128], index: 3, kind: input, shape index: {}]   ;;  %s1304_s4 = inlined_call_operand.vmem [shape: f32[512,128], index: 4, kind: output, shape index: {0}]   ;;  %s1305_s5 = inlined_call_operand.vmem [shape: f32[2,2,128], index: 5, kind: output, shape index: {1}]  }
   0x1 LB: > { %s1013_s19 = sadd.s32 4294967295, %s975_s18   ;;  %p808_p0 = scmp.ge.s32.totalorder %s975_s18, 1  ;;  %s975_s18 = sphi %s1007_s18, %s16_s18  }
   0x2   : > { %p191_p1 = scmp.lt.s32.totalorder %s975_s18, 3 }
   0x4   : > { %p192_p2 = pnand %p808_p0, %p191_p1 }
   0x5   : > { %s809_s22 = sshll.u32 (!%p192_p2), %s1013_s19, 5  ;;  %p235_p4 = scmp.lt.s32.totalorder (!%p192_p2), %s1013_s19, 1 }
   0x6   : > { %195 = sbr.rel (%p192_p2) target bundleno = 291 (0x123), region = 36  ;;  %p224_p3 = scmp.lt.s32.totalorder (!%p192_p2), %s809_s22, 63 }
   0xb   : > { %v855_v0 = vld [vmem:[%s1301_s1 + $0x38] sm:$0xff]  ;;  %v854_v1 = vld [vmem:[%s1301_s1 + $0x30] sm:$0xff]  ;;  %s1307_s22 = smov (!%p224_p3, %s809_s22), 63  ;;  %v853_v2 = vld [vmem:[%s1301_s1 + $0x28] sm:$0xff]  ;;  %s1309_s19 = smov (!%p235_p4, %s1013_s19), 1  ;;  %vm714_vm0 = vcmask 1040384  }
   0xc   : > { %487 = vmatpush.bf16.msra.mxu0 %v855_v0  ;;  %935 = vmatpush.bf16.msra.mxu1 %v855_v0  ;;  %s810_s25 = sshll.u32 %s1307_s22, 2  ;;  %v852_v4 = vld [vmem:[%s1301_s1 + $0x20] sm:$0xff]  ;;  %v851_v12 = vld [vmem:[%s1301_s1 + $0x18] sm:$0xff]  ;;  %v850_v20 = vld [vmem:[%s1301_s1 + $0x10] sm:$0xff]  ;;  %s812_s23 = sshll.u32 %s1307_s22, 3 }
   0xd   : > { %936 = vmatpush.bf16.msra.mxu2 %v855_v0  ;;  %937 = vmatpush.bf16.msra.mxu3 %v855_v0  ;;  %s1033_s30 = scalar_lea.vmem %s1300_s0, %s810_s25  ;;  %v1044_v9 = vld [vmem:[%s1302_s2] ss:$0 sm:$0xff]  ;;  %v849_v27 = vld [vmem:[%s1301_s1 + $0x8] sm:$0xff]  ;;  %s1144_s26 = scalar_lea.vmem %s1304_s4, %s812_s23 }
   0xe   : > { %v857_v3 = vld [vmem:[%s1033_s30] sm:$0xff]   ;;  %v920_v32 = vld [vmem:[%s1033_s30 + $0x8] sm:$0xff]   ;;  %s813_s22 = sshll.u32 %s1309_s19, 1 }
   0xf   : > { %v923_v5 = vld [vmem:[%s1033_s30 + $0x20] sm:$0xff]   ;;  %v858_v7 = vunpack.c.l.bf16 %v857_v3  ;;  %v859_v8 = vunpack.c.h.bf16 %v857_v3  ;;  %v924_v36 = vld [vmem:[%s1033_s30 + $0x28] sm:$0xff]   ;;  %v862_v42 = vunpack.c.l.bf16 %v920_v32  ;;  %v863_v45 = vunpack.c.h.bf16 %v920_v32  ;;  %s238_s29 = scalar_lea.vmem %s1305_s5, %s813_s22 }
  0x10   : > { %488 = vmatpush.bf16.msra.mxu0 %v854_v1  ;;  %938 = vmatpush.bf16.msra.mxu1 %v854_v1  ;;  %v927_v6 = vld [vmem:[%s1033_s30 + $0x40] sm:$0xff]   ;;  %v874_v10 = vunpack.c.l.bf16 %v923_v5  ;;  %v875_v11 = vunpack.c.h.bf16 %v923_v5  ;;  %v928_v43 = vld [vmem:[%s1033_s30 + $0x48] sm:$0xff]   ;;  %v878_v46 = vunpack.c.l.bf16 %v924_v36  ;;  %v879_v47 = vunpack.c.h.bf16 %v924_v36 }
  0x11   : > { %939 = vmatpush.bf16.msra.mxu2 %v854_v1  ;;  %940 = vmatpush.bf16.msra.mxu3 %v854_v1  ;;  %v890_v13 = vunpack.c.l.bf16 %v927_v6  ;;  %v891_v14 = vunpack.c.h.bf16 %v927_v6  ;;  %v307_v15 = vmul.f32 %v1044_v9, %v858_v7  ;;  %v308_v16 = vmul.f32 %v1044_v9, %v859_v8  ;;  %v1054_v17 = vld [vmem:[%s1303_s3] ss:$0 sm:$0xff] }
  0x12   : > { %v315_v18 = vmul.f32 %v1044_v9, %v874_v10  ;;  %v316_v19 = vmul.f32 %v1044_v9, %v875_v11  ;;  %v931_v33 = vld [vmem:[%s1033_s30 + $0x60] sm:$0xff]   ;;  %v894_v53 = vunpack.c.l.bf16 %v928_v43  ;;  %v895_v54 = vunpack.c.h.bf16 %v928_v43  ;;  %v933_v43 = vld [vmem:[%s1033_s30 + $0x70] sm:$0xff]  }
  0x13   : > { %v323_v21 = vmul.f32 %v1044_v9, %v890_v13  ;;  %v324_v22 = vmul.f32 %v1044_v9, %v891_v14  ;;  %v343_v23 = vadd.f32 %v1054_v17, %v307_v15  ;;  %v344_v24 = vadd.f32 %v1054_v17, %v308_v16  ;;  %v848_v39 = vld [vmem:[%s1301_s1] sm:$0xff]  ;;  %v921_v13 = vld [vmem:[%s1033_s30 + $0x10] sm:$0xff]  }
  0x14   : > { %489 = vmatpush.bf16.msra.mxu0 %v853_v2  ;;  %941 = vmatpush.bf16.msra.mxu1 %v853_v2  ;;  %v351_v25 = vadd.f32 %v1054_v17, %v315_v18  ;;  %v352_v26 = vadd.f32 %v1054_v17, %v316_v19  ;;  %v906_v37 = vunpack.c.l.bf16 %v931_v33  ;;  %v907_v38 = vunpack.c.h.bf16 %v931_v33  ;;  %v925_v19 = vld [vmem:[%s1033_s30 + $0x30] sm:$0xff]  }
  0x15   : > { %942 = vmatpush.bf16.msra.mxu2 %v853_v2  ;;  %943 = vmatpush.bf16.msra.mxu3 %v853_v2  ;;  %v359_v28 = vadd.f32 %v1054_v17, %v323_v21  ;;  %v360_v29 = vadd.f32 %v1054_v17, %v324_v22  ;;  %v375_v30 = vmax.f32 %v343_v23, 0.0  ;;  %v376_v31 = vmax.f32 %v344_v24, 0.0 }
  0x16   : > { %v383_v34 = vmax.f32 %v351_v25, 0.0  ;;  %v384_v35 = vmax.f32 %v352_v26, 0.0  ;;  %v331_v44 = vmul.f32 %v1044_v9, %v906_v37  ;;  %v332_v48 = vmul.f32 %v1044_v9, %v907_v38 }
  0x17   : > { %v391_v40 = vmax.f32 %v359_v28, 0.0  ;;  %v392_v41 = vmax.f32 %v360_v29, 0.0  ;;  %v407_v49 = vpack.c.bf16 %v376_v31, %v375_v30  ;;  %v309_v56 = vmul.f32 %v1044_v9, %v862_v42 }
  0x18   : > { %490 = vmatpush.bf16.msra.mxu0 %v852_v4  ;;  %944 = vmatpush.bf16.msra.mxu1 %v852_v4  ;;  %v411_v50 = vpack.c.bf16 %v384_v35, %v383_v34  ;;  %v367_v51 = vadd.f32 %v1054_v17, %v331_v44  ;;  %v368_v55 = vadd.f32 %v1054_v17, %v332_v48  ;;  %v866_v25 = vunpack.c.l.bf16 %v921_v13 }
  0x19   : > { %945 = vmatpush.bf16.msra.mxu2 %v852_v4  ;;  %946 = vmatpush.bf16.msra.mxu3 %v852_v4  ;;  %v415_v52 = vpack.c.bf16 %v392_v41, %v391_v40  ;;  %v310_v58 = vmul.f32 %v1044_v9, %v863_v45  ;;  %v317_v59 = vmul.f32 %v1044_v9, %v878_v46  ;;  %v867_v26 = vunpack.c.h.bf16 %v921_v13 }
  0x1a   : > { %v399_v57 = vmax.f32 %v367_v51, 0.0  ;;  %v318_v60 = vmul.f32 %v1044_v9, %v879_v47  ;;  %v400_v61 = vmax.f32 %v368_v55, 0.0  ;;  %v325_v62 = vmul.f32 %v1044_v9, %v894_v53 }
  0x1b   : > { %v326_v63 = vmul.f32 %v1044_v9, %v895_v54  ;;  %v345_v1 = vadd.f32 %v1054_v17, %v309_v56  ;;  %v346_v2 = vadd.f32 %v1054_v17, %v310_v58  ;;  %v353_v3 = vadd.f32 %v1054_v17, %v317_v59 }
  0x1c   : > { %491 = vmatpush.bf16.msra.mxu0 %v851_v12  ;;  %947 = vmatpush.bf16.msra.mxu1 %v851_v12  ;;  %v419_v0 = vpack.c.bf16 %v400_v61, %v399_v57  ;;  %v354_v4 = vadd.f32 %v1054_v17, %v318_v60  ;;  %v361_v5 = vadd.f32 %v1054_v17, %v325_v62  ;;  %v883_v28 = vunpack.c.h.bf16 %v925_v19  ;;  %v922_v60 = vld [vmem:[%s1033_s30 + $0x18] sm:$0xff]  }
  0x1d   : > { %948 = vmatpush.bf16.msra.mxu2 %v851_v12  ;;  %949 = vmatpush.bf16.msra.mxu3 %v851_v12  ;;  %v362_v6 = vadd.f32 %v1054_v17, %v326_v63  ;;  %v377_v7 = vmax.f32 %v345_v1, 0.0  ;;  %v378_v8 = vmax.f32 %v346_v2, 0.0  ;;  %v385_v10 = vmax.f32 %v353_v3, 0.0  ;;  %v932_v12 = vld [vmem:[%s1033_s30 + $0x68] sm:$0xff]   ;;  %v926_v63 = vld [vmem:[%s1033_s30 + $0x38] sm:$0xff]  }
  0x1e   : > { %v386_v11 = vmax.f32 %v354_v4, 0.0  ;;  %v910_v14 = vunpack.c.l.bf16 %v932_v12  ;;  %v911_v15 = vunpack.c.h.bf16 %v932_v12  ;;  %v393_v16 = vmax.f32 %v361_v5, 0.0 }
  0x1f   : > { %v394_v18 = vmax.f32 %v362_v6, 0.0  ;;  %v408_v23 = vpack.c.bf16 %v378_v8, %v377_v7  ;;  %v311_v36 = vmul.f32 %v1044_v9, %v866_v25  ;;  %v312_v37 = vmul.f32 %v1044_v9, %v867_v26 }
  0x20   : > { %492 = vmatpush.bf16.msra.mxu0 %v850_v20  ;;  %950 = vmatpush.bf16.msra.mxu1 %v850_v20  ;;  %v333_v21 = vmul.f32 %v1044_v9, %v910_v14  ;;  %v334_v22 = vmul.f32 %v1044_v9, %v911_v15  ;;  %v412_v24 = vpack.c.bf16 %v386_v11, %v385_v10  ;;  %v914_v44 = vunpack.c.l.bf16 %v933_v43  ;;  %v934_v10 = vld [vmem:[%s1033_s30 + $0x78] sm:$0xff]  }
  0x21   : > { %951 = vmatpush.bf16.msra.mxu2 %v850_v20  ;;  %952 = vmatpush.bf16.msra.mxu3 %v850_v20  ;;  %v929_v20 = vld [vmem:[%s1033_s30 + $0x50] sm:$0xff]   ;;  %v416_v31 = vpack.c.bf16 %v394_v18, %v393_v16  ;;  %v915_v45 = vunpack.c.h.bf16 %v933_v43  ;;  %v347_v46 = vadd.f32 %v1054_v17, %v311_v36  ;;  %v348_v47 = vadd.f32 %v1054_v17, %v312_v37 }
  0x22   : > { %v369_v29 = vadd.f32 %v1054_v17, %v333_v21  ;;  %v370_v30 = vadd.f32 %v1054_v17, %v334_v22  ;;  %v898_v32 = vunpack.c.l.bf16 %v929_v20  ;;  %v899_v33 = vunpack.c.h.bf16 %v929_v20 }
  0x23   : > { %v336_v51 = vmul.f32 %v1044_v9, %v915_v45  ;;  %v379_v54 = vmax.f32 %v347_v46, 0.0  ;;  %v380_v55 = vmax.f32 %v348_v47, 0.0  ;;  %v870_v2 = vunpack.c.l.bf16 %v922_v60 }
  0x24   : > { %493 = vmatpush.bf16.msra.mxu0 %v849_v27  ;;  %953 = vmatpush.bf16.msra.mxu1 %v849_v27  ;;  %v401_v34 = vmax.f32 %v369_v29, 0.0  ;;  %v402_v35 = vmax.f32 %v370_v30, 0.0  ;;  %v327_v41 = vmul.f32 %v1044_v9, %v898_v32  ;;  %v328_v42 = vmul.f32 %v1044_v9, %v899_v33 }
  0x25   : > { %954 = vmatpush.bf16.msra.mxu2 %v849_v27  ;;  %955 = vmatpush.bf16.msra.mxu3 %v849_v27  ;;  %v882_v27 = vunpack.c.l.bf16 %v925_v19  ;;  %v372_v57 = vadd.f32 %v1054_v17, %v336_v51  ;;  %v409_v1 = vpack.c.bf16 %v380_v55, %v379_v54  ;;  %v871_v6 = vunpack.c.h.bf16 %v922_v60 }
  0x26   : > { %v420_v40 = vpack.c.bf16 %v402_v35, %v401_v34  ;;  %v364_v53 = vadd.f32 %v1054_v17, %v328_v42  ;;  %v886_v7 = vunpack.c.l.bf16 %v926_v63  ;;  %v887_v8 = vunpack.c.h.bf16 %v926_v63 }
  0x27   : > { %v319_v38 = vmul.f32 %v1044_v9, %v882_v27  ;;  %v404_v4 = vmax.f32 %v372_v57, 0.0  ;;  %v313_v14 = vmul.f32 %v1044_v9, %v870_v2  ;;  %v918_v16 = vunpack.c.l.bf16 %v934_v10 }
  0x28   : > { %494 = vmatpush.bf16.msra.mxu0 %v848_v39  ;;  %956 = vmatpush.bf16.msra.mxu1 %v848_v39  ;;  %v396_v62 = vmax.f32 %v364_v53, 0.0  ;;  %v919_v18 = vunpack.c.h.bf16 %v934_v10  ;;  %v314_v19 = vmul.f32 %v1044_v9, %v871_v6  ;;  %v321_v20 = vmul.f32 %v1044_v9, %v886_v7 }
  0x29   : > { %957 = vmatpush.bf16.msra.mxu2 %v848_v39  ;;  %958 = vmatpush.bf16.msra.mxu3 %v848_v39  ;;  %v320_v39 = vmul.f32 %v1044_v9, %v883_v28  ;;  %v355_v48 = vadd.f32 %v1054_v17, %v319_v38  ;;  %v322_v21 = vmul.f32 %v1044_v9, %v887_v8 }
  0x2a   : > { %v338_v25 = vmul.f32 %v1044_v9, %v919_v18  ;;  %v349_v26 = vadd.f32 %v1054_v17, %v313_v14  ;;  %v350_v27 = vadd.f32 %v1054_v17, %v314_v19  ;;  %v357_v28 = vadd.f32 %v1054_v17, %v321_v20 }
  0x2b   : > { %495 = vmatmul.bf16.vlgmr.msra.gmra.mxu0 %v407_v49  ;;  %515 = vmatmul.bf16.vlgmr.msra.gmra.mxu1 %v411_v50  ;;  %v356_v49 = vadd.f32 %v1054_v17, %v320_v39  ;;  %v335_v50 = vmul.f32 %v1044_v9, %v914_v44  ;;  %v387_v58 = vmax.f32 %v355_v48, 0.0  ;;  %v358_v29 = vadd.f32 %v1054_v17, %v322_v21 }
  0x2c   : > { %535 = vmatmul.bf16.vlgmr.msra.gmra.mxu2 %v415_v52  ;;  %555 = vmatmul.bf16.vlgmr.msra.gmra.mxu3 %v419_v0  ;;  %v363_v52 = vadd.f32 %v1054_v17, %v327_v41  ;;  %v930_v0 = vld [vmem:[%s1033_s30 + $0x58] sm:$0xff]   ;;  %v374_v33 = vadd.f32 %v1054_v17, %v338_v25  ;;  %v381_v34 = vmax.f32 %v349_v26, 0.0  ;;  %v382_v35 = vmax.f32 %v350_v27, 0.0 }
  0x2d   : > { %v371_v56 = vadd.f32 %v1054_v17, %v335_v50  ;;  %v388_v59 = vmax.f32 %v356_v49, 0.0  ;;  %v902_v12 = vunpack.c.l.bf16 %v930_v0  ;;  %v903_v13 = vunpack.c.h.bf16 %v930_v0 }
  0x2e   : > { %v395_v61 = vmax.f32 %v363_v52, 0.0  ;;  %v390_v36 = vmax.f32 %v358_v29, 0.0  ;;  %v410_v41 = vpack.c.bf16 %v382_v35, %v381_v34 }
  0x2f   : > { %v403_v3 = vmax.f32 %v371_v56, 0.0  ;;  %v413_v5 = vpack.c.bf16 %v388_v59, %v387_v58  ;;  %v329_v22 = vmul.f32 %v1044_v9, %v902_v12 }
  0x30   : > { %v417_v11 = vpack.c.bf16 %v396_v62, %v395_v61 }
  0x31   : > { %v421_v15 = vpack.c.bf16 %v404_v4, %v403_v3  ;;  %v365_v30 = vadd.f32 %v1054_v17, %v329_v22 }
  0x33   : > { %v397_v37 = vmax.f32 %v365_v30, 0.0 }
  0x3b   : > { %500 = vmatmul.bf16.gmra.mxu0 %v408_v23  ;;  %520 = vmatmul.bf16.gmra.mxu1 %v412_v24  ;;  %v330_v23 = vmul.f32 %v1044_v9, %v903_v13  ;;  %v337_v24 = vmul.f32 %v1044_v9, %v918_v16  ;;  %v389_v9 = vmax.f32 %v357_v28, 0.0 }
  0x3c   : > { %540 = vmatmul.bf16.gmra.mxu2 %v416_v31  ;;  %560 = vmatmul.bf16.gmra.mxu3 %v420_v40  ;;  %v406_v40 = vmax.f32 %v374_v33, 0.0 }
  0x3d   : > { %v366_v31 = vadd.f32 %v1054_v17, %v330_v23  ;;  %v373_v32 = vadd.f32 %v1054_v17, %v337_v24  ;;  %v414_v42 = vpack.c.bf16 %v390_v36, %v389_v9 }
  0x3f   : > { %v398_v38 = vmax.f32 %v366_v31, 0.0  ;;  %v405_v39 = vmax.f32 %v373_v32, 0.0 }
  0x41   : > { %v418_v43 = vpack.c.bf16 %v398_v38, %v397_v37  ;;  %v422_v44 = vpack.c.bf16 %v406_v40, %v405_v39 }
  0x4b   : > { %505 = vmatmul.bf16.gmra.mxu0 %v409_v1  ;;  %525 = vmatmul.bf16.gmra.mxu1 %v413_v5 }
  0x4c   : > { %545 = vmatmul.bf16.gmra.mxu2 %v417_v11  ;;  %565 = vmatmul.bf16.gmra.mxu3 %v421_v15 }
  0x5b   : > { %510 = vmatmul.bf16.gmra.mxu0 %v410_v41  ;;  %530 = vmatmul.bf16.gmra.mxu1 %v414_v42 }
  0x5c   : > { %550 = vmatmul.bf16.gmra.mxu2 %v418_v43  ;;  %570 = vmatmul.bf16.gmra.mxu3 %v422_v44 }
  0xa8   : > { %v496_v17 = vpop.f32.mrf.mxu0  ;;  %v1146_v45 = vpop.f32.mrf.mxu1 }
  0xa9   : > { %576 = vst [vmem:[%s1144_s26] sm:$0xff] %v496_v17  ;;  %v645_v3 = vmul.f32 %v496_v17, %v496_v17  ;;  %v653_v33 = vmul.f32 %v1146_v45, %v1146_v45 }
  0xaa   : > { %584 = vst [vmem:[%s1144_s26 + $0x40] sm:$0xff] %v1146_v45 }
  0xaf   : > { %v1151_v46 = vpop.f32.mrf.mxu2  ;;  %v1158_v49 = vpop.f32.mrf.mxu3 }
  0xb0   : > { %v498_v47 = vpop.f32.mrf.mxu0  ;;  %v1153_v48 = vpop.f32.mrf.mxu1  ;;  %592 = vst [vmem:[%s1144_s26 + $0x80] sm:$0xff] %v1151_v46 }
  0xb1   : > { %577 = vst [vmem:[%s1144_s26 + $0x8] sm:$0xff] %v498_v47  ;;  %v646_v2 = vmul.f32 %v498_v47, %v498_v47  ;;  %v608_v4 = vadd.f32 %v498_v47, %v496_v17  ;;  %v654_v9 = vmul.f32 %v1153_v48, %v1153_v48 }
  0xb2   : > { %585 = vst [vmem:[%s1144_s26 + $0x48] sm:$0xff] %v1153_v48 }
  0xb3   : > { %600 = vst [vmem:[%s1144_s26 + $0xc0] sm:$0xff] %v1158_v49  ;;  %v677_v6 = vadd.f32 %v646_v2, %v645_v3 }
  0xb7   : > { %v1164_v50 = vpop.f32.mrf.mxu2  ;;  %v1171_v53 = vpop.f32.mrf.mxu3 }
  0xb8   : > { %v501_v51 = vpop.f32.mrf.mxu0  ;;  %v1166_v52 = vpop.f32.mrf.mxu1  ;;  %593 = vst [vmem:[%s1144_s26 + $0x88] sm:$0xff] %v1164_v50 }
  0xb9   : > { %578 = vst [vmem:[%s1144_s26 + $0x10] sm:$0xff] %v501_v51  ;;  %v647_v5 = vmul.f32 %v501_v51, %v501_v51  ;;  %v609_v7 = vadd.f32 %v608_v4, %v501_v51  ;;  %v655_v38 = vmul.f32 %v1166_v52, %v1166_v52 }
  0xba   : > { %586 = vst [vmem:[%s1144_s26 + $0x50] sm:$0xff] %v1166_v52 }
  0xbb   : > { %601 = vst [vmem:[%s1144_s26 + $0xc8] sm:$0xff] %v1171_v53  ;;  %v678_v13 = vadd.f32 %v677_v6, %v647_v5  ;;  %v661_v5 = vmul.f32 %v1151_v46, %v1151_v46 }
  0xbf   : > { %v1177_v54 = vpop.f32.mrf.mxu2  ;;  %v1184_v57 = vpop.f32.mrf.mxu3 }
  0xc0   : > { %v503_v55 = vpop.f32.mrf.mxu0  ;;  %v1179_v56 = vpop.f32.mrf.mxu1  ;;  %594 = vst [vmem:[%s1144_s26 + $0x90] sm:$0xff] %v1177_v54 }
  0xc1   : > { %579 = vst [vmem:[%s1144_s26 + $0x18] sm:$0xff] %v503_v55  ;;  %v648_v8 = vmul.f32 %v503_v55, %v503_v55  ;;  %v610_v14 = vadd.f32 %v609_v7, %v503_v55  ;;  %v656_v42 = vmul.f32 %v1179_v56, %v1179_v56 }
  0xc2   : > { %587 = vst [vmem:[%s1144_s26 + $0x58] sm:$0xff] %v1179_v56 }
  0xc3   : > { %602 = vst [vmem:[%s1144_s26 + $0xd0] sm:$0xff] %v1184_v57  ;;  %v679_v18 = vadd.f32 %v678_v13, %v648_v8 }
  0xc7   : > { %v1190_v58 = vpop.f32.mrf.mxu2  ;;  %v1197_v61 = vpop.f32.mrf.mxu3 }
  0xc8   : > { %v506_v59 = vpop.f32.mrf.mxu0  ;;  %v1192_v60 = vpop.f32.mrf.mxu1  ;;  %595 = vst [vmem:[%s1144_s26 + $0x98] sm:$0xff] %v1190_v58 }
  0xc9   : > { %580 = vst [vmem:[%s1144_s26 + $0x20] sm:$0xff] %v506_v59  ;;  %v649_v15 = vmul.f32 %v506_v59, %v506_v59  ;;  %v611_v19 = vadd.f32 %v610_v14, %v506_v59  ;;  %v664_v14 = vmul.f32 %v1190_v58, %v1190_v58 }
  0xca   : > { %588 = vst [vmem:[%s1144_s26 + $0x60] sm:$0xff] %v1192_v60 }
  0xcb   : > { %603 = vst [vmem:[%s1144_s26 + $0xd8] sm:$0xff] %v1197_v61  ;;  %v680_v21 = vadd.f32 %v679_v18, %v649_v15 }
  0xcf   : > { %v1203_v62 = vpop.f32.mrf.mxu2  ;;  %v1210_v1 = vpop.f32.mrf.mxu3 }
  0xd0   : > { %v508_v63 = vpop.f32.mrf.mxu0  ;;  %v1205_v0 = vpop.f32.mrf.mxu1  ;;  %596 = vst [vmem:[%s1144_s26 + $0xa0] sm:$0xff] %v1203_v62 }
  0xd1   : > { %581 = vst [vmem:[%s1144_s26 + $0x28] sm:$0xff] %v508_v63  ;;  %v650_v20 = vmul.f32 %v508_v63, %v508_v63  ;;  %v612_v22 = vadd.f32 %v611_v19, %v508_v63  ;;  %v658_v51 = vmul.f32 %v1205_v0, %v1205_v0 }
  0xd2   : > { %589 = vst [vmem:[%s1144_s26 + $0x68] sm:$0xff] %v1205_v0 }
  0xd3   : > { %604 = vst [vmem:[%s1144_s26 + $0xe0] sm:$0xff] %v1210_v1  ;;  %v681_v24 = vadd.f32 %v680_v21, %v650_v20 }
  0xd7   : > { %v1216_v10 = vpop.f32.mrf.mxu2  ;;  %v1221_v16 = vpop.f32.mrf.mxu3 }
  0xd8   : > { %v511_v11 = vpop.f32.mrf.mxu0  ;;  %v531_v12 = vpop.f32.mrf.mxu1  ;;  %597 = vst [vmem:[%s1144_s26 + $0xa8] sm:$0xff] %v1216_v10  ;;  %v666_v21 = vmul.f32 %v1216_v10, %v1216_v10 }
  0xd9   : > { %582 = vst [vmem:[%s1144_s26 + $0x30] sm:$0xff] %v511_v11  ;;  %v651_v23 = vmul.f32 %v511_v11, %v511_v11  ;;  %v613_v25 = vadd.f32 %v612_v22, %v511_v11  ;;  %v659_v63 = vmul.f32 %v531_v12, %v531_v12 }
  0xda   : > { %590 = vst [vmem:[%s1144_s26 + $0x70] sm:$0xff] %v531_v12 }
  0xdb   : > { %605 = vst [vmem:[%s1144_s26 + $0xe8] sm:$0xff] %v1221_v16  ;;  %v682_v29 = vadd.f32 %v681_v24, %v651_v23 }
  0xdf   : > { %v551_v26 = vpop.f32.mrf.mxu2  ;;  %v1228_v32 = vpop.f32.mrf.mxu3 }
  0xe0   : > { %v513_v27 = vpop.f32.mrf.mxu0  ;;  %v533_v28 = vpop.f32.mrf.mxu1  ;;  %598 = vst [vmem:[%s1144_s26 + $0xb0] sm:$0xff] %v551_v26  ;;  %v667_v24 = vmul.f32 %v551_v26, %v551_v26 }
  0xe1   : > { %583 = vst [vmem:[%s1144_s26 + $0x38] sm:$0xff] %v513_v27  ;;  %v614_v30 = vadd.f32 %v613_v25, %v513_v27  ;;  %v652_v31 = vmul.f32 %v513_v27, %v513_v27 }
  0xe2   : > { %591 = vst [vmem:[%s1144_s26 + $0x78] sm:$0xff] %v533_v28 }
  0xe3   : > { %v615_v34 = vadd.f32 %v614_v30, %v1146_v45  ;;  %v683_v35 = vadd.f32 %v682_v29, %v652_v31  ;;  %606 = vst [vmem:[%s1144_s26 + $0xf0] sm:$0xff] %v1228_v32  ;;  %v657_v45 = vmul.f32 %v1192_v60, %v1192_v60 }
  0xe5   : > { %v616_v36 = vadd.f32 %v615_v34, %v1153_v48  ;;  %v684_v37 = vadd.f32 %v683_v35, %v653_v33  ;;  %v672_v35 = vmul.f32 %v1197_v61, %v1197_v61 }
  0xe7   : > { %v617_v39 = vadd.f32 %v616_v36, %v1166_v52  ;;  %v685_v40 = vadd.f32 %v684_v37, %v654_v9  ;;  %v553_v41 = vpop.f32.mrf.mxu2  ;;  %v573_v17 = vpop.f32.mrf.mxu3  ;;  %v673_v36 = vmul.f32 %v1210_v1, %v1210_v1 }
  0xe8   : > { %599 = vst [vmem:[%s1144_s26 + $0xb8] sm:$0xff] %v553_v41 }
  0xe9   : > { %v686_v43 = vadd.f32 %v685_v40, %v655_v38  ;;  %v618_v44 = vadd.f32 %v617_v39, %v1179_v56  ;;  %607 = vst [vmem:[%s1144_s26 + $0xf8] sm:$0xff] %v573_v17  ;;  %v660_v56 = vmul.f32 %v533_v28, %v533_v28 }
  0xeb   : > { %v619_v47 = vadd.f32 %v618_v44, %v1192_v60  ;;  %v687_v48 = vadd.f32 %v686_v43, %v656_v42  ;;  %v662_v60 = vmul.f32 %v1164_v50, %v1164_v50  ;;  %v675_v42 = vmul.f32 %v1228_v32, %v1228_v32 }
  0xec   : > { %v676_v44 = vmul.f32 %v573_v17, %v573_v17 }
  0xed   : > { %v620_v52 = vadd.f32 %v619_v47, %v1205_v0  ;;  %v688_v55 = vadd.f32 %v687_v48, %v657_v45  ;;  %v663_v0 = vmul.f32 %v1177_v54, %v1177_v54 }
  0xef   : > { %v621_v59 = vadd.f32 %v620_v52, %v531_v12  ;;  %v689_v2 = vadd.f32 %v688_v55, %v658_v51 }
  0xf1   : > { %v690_v3 = vadd.f32 %v689_v2, %v659_v63  ;;  %v622_v4 = vadd.f32 %v621_v59, %v533_v28  ;;  %v668_v28 = vmul.f32 %v553_v41, %v553_v41 }
  0xf3   : > { %v623_v6 = vadd.f32 %v622_v4, %v1151_v46  ;;  %v691_v7 = vadd.f32 %v690_v3, %v660_v56  ;;  %v665_v46 = vmul.f32 %v1203_v62, %v1203_v62 }
  0xf5   : > { %v624_v8 = vadd.f32 %v623_v6, %v1164_v50  ;;  %v692_v11 = vadd.f32 %v691_v7, %v661_v5 }
  0xf7   : > { %v625_v12 = vadd.f32 %v624_v8, %v1177_v54  ;;  %v693_v13 = vadd.f32 %v692_v11, %v662_v60 }
  0xf9   : > { %v694_v15 = vadd.f32 %v693_v13, %v663_v0  ;;  %v626_v18 = vadd.f32 %v625_v12, %v1190_v58  ;;  %v669_v58 = vmul.f32 %v1158_v49, %v1158_v49 }
  0xfb   : > { %v627_v19 = vadd.f32 %v626_v18, %v1203_v62  ;;  %v695_v20 = vadd.f32 %v694_v15, %v664_v14  ;;  %v670_v62 = vmul.f32 %v1171_v53, %v1171_v53 }
  0xfd   : > { %v628_v50 = vadd.f32 %v627_v19, %v1216_v10  ;;  %v696_v22 = vadd.f32 %v695_v20, %v665_v46  ;;  %v671_v10 = vmul.f32 %v1184_v57, %v1184_v57 }
  0xff   : > { %v697_v54 = vadd.f32 %v696_v22, %v666_v21  ;;  %v629_v23 = vadd.f32 %v628_v50, %v551_v26 }
 0x101   : > { %v698_v25 = vadd.f32 %v697_v54, %v667_v24  ;;  %v630_v27 = vadd.f32 %v629_v23, %v553_v41 }
 0x103   : > { %v631_v29 = vadd.f32 %v630_v27, %v1158_v49  ;;  %v699_v30 = vadd.f32 %v698_v25, %v668_v28 }
 0x105   : > { %v632_v31 = vadd.f32 %v631_v29, %v1171_v53  ;;  %v700_v33 = vadd.f32 %v699_v30, %v669_v58 }
 0x107   : > { %v633_v26 = vadd.f32 %v632_v31, %v1184_v57  ;;  %v701_v34 = vadd.f32 %v700_v33, %v670_v62  ;;  %v674_v57 = vmul.f32 %v1221_v16, %v1221_v16 }
 0x109   : > { %v702_v9 = vadd.f32 %v701_v34, %v671_v10  ;;  %v634_v49 = vadd.f32 %v633_v26, %v1197_v61 }
 0x10b   : > { %v635_v37 = vadd.f32 %v634_v49, %v1210_v1  ;;  %v703_v53 = vadd.f32 %v702_v9, %v672_v35 }
 0x10d   : > { %v636_v38 = vadd.f32 %v635_v37, %v1221_v16  ;;  %v704_v39 = vadd.f32 %v703_v53, %v673_v36 }
 0x10f   : > { %v705_v40 = vadd.f32 %v704_v39, %v674_v57  ;;  %v637_v41 = vadd.f32 %v636_v38, %v1228_v32 }
 0x111   : > { %v706_v61 = vadd.f32 %v705_v40, %v675_v42  ;;  %v638_v43 = vadd.f32 %v637_v41, %v573_v17 }
 0x113   : > { %v639_v45 = vrot.slane %v638_v43, 4  ;;  %v707_v47 = vadd.f32 %v706_v61, %v676_v44 }
 0x115   : > { %v640_v1 = vadd.f32 %v639_v45, %v638_v43  ;;  %v708_v48 = vrot.slane %v707_v47, 4 }
 0x117   : > { %v641_v51 = vrot.slane %v640_v1, 2  ;;  %v709_v52 = vadd.f32 %v708_v48, %v707_v47 }
 0x119   : > { %v642_v55 = vadd.f32 %v641_v51, %v640_v1  ;;  %v710_v16 = vrot.slane %v709_v52, 2 }
 0x11b   : > { %v643_v59 = vrot.slane %v642_v55, 1  ;;  %v711_v63 = vadd.f32 %v710_v16, %v709_v52 }
 0x11d   : > { %v712_v2 = vrot.slane %v711_v63, 1  ;;  %v644_v32 = vadd.f32 %v643_v59, %v642_v55 }
 0x11f   : > { %v713_v17 = vadd.f32 %v712_v2, %v711_v63 }
 0x121   : > { %v715_v3 = vsel %vm714_vm0, %v644_v32, %v713_v17 }
 0x122   : > { %716 = vst [vmem:[%s238_s29] sm:$0x3] %v715_v3 }
 0x123 PF: > { %s16_s18 = sadd.s32 1, %s975_s18  }
 0x124   : > { %p13_p5 = scmp.ge.s32.totalorder %s16_s18, 4  }
 0x126   :  { %15 = sbr.rel (!%p13_p5) target bundleno = 1 (0x1), region = 78 }

// kernel: bottleneck_forward.5
= control target key start
LH: loop header
LB: loop body
LE: loop exit
PB: predicated region body
PF: predicated region fallthrough
CT: control target
= control target key end

     0   :  { %s7239_s18 = smov 0   ;;  %s8919_s0 = inlined_call_operand.vmem [shape: bf16[2,16,16,128], index: 0, kind: input, shape index: {}]   ;;  %s8920_s1 = inlined_call_operand.vmem [shape: bf16[3,3,128,128], index: 1, kind: input, shape index: {}]   ;;  %s8921_s2 = inlined_call_operand.vmem [shape: f32[1,128], index: 2, kind: input, shape index: {}]   ;;  %s8922_s3 = inlined_call_operand.vmem [shape: f32[1,128], index: 3, kind: input, shape index: {}]   ;;  %s8923_s4 = inlined_call_operand.vmem [shape: bf16[2,16,16,128], index: 4, kind: output, shape index: {0}]   ;;  %s8924_s5 = inlined_call_operand.vmem [shape: f32[2,2,128], index: 5, kind: output, shape index: {1}]  }
   0x1 LB: > { %s6199_s19 = sadd.s32 4294967295, %s7206_s18   ;;  %p6203_p0 = scmp.ge.s32.totalorder %s7206_s18, 1  ;;  %s7206_s18 = sphi %s7239_s18, %s16_s18  }
   0x2   : > { %p190_p1 = scmp.lt.s32.totalorder %s7206_s18, 3 }
   0x4   : > { %p191_p2 = pnand %p6203_p0, %p190_p1 }
   0x6   : > { %194 = sbr.rel (%p191_p2) target bundleno = 801 (0x321), region = 36 }
   0xb   : > { %v6892_v0 = vld [vmem:[%s8920_s1 + $0x38] sm:$0xff]  ;;  %p222_p3 = scmp.lt.s32.totalorder %s6199_s19, 1  ;;  %v7208_v1 = vmov 0   ;;  %v6891_v2 = vld [vmem:[%s8920_s1 + $0x30] sm:$0xff]  ;;  %v7268_v3 = vld [vmem:[%s8921_s2] ss:$0 sm:$0xff] }
   0xc   : > { %417 = vst [vmem:[#allocation2 + $0x30] sm:$0xf] %v7208_v1  ;;  %7163 = vmatpush.bf16.msra.mxu1 %v6892_v0  ;;  %7164 = vmatpush.bf16.msra.mxu2 %v6892_v0  ;;  %v6890_v4 = vld [vmem:[%s8920_s1 + $0x28] sm:$0xff]  ;;  %v7280_v9 = vld [vmem:[%s8922_s3] ss:$0 sm:$0xff]  ;;  %v6888_v25 = vld [vmem:[%s8920_s1 + $0x18] sm:$0xff] }
   0xd   : > { %s8974_s19 = smov (!%p222_p3, %s6199_s19), 1  ;;  %7165 = vmatpush.bf16.msra.mxu3 %v6892_v0  ;;  %1188 = vmatpush.bf16.msra.mxu0 %v6892_v0  ;;  %418 = vst [vmem:[#allocation2 + $0x34] sm:$0xf] %v7208_v1  ;;  %v6889_v16 = vld [vmem:[%s8920_s1 + $0x20] sm:$0xff]  ;;  %vm491_vm0 = vsmask.f32 256 }
   0xe   : > { %s6867_s24 = sshll.u32 %s8974_s19, 7  ;;  %405 = vst [vmem:[#allocation2] sm:$0xf] %v7208_v1  ;;  %vm492_vm1 = vsmask.f32 4368  ;;  %vm815_vm2 = vcmask 1043456  }
   0xf   : > { %s7263_s27 = scalar_lea.vmem %s8919_s0, %s6867_s24  ;;  %406 = vst [vmem:[#allocation2 + $0x4] sm:$0xf] %v7208_v1  ;;  %vm816_vm3 = vsmask.f32 7938  ;;  %v6887_v36 = vld [vmem:[%s8920_s1 + $0x10] sm:$0xff]  ;;  %vm7316_vm4 = vmor %vm491_vm0, %vm492_vm1  ;;  %v6886_v49 = vld [vmem:[%s8920_s1 + $0x8] sm:$0xff]  ;;  %s8736_s30 = scalar_lea.vmem %s8923_s4, %s6867_s24 }
  0x10   : > { %7166 = vmatpush.bf16.msra.mxu1 %v6891_v2  ;;  %7167 = vmatpush.bf16.msra.mxu2 %v6891_v2  ;;  %v7135_v5 = vld [vmem:[%s7263_s27 + $0x18] sm:$0xff]   ;;  %407 = vst [vmem:[#allocation2 + $0x8] sm:$0x1] %v7208_v1  ;;  %vm7327_vm5 = vmand %vm815_vm2, %vm816_vm3  ;;  %v6885_v56 = vld [vmem:[%s8920_s1] sm:$0xff]  ;;  %vm822_vm6 = vcmask 1040384   ;;  %vm2218_vm11 = vcmask 1042432  }
  0x11   : > { %v7139_v6 = vld [vmem:[%s7263_s27 + $0x38] sm:$0xff]   ;;  %7168 = vmatpush.bf16.msra.mxu3 %v6891_v2  ;;  %1189 = vmatpush.bf16.msra.mxu0 %v6891_v2  ;;  %v7003_v7 = vunpack.c.l.bf16 %v7135_v5  ;;  %v7004_v8 = vunpack.c.h.bf16 %v7135_v5  ;;  %408 = vst [vmem:[#allocation2 + $0xc] sm:$0xf] %v7208_v1  ;;  %v7136_v61 = vld [vmem:[%s7263_s27 + $0x20] sm:$0xff]   ;;  %vm7726_vm7 = vmand %vm822_vm6, %vm491_vm0  ;;  %vm1421_vm8 = vsmask.f32 3328 }
  0x12   : > { %v7019_v10 = vunpack.c.l.bf16 %v7139_v6  ;;  %v7020_v11 = vunpack.c.h.bf16 %v7139_v6  ;;  %409 = vst [vmem:[#allocation2 + $0x10] sm:$0xf] %v7208_v1  ;;  %v7143_v17 = vld [vmem:[%s7263_s27 + $0x58] sm:$0xff]   ;;  %v7140_v62 = vld [vmem:[%s7263_s27 + $0x40] sm:$0xff]   ;;  %v7008_v5 = vunpack.c.h.bf16 %v7136_v61  ;;  %vm1422_vm9 = vsmask.f32 7440 }
  0x13   : > { %v312_v12 = vmul.f32 %v7268_v3, %v7003_v7  ;;  %v313_v13 = vmul.f32 %v7268_v3, %v7004_v8  ;;  %410 = vst [vmem:[#allocation2 + $0x14] sm:$0x1] %v7208_v1  ;;  %v7035_v22 = vunpack.c.l.bf16 %v7143_v17  ;;  %v7036_v26 = vunpack.c.h.bf16 %v7143_v17  ;;  %v841_v43 = vld [vmem:[#allocation2 + $0x30] sm:$0xf]  ;;  %v7144_v63 = vld [vmem:[%s7263_s27 + $0x60] sm:$0xff]   ;;  %vm7769_vm10 = vmor %vm1421_vm8, %vm1422_vm9  ;;  %s6208_s24 = sshll.u32 %s8974_s19, 1 }
  0x14   : > { %v320_v14 = vmul.f32 %v7268_v3, %v7019_v10  ;;  %v321_v15 = vmul.f32 %v7268_v3, %v7020_v11  ;;  %7169 = vmatpush.bf16.msra.mxu1 %v6890_v4  ;;  %7170 = vmatpush.bf16.msra.mxu2 %v6890_v4  ;;  %411 = vst [vmem:[#allocation2 + $0x18] sm:$0xf] %v7208_v1  ;;  %v7023_v7 = vunpack.c.l.bf16 %v7140_v62  ;;  %v7024_v8 = vunpack.c.h.bf16 %v7140_v62  ;;  %s235_s8 = scalar_lea.vmem %s8924_s5, %s6208_s24 }
  0x15   : > { %7171 = vmatpush.bf16.msra.mxu3 %v6890_v4  ;;  %1190 = vmatpush.bf16.msra.mxu0 %v6890_v4  ;;  %v347_v18 = vadd.f32 %v7280_v9, %v312_v12  ;;  %v348_v19 = vadd.f32 %v7280_v9, %v313_v13  ;;  %412 = vst [vmem:[#allocation2 + $0x1c] sm:$0xf] %v7208_v1  ;;  %v7007_v4 = vunpack.c.l.bf16 %v7136_v61  ;;  %v7039_v10 = vunpack.c.l.bf16 %v7144_v63 }
  0x16   : > { %v355_v20 = vadd.f32 %v7280_v9, %v320_v14  ;;  %v356_v21 = vadd.f32 %v7280_v9, %v321_v15  ;;  %413 = vst [vmem:[#allocation2 + $0x20] sm:$0x1] %v7208_v1  ;;  %v328_v31 = vmul.f32 %v7268_v3, %v7035_v22  ;;  %v329_v37 = vmul.f32 %v7268_v3, %v7036_v26 }
  0x17   : > { %v379_v23 = vmax.f32 %v347_v18, 0.0  ;;  %v380_v24 = vmax.f32 %v348_v19, 0.0  ;;  %414 = vst [vmem:[#allocation2 + $0x24] sm:$0xf] %v7208_v1  ;;  %v314_v12 = vmul.f32 %v7268_v3, %v7007_v4  ;;  %v315_v13 = vmul.f32 %v7268_v3, %v7008_v5 }
  0x18   : > { %7172 = vmatpush.bf16.msra.mxu1 %v6889_v16  ;;  %7173 = vmatpush.bf16.msra.mxu2 %v6889_v16  ;;  %415 = vst [vmem:[#allocation2 + $0x28] sm:$0xf] %v7208_v1  ;;  %v387_v29 = vmax.f32 %v355_v20, 0.0  ;;  %v388_v30 = vmax.f32 %v356_v21, 0.0  ;;  %v363_v44 = vadd.f32 %v7280_v9, %v328_v31  ;;  %v364_v50 = vadd.f32 %v7280_v9, %v329_v37  ;;  %v6990_v20 = vld [vmem:[%s7263_s27] sm:$0xff]  }
  0x19   : > { %7174 = vmatpush.bf16.msra.mxu3 %v6889_v16  ;;  %1191 = vmatpush.bf16.msra.mxu0 %v6889_v16  ;;  %v465_v27 = vpack.c.bf16 %v379_v23, %v379_v23  ;;  %v466_v28 = vpack.c.bf16 %v380_v24, %v380_v24  ;;  %416 = vst [vmem:[#allocation2 + $0x2c] sm:$0x1] %v7208_v1  ;;  %v7040_v14 = vunpack.c.h.bf16 %v7144_v63  ;;  %v6907_v63 = vld [vmem:[%s8920_s1 + $0xb0] sm:$0xff]  ;;  %vm2219_vm12 = vcmask 1046532  }
  0x1a   : > { %419 = vst [vmem:[#allocation2 + $0x38] sm:$0x1] %v7208_v1  ;;  %v7323_v41 = vpack.c.bf16 %v387_v29, %v387_v29  ;;  %v474_v48 = vpack.c.bf16 %v388_v30, %v388_v30  ;;  %v395_v54 = vmax.f32 %v363_v44, 0.0  ;;  %v396_v57 = vmax.f32 %v364_v50, 0.0  ;;  %v6869_v50 = vld [vmem:[#allocation2] sm:$0xff]  ;;  %vm7785_vm13 = vmor %vm2218_vm11, %vm2219_vm12 }
  0x1b   : > { %v546_v32 = vshrl.u32 %v465_v27, 16  ;;  %v549_v33 = vshll.u32 %v465_v27, 16  ;;  %v554_v34 = vshrl.u32 %v466_v28, 16  ;;  %v557_v35 = vshll.u32 %v466_v28, 16  ;;  %420 = vst [vmem:[#allocation2 + $0x3c] sm:$0xf] %v7208_v1 }
  0x1c   : > { %7175 = vmatpush.bf16.msra.mxu1 %v6888_v25  ;;  %7176 = vmatpush.bf16.msra.mxu2 %v6888_v25  ;;  %421 = vst [vmem:[#allocation2 + $0x40] sm:$0xf] %v7208_v1  ;;  %v614_v53 = vshrl.u32 %v7323_v41, 16  ;;  %v622_v55 = vshrl.u32 %v474_v48, 16  ;;  %v617_v59 = vshll.u32 %v7323_v41, 16  ;;  %v7355_v60 = vpack.c.bf16 %v395_v54, %v395_v54 }
  0x1d   : > { %7177 = vmatpush.bf16.msra.mxu3 %v6888_v25  ;;  %1192 = vmatpush.bf16.msra.mxu0 %v6888_v25  ;;  %v548_v39 = vrot.slane %v546_v32, 7  ;;  %v7320_v40 = vrot.slane %v554_v34, 7  ;;  %422 = vst [vmem:[#allocation2 + $0x44] sm:$0x1] %v7208_v1  ;;  %v625_v2 = vshll.u32 %v474_v48, 16  ;;  %v7364_v6 = vpack.c.bf16 %v396_v57, %v396_v57 }
  0x1e   : > { %423 = vst [vmem:[#allocation2 + $0x48] sm:$0xf] %v7208_v1  ;;  %v7351_v58 = vrot.slane %v614_v53, 7  ;;  %v7361_v0 = vrot.slane %v622_v55, 7  ;;  %v682_v16 = vshrl.u32 %v7355_v60, 16  ;;  %v322_v17 = vmul.f32 %v7268_v3, %v7023_v7  ;;  %v6900_v55 = vld [vmem:[%s8920_s1 + $0x78] sm:$0xff] }
  0x1f   : > { %v551_v45 = vor.u32 %v549_v33, %v548_v39  ;;  %v552_v46 = vrot.slane %v548_v39, 4  ;;  %v559_v47 = vor.u32 %v557_v35, %v7320_v40  ;;  %424 = vst [vmem:[#allocation2 + $0x4c] sm:$0xf] %v7208_v1  ;;  %v323_v18 = vmul.f32 %v7268_v3, %v7024_v8  ;;  %v6931_v7 = vld [vmem:[%s8920_s1 + $0xf0] sm:$0xff] }
  0x20   : > { %7178 = vmatpush.bf16.msra.mxu1 %v6887_v36  ;;  %7179 = vmatpush.bf16.msra.mxu2 %v6887_v36  ;;  %425 = vst [vmem:[#allocation2 + $0x50] sm:$0x1] %v7208_v1  ;;  %v620_v11 = vrot.slane %v7351_v58, 4  ;;  %v330_v19 = vmul.f32 %v7268_v3, %v7039_v10  ;;  %v627_v21 = vor.u32 %v625_v2, %v7361_v0  ;;  %v690_v25 = vshrl.u32 %v7364_v6, 16  ;;  %v6940_v2 = vld [vmem:[%s8920_s1 + $0x138] sm:$0xff]  ;;  %v6899_v8 = vld [vmem:[%s8920_s1 + $0x70] sm:$0xff] }
  0x21   : > { %7180 = vmatpush.bf16.msra.mxu3 %v6887_v36  ;;  %1193 = vmatpush.bf16.msra.mxu0 %v6887_v36  ;;  %v560_v51 = vsel %vm7316_vm4, %v552_v46, %v559_v47  ;;  %v842_v52 = vsel %vm7327_vm5, %v551_v45, %v841_v43  ;;  %426 = vst [vmem:[#allocation2 + $0x54] sm:$0xf] %v7208_v1  ;;  %v6991_v32 = vunpack.c.l.bf16 %v6990_v20  ;;  %v7389_v33 = vrot.slane %v682_v16, 7 }
  0x22   : > { %843 = vst [vmem:[#allocation2 + $0x30] sm:$0xf] %v842_v52  ;;  %v349_v22 = vadd.f32 %v7280_v9, %v314_v12  ;;  %v350_v23 = vadd.f32 %v7280_v9, %v315_v13  ;;  %v331_v24 = vmul.f32 %v7268_v3, %v7040_v14  ;;  %v357_v26 = vadd.f32 %v7280_v9, %v322_v17 }
  0x23   : > { %844 = vst [vmem:[#allocation2 + $0x34] sm:$0xf] %v560_v51  ;;  %v358_v27 = vadd.f32 %v7280_v9, %v323_v18  ;;  %v365_v28 = vadd.f32 %v7280_v9, %v330_v19  ;;  %v685_v34 = vshll.u32 %v7355_v60, 16  ;;  %v693_v37 = vshll.u32 %v7364_v6, 16  ;;  %v6932_v51 = vld [vmem:[%s8920_s1 + $0xf8] sm:$0xff] }
  0x24   : > { %7181 = vmatpush.bf16.msra.mxu1 %v6886_v49  ;;  %7182 = vmatpush.bf16.msra.mxu2 %v6886_v49  ;;  %427 = vst [vmem:[#allocation2 + $0x58] sm:$0xf] %v7208_v1  ;;  %v381_v29 = vmax.f32 %v349_v22, 0.0  ;;  %v382_v30 = vmax.f32 %v350_v23, 0.0  ;;  %v366_v31 = vadd.f32 %v7280_v9, %v331_v24  ;;  %v389_v35 = vmax.f32 %v357_v26, 0.0 }
  0x25   : > { %7183 = vmatpush.bf16.msra.mxu3 %v6886_v49  ;;  %1194 = vmatpush.bf16.msra.mxu0 %v6886_v49  ;;  %428 = vst [vmem:[#allocation2 + $0x5c] sm:$0x1] %v7208_v1  ;;  %v390_v36 = vmax.f32 %v358_v27, 0.0  ;;  %v6992_v44 = vunpack.c.h.bf16 %v6990_v20  ;;  %v7395_v45 = vrot.slane %v690_v25, 7  ;;  %v397_v47 = vmax.f32 %v365_v28, 0.0  ;;  %v6908_v49 = vld [vmem:[%s8920_s1 + $0xb8] sm:$0xff] }
  0x26   : > { %429 = vst [vmem:[#allocation2 + $0x60] sm:$0xf] %v7208_v1  ;;  %v467_v39 = vpack.c.bf16 %v381_v29, %v381_v29  ;;  %v468_v43 = vpack.c.bf16 %v382_v30, %v382_v30  ;;  %v475_v46 = vpack.c.bf16 %v389_v35, %v389_v35  ;;  %v398_v48 = vmax.f32 %v366_v31, 0.0  ;;  %v7456_v22 = vld [vmem:[#allocation2 + $0x3c] sm:$0xf] }
  0x27   : > { %430 = vst [vmem:[#allocation2 + $0x64] sm:$0xf] %v7208_v1  ;;  %v306_v53 = vmul.f32 %v7268_v3, %v6991_v32  ;;  %v688_v54 = vrot.slane %v7389_v33, 4  ;;  %v7410_v57 = vpack.c.bf16 %v390_v36, %v390_v36  ;;  %v7412_v61 = vpack.c.bf16 %v397_v47, %v397_v47 }
  0x28   : > { %7184 = vmatpush.bf16.msra.mxu1 %v6885_v56  ;;  %7185 = vmatpush.bf16.msra.mxu2 %v6885_v56  ;;  %431 = vst [vmem:[#allocation2 + $0x68] sm:$0x1] %v7208_v1  ;;  %v563_v52 = vshrl.u32 %v467_v39, 16  ;;  %v7418_v62 = vor.u32 %v617_v59, %v7351_v58  ;;  %v571_v5 = vshrl.u32 %v468_v43, 16  ;;  %v307_v6 = vmul.f32 %v7268_v3, %v6992_v44 }
  0x29   : > { %7186 = vmatpush.bf16.msra.mxu3 %v6885_v56  ;;  %1195 = vmatpush.bf16.msra.mxu0 %v6885_v56  ;;  %432 = vst [vmem:[#allocation2 + $0x6c] sm:$0xf] %v7208_v1  ;;  %v566_v56 = vshll.u32 %v467_v39, 16  ;;  %v7432_v41 = vsel %vm7316_vm4, %v620_v11, %v627_v21  ;;  %v695_v59 = vor.u32 %v693_v37, %v7395_v45  ;;  %v574_v10 = vshll.u32 %v468_v43, 16  ;;  %v7141_v39 = vld [vmem:[%s7263_s27 + $0x48] sm:$0xff]  }
  0x2a   : > { %v6873_v15 = vld [vmem:[#allocation2 + $0x30] sm:$0xff]  ;;  %433 = vst [vmem:[#allocation2 + $0x70] sm:$0xf] %v7208_v1  ;;  %v565_v4 = vrot.slane %v563_v52, 7  ;;  %v631_v12 = vshrl.u32 %v475_v46, 16  ;;  %v7444_v11 = vrot.slane %v571_v5, 7  ;;  %v484_v14 = vpack.c.bf16 %v398_v48, %v398_v48 }
  0x2b   : > { %1216 = vmatmul.bf16.vlgmr.msra.gmra.mxu1 %v6873_v15  ;;  %434 = vst [vmem:[#allocation2 + $0x74] sm:$0x1] %v7208_v1  ;;  %v634_v13 = vshll.u32 %v475_v46, 16  ;;  %v341_v15 = vadd.f32 %v7280_v9, %v306_v53  ;;  %v639_v18 = vshrl.u32 %v7410_v57, 16  ;;  %v699_v19 = vshrl.u32 %v7412_v61, 16 }
  0x2c   : > { %435 = vst [vmem:[#allocation2 + $0x78] sm:$0xf] %v7208_v1  ;;  %2462 = vmatpush.bf16.msrb.mxu2 %v6908_v49  ;;  %1196 = vmatmul.bf16.vlgmr.msra.gmra.mxu0 %v6869_v50  ;;  %v7448_v16 = vor.u32 %v566_v56, %v565_v4  ;;  %v7450_v17 = vrot.slane %v631_v12, 7  ;;  %v569_v20 = vrot.slane %v565_v4, 4  ;;  %v576_v21 = vor.u32 %v574_v10, %v7444_v11  ;;  %v7145_v4 = vld [vmem:[%s7263_s27 + $0x68] sm:$0xff]  }
  0x2d   : > { %436 = vst [vmem:[#allocation2 + $0x7c] sm:$0xf] %v7208_v1  ;;  %2840 = vmatpush.bf16.msrb.mxu3 %v6932_v51  ;;  %1937 = vmatpush.bf16.msrb.mxu1 %v6900_v55  ;;  %v7442_v58 = vld [vmem:[#allocation2 + $0x60] sm:$0xf]  ;;  %v642_v23 = vshll.u32 %v7410_v57, 16  ;;  %v342_v24 = vadd.f32 %v7280_v9, %v307_v6  ;;  %v7464_v25 = vor.u32 %v685_v34, %v7389_v33  ;;  %v7469_v27 = vrot.slane %v639_v18, 7 }
  0x2e   : > { %437 = vst [vmem:[#allocation2 + $0x80] sm:$0x1] %v7208_v1  ;;  %3586 = vmatpush.bf16.msrb.mxu0 %v6940_v2  ;;  %v7467_v26 = vor.u32 %v634_v13, %v7450_v17  ;;  %v702_v29 = vshll.u32 %v7412_v61, 16  ;;  %v7477_v30 = vsel %vm7316_vm4, %v688_v54, %v695_v59  ;;  %v7479_v60 = vrot.slane %v699_v19, 7  ;;  %v7137_v33 = vld [vmem:[%s7263_s27 + $0x28] sm:$0xff]   ;;  %v6939_v19 = vld [vmem:[%s8920_s1 + $0x130] sm:$0xff] }
  0x2f   : > { %438 = vst [vmem:[#allocation2 + $0x84] sm:$0xf] %v7208_v1  ;;  %v707_v31 = vshrl.u32 %v484_v14, 16  ;;  %v373_v32 = vmax.f32 %v341_v15, 0.0  ;;  %v870_v34 = vsel %vm7327_vm5, %v7418_v62, %v7442_v58  ;;  %v849_v35 = vsel %vm7327_vm5, %v7448_v16, %v7456_v22  ;;  %v6906_v15 = vld [vmem:[%s8920_s1 + $0xa8] sm:$0xff] }
  0x30   : > { %439 = vst [vmem:[#allocation2 + $0x88] sm:$0xf] %v7208_v1  ;;  %2463 = vmatpush.bf16.msrb.mxu2 %v6907_v63  ;;  %v7471_v28 = vld [vmem:[#allocation2 + $0x6c] sm:$0xf]  ;;  %v637_v36 = vrot.slane %v7450_v17, 4  ;;  %v710_v37 = vshll.u32 %v484_v14, 16  ;;  %v7498_v44 = vsel %vm7316_vm4, %v569_v20, %v576_v21  ;;  %v644_v46 = vor.u32 %v642_v23, %v7469_v27 }
  0x31   : > { %440 = vst [vmem:[#allocation2 + $0x8c] sm:$0x1] %v7208_v1  ;;  %2841 = vmatpush.bf16.msrb.mxu3 %v6931_v7  ;;  %1938 = vmatpush.bf16.msrb.mxu1 %v6899_v8  ;;  %v7501_v47 = vrot.slane %v707_v31, 7  ;;  %v374_v48 = vmax.f32 %v342_v24, 0.0  ;;  %v877_v49 = vsel %vm7327_vm5, %v7467_v26, %v7471_v28  ;;  %v459_v50 = vpack.c.bf16 %v373_v32, %v373_v32  ;;  %v6930_v18 = vld [vmem:[%s8920_s1 + $0xe8] sm:$0xff] }
  0x32   : > { %441 = vst [vmem:[#allocation2 + $0x90] sm:$0xf] %v7208_v1  ;;  %v7011_v51 = vunpack.c.l.bf16 %v7137_v33  ;;  %v7012_v52 = vunpack.c.h.bf16 %v7137_v33  ;;  %v7510_v53 = vor.u32 %v702_v29, %v7479_v60  ;;  %v7027_v55 = vunpack.c.l.bf16 %v7141_v39  ;;  %v7551_v29 = vld [vmem:[#allocation2 + $0xc] sm:$0xf]  ;;  %3587 = vmatpush.bf16.msrb.mxu0 %v6939_v19 }
  0x33   : > { %442 = vst [vmem:[#allocation2 + $0x94] sm:$0xf] %v7208_v1  ;;  %v460_v54 = vpack.c.bf16 %v374_v48, %v374_v48  ;;  %v7028_v56 = vunpack.c.h.bf16 %v7141_v39  ;;  %v495_v61 = vshrl.u32 %v459_v50, 16  ;;  %v498_v63 = vshll.u32 %v459_v50, 16  ;;  %v6929_v39 = vld [vmem:[%s8920_s1 + $0xe0] sm:$0xff]  ;;  %v6938_v50 = vld [vmem:[%s8920_s1 + $0x128] sm:$0xff] }
  0x34   : > { %443 = vst [vmem:[#allocation2 + $0x98] sm:$0x1] %v7208_v1  ;;  %v316_v2 = vmul.f32 %v7268_v3, %v7011_v51  ;;  %v705_v5 = vrot.slane %v7479_v60, 4  ;;  %v712_v6 = vor.u32 %v710_v37, %v7501_v47  ;;  %v317_v12 = vmul.f32 %v7268_v3, %v7012_v52  ;;  %v6898_v60 = vld [vmem:[%s8920_s1 + $0x68] sm:$0xff]  ;;  %2464 = vmatpush.bf16.msrb.mxu2 %v6906_v15  ;;  %v6905_v37 = vld [vmem:[%s8920_s1 + $0xa0] sm:$0xff] }
  0x35   : > { %444 = vst [vmem:[#allocation2 + $0x9c] sm:$0xf] %v7208_v1  ;;  %v503_v59 = vshrl.u32 %v460_v54, 16  ;;  %v506_v7 = vshll.u32 %v460_v54, 16  ;;  %v7525_v10 = vrot.slane %v495_v61, 7  ;;  %v324_v14 = vmul.f32 %v7268_v3, %v7027_v55  ;;  %2842 = vmatpush.bf16.msrb.mxu3 %v6930_v18  ;;  %1939 = vmatpush.bf16.msrb.mxu1 %v6898_v60  ;;  %v6897_v51 = vld [vmem:[%s8920_s1 + $0x60] sm:$0xff] }
  0x36   : > { %445 = vst [vmem:[#allocation2 + $0xa0] sm:$0xf] %v7208_v1  ;;  %v351_v13 = vadd.f32 %v7280_v9, %v316_v2  ;;  %v325_v20 = vmul.f32 %v7268_v3, %v7028_v56  ;;  %v7043_v21 = vunpack.c.l.bf16 %v7145_v4  ;;  %v7044_v23 = vunpack.c.h.bf16 %v7145_v4  ;;  %3588 = vmatpush.bf16.msrb.mxu0 %v6938_v50 }
  0x37   : > { %446 = vst [vmem:[#allocation2 + $0xa4] sm:$0x1] %v7208_v1  ;;  %v7534_v17 = vrot.slane %v503_v59, 7  ;;  %v7546_v24 = vsel %vm7316_vm4, %v637_v36, %v644_v46  ;;  %v352_v31 = vadd.f32 %v7280_v9, %v317_v12  ;;  %v359_v32 = vadd.f32 %v7280_v9, %v324_v14 }
  0x38   : > { %447 = vst [vmem:[#allocation2 + $0xa8] sm:$0xf] %v7208_v1  ;;  %v501_v36 = vrot.slane %v7525_v10, 4  ;;  %v360_v46 = vadd.f32 %v7280_v9, %v325_v20  ;;  %v713_v48 = vsel %vm7316_vm4, %v705_v5, %v712_v6  ;;  %v332_v55 = vmul.f32 %v7268_v3, %v7043_v21  ;;  %2465 = vmatpush.bf16.msrb.mxu2 %v6905_v37 }
  0x39   : > { %448 = vst [vmem:[#allocation2 + $0xac] sm:$0xf] %v7208_v1  ;;  %v7494_v43 = vld [vmem:[#allocation2 + $0x90] sm:$0xf]  ;;  %v384_v52 = vmax.f32 %v352_v31, 0.0  ;;  %v391_v54 = vmax.f32 %v359_v32, 0.0  ;;  %2843 = vmatpush.bf16.msrb.mxu3 %v6929_v39  ;;  %1940 = vmatpush.bf16.msrb.mxu1 %v6897_v51 }
  0x3a   : > { %449 = vst [vmem:[#allocation2 + $0xb0] sm:$0x1] %v7208_v1  ;;  %v898_v57 = vsel %vm7327_vm5, %v7464_v25, %v7494_v43  ;;  %v7549_v25 = vor.u32 %v498_v63, %v7525_v10  ;;  %v383_v43 = vmax.f32 %v351_v13, 0.0  ;;  %v392_v61 = vmax.f32 %v360_v46, 0.0  ;;  %v855_v13 = vld [vmem:[#allocation2 + $0x48] sm:$0xf] }
  0x3b   : > { %450 = vst [vmem:[#allocation2 + $0xb4] sm:$0xf] %v7208_v1  ;;  %v333_v63 = vmul.f32 %v7268_v3, %v7044_v23  ;;  %v470_v4 = vpack.c.bf16 %v384_v52, %v384_v52  ;;  %v477_v5 = vpack.c.bf16 %v391_v54, %v391_v54  ;;  %v367_v6 = vadd.f32 %v7280_v9, %v332_v55  ;;  %v7142_v10 = vld [vmem:[%s7263_s27 + $0x50] sm:$0xff]  }
  0x3c   : > { %451 = vst [vmem:[#allocation2 + $0xb8] sm:$0xf] %v7208_v1  ;;  %v7523_v8 = vld [vmem:[#allocation2 + $0x9c] sm:$0xf]  ;;  %v469_v56 = vpack.c.bf16 %v383_v43, %v383_v43  ;;  %v819_v2 = vsel %vm7327_vm5, %v7549_v25, %v7551_v29  ;;  %v7138_v43 = vld [vmem:[%s7263_s27 + $0x30] sm:$0xff]  }
  0x3d   : > { %452 = vst [vmem:[#allocation2 + $0xbc] sm:$0x1] %v7208_v1  ;;  %v905_v33 = vsel %vm7327_vm5, %v7510_v53, %v7523_v8  ;;  %v368_v59 = vadd.f32 %v7280_v9, %v333_v63  ;;  %v591_v12 = vshll.u32 %v470_v4, 16  ;;  %v648_v14 = vshrl.u32 %v477_v5, 16 }
  0x3e   : > { %453 = vst [vmem:[#allocation2 + $0xc0] sm:$0xf] %v7208_v1  ;;  %v580_v62 = vshrl.u32 %v469_v56, 16  ;;  %v583_v58 = vshll.u32 %v469_v56, 16  ;;  %v651_v15 = vshll.u32 %v477_v5, 16  ;;  %v399_v20 = vmax.f32 %v367_v6, 0.0 }
  0x3f   : > { %454 = vst [vmem:[#allocation2 + $0xc4] sm:$0xf] %v7208_v1  ;;  %v650_v21 = vrot.slane %v648_v14, 7  ;;  %v400_v23 = vmax.f32 %v368_v59, 0.0  ;;  %v911_v55 = vld [vmem:[#allocation2 + $0xa8] sm:$0xf]  ;;  %v7015_v56 = vunpack.c.l.bf16 %v7138_v43 }
  0x40   : > { %455 = vst [vmem:[#allocation2 + $0xc8] sm:$0x1] %v7208_v1  ;;  %v485_v60 = vpack.c.bf16 %v399_v20, %v399_v20  ;;  %v6928_v6 = vld [vmem:[%s8920_s1 + $0xd8] sm:$0xff]  ;;  %v7146_v14 = vld [vmem:[%s7263_s27 + $0x70] sm:$0xff]  }
  0x41   : > { %456 = vst [vmem:[#allocation2 + $0xcc] sm:$0xf] %v7208_v1  ;;  %v653_v31 = vor.u32 %v651_v15, %v650_v21  ;;  %v654_v32 = vrot.slane %v650_v21, 4  ;;  %2844 = vmatpush.bf16.msrb.mxu3 %v6928_v6 }
  0x42   : > { %457 = vst [vmem:[#allocation2 + $0xd0] sm:$0xf] %v7208_v1  ;;  %v716_v8 = vshrl.u32 %v485_v60, 16 }
  0x43   : > { %458 = vst [vmem:[#allocation2 + $0xd4] sm:$0x1] %v7208_v1  ;;  %v508_v1 = vor.u32 %v506_v7, %v7534_v17  ;;  %v7133_v7 = vld [vmem:[%s7263_s27 + $0x8] sm:$0xff]  }
  0x44   : > { %871 = vst [vmem:[#allocation2 + $0x60] sm:$0xf] %v870_v34  ;;  %v478_v34 = vpack.c.bf16 %v392_v61, %v392_v61  ;;  %v6995_v25 = vunpack.c.l.bf16 %v7133_v7  ;;  %v6996_v37 = vunpack.c.h.bf16 %v7133_v7  ;;  %v7016_v61 = vunpack.c.h.bf16 %v7138_v43 }
  0x45   : > { %872 = vst [vmem:[#allocation2 + $0x64] sm:$0xf] %v7432_v41  ;;  %v588_v41 = vshrl.u32 %v470_v4, 16  ;;  %v509_v26 = vsel %vm7316_vm4, %v501_v36, %v508_v1 }
  0x46   : > { %899 = vst [vmem:[#allocation2 + $0x90] sm:$0xf] %v898_v57  ;;  %v582_v57 = vrot.slane %v580_v62, 7  ;;  %v656_v18 = vshrl.u32 %v478_v34, 16  ;;  %v659_v19 = vshll.u32 %v478_v34, 16  ;;  %v308_v54 = vmul.f32 %v7268_v3, %v6995_v25  ;;  %v6936_v25 = vld [vmem:[%s8920_s1 + $0x118] sm:$0xff] }
  0x47   : > { %900 = vst [vmem:[#allocation2 + $0x94] sm:$0xf] %v7477_v30  ;;  %v7603_v30 = vrot.slane %v588_v41, 7  ;;  %v309_v1 = vmul.f32 %v7268_v3, %v6996_v37  ;;  %v7031_v62 = vunpack.c.l.bf16 %v7142_v10  ;;  %v6937_v41 = vld [vmem:[%s8920_s1 + $0x120] sm:$0xff] }
  0x48   : > { %850 = vst [vmem:[#allocation2 + $0x3c] sm:$0xf] %v849_v35  ;;  %v585_v29 = vor.u32 %v583_v58, %v582_v57  ;;  %v586_v16 = vrot.slane %v582_v57, 4  ;;  %v7610_v22 = vrot.slane %v656_v18, 7  ;;  %v883_v35 = vld [vmem:[#allocation2 + $0x78] sm:$0xf]  ;;  %v343_v5 = vadd.f32 %v7280_v9, %v308_v54  ;;  %3589 = vmatpush.bf16.msrb.mxu0 %v6937_v41 }
  0x49   : > { %851 = vst [vmem:[#allocation2 + $0x40] sm:$0xf] %v7498_v44  ;;  %v593_v44 = vor.u32 %v591_v12, %v7603_v30  ;;  %v884_v53 = vsel %vm7327_vm5, %v653_v31, %v883_v35  ;;  %v7032_v58 = vunpack.c.h.bf16 %v7142_v10  ;;  %v344_v7 = vadd.f32 %v7280_v9, %v309_v1  ;;  %v6896_v12 = vld [vmem:[%s8920_s1 + $0x58] sm:$0xff]  ;;  %v6903_v18 = vld [vmem:[%s8920_s1 + $0x90] sm:$0xff] }
  0x4a   : > { %878 = vst [vmem:[#allocation2 + $0x6c] sm:$0xf] %v877_v49  ;;  %v856_v28 = vsel %vm7327_vm5, %v585_v29, %v855_v13  ;;  %v661_v49 = vor.u32 %v659_v19, %v7610_v22  ;;  %v318_v13 = vmul.f32 %v7268_v3, %v7015_v56  ;;  %v375_v57 = vmax.f32 %v343_v5, 0.0  ;;  %1941 = vmatpush.bf16.msrb.mxu1 %v6896_v12 }
  0x4b   : > { %879 = vst [vmem:[#allocation2 + $0x70] sm:$0xf] %v7546_v24  ;;  %v486_v24 = vpack.c.bf16 %v400_v23, %v400_v23  ;;  %v594_v46 = vsel %vm7316_vm4, %v586_v16, %v593_v44  ;;  %v319_v19 = vmul.f32 %v7268_v3, %v7016_v61  ;;  %v376_v21 = vmax.f32 %v344_v7, 0.0  ;;  %v6927_v23 = vld [vmem:[%s8920_s1 + $0xd0] sm:$0xff] }
  0x4c   : > { %v6877_v39 = vld [vmem:[#allocation2 + $0x60] sm:$0xff]  ;;  %906 = vst [vmem:[#allocation2 + $0x9c] sm:$0xf] %v905_v33  ;;  %v719_v33 = vshll.u32 %v485_v60, 16  ;;  %v662_v36 = vsel %vm7316_vm4, %v654_v32, %v661_v49  ;;  %v353_v29 = vadd.f32 %v7280_v9, %v318_v13  ;;  %v461_v35 = vpack.c.bf16 %v375_v57, %v375_v57  ;;  %v6895_v60 = vld [vmem:[%s8920_s1 + $0x50] sm:$0xff]  ;;  %2845 = vmatpush.bf16.msrb.mxu3 %v6927_v23 }
  0x4d   : > { %907 = vst [vmem:[#allocation2 + $0xa0] sm:$0xf] %v713_v48  ;;  %1236 = vmatmul.bf16.vlgmr.msra.gmra.mxu2 %v6877_v39  ;;  %v724_v51 = vshrl.u32 %v486_v24, 16  ;;  %v727_v52 = vshll.u32 %v486_v24, 16  ;;  %v718_v48 = vrot.slane %v716_v8, 7  ;;  %v354_v44 = vadd.f32 %v7280_v9, %v319_v19  ;;  %3590 = vmatpush.bf16.msrb.mxu0 %v6936_v25 }
  0x4e   : > { %v6881_v50 = vld [vmem:[#allocation2 + $0x90] sm:$0xff]  ;;  %820 = vst [vmem:[#allocation2 + $0xc] sm:$0xf] %v819_v2  ;;  %v6904_v2 = vld [vmem:[%s8920_s1 + $0x98] sm:$0xff]  ;;  %v7047_v31 = vunpack.c.l.bf16 %v7146_v14  ;;  %v462_v32 = vpack.c.bf16 %v376_v21, %v376_v21  ;;  %v385_v37 = vmax.f32 %v353_v29, 0.0  ;;  %v326_v39 = vmul.f32 %v7268_v3, %v7031_v62  ;;  %1942 = vmatpush.bf16.msrb.mxu1 %v6895_v60 }
  0x4f   : > { %821 = vst [vmem:[#allocation2 + $0x10] sm:$0xf] %v509_v26  ;;  %1256 = vmatmul.bf16.vlgmr.msra.gmra.mxu3 %v6881_v50  ;;  %v7636_v4 = vrot.slane %v724_v51, 7  ;;  %v721_v34 = vor.u32 %v719_v33, %v718_v48  ;;  %v722_v59 = vrot.slane %v718_v48, 4  ;;  %2466 = vmatpush.bf16.msrb.mxu2 %v6904_v2  ;;  %v327_v26 = vmul.f32 %v7268_v3, %v7032_v58  ;;  %v827_v48 = vld [vmem:[#allocation2 + $0x18] sm:$0xf] }
  0x50   : > { %v6874_v63 = vld [vmem:[#allocation2 + $0x3c] sm:$0xff]  ;;  %857 = vst [vmem:[#allocation2 + $0x48] sm:$0xf] %v856_v28  ;;  %v512_v49 = vshrl.u32 %v461_v35, 16  ;;  %v515_v24 = vshll.u32 %v461_v35, 16  ;;  %v386_v43 = vmax.f32 %v354_v44, 0.0  ;;  %v471_v33 = vpack.c.bf16 %v385_v37, %v385_v37 }
  0x51   : > { %858 = vst [vmem:[#allocation2 + $0x4c] sm:$0xf] %v594_v46  ;;  %1221 = vmatmul.bf16.gmra.mxu1 %v6874_v63  ;;  %v729_v15 = vor.u32 %v727_v52, %v7636_v4  ;;  %v912_v20 = vsel %vm7327_vm5, %v721_v34, %v911_v55  ;;  %v7048_v46 = vunpack.c.h.bf16 %v7146_v14  ;;  %v523_v8 = vshll.u32 %v462_v32, 16  ;;  %v862_v13 = vld [vmem:[#allocation2 + $0x54] sm:$0xf] }
  0x52   : > { %885 = vst [vmem:[#allocation2 + $0x78] sm:$0xf] %v884_v53  ;;  %v520_v53 = vshrl.u32 %v462_v32, 16  ;;  %v361_v10 = vadd.f32 %v7280_v9, %v326_v39  ;;  %v514_v50 = vrot.slane %v512_v49, 7  ;;  %v362_v51 = vadd.f32 %v7280_v9, %v327_v26  ;;  %v6878_v61 = vld [vmem:[#allocation2 + $0x6c] sm:$0xff] }
  0x53   : > { %886 = vst [vmem:[#allocation2 + $0x7c] sm:$0xf] %v662_v36  ;;  %v730_v16 = vsel %vm7316_vm4, %v722_v59, %v729_v15  ;;  %2467 = vmatpush.bf16.msrb.mxu2 %v6903_v18  ;;  %v472_v36 = vpack.c.bf16 %v386_v43, %v386_v43  ;;  %v334_v52 = vmul.f32 %v7268_v3, %v7047_v31  ;;  %v597_v55 = vshrl.u32 %v471_v33, 16  ;;  %v7134_v21 = vld [vmem:[%s7263_s27 + $0x10] sm:$0xff]   ;;  %v890_v31 = vld [vmem:[#allocation2 + $0x84] sm:$0xf] }
  0x54   : > { %913 = vst [vmem:[#allocation2 + $0xa8] sm:$0xf] %v912_v20  ;;  %v7679_v54 = vrot.slane %v520_v53, 7  ;;  %v600_v1 = vshll.u32 %v471_v33, 16  ;;  %v393_v56 = vmax.f32 %v361_v10, 0.0  ;;  %v517_v63 = vor.u32 %v515_v24, %v514_v50  ;;  %v6882_v7 = vld [vmem:[#allocation2 + $0x9c] sm:$0xff] }
  0x55   : > { %914 = vst [vmem:[#allocation2 + $0xac] sm:$0xf] %v730_v16  ;;  %v518_v2 = vrot.slane %v514_v50, 4  ;;  %v605_v5 = vshrl.u32 %v472_v36, 16  ;;  %v608_v6 = vshll.u32 %v472_v36, 16  ;;  %v599_v58 = vrot.slane %v597_v55, 7 }
  0x56   : > { %v6870_v28 = vld [vmem:[#allocation2 + $0xc] sm:$0xff]  ;;  %v525_v62 = vor.u32 %v523_v8, %v7679_v54  ;;  %v394_v34 = vmax.f32 %v362_v51, 0.0  ;;  %v335_v59 = vmul.f32 %v7268_v3, %v7048_v46  ;;  %v828_v41 = vsel %vm7327_vm5, %v517_v63, %v827_v48 }
  0x57   : > { %1201 = vmatmul.bf16.gmra.mxu0 %v6870_v28  ;;  %v7685_v12 = vrot.slane %v605_v5, 7  ;;  %v479_v14 = vpack.c.bf16 %v393_v56, %v393_v56  ;;  %v369_v15 = vadd.f32 %v7280_v9, %v334_v52  ;;  %829 = vst [vmem:[#allocation2 + $0x18] sm:$0xf] %v828_v41  ;;  %v602_v18 = vor.u32 %v600_v1, %v599_v58  ;;  %v6902_v28 = vld [vmem:[%s8920_s1 + $0x88] sm:$0xff]  ;;  %v6935_v8 = vld [vmem:[%s8920_s1 + $0x110] sm:$0xff]  ;;  %v6901_v52 = vld [vmem:[%s8920_s1 + $0x80] sm:$0xff] }
  0x58   : > { %v526_v57 = vsel %vm7316_vm4, %v518_v2, %v525_v62  ;;  %v603_v19 = vrot.slane %v599_v58, 4  ;;  %v480_v20 = vpack.c.bf16 %v394_v34, %v394_v34  ;;  %v6875_v23 = vld [vmem:[#allocation2 + $0x48] sm:$0xff]  ;;  %v370_v32 = vadd.f32 %v7280_v9, %v335_v59  ;;  %2468 = vmatpush.bf16.msrb.mxu2 %v6902_v28  ;;  %3591 = vmatpush.bf16.msrb.mxu0 %v6935_v8  ;;  %v824_v2 = vld [vmem:[#allocation2 + $0x14] sm:$0x1]  ;;  %v6893_v58 = vld [vmem:[%s8920_s1 + $0x40] sm:$0xff] }
  0x59   : > { %830 = vst [vmem:[#allocation2 + $0x1c] sm:$0xf] %v526_v57  ;;  %v610_v25 = vor.u32 %v608_v6, %v7685_v12  ;;  %v665_v29 = vshrl.u32 %v479_v14, 16  ;;  %v668_v16 = vshll.u32 %v479_v14, 16  ;;  %v863_v35 = vsel %vm7327_vm5, %v602_v18, %v862_v13  ;;  %v6926_v24 = vld [vmem:[%s8920_s1 + $0xc8] sm:$0xff] }
  0x5a   : > { %v673_v60 = vshrl.u32 %v480_v20, 16  ;;  %v676_v44 = vshll.u32 %v480_v20, 16  ;;  %864 = vst [vmem:[#allocation2 + $0x54] sm:$0xf] %v863_v35  ;;  %v401_v26 = vmax.f32 %v369_v15, 0.0  ;;  %v6999_v49 = vunpack.c.l.bf16 %v7134_v21  ;;  %v6894_v33 = vld [vmem:[%s8920_s1 + $0x48] sm:$0xff]  ;;  %2846 = vmatpush.bf16.msrb.mxu3 %v6926_v24 }
  0x5b   : > { %v611_v37 = vsel %vm7316_vm4, %v603_v19, %v610_v25  ;;  %v667_v39 = vrot.slane %v665_v29, 7  ;;  %v402_v46 = vmax.f32 %v370_v32, 0.0  ;;  %v7000_v53 = vunpack.c.h.bf16 %v7134_v21  ;;  %v6934_v63 = vld [vmem:[%s8920_s1 + $0x108] sm:$0xff]  ;;  %1943 = vmatpush.bf16.msrb.mxu1 %v6894_v33  ;;  %v1341_v34 = vld [vmem:[#allocation2] sm:$0xf] }
  0x5c   : > { %865 = vst [vmem:[#allocation2 + $0x58] sm:$0xf] %v611_v37  ;;  %v7703_v43 = vrot.slane %v673_v60, 7  ;;  %v487_v36 = vpack.c.bf16 %v401_v26, %v401_v26  ;;  %v310_v51 = vmul.f32 %v7268_v3, %v6999_v49  ;;  %v510_v48 = vrot.slane %v7534_v17, 4  ;;  %2469 = vmatpush.bf16.msrb.mxu2 %v6901_v52  ;;  %v918_v19 = vld [vmem:[#allocation2 + $0xb4] sm:$0xf]  ;;  %3592 = vmatpush.bf16.msrb.mxu0 %v6934_v63 }
  0x5d   : > { %1241 = vmatmul.bf16.gmra.mxu2 %v6878_v61  ;;  %v670_v10 = vor.u32 %v668_v16, %v667_v39  ;;  %v671_v50 = vrot.slane %v667_v39, 4  ;;  %v488_v1 = vpack.c.bf16 %v402_v46, %v402_v46  ;;  %v311_v56 = vmul.f32 %v7268_v3, %v7000_v53  ;;  %v6925_v61 = vld [vmem:[%s8920_s1 + $0xc0] sm:$0xff]  ;;  %v1343_v32 = vld [vmem:[#allocation2 + $0x8] sm:$0x1]  ;;  %v6879_v39 = vld [vmem:[#allocation2 + $0x78] sm:$0xff] }
  0x5e   : > { %v678_v55 = vor.u32 %v676_v44, %v7703_v43  ;;  %v733_v5 = vshrl.u32 %v487_v36, 16  ;;  %v736_v6 = vshll.u32 %v487_v36, 16  ;;  %v345_v62 = vadd.f32 %v7280_v9, %v310_v51  ;;  %2847 = vmatpush.bf16.msrb.mxu3 %v6925_v61  ;;  %v6933_v21 = vld [vmem:[%s8920_s1 + $0x100] sm:$0xff] }
  0x5f   : > { %1261 = vmatmul.bf16.gmra.mxu3 %v6882_v7  ;;  %v891_v3 = vsel %vm7327_vm5, %v670_v10, %v890_v31  ;;  %v741_v41 = vshrl.u32 %v488_v1, 16  ;;  %v744_v13 = vshll.u32 %v488_v1, 16  ;;  %v346_v14 = vadd.f32 %v7280_v9, %v311_v56  ;;  %1944 = vmatpush.bf16.msrb.mxu1 %v6893_v58  ;;  %v1342_v35 = vld [vmem:[#allocation2 + $0x4] sm:$0xf]  ;;  %v6883_v10 = vld [vmem:[#allocation2 + $0xa8] sm:$0xff] }
  0x60   : > { %v6871_v59 = vld [vmem:[#allocation2 + $0x18] sm:$0xff]  ;;  %v679_v7 = vsel %vm7316_vm4, %v671_v50, %v678_v55  ;;  %892 = vst [vmem:[#allocation2 + $0x84] sm:$0xf] %v891_v3  ;;  %v735_v15 = vrot.slane %v733_v5, 7  ;;  %v377_v57 = vmax.f32 %v345_v62, 0.0  ;;  %v825_v25 = vsel %vm7726_vm7, %v510_v48, %v824_v2  ;;  %3593 = vmatpush.bf16.msrb.mxu0 %v6933_v21 }
  0x61   : > { %1226 = vmatmul.bf16.gmra.mxu1 %v6875_v23  ;;  %893 = vst [vmem:[#allocation2 + $0x88] sm:$0xf] %v679_v7  ;;  %v7739_v18 = vrot.slane %v741_v41, 7  ;;  %v378_v20 = vmax.f32 %v346_v14, 0.0  ;;  %v1425_v23 = vshrl.u32 %v1341_v34, 16  ;;  %v1428_v60 = vshll.u32 %v1341_v34, 16 }
  0x62   : > { %v738_v9 = vor.u32 %v736_v6, %v735_v15  ;;  %v739_v29 = vrot.slane %v735_v15, 4  ;;  %v463_v16 = vpack.c.bf16 %v377_v57, %v377_v57  ;;  %826 = vst [vmem:[#allocation2 + $0x14] sm:$0x1] %v825_v25  ;;  %v1434_v33 = vshll.u32 %v1342_v35, 16  ;;  %v834_v48 = vld [vmem:[#allocation2 + $0x24] sm:$0xf] }
  0x63   : > { %v746_v44 = vor.u32 %v744_v13, %v7739_v18  ;;  %v464_v31 = vpack.c.bf16 %v378_v20, %v378_v20  ;;  %v1427_v37 = vrot.slane %v1425_v23, 4  ;;  %v1430_v24 = vrot.slane %v1428_v60, 5  ;;  %v6876_v56 = vld [vmem:[#allocation2 + $0x54] sm:$0xff]  ;;  %v2993_v3 = vld [vmem:[#allocation2 + $0xc] sm:$0xf] }
  0x64   : > { %v919_v26 = vsel %vm7327_vm5, %v738_v9, %v918_v19  ;;  %v529_v28 = vshrl.u32 %v463_v16, 16  ;;  %v532_v49 = vshll.u32 %v463_v16, 16  ;;  %v1438_v51 = vshrl.u32 %v1342_v35, 16  ;;  %v2994_v6 = vld [vmem:[#allocation2 + $0x10] sm:$0xf]  ;;  %v6980_v7 = vld [vmem:[%s8920_s1 + $0x1f8] sm:$0xff] }
  0x65   : > { %v747_v46 = vsel %vm7316_vm4, %v739_v29, %v746_v44  ;;  %920 = vst [vmem:[#allocation2 + $0xb4] sm:$0xf] %v919_v26  ;;  %v537_v53 = vshrl.u32 %v464_v31, 16  ;;  %v540_v8 = vshll.u32 %v464_v31, 16  ;;  %v1431_v36 = vor.u32 %v1430_v24, %v1427_v37  ;;  %v6948_v41 = vld [vmem:[%s8920_s1 + $0x178] sm:$0xff]  ;;  %5233 = vmatpush.bf16.msra.mxu3 %v6980_v7 }
  0x66   : > { %921 = vst [vmem:[#allocation2 + $0xb8] sm:$0xf] %v747_v46  ;;  %v531_v50 = vrot.slane %v529_v28, 7  ;;  %v1436_v55 = vrot.slane %v1434_v33, 5  ;;  %v1444_v1 = vshll.u32 %v1343_v32, 16  ;;  %v1440_v2 = vrot.slane %v1438_v51, 4  ;;  %4108 = vmatpush.bf16.msra.mxu1 %v6948_v41 }
  0x67   : > { %1206 = vmatmul.bf16.gmra.mxu0 %v6871_v59  ;;  %v7751_v52 = vrot.slane %v537_v53, 7  ;;  %v1432_v58 = vrot.slane %v1431_v36, 4  ;;  %v6972_v59 = vld [vmem:[%s8920_s1 + $0x1b8] sm:$0xff]  ;;  %v3074_v57 = vshrl.u32 %v2993_v3, 16  ;;  %v3077_v21 = vshll.u32 %v2993_v3, 16 }
  0x68   : > { %v534_v61 = vor.u32 %v532_v49, %v531_v50  ;;  %v535_v63 = vrot.slane %v531_v50, 4  ;;  %v1441_v34 = vor.u32 %v1440_v2, %v1436_v55  ;;  %v1446_v14 = vrot.slane %v1444_v1, 5  ;;  %4487 = vmatpush.bf16.msra.mxu2 %v6972_v59  ;;  %v6988_v23 = vld [vmem:[%s8920_s1 + $0x238] sm:$0xff]  ;;  %v1344_v16 = vld [vmem:[#allocation2 + $0xc] sm:$0xf]  ;;  %v6880_v33 = vld [vmem:[#allocation2 + $0x84] sm:$0xff] }
  0x69   : > { %v542_v5 = vor.u32 %v540_v8, %v7751_v52  ;;  %v2995_v15 = vld [vmem:[#allocation2 + $0x14] sm:$0x1]  ;;  %v3076_v25 = vrot.slane %v3074_v57, 4  ;;  %v3083_v9 = vshll.u32 %v2994_v6, 16  ;;  %v3087_v29 = vshrl.u32 %v2994_v6, 16  ;;  %5755 = vmatpush.bf16.msra.mxu0 %v6988_v23 }
  0x6a   : > { %v835_v62 = vsel %vm7327_vm5, %v534_v61, %v834_v48  ;;  %v1442_v20 = vrot.slane %v1441_v34, 4  ;;  %v527_v35 = vrot.slane %v7679_v54, 4  ;;  %v3079_v60 = vrot.slane %v3077_v21, 5  ;;  %v1345_v44 = vld [vmem:[#allocation2 + $0x10] sm:$0xf] }
  0x6b   : > { %v543_v13 = vsel %vm7316_vm4, %v535_v63, %v542_v5  ;;  %836 = vst [vmem:[#allocation2 + $0x24] sm:$0xf] %v835_v62  ;;  %v1437_v31 = vsel %vm7769_vm10, %v1432_v58, %v1436_v55  ;;  %v2091_v37 = vld [vmem:[#allocation2 + $0x4] sm:$0xf]  ;;  %v3089_v26 = vrot.slane %v3087_v29, 4  ;;  %v3093_v49 = vshll.u32 %v2995_v15, 16 }
  0x6c   : > { %837 = vst [vmem:[#allocation2 + $0x28] sm:$0xf] %v543_v13  ;;  %v1447_v32 = vsel %vm7769_vm10, %v1442_v20, %v1446_v14  ;;  %v3080_v28 = vor.u32 %v3079_v60, %v3076_v25  ;;  %v1449_v24 = vshrl.u32 %v1344_v16, 16  ;;  %v1452_v46 = vshll.u32 %v1344_v16, 16  ;;  %v2090_v53 = vld [vmem:[#allocation2] sm:$0xe] }
  0x6d   : > { %1246 = vmatmul.bf16.gmra.mxu2 %v6879_v39  ;;  %v3085_v39 = vrot.slane %v3083_v9, 5  ;;  %v1458_v8 = vshll.u32 %v1345_v44, 16  ;;  %v1826_v50 = vunpack.c.l.b16 %v1447_v32  ;;  %v2092_v36 = vld [vmem:[#allocation2 + $0x8] sm:$0x1]  ;;  %v2223_v51 = vrot.slane %v2091_v37, 5  ;;  %v6884_v34 = vld [vmem:[#allocation2 + $0xb4] sm:$0xff] }
  0x6e   : > { %v1462_v48 = vshrl.u32 %v1345_v44, 16  ;;  %v3081_v1 = vrot.slane %v3080_v28, 4  ;;  %v1451_v61 = vrot.slane %v1449_v24, 4  ;;  %v1454_v63 = vrot.slane %v1452_v46, 5  ;;  %v831_v62 = vld [vmem:[#allocation2 + $0x20] sm:$0x1] }
  0x6f   : > { %1266 = vmatmul.bf16.gmra.mxu3 %v6883_v10  ;;  %v3090_v54 = vor.u32 %v3089_v26, %v3085_v39  ;;  %v1825_v10 = vunpack.c.l.b16 %v1437_v31  ;;  %v3095_v3 = vrot.slane %v3093_v49, 5  ;;  %v7781_v5 = vrot.slane %v1458_v8, 5  ;;  %v2996_v58 = vld [vmem:[#allocation2 + $0x18] sm:$0xf]  ;;  %v2997_v23 = vld [vmem:[#allocation2 + $0x1c] sm:$0xf] }
  0x70   : > { %v1464_v6 = vrot.slane %v1462_v48, 4  ;;  %v6353_v7 = vrot.slane %v2090_v53, 9  ;;  %v2225_v41 = vrot.slane %v2223_v51, 4  ;;  %v2226_v13 = vrot.slane %v2092_v36, 5  ;;  %v1347_v37 = vld [vmem:[#allocation2 + $0x18] sm:$0xf] }
  0x71   : > { %1231 = vmatmul.bf16.gmra.mxu1 %v6876_v56  ;;  %v1346_v56 = vld [vmem:[#allocation2 + $0x14] sm:$0x1]  ;;  %v3091_v2 = vrot.slane %v3090_v54, 4  ;;  %v1857_v59 = vpack.c.b16 %v1826_v50, %v1825_v10  ;;  %v3086_v15 = vsel %vm7769_vm10, %v3081_v1, %v3085_v39  ;;  %v1455_v57 = vor.u32 %v1454_v63, %v1451_v61 }
  0x72   : > { %v1468_v20 = vshll.u32 %v1346_v56, 16  ;;  %v832_v21 = vsel %vm7726_vm7, %v527_v35, %v831_v62  ;;  %v1465_v9 = vor.u32 %v1464_v6, %v7781_v5  ;;  %v3098_v29 = vshrl.u32 %v2996_v58, 16  ;;  %v1348_v35 = vld [vmem:[#allocation2 + $0x1c] sm:$0xf] }
  0x73   : > { %v6872_v55 = vld [vmem:[#allocation2 + $0x24] sm:$0xff]  ;;  %v3096_v25 = vsel %vm7769_vm10, %v3091_v2, %v3095_v3  ;;  %833 = vst [vmem:[#allocation2 + $0x20] sm:$0x1] %v832_v21  ;;  %v3101_v16 = vshll.u32 %v2996_v58, 16  ;;  %v544_v60 = vrot.slane %v7751_v52, 4  ;;  %v2224_v44 = vsel %vm7785_vm13, %v6353_v7, %v2223_v51 }
  0x74   : > { %v3107_v31 = vshll.u32 %v2997_v23, 16  ;;  %v3111_v32 = vshrl.u32 %v2997_v23, 16  ;;  %v2227_v39 = vsel %vm7785_vm13, %v2225_v41, %v2226_v13  ;;  %v3474_v26 = vunpack.c.l.b16 %v3086_v15  ;;  %v838_v52 = vld [vmem:[#allocation2 + $0x2c] sm:$0x1]  ;;  %v2094_v3 = vld [vmem:[#allocation2 + $0x10] sm:$0xf] }
  0x75   : > { %v3475_v28 = vunpack.c.l.b16 %v3096_v25  ;;  %v1470_v49 = vrot.slane %v1468_v20, 5  ;;  %v1456_v24 = vrot.slane %v1455_v57, 4  ;;  %v1466_v46 = vrot.slane %v1465_v9, 4  ;;  %v2093_v21 = vld [vmem:[#allocation2 + $0xc] sm:$0xe] }
  0x76   : > { %v3100_v53 = vrot.slane %v3098_v29, 4  ;;  %v3103_v54 = vrot.slane %v3101_v16, 5  ;;  %v1473_v8 = vshrl.u32 %v1347_v37, 16  ;;  %v1482_v10 = vshll.u32 %v1348_v35, 16  ;;  %v2095_v25 = vld [vmem:[#allocation2 + $0x14] sm:$0x1] }
  0x77   : > { %1211 = vmatmul.bf16.gmra.mxu0 %v6872_v55  ;;  %v1486_v50 = vshrl.u32 %v1348_v35, 16  ;;  %v7801_v36 = vrot.slane %v3107_v31, 5  ;;  %v3113_v51 = vrot.slane %v3111_v32, 4  ;;  %v2350_v48 = vunpack.c.l.b16 %v2224_v44  ;;  %v2999_v32 = vld [vmem:[#allocation2 + $0x24] sm:$0xf] }
  0x78   : > { %v2351_v55 = vunpack.c.l.b16 %v2227_v39  ;;  %v839_v56 = vsel %vm7726_vm7, %v544_v60, %v838_v52  ;;  %v3506_v61 = vpack.c.b16 %v3475_v28, %v3474_v26  ;;  %v1461_v63 = vsel %vm7769_vm10, %v1456_v24, %v7781_v5  ;;  %v6909_v60 = vld [vmem:[#allocation2 + $0xc] sm:$0xff]  ;;  %v3000_v39 = vld [vmem:[#allocation2 + $0x28] sm:$0xf] }
  0x79   : > { %v1471_v2 = vsel %vm7769_vm10, %v1466_v46, %v1470_v49  ;;  %v3104_v6 = vor.u32 %v3103_v54, %v3100_v53  ;;  %v1475_v62 = vrot.slane %v1473_v8, 4  ;;  %840 = vst [vmem:[#allocation2 + $0x2c] sm:$0x1] %v839_v56  ;;  %v3114_v7 = vor.u32 %v3113_v51, %v7801_v36  ;;  %v845_v8 = vld [vmem:[#allocation2 + $0x38] sm:$0x1] }
  0x7a   : > { %v2998_v1 = vld [vmem:[#allocation2 + $0x20] sm:$0x1]  ;;  %v2382_v15 = vpack.c.b16 %v2351_v55, %v2350_v48  ;;  %v1827_v57 = vunpack.c.l.b16 %v1461_v63  ;;  %v1828_v20 = vunpack.c.l.b16 %v1471_v2  ;;  %v2230_v5 = vrot.slane %v2094_v3, 5  ;;  %v6947_v48 = vld [vmem:[%s8920_s1 + $0x170] sm:$0xff]  ;;  %v1351_v63 = vld [vmem:[#allocation2 + $0x28] sm:$0xf] }
  0x7b   : > { %v3117_v41 = vshll.u32 %v2998_v1, 16  ;;  %v1349_v13 = vld [vmem:[#allocation2 + $0x20] sm:$0x1]  ;;  %v3105_v23 = vrot.slane %v3104_v6, 4  ;;  %v3115_v44 = vrot.slane %v3114_v7, 4  ;;  %v6354_v35 = vrot.slane %v2093_v21, 9  ;;  %4109 = vmatpush.bf16.msra.mxu1 %v6947_v48 }
  0x7c   : > { %v1492_v16 = vshll.u32 %v1349_v13, 16  ;;  %v1858_v26 = vpack.c.b16 %v1828_v20, %v1827_v57  ;;  %v2232_v28 = vrot.slane %v2230_v5, 4  ;;  %v2233_v49 = vrot.slane %v2095_v25, 5  ;;  %v6987_v55 = vld [vmem:[%s8920_s1 + $0x230] sm:$0xff] }
  0x7d   : > { %1251 = vmatmul.bf16.gmra.mxu2 %v6880_v33  ;;  %v1476_v33 = vshll.u32 %v1347_v37, 16  ;;  %v3119_v31 = vrot.slane %v3117_v41, 5  ;;  %v561_v37 = vrot.slane %v7320_v40, 4  ;;  %v3110_v24 = vsel %vm7769_vm10, %v3105_v23, %v7801_v36  ;;  %v6971_v40 = vld [vmem:[%s8920_s1 + $0x1b0] sm:$0xff]  ;;  %5756 = vmatpush.bf16.msra.mxu0 %v6987_v55 }
  0x7e   : > { %v1494_v54 = vrot.slane %v1492_v16, 5  ;;  %v3122_v52 = vshrl.u32 %v2999_v32, 16  ;;  %v3135_v51 = vshrl.u32 %v3000_v39, 16  ;;  %v6979_v36 = vld [vmem:[%s8920_s1 + $0x1f0] sm:$0xff]  ;;  %v2231_v1 = vsel %vm7785_vm13, %v6354_v35, %v2230_v5  ;;  %4488 = vmatpush.bf16.msra.mxu2 %v6971_v40  ;;  %v2098_v35 = vld [vmem:[#allocation2 + $0x20] sm:$0x1] }
  0x7f   : > { %1271 = vmatmul.bf16.gmra.mxu3 %v6884_v34  ;;  %v1478_v58 = vrot.slane %v1476_v33, 5  ;;  %v7810_v34 = vrot.slane %v1482_v10, 5  ;;  %v3120_v33 = vsel %vm7769_vm10, %v3115_v44, %v3119_v31  ;;  %v3125_v10 = vshll.u32 %v2999_v32, 16  ;;  %v2096_v44 = vld [vmem:[#allocation2 + $0x18] sm:$0xe] }
  0x80   : > { %v2234_v56 = vsel %vm7785_vm13, %v2232_v28, %v2233_v49  ;;  %v846_v2 = vsel %vm7726_vm7, %v561_v37, %v845_v8  ;;  %v3476_v3 = vunpack.c.l.b16 %v3110_v24  ;;  %v3477_v6 = vunpack.c.l.b16 %v3120_v33  ;;  %5234 = vmatpush.bf16.msra.mxu3 %v6979_v36  ;;  %v3001_v7 = vld [vmem:[#allocation2 + $0x2c] sm:$0x1]  ;;  %v3002_v8 = vld [vmem:[#allocation2 + $0x30] sm:$0xf]  ;;  %v3003_v33 = vld [vmem:[#allocation2 + $0x34] sm:$0xf] }
  0x81   : > { %1945 = vmatmul.bf16.vlgmr.msrb.gmra.mxu1 %v1857_v59  ;;  %v1488_v59 = vrot.slane %v1486_v50, 4  ;;  %v1479_v9 = vor.u32 %v1478_v58, %v1475_v62  ;;  %v3131_v50 = vshll.u32 %v3000_v39, 16  ;;  %v3124_v41 = vrot.slane %v3122_v52, 4  ;;  %847 = vst [vmem:[#allocation2 + $0x38] sm:$0x1] %v846_v2  ;;  %v6910_v40 = vld [vmem:[#allocation2 + $0x18] sm:$0xff] }
  0x82   : > { %v3127_v13 = vrot.slane %v3125_v10, 5  ;;  %v3137_v57 = vrot.slane %v3135_v51, 4  ;;  %v1506_v5 = vshll.u32 %v1351_v63, 16  ;;  %v1510_v23 = vshrl.u32 %v1351_v63, 16 }
  0x83   : > { %v1489_v29 = vor.u32 %v1488_v59, %v7810_v34  ;;  %v1480_v46 = vrot.slane %v1479_v9, 4  ;;  %v2097_v59 = vld [vmem:[#allocation2 + $0x1c] sm:$0xf]  ;;  %v2352_v25 = vunpack.c.l.b16 %v2231_v1  ;;  %v2353_v9 = vunpack.c.l.b16 %v2234_v56 }
  0x84   : > { %v2237_v16 = vrot.slane %v2097_v59, 5  ;;  %v3128_v31 = vor.u32 %v3127_v13, %v3124_v41  ;;  %v3141_v37 = vshll.u32 %v3001_v7, 16  ;;  %v1508_v28 = vrot.slane %v1506_v5, 5 }
  0x85   : > { %v1490_v53 = vrot.slane %v1489_v29, 4  ;;  %v1485_v62 = vsel %vm7769_vm10, %v1480_v46, %v7810_v34  ;;  %v3507_v34 = vpack.c.b16 %v3477_v6, %v3476_v3  ;;  %v1512_v49 = vrot.slane %v1510_v23, 4  ;;  %v852_v3 = vld [vmem:[#allocation2 + $0x44] sm:$0x1] }
  0x86   : > { %v1829_v29 = vunpack.c.l.b16 %v1485_v62  ;;  %v578_v24 = vrot.slane %v7444_v11, 4  ;;  %v2383_v46 = vpack.c.b16 %v2353_v9, %v2352_v25  ;;  %v2239_v52 = vrot.slane %v2237_v16, 4 }
  0x87   : > { %3594 = vmatmul.bf16.vlgmr.msrb.gmra.mxu0 %v3506_v61  ;;  %v1350_v61 = vld [vmem:[#allocation2 + $0x24] sm:$0xf]  ;;  %v1495_v58 = vsel %vm7769_vm10, %v1490_v53, %v1494_v54  ;;  %v1352_v53 = vld [vmem:[#allocation2 + $0x2c] sm:$0x1]  ;;  %v6355_v54 = vrot.slane %v2096_v44, 9  ;;  %v2240_v10 = vrot.slane %v2098_v35, 5  ;;  %v1513_v1 = vor.u32 %v1512_v49, %v1508_v28 }
  0x88   : > { %v1497_v20 = vshrl.u32 %v1350_v61, 16  ;;  %v1500_v21 = vshll.u32 %v1350_v61, 16  ;;  %v3143_v36 = vrot.slane %v3141_v37, 5  ;;  %v1516_v56 = vshll.u32 %v1352_v53, 16 }
  0x89   : > { %v3146_v61 = vshrl.u32 %v3002_v8, 16  ;;  %v3149_v63 = vshll.u32 %v3002_v8, 16  ;;  %v3155_v11 = vshll.u32 %v3003_v33, 16  ;;  %v3159_v2 = vshrl.u32 %v3003_v33, 16 }
  0x8a   : > { %v1499_v39 = vrot.slane %v1497_v20, 4  ;;  %v2238_v6 = vsel %vm7785_vm13, %v6355_v54, %v2237_v16  ;;  %v2241_v62 = vsel %vm7785_vm13, %v2239_v52, %v2240_v10  ;;  %v1514_v41 = vrot.slane %v1513_v1, 4  ;;  %v3005_v52 = vld [vmem:[#allocation2 + $0x3c] sm:$0xf] }
  0x8b   : > { %v1518_v13 = vrot.slane %v1516_v56, 5  ;;  %v3148_v20 = vrot.slane %v3146_v61, 4  ;;  %v7854_v5 = vrot.slane %v3155_v11, 5  ;;  %v3161_v23 = vrot.slane %v3159_v2, 4  ;;  %v6911_v2 = vld [vmem:[#allocation2 + $0x24] sm:$0xff] }
  0x8c   : > { %v2354_v16 = vunpack.c.l.b16 %v2238_v6  ;;  %v595_v54 = vrot.slane %v7603_v30, 4  ;;  %v3170_v11 = vshrl.u32 %v3005_v52, 16  ;;  %v1355_v30 = vld [vmem:[#allocation2 + $0x38] sm:$0x1] }
  0x8d   : > { %2470 = vmatmul.bf16.vlgmr.msrb.gmra.mxu2 %v2382_v15  ;;  %v3133_v15 = vrot.slane %v3131_v50, 5  ;;  %v3129_v50 = vrot.slane %v3128_v31, 4  ;;  %v1519_v31 = vsel %vm7769_vm10, %v1514_v41, %v1518_v13  ;;  %v3162_v35 = vor.u32 %v3161_v23, %v7854_v5 }
  0x8e   : > { %v1540_v23 = vshll.u32 %v1355_v30, 16 }
  0x8f   : > { %2848 = vmatmul.bf16.vlgmr.msrb.gmra.mxu3 %v6909_v60  ;;  %v1830_v60 = vunpack.c.l.b16 %v1495_v58  ;;  %v3138_v32 = vor.u32 %v3137_v57, %v3133_v15  ;;  %v3134_v58 = vsel %vm7769_vm10, %v3129_v50, %v3133_v15  ;;  %v853_v57 = vsel %vm7726_vm7, %v578_v24, %v852_v3  ;;  %v1354_v15 = vld [vmem:[#allocation2 + $0x34] sm:$0xf]  ;;  %v3006_v50 = vld [vmem:[#allocation2 + $0x40] sm:$0xf] }
  0x90   : > { %v3478_v25 = vunpack.c.l.b16 %v3134_v58  ;;  %854 = vst [vmem:[#allocation2 + $0x44] sm:$0x1] %v853_v57  ;;  %v1534_v53 = vshrl.u32 %v1354_v15, 16  ;;  %v3173_v3 = vshll.u32 %v3005_v52, 16  ;;  %v3179_v6 = vshll.u32 %v3006_v50, 16 }
  0x91   : > { %1950 = vmatmul.bf16.gmra.mxu1 %v1858_v26  ;;  %v1502_v26 = vrot.slane %v1500_v21, 5  ;;  %v3139_v51 = vrot.slane %v3138_v32, 4  ;;  %v1859_v48 = vpack.c.b16 %v1830_v60, %v1829_v29  ;;  %v3151_v21 = vrot.slane %v3149_v63, 5  ;;  %v1353_v29 = vld [vmem:[#allocation2 + $0x30] sm:$0xf] }
  0x92   : > { %v2355_v60 = vunpack.c.l.b16 %v2241_v62  ;;  %v2100_v32 = vld [vmem:[#allocation2 + $0x28] sm:$0xf]  ;;  %v1524_v24 = vshll.u32 %v1353_v29, 16  ;;  %v1536_v63 = vrot.slane %v1534_v53, 4  ;;  %v3183_v62 = vshrl.u32 %v3006_v50, 16 }
  0x93   : > { %v1503_v55 = vor.u32 %v1502_v26, %v1499_v39  ;;  %v3144_v59 = vsel %vm7769_vm10, %v3139_v51, %v3143_v36  ;;  %v3152_v37 = vor.u32 %v3151_v21, %v3148_v20  ;;  %v1521_v26 = vshrl.u32 %v1353_v29, 16  ;;  %v2101_v51 = vld [vmem:[#allocation2 + $0x2c] sm:$0x1] }
  0x94   : > { %v3479_v9 = vunpack.c.l.b16 %v3144_v59  ;;  %v2384_v8 = vpack.c.b16 %v2355_v60, %v2354_v16  ;;  %v2244_v10 = vrot.slane %v2100_v32, 5  ;;  %v1526_v56 = vrot.slane %v1524_v24, 5  ;;  %v6946_v53 = vld [vmem:[%s8920_s1 + $0x168] sm:$0xff] }
  0x95   : > { %v1504_v7 = vrot.slane %v1503_v55, 4  ;;  %v3153_v36 = vrot.slane %v3152_v37, 4  ;;  %v1523_v1 = vrot.slane %v1521_v26, 4  ;;  %v2247_v59 = vrot.slane %v2101_v51, 5  ;;  %4110 = vmatpush.bf16.msra.mxu1 %v6946_v53 }
  0x96   : > { %v3508_v49 = vpack.c.b16 %v3479_v9, %v3478_v25  ;;  %v2246_v41 = vrot.slane %v2244_v10, 4  ;;  %v3172_v25 = vrot.slane %v3170_v11, 4  ;;  %v859_v9 = vld [vmem:[#allocation2 + $0x50] sm:$0x1]  ;;  %v3175_v29 = vrot.slane %v3173_v3, 5 }
  0x97   : > { %3599 = vmatmul.bf16.gmra.mxu0 %v3507_v34  ;;  %v3004_v34 = vld [vmem:[#allocation2 + $0x38] sm:$0x1]  ;;  %v1509_v44 = vsel %vm7769_vm10, %v1504_v7, %v1508_v28  ;;  %v2099_v28 = vld [vmem:[#allocation2 + $0x24] sm:$0xe]  ;;  %v3158_v13 = vsel %vm7769_vm10, %v3153_v36, %v7854_v5  ;;  %v1527_v20 = vor.u32 %v1526_v56, %v1523_v1  ;;  %v3185_v16 = vrot.slane %v3183_v62, 4  ;;  %v6978_v5 = vld [vmem:[%s8920_s1 + $0x1e8] sm:$0xff] }
  0x98   : > { %v3165_v39 = vshll.u32 %v3004_v34, 16  ;;  %v1831_v33 = vunpack.c.l.b16 %v1509_v44  ;;  %v6356_v58 = vrot.slane %v2099_v28, 9  ;;  %v6970_v34 = vld [vmem:[%s8920_s1 + $0x1a8] sm:$0xff]  ;;  %v860_v60 = vsel %vm7726_vm7, %v595_v54, %v859_v9  ;;  %v3007_v44 = vld [vmem:[#allocation2 + $0x44] sm:$0x1]  ;;  %5235 = vmatpush.bf16.msra.mxu3 %v6978_v5 }
  0x99   : > { %861 = vst [vmem:[#allocation2 + $0x50] sm:$0x1] %v860_v60  ;;  %v2248_v32 = vsel %vm7785_vm13, %v2246_v41, %v2247_v59  ;;  %v3480_v37 = vunpack.c.l.b16 %v3158_v13  ;;  %4489 = vmatpush.bf16.msra.mxu2 %v6970_v34  ;;  %v6986_v54 = vld [vmem:[%s8920_s1 + $0x228] sm:$0xff]  ;;  %v3176_v52 = vor.u32 %v3175_v29, %v3172_v25  ;;  %v2102_v56 = vld [vmem:[#allocation2 + $0x30] sm:$0xe] }
  0x9a   : > { %v3167_v55 = vrot.slane %v3165_v39, 5  ;;  %v1357_v39 = vld [vmem:[#allocation2 + $0x40] sm:$0xf]  ;;  %5757 = vmatpush.bf16.msra.mxu0 %v6986_v54  ;;  %v2357_v36 = vunpack.c.l.b16 %v2248_v32  ;;  %v2104_v11 = vld [vmem:[#allocation2 + $0x38] sm:$0x1]  ;;  %v6357_v25 = vrot.slane %v2102_v56, 9 }
  0x9b   : > { %v1558_v50 = vshrl.u32 %v1357_v39, 16  ;;  %v3009_v9 = vld [vmem:[#allocation2 + $0x4c] sm:$0xf]  ;;  %v6912_v34 = vld [vmem:[#allocation2 + $0x30] sm:$0xff]  ;;  %v2254_v29 = vrot.slane %v2104_v11, 5 }
  0x9d   : > { %2475 = vmatmul.bf16.gmra.mxu2 %v2383_v46  ;;  %v1530_v46 = vshll.u32 %v1354_v15, 16  ;;  %v7873_v15 = vrot.slane %v3179_v6, 5  ;;  %v1560_v59 = vrot.slane %v1558_v50, 4 }
  0x9f   : > { %2853 = vmatmul.bf16.gmra.mxu3 %v6910_v40  ;;  %v1832_v40 = vunpack.c.l.b16 %v1519_v31  ;;  %v7862_v61 = vrot.slane %v1530_v46, 5  ;;  %v2245_v31 = vsel %vm7785_vm13, %v6356_v58, %v2244_v10  ;;  %v1542_v46 = vrot.slane %v1540_v23, 5 }
  0xa0   : > { %v1554_v10 = vshll.u32 %v1357_v39, 16  ;;  %v2356_v51 = vunpack.c.l.b16 %v2245_v31  ;;  %v3203_v39 = vshll.u32 %v3009_v9, 16 }
  0xa1   : > { %1955 = vmatmul.bf16.gmra.mxu1 %v1859_v48  ;;  %v3163_v48 = vrot.slane %v3162_v35, 4  ;;  %v1860_v7 = vpack.c.b16 %v1832_v40, %v1831_v33  ;;  %v1537_v21 = vor.u32 %v1536_v63, %v7862_v61  ;;  %v1356_v35 = vld [vmem:[#allocation2 + $0x3c] sm:$0xf]  ;;  %v3189_v33 = vshll.u32 %v3007_v44, 16  ;;  %v2103_v63 = vld [vmem:[#allocation2 + $0x34] sm:$0xf] }
  0xa2   : > { %v1545_v40 = vshrl.u32 %v1356_v35, 16  ;;  %v1548_v28 = vshll.u32 %v1356_v35, 16  ;;  %v7896_v58 = vrot.slane %v1554_v10, 5  ;;  %v2385_v41 = vpack.c.b16 %v2357_v36, %v2356_v51  ;;  %v1359_v36 = vld [vmem:[#allocation2 + $0x48] sm:$0xf] }
  0xa3   : > { %v3168_v57 = vsel %vm7769_vm10, %v3163_v48, %v3167_v55  ;;  %v1538_v24 = vrot.slane %v1537_v21, 4  ;;  %v3191_v3 = vrot.slane %v3189_v33, 5  ;;  %v612_v21 = vrot.slane %v7685_v12, 4 }
  0xa4   : > { %v3481_v26 = vunpack.c.l.b16 %v3168_v57  ;;  %v1547_v6 = vrot.slane %v1545_v40, 4  ;;  %v1550_v62 = vrot.slane %v1548_v28, 5  ;;  %v1561_v31 = vor.u32 %v1560_v59, %v7896_v58 }
  0xa5   : > { %v1543_v1 = vsel %vm7769_vm10, %v1538_v24, %v1542_v46  ;;  %v7915_v50 = vrot.slane %v3203_v39, 5  ;;  %v1572_v56 = vshll.u32 %v1359_v36, 16 }
  0xa6   : > { %v3509_v48 = vpack.c.b16 %v3481_v26, %v3480_v37  ;;  %v1834_v57 = vunpack.c.l.b16 %v1543_v1  ;;  %v1551_v44 = vor.u32 %v1550_v62, %v1547_v6  ;;  %v3207_v26 = vshrl.u32 %v3009_v9, 16  ;;  %v1361_v9 = vld [vmem:[#allocation2 + $0x50] sm:$0x1] }
  0xa7   : > { %3604 = vmatmul.bf16.gmra.mxu0 %v3508_v49  ;;  %v1528_v49 = vrot.slane %v1527_v20, 4  ;;  %v2251_v20 = vrot.slane %v2103_v63, 5  ;;  %v1569_v1 = vshrl.u32 %v1359_v36, 16  ;;  %v1588_v39 = vshll.u32 %v1361_v9, 16 }
  0xa8   : > { %v7899_v23 = vpop.f32.mrf.mxu1  ;;  %v3209_v51 = vrot.slane %v3207_v26, 4  ;;  %v629_v26 = vrot.slane %v7361_v0, 4 }
  0xa9   : > { %v1533_v55 = vsel %vm7769_vm10, %v1528_v49, %v7862_v61  ;;  %v1358_v61 = vld [vmem:[#allocation2 + $0x44] sm:$0x1]  ;;  %v2253_v35 = vrot.slane %v2251_v20, 4  ;;  %v866_v49 = vld [vmem:[#allocation2 + $0x5c] sm:$0x1]  ;;  %v7909_v54 = vpop.f32.mrf.mxu0  ;;  %v2252_v28 = vsel %vm7785_vm13, %v6357_v25, %v2251_v20  ;;  %v1571_v20 = vrot.slane %v1569_v1, 4 }
  0xaa   : > { %v1833_v13 = vunpack.c.l.b16 %v1533_v55  ;;  %v1564_v32 = vshll.u32 %v1358_v61, 16  ;;  %v3010_v55 = vld [vmem:[#allocation2 + $0x50] sm:$0x1]  ;;  %v1574_v61 = vrot.slane %v1572_v56, 5  ;;  %v1590_v0 = vrot.slane %v1588_v39, 5 }
  0xab   : > { %v2255_v10 = vsel %vm7785_vm13, %v2253_v35, %v2254_v29 }
  0xac   : > { %v1861_v37 = vpack.c.b16 %v1834_v57, %v1833_v13  ;;  %v1566_v33 = vrot.slane %v1564_v32, 5  ;;  %v3210_v13 = vor.u32 %v3209_v51, %v7915_v50  ;;  %v3213_v57 = vshll.u32 %v3010_v55, 16  ;;  %v6969_v55 = vld [vmem:[%s8920_s1 + $0x1a0] sm:$0xff] }
  0xad   : > { %2480 = vmatmul.bf16.gmra.mxu2 %v2384_v8  ;;  %v3186_v8 = vor.u32 %v3185_v16, %v7873_v15 }
  0xae   : > { %4490 = vmatpush.bf16.msra.mxu2 %v6969_v55 }
  0xaf   : > { %2858 = vmatmul.bf16.gmra.mxu3 %v6911_v2  ;;  %v3177_v2 = vrot.slane %v3176_v52, 4  ;;  %v3187_v30 = vrot.slane %v3186_v8, 4  ;;  %v1552_v52 = vrot.slane %v1551_v44, 4  ;;  %v1562_v8 = vrot.slane %v1561_v31, 4 }
  0xb0   : > { %v7917_v6 = vpop.f32.mrf.mxu1  ;;  %v3211_v44 = vrot.slane %v3210_v13, 4  ;;  %v3215_v31 = vrot.slane %v3213_v57, 5 }
  0xb1   : > { %1960 = vmatmul.bf16.gmra.mxu1 %v1860_v7  ;;  %v3008_v7 = vld [vmem:[#allocation2 + $0x48] sm:$0xf]  ;;  %v3182_v16 = vsel %vm7769_vm10, %v3177_v2, %v7873_v15  ;;  %v3192_v5 = vsel %vm7769_vm10, %v3187_v30, %v3191_v3  ;;  %v867_v15 = vsel %vm7726_vm7, %v612_v21, %v866_v49  ;;  %v2358_v2 = vunpack.c.l.b16 %v2252_v28  ;;  %v7927_v32 = vpop.f32.mrf.mxu0  ;;  %v6913_v49 = vld [vmem:[#allocation2 + $0x3c] sm:$0xff] }
  0xb2   : > { %v3194_v60 = vshrl.u32 %v3008_v7, 16  ;;  %v3197_v12 = vshll.u32 %v3008_v7, 16  ;;  %v3482_v24 = vunpack.c.l.b16 %v3182_v16  ;;  %v3483_v46 = vunpack.c.l.b16 %v3192_v5  ;;  %868 = vst [vmem:[#allocation2 + $0x5c] sm:$0x1] %v867_v15  ;;  %v2106_v7 = vld [vmem:[#allocation2 + $0x40] sm:$0xf] }
  0xb3   : > { %v2359_v30 = vunpack.c.l.b16 %v2255_v10  ;;  %v1557_v62 = vsel %vm7769_vm10, %v1552_v52, %v7896_v58  ;;  %v1567_v59 = vsel %vm7769_vm10, %v1562_v8, %v1566_v33  ;;  %v2258_v16 = vrot.slane %v2106_v7, 5  ;;  %v3012_v15 = vld [vmem:[#allocation2 + $0x58] sm:$0xf] }
  0xb4   : > { %v3196_v53 = vrot.slane %v3194_v60, 4  ;;  %v3199_v40 = vrot.slane %v3197_v12, 5  ;;  %v3510_v3 = vpack.c.b16 %v3483_v46, %v3482_v24  ;;  %v1835_v29 = vunpack.c.l.b16 %v1557_v62  ;;  %v2105_v60 = vld [vmem:[#allocation2 + $0x3c] sm:$0xe]  ;;  %v2107_v12 = vld [vmem:[#allocation2 + $0x44] sm:$0x1] }
  0xb5   : > { %v1836_v5 = vunpack.c.l.b16 %v1567_v59  ;;  %v3011_v24 = vld [vmem:[#allocation2 + $0x54] sm:$0xf]  ;;  %v6358_v46 = vrot.slane %v2105_v60, 9  ;;  %v2261_v8 = vrot.slane %v2107_v12, 5  ;;  %v3227_v56 = vshll.u32 %v3012_v15, 16 }
  0xb6   : > { %v3218_v36 = vshrl.u32 %v3011_v24, 16  ;;  %v3221_v1 = vshll.u32 %v3011_v24, 16  ;;  %v1362_v62 = vld [vmem:[#allocation2 + $0x54] sm:$0xf]  ;;  %v1363_v59 = vld [vmem:[#allocation2 + $0x58] sm:$0xf] }
  0xb7   : > { %3609 = vmatmul.bf16.gmra.mxu0 %v3509_v48  ;;  %v1360_v48 = vld [vmem:[#allocation2 + $0x4c] sm:$0xf]  ;;  %v1862_v52 = vpack.c.b16 %v1836_v5, %v1835_v29  ;;  %v1606_v12 = vshrl.u32 %v1363_v59, 16 }
  0xb8   : > { %v1578_v63 = vshll.u32 %v1360_v48, 16  ;;  %v1582_v11 = vshrl.u32 %v1360_v48, 16  ;;  %v873_v48 = vld [vmem:[#allocation2 + $0x68] sm:$0x1]  ;;  %v3223_v29 = vrot.slane %v3221_v1, 5 }
  0xb9   : > { %v1364_v1 = vld [vmem:[#allocation2 + $0x5c] sm:$0x1] }
  0xba   : > { %v7925_v21 = vrot.slane %v1578_v63, 5  ;;  %v1584_v25 = vrot.slane %v1582_v11, 4  ;;  %v3231_v63 = vshrl.u32 %v3012_v15, 16  ;;  %v874_v11 = vsel %vm7726_vm7, %v629_v26, %v873_v48 }
  0xbb   : > { %875 = vst [vmem:[#allocation2 + $0x68] sm:$0x1] %v874_v11  ;;  %v646_v48 = vrot.slane %v7469_v27, 4  ;;  %v3014_v11 = vld [vmem:[#allocation2 + $0x60] sm:$0xf] }
  0xbc   : > { %v1585_v35 = vor.u32 %v1584_v25, %v7925_v21  ;;  %v6985_v25 = vld [vmem:[%s8920_s1 + $0x220] sm:$0xff]  ;;  %v3233_v5 = vrot.slane %v3231_v63, 4 }
  0xbd   : > { %2485 = vmatmul.bf16.gmra.mxu2 %v2385_v41  ;;  %v3200_v41 = vor.u32 %v3199_v40, %v3196_v53  ;;  %v2260_v53 = vrot.slane %v2258_v16, 4  ;;  %v3216_v40 = vsel %vm7769_vm10, %v3211_v44, %v3215_v31  ;;  %5758 = vmatpush.bf16.msra.mxu0 %v6985_v25  ;;  %v1596_v44 = vshll.u32 %v1362_v62, 16 }
  0xbe   : > { %v1586_v51 = vrot.slane %v1585_v35, 4  ;;  %v3485_v13 = vunpack.c.l.b16 %v3216_v40  ;;  %v1602_v31 = vshll.u32 %v1363_v59, 16  ;;  %v2110_v40 = vld [vmem:[#allocation2 + $0x50] sm:$0x1]  ;;  %v1612_v25 = vshll.u32 %v1364_v1, 16 }
  0xbf   : > { %2863 = vmatmul.bf16.gmra.mxu3 %v6912_v34  ;;  %v2386_v34 = vpack.c.b16 %v2359_v30, %v2358_v2  ;;  %v3201_v58 = vrot.slane %v3200_v41, 4  ;;  %v2259_v30 = vsel %vm7785_vm13, %v6358_v46, %v2258_v16  ;;  %v7965_v16 = vrot.slane %v3227_v56, 5 }
  0xc0   : > { %v1591_v9 = vsel %vm7769_vm10, %v1586_v51, %v1590_v0  ;;  %v1598_v51 = vrot.slane %v1596_v44, 5  ;;  %v7974_v0 = vrot.slane %v1602_v31, 5 }
  0xc1   : > { %1965 = vmatmul.bf16.gmra.mxu1 %v1861_v37  ;;  %v1575_v37 = vor.u32 %v1574_v61, %v1571_v20  ;;  %v3206_v33 = vsel %vm7769_vm10, %v3201_v58, %v7915_v50  ;;  %v6977_v50 = vld [vmem:[%s8920_s1 + $0x1e0] sm:$0xff]  ;;  %v3220_v20 = vrot.slane %v3218_v36, 4  ;;  %v1593_v58 = vshrl.u32 %v1362_v62, 16 }
  0xc2   : > { %v3484_v41 = vunpack.c.l.b16 %v3206_v33  ;;  %5236 = vmatpush.bf16.msra.mxu3 %v6977_v50  ;;  %v6945_v61 = vld [vmem:[%s8920_s1 + $0x160] sm:$0xff]  ;;  %v1838_v46 = vunpack.c.l.b16 %v1591_v9  ;;  %v1608_v36 = vrot.slane %v1606_v12, 4  ;;  %v2268_v62 = vrot.slane %v2110_v40, 5 }
  0xc3   : > { %v1576_v10 = vrot.slane %v1575_v37, 4  ;;  %4111 = vmatpush.bf16.msra.mxu1 %v6945_v61  ;;  %v2360_v37 = vunpack.c.l.b16 %v2259_v30  ;;  %v3224_v15 = vor.u32 %v3223_v29, %v3220_v20  ;;  %v3015_v30 = vld [vmem:[#allocation2 + $0x64] sm:$0xf]  ;;  %v3242_v9 = vshrl.u32 %v3014_v11, 16 }
  0xc4   : > { %v3511_v39 = vpack.c.b16 %v3485_v13, %v3484_v41  ;;  %v1609_v27 = vor.u32 %v1608_v36, %v7974_v0  ;;  %v3251_v29 = vshll.u32 %v3015_v30, 16  ;;  %v1365_v36 = vld [vmem:[#allocation2 + $0x60] sm:$0xf] }
  0xc5   : > { %v1581_v57 = vsel %vm7769_vm10, %v1576_v10, %v7925_v21  ;;  %v3013_v21 = vld [vmem:[#allocation2 + $0x5c] sm:$0x1]  ;;  %v1595_v10 = vrot.slane %v1593_v58, 4  ;;  %v3225_v59 = vrot.slane %v3224_v15, 4  ;;  %v880_v58 = vld [vmem:[#allocation2 + $0x74] sm:$0x1] }
  0xc7   : > { %3614 = vmatmul.bf16.gmra.mxu0 %v3510_v3  ;;  %v2262_v3 = vsel %vm7785_vm13, %v2260_v53, %v2261_v8  ;;  %v2108_v53 = vld [vmem:[#allocation2 + $0x48] sm:$0xe]  ;;  %v3237_v8 = vshll.u32 %v3013_v21, 16  ;;  %v1599_v61 = vor.u32 %v1598_v51, %v1595_v10  ;;  %v3230_v31 = vsel %vm7769_vm10, %v3225_v59, %v7965_v16  ;;  %v3016_v51 = vld [vmem:[#allocation2 + $0x68] sm:$0x1] }
  0xc8   : > { %v2361_v35 = vunpack.c.l.b16 %v2262_v3  ;;  %v6359_v63 = vrot.slane %v2108_v53, 9  ;;  %v6914_v3 = vld [vmem:[#allocation2 + $0x48] sm:$0xff]  ;;  %v1614_v53 = vrot.slane %v1612_v25, 5  ;;  %v3486_v40 = vunpack.c.l.b16 %v3230_v31  ;;  %v3018_v31 = vld [vmem:[#allocation2 + $0x70] sm:$0xf] }
  0xc9   : > { %v3239_v13 = vrot.slane %v3237_v8, 5  ;;  %v3261_v59 = vshll.u32 %v3016_v51, 16  ;;  %v1367_v51 = vld [vmem:[#allocation2 + $0x68] sm:$0x1] }
  0xca   : > { %v2387_v55 = vpack.c.b16 %v2361_v35, %v2360_v37  ;;  %v881_v37 = vsel %vm7726_vm7, %v646_v48, %v880_v58  ;;  %v1366_v48 = vld [vmem:[#allocation2 + $0x64] sm:$0xf] }
  0xcb   : > { %882 = vst [vmem:[#allocation2 + $0x74] sm:$0x1] %v881_v37  ;;  %v1630_v25 = vshrl.u32 %v1366_v48, 16 }
  0xcd   : > { %2490 = vmatmul.bf16.gmra.mxu2 %v2386_v34  ;;  %v2109_v34 = vld [vmem:[#allocation2 + $0x4c] sm:$0xf] }
  0xce   : > { %v7936_v28 = vpop.f32.mrf.mxu1  ;;  %v2265_v24 = vrot.slane %v2109_v34, 5  ;;  %v3245_v34 = vshll.u32 %v3014_v11, 16 }
  0xcf   : > { %2868 = vmatmul.bf16.gmra.mxu3 %v6913_v49  ;;  %v1837_v49 = vunpack.c.l.b16 %v1581_v57 }
  0xd0   : > { %v7946_v2 = vpop.f32.mrf.mxu2  ;;  %v2267_v50 = vrot.slane %v2265_v24, 4  ;;  %v2266_v44 = vsel %vm7785_vm13, %v6359_v63, %v2265_v24  ;;  %v3244_v24 = vrot.slane %v3242_v9, 4  ;;  %v3247_v15 = vrot.slane %v3245_v34, 5  ;;  %v3017_v34 = vld [vmem:[#allocation2 + $0x6c] sm:$0xf] }
  0xd1   : > { %1970 = vmatmul.bf16.gmra.mxu1 %v1862_v52  ;;  %v3234_v52 = vor.u32 %v3233_v5, %v7965_v16  ;;  %v1863_v20 = vpack.c.b16 %v1838_v46, %v1837_v49  ;;  %v3255_v5 = vshrl.u32 %v3015_v30, 16  ;;  %v1600_v49 = vrot.slane %v1599_v61, 4  ;;  %v2112_v30 = vld [vmem:[#allocation2 + $0x58] sm:$0xf] }
  0xd2   : > { %v7952_v7 = vpop.f32.mrf.mxu3  ;;  %v1610_v46 = vrot.slane %v1609_v27, 4  ;;  %v2362_v1 = vunpack.c.l.b16 %v2266_v44  ;;  %v1620_v61 = vshll.u32 %v1365_v36, 16  ;;  %v1626_v27 = vshll.u32 %v1366_v48, 16 }
  0xd3   : > { %8935 = vst [vmem:[#allocation4_spill] sm:$0xff] %v7952_v7  ;;  %v3235_v41 = vrot.slane %v3234_v52, 4  ;;  %v7997_v52 = vrot.slane %v3251_v29, 5  ;;  %v3257_v16 = vrot.slane %v3255_v5, 4  ;;  %v663_v9 = vrot.slane %v7610_v22, 4 }
  0xd4   : > { %v7967_v60 = vpop.f32.mrf.mxu0  ;;  %v1615_v11 = vsel %vm7769_vm10, %v1610_v46, %v1614_v53  ;;  %v2272_v44 = vrot.slane %v2112_v30, 5  ;;  %v1632_v22 = vrot.slane %v1630_v25, 4  ;;  %v3275_v48 = vshll.u32 %v3018_v31, 16  ;;  %v3019_v25 = vld [vmem:[#allocation2 + $0x74] sm:$0x1] }
  0xd5   : > { %v3240_v12 = vsel %vm7769_vm10, %v3235_v41, %v3239_v13  ;;  %v1617_v41 = vshrl.u32 %v1365_v36, 16  ;;  %v1840_v58 = vunpack.c.l.b16 %v1615_v11  ;;  %v3269_v36 = vshll.u32 %v3017_v34, 16 }
  0xd6   : > { %v7969_v26 = vpop.f32.mrf.mxu1  ;;  %v3487_v10 = vunpack.c.l.b16 %v3240_v12  ;;  %v2111_v12 = vld [vmem:[#allocation2 + $0x54] sm:$0xe] }
  0xd7   : > { %3619 = vmatmul.bf16.gmra.mxu0 %v3511_v39  ;;  %v2269_v39 = vsel %vm7785_vm13, %v2267_v50, %v2268_v62  ;;  %v1605_v50 = vsel %vm7769_vm10, %v1600_v49, %v7974_v0  ;;  %v3258_v62 = vor.u32 %v3257_v16, %v7997_v52  ;;  %v3263_v49 = vrot.slane %v3261_v59, 5 }
  0xd8   : > { %v7972_v33 = vpop.f32.mrf.mxu2  ;;  %v2363_v63 = vunpack.c.l.b16 %v2269_v39  ;;  %v3512_v13 = vpack.c.b16 %v3487_v10, %v3486_v40  ;;  %v1839_v5 = vunpack.c.l.b16 %v1605_v50  ;;  %v1619_v46 = vrot.slane %v1617_v41, 4  ;;  %v6915_v10 = vld [vmem:[#allocation2 + $0x54] sm:$0xff] }
  0xd9   : > { %v3259_v39 = vrot.slane %v3258_v62, 4  ;;  %v8016_v16 = vrot.slane %v1626_v27, 5  ;;  %v3266_v40 = vshrl.u32 %v3017_v34, 16  ;;  %v2274_v50 = vrot.slane %v2272_v44, 4 }
  0xda   : > { %v7977_v56 = vpop.f32.mrf.mxu3  ;;  %v2388_v0 = vpack.c.b16 %v2363_v63, %v2362_v1  ;;  %v3279_v1 = vshrl.u32 %v3018_v31, 16  ;;  %v6360_v63 = vrot.slane %v2111_v12, 9  ;;  %v1864_v30 = vpack.c.b16 %v1840_v58, %v1839_v5  ;;  %v6968_v5 = vld [vmem:[%s8920_s1 + $0x198] sm:$0xff] }
  0xdb   : > { %8936 = vst [vmem:[#allocation5_spill] sm:$0xff] %v7977_v56  ;;  %v3264_v59 = vsel %vm7769_vm10, %v3259_v39, %v3263_v49  ;;  %v1636_v27 = vshll.u32 %v1367_v51, 16  ;;  %v3268_v34 = vrot.slane %v3266_v40, 4  ;;  %v3271_v58 = vrot.slane %v3269_v36, 5  ;;  %v6976_v12 = vld [vmem:[%s8920_s1 + $0x1d8] sm:$0xff]  ;;  %4491 = vmatpush.bf16.msra.mxu2 %v6968_v5 }
  0xdc   : > { %v7979_v57 = vpop.f32.mrf.mxu0  ;;  %v8031_v31 = vrot.slane %v3275_v48, 5  ;;  %v2273_v49 = vsel %vm7785_vm13, %v6360_v63, %v2272_v44  ;;  %v1369_v40 = vld [vmem:[#allocation2 + $0x70] sm:$0xf]  ;;  %v3285_v48 = vshll.u32 %v3019_v25, 16  ;;  %5237 = vmatpush.bf16.msra.mxu3 %v6976_v12  ;;  %v6944_v63 = vld [vmem:[%s8920_s1 + $0x158] sm:$0xff] }
  0xdd   : > { %2495 = vmatmul.bf16.gmra.mxu2 %v2387_v55  ;;  %4112 = vmatpush.bf16.msra.mxu1 %v6944_v63  ;;  %v894_v56 = vld [vmem:[#allocation2 + $0x8c] sm:$0x1] }
  0xde   : > { %v7982_v21 = vpop.f32.mrf.mxu1 }
  0xdf   : > { %2873 = vmatmul.bf16.gmra.mxu3 %v6914_v3  ;;  %v3248_v3 = vor.u32 %v3247_v15, %v3244_v24  ;;  %v2113_v24 = vld [vmem:[#allocation2 + $0x5c] sm:$0x1]  ;;  %v1622_v15 = vrot.slane %v1620_v61, 5  ;;  %v1633_v61 = vor.u32 %v1632_v22, %v8016_v16  ;;  %v1368_v22 = vld [vmem:[#allocation2 + $0x6c] sm:$0xf] }
  0xe0   : > { %v7993_v35 = vpop.f32.mrf.mxu2 }
  0xe1   : > { %1975 = vmatmul.bf16.gmra.mxu1 %v1863_v20  ;;  %v3249_v37 = vrot.slane %v3248_v3, 4  ;;  %v2275_v3 = vrot.slane %v2113_v24, 5  ;;  %v1634_v36 = vrot.slane %v1633_v61, 4  ;;  %v2364_v61 = vunpack.c.l.b16 %v2273_v49 }
  0xe2   : > { %v7999_v8 = vpop.f32.mrf.mxu3 }
  0xe3   : > { %8937 = vst [vmem:[#allocation6_spill] sm:$0xff] %v7999_v8  ;;  %v3254_v62 = vsel %vm7769_vm10, %v3249_v37, %v7997_v52  ;;  %v3281_v52 = vrot.slane %v3279_v1, 4  ;;  %v8046_v1 = vld [vmem:[#allocation2 + $0x64] sm:$0xf] }
  0xe4   : > { %v8001_v55 = vpop.f32.mrf.mxu0  ;;  %v3488_v24 = vunpack.c.l.b16 %v3254_v62  ;;  %v1644_v62 = vshll.u32 %v1368_v22, 16 }
  0xe5   : > { %v3282_v44 = vor.u32 %v3281_v52, %v8031_v31  ;;  %v3287_v52 = vrot.slane %v3285_v48, 5 }
  0xe6   : > { %v8009_v20 = vpop.f32.mrf.mxu1 }
  0xe7   : > { %3624 = vmatmul.bf16.gmra.mxu0 %v3512_v13  ;;  %v1623_v13 = vor.u32 %v1622_v15, %v1619_v46  ;;  %v2276_v46 = vsel %vm7785_vm13, %v2274_v50, %v2275_v3  ;;  %v3489_v15 = vunpack.c.l.b16 %v3264_v59  ;;  %v6984_v50 = vld [vmem:[%s8920_s1 + $0x218] sm:$0xff]  ;;  %v1641_v3 = vshrl.u32 %v1368_v22, 16 }
  0xe8   : > { %v8012_v29 = vpop.f32.mrf.mxu2  ;;  %v1650_v59 = vshll.u32 %v1369_v40, 16  ;;  %5759 = vmatpush.bf16.msra.mxu0 %v6984_v50 }
  0xe9   : > { %v1624_v51 = vrot.slane %v1623_v13, 4  ;;  %v1654_v13 = vshrl.u32 %v1369_v40, 16  ;;  %v3513_v25 = vpack.c.b16 %v3489_v15, %v3488_v24  ;;  %v1643_v24 = vrot.slane %v1641_v3, 4  ;;  %v6916_v3 = vld [vmem:[#allocation2 + $0x60] sm:$0xff] }
  0xea   : > { %v8014_v53 = vpop.f32.mrf.mxu3  ;;  %v1646_v15 = vrot.slane %v1644_v62, 5  ;;  %v8067_v40 = vrot.slane %v1650_v59, 5 }
  0xeb   : > { %8938 = vst [vmem:[#allocation7_spill] sm:$0xff] %v8014_v53  ;;  %v1656_v63 = vrot.slane %v1654_v13, 4 }
  0xec   : > { %v8018_v11 = vpop.f32.mrf.mxu0 }
  0xed   : > { %2500 = vmatmul.bf16.gmra.mxu2 %v2388_v0  ;;  %v887_v0 = vld [vmem:[#allocation2 + $0x80] sm:$0x1] }
  0xee   : > { %v8025_v41 = vpop.f32.mrf.mxu1  ;;  %v888_v37 = vsel %vm7726_vm7, %v663_v9, %v887_v0  ;;  %v1638_v9 = vrot.slane %v1636_v27, 5  ;;  %v2365_v27 = vunpack.c.l.b16 %v2276_v46  ;;  %v1629_v0 = vsel %vm7769_vm10, %v1624_v51, %v8016_v16 }
  0xef   : > { %2878 = vmatmul.bf16.gmra.mxu3 %v6915_v10  ;;  %889 = vst [vmem:[#allocation2 + $0x80] sm:$0x1] %v888_v37  ;;  %v2114_v37 = vld [vmem:[#allocation2 + $0x60] sm:$0xe]  ;;  %v3283_v46 = vrot.slane %v3282_v44, 4  ;;  %v1841_v16 = vunpack.c.l.b16 %v1629_v0 }
  0xf0   : > { %v8038_v39 = vpop.f32.mrf.mxu2  ;;  %v1639_v5 = vsel %vm7769_vm10, %v1634_v36, %v1638_v9  ;;  %v2389_v50 = vpack.c.b16 %v2365_v27, %v2364_v61  ;;  %v3020_v36 = vld [vmem:[#allocation2 + $0x78] sm:$0xf]  ;;  %v680_v9 = vrot.slane %v7703_v43, 4  ;;  %v3021_v44 = vld [vmem:[#allocation2 + $0x7c] sm:$0xf]  ;;  %v1647_v61 = vor.u32 %v1646_v15, %v1643_v24 }
  0xf1   : > { %8939 = vst [vmem:[#allocation8_spill] sm:$0xff] %v8038_v39  ;;  %1980 = vmatmul.bf16.gmra.mxu1 %v1864_v30  ;;  %v3272_v30 = vor.u32 %v3271_v58, %v3268_v34  ;;  %v2279_v58 = vrot.slane %v8046_v1, 5  ;;  %v1842_v51 = vunpack.c.l.b16 %v1639_v5  ;;  %v2116_v1 = vld [vmem:[#allocation2 + $0x68] sm:$0x1]  ;;  %v3288_v13 = vsel %vm7769_vm10, %v3283_v46, %v3287_v52 }
  0xf2   : > { %v8044_v10 = vpop.f32.mrf.mxu3  ;;  %v1657_v27 = vor.u32 %v1656_v63, %v8067_v40  ;;  %v3290_v43 = vshrl.u32 %v3020_v36, 16  ;;  %v3293_v5 = vshll.u32 %v3020_v36, 16  ;;  %v3303_v53 = vshrl.u32 %v3021_v44, 16 }
  0xf3   : > { %8940 = vst [vmem:[#allocation9_spill] sm:$0xff] %v8044_v10  ;;  %v3273_v49 = vrot.slane %v3272_v30, 4  ;;  %v1370_v10 = vld [vmem:[#allocation2 + $0x74] sm:$0x1]  ;;  %v6361_v30 = vrot.slane %v2114_v37, 9  ;;  %v2281_v62 = vrot.slane %v2279_v58, 4  ;;  %v895_v46 = vsel %vm7726_vm7, %v680_v9, %v894_v56 }
  0xf4   : > { %v8063_v12 = vpop.f32.mrf.mxu0  ;;  %v1660_v0 = vshll.u32 %v1370_v10, 16  ;;  %v3299_v37 = vshll.u32 %v3021_v44, 16  ;;  %v1648_v52 = vrot.slane %v1647_v61, 4  ;;  %v1658_v24 = vrot.slane %v1657_v27, 4  ;;  %896 = vst [vmem:[#allocation2 + $0x8c] sm:$0x1] %v895_v46 }
  0xf5   : > { %v3278_v59 = vsel %vm7769_vm10, %v3273_v49, %v8031_v31  ;;  %v3491_v49 = vunpack.c.l.b16 %v3288_v13  ;;  %v3292_v63 = vrot.slane %v3290_v43, 4  ;;  %v1371_v44 = vld [vmem:[#allocation2 + $0x78] sm:$0xf] }
  0xf6   : > { %v8055_v34 = vpop.f32.mrf.mxu1  ;;  %v3490_v31 = vunpack.c.l.b16 %v3278_v59  ;;  %v1662_v15 = vrot.slane %v1660_v0, 5  ;;  %v8090_v36 = vrot.slane %v3299_v37, 5  ;;  %v3022_v9 = vld [vmem:[#allocation2 + $0x80] sm:$0x1]  ;;  %v1665_v59 = vshrl.u32 %v1371_v44, 16 }
  0xf7   : > { %3629 = vmatmul.bf16.gmra.mxu0 %v3513_v25  ;;  %v1865_v25 = vpack.c.b16 %v1842_v51, %v1841_v16  ;;  %v2280_v16 = vsel %vm7785_vm13, %v6361_v30, %v2279_v58  ;;  %v1668_v13 = vshll.u32 %v1371_v44, 16  ;;  %v1653_v58 = vsel %vm7769_vm10, %v1648_v52, %v8067_v40  ;;  %v1373_v40 = vld [vmem:[#allocation2 + $0x80] sm:$0x1] }
  0xf8   : > { %v8065_v22 = vpop.f32.mrf.mxu2  ;;  %v2366_v0 = vunpack.c.l.b16 %v2280_v16  ;;  %v1667_v46 = vrot.slane %v1665_v59, 4  ;;  %v1843_v52 = vunpack.c.l.b16 %v1653_v58 }
  0xf9   : > { %8941 = vst [vmem:[#allocation10_spill] sm:$0xff] %v8065_v22  ;;  %v1670_v44 = vrot.slane %v1668_v13, 5 }
  0xfa   : > { %v8070_v48 = vpop.f32.mrf.mxu3 }
  0xfb   : > { %8942 = vst [vmem:[#allocation11_spill] sm:$0xff] %v8070_v48  ;;  %v2282_v48 = vrot.slane %v2116_v1, 5  ;;  %v3305_v1 = vrot.slane %v3303_v53, 4  ;;  %v2118_v53 = vld [vmem:[#allocation2 + $0x70] sm:$0xf] }
  0xfc   : > { %v8080_v7 = vpop.f32.mrf.mxu0 }
  0xfd   : > { %2505 = vmatmul.bf16.gmra.mxu2 %v2389_v50  ;;  %v3295_v50 = vrot.slane %v3293_v5, 5  ;;  %v2283_v51 = vsel %vm7785_vm13, %v2281_v62, %v2282_v48  ;;  %v3514_v5 = vpack.c.b16 %v3491_v49, %v3490_v31  ;;  %v1663_v48 = vsel %vm7769_vm10, %v1658_v24, %v1662_v15  ;;  %v2117_v15 = vld [vmem:[#allocation2 + $0x6c] sm:$0xe] }
  0xfe   : > { %v8078_v8 = vpop.f32.mrf.mxu1  ;;  %v2367_v43 = vunpack.c.l.b16 %v2283_v51  ;;  %v3306_v62 = vor.u32 %v3305_v1, %v8090_v36  ;;  %v1844_v24 = vunpack.c.l.b16 %v1663_v48  ;;  %v2119_v1 = vld [vmem:[#allocation2 + $0x74] sm:$0x1]  ;;  %v6362_v48 = vrot.slane %v2117_v15, 9 }
  0xff   : > { %2883 = vmatmul.bf16.gmra.mxu3 %v6916_v3  ;;  %v1372_v3 = vld [vmem:[#allocation2 + $0x7c] sm:$0xf]  ;;  %v3296_v30 = vor.u32 %v3295_v50, %v3292_v63  ;;  %v2286_v63 = vrot.slane %v2118_v53, 5  ;;  %v2289_v53 = vrot.slane %v2119_v1, 5  ;;  %v6975_v15 = vld [vmem:[%s8920_s1 + $0x1d0] sm:$0xff] }
 0x100   : > { %v8084_v10 = vpop.f32.mrf.mxu2  ;;  %v1674_v61 = vshll.u32 %v1372_v3, 16  ;;  %v1678_v27 = vshrl.u32 %v1372_v3, 16  ;;  %v2390_v50 = vpack.c.b16 %v2367_v43, %v2366_v0  ;;  %v1866_v58 = vpack.c.b16 %v1844_v24, %v1843_v52  ;;  %v3024_v0 = vld [vmem:[#allocation2 + $0x88] sm:$0xf]  ;;  %5238 = vmatpush.bf16.msra.mxu3 %v6975_v15 }
 0x101   : > { %8943 = vst [vmem:[#allocation12_spill] sm:$0xff] %v8084_v10  ;;  %1985 = vmatmul.bf16.gmra.mxu1 %v1865_v25  ;;  %v3309_v25 = vshll.u32 %v3022_v9, 16  ;;  %v3297_v3 = vrot.slane %v3296_v30, 4  ;;  %v3307_v9 = vrot.slane %v3306_v62, 4  ;;  %v697_v10 = vrot.slane %v7395_v45, 4 }
 0x102   : > { %v8092_v56 = vpop.f32.mrf.mxu3  ;;  %v1680_v16 = vrot.slane %v1678_v27, 4  ;;  %v2288_v22 = vrot.slane %v2286_v63, 4  ;;  %v2026_v43 = vadd.f32 %v8078_v8, %v7909_v54  ;;  %v6967_v8 = vld [vmem:[%s8920_s1 + $0x190] sm:$0xff]  ;;  %v3327_v24 = vshrl.u32 %v3024_v0, 16 }
 0x103   : > { %8944 = vst [vmem:[#allocation13_spill] sm:$0xff] %v8092_v56  ;;  %v8100_v56 = vrot.slane %v1674_v61, 5  ;;  %v3311_v59 = vrot.slane %v3309_v25, 5  ;;  %v1671_v61 = vor.u32 %v1670_v44, %v1667_v46  ;;  %4492 = vmatpush.bf16.msra.mxu2 %v6967_v8 }
 0x104   : > { %v8102_v51 = vpop.f32.mrf.mxu0 }
 0x105   : > { %v1681_v27 = vor.u32 %v1680_v16, %v8100_v56  ;;  %v3312_v30 = vsel %vm7769_vm10, %v3307_v9, %v3311_v59  ;;  %v1672_v45 = vrot.slane %v1671_v61, 4  ;;  %v1374_v59 = vld [vmem:[#allocation2 + $0x84] sm:$0xf]  ;;  %v1375_v61 = vld [vmem:[#allocation2 + $0x88] sm:$0xf] }
 0x106   : > { %v1948_v37 = vpop.f32.mrf.mxu1 }
 0x107   : > { %v8105_v31 = vadd.f32 %v1948_v37, %v7927_v32  ;;  %3634 = vmatmul.bf16.gmra.mxu0 %v3514_v5  ;;  %v1684_v32 = vshll.u32 %v1373_v40, 16  ;;  %v3023_v37 = vld [vmem:[#allocation2 + $0x84] sm:$0xf]  ;;  %v3302_v5 = vsel %vm7769_vm10, %v3297_v3, %v8090_v36  ;;  %v1682_v46 = vrot.slane %v1681_v27, 4  ;;  %v901_v40 = vld [vmem:[#allocation2 + $0x98] sm:$0x1] }
 0x108   : > { %v8107_v49 = vpop.f32.mrf.mxu2  ;;  %v3314_v62 = vshrl.u32 %v3023_v37, 16  ;;  %v3317_v16 = vshll.u32 %v3023_v37, 16  ;;  %v3323_v36 = vshll.u32 %v3024_v0, 16  ;;  %v2290_v3 = vsel %vm7785_vm13, %v2288_v22, %v2289_v53 }
 0x109   : > { %8945 = vst [vmem:[#allocation14_spill] sm:$0xff] %v8107_v49  ;;  %v6917_v49 = vld [vmem:[#allocation2 + $0x6c] sm:$0xff]  ;;  %v1686_v44 = vrot.slane %v1684_v32, 5  ;;  %v3492_v9 = vunpack.c.l.b16 %v3302_v5  ;;  %v3493_v32 = vunpack.c.l.b16 %v3312_v30  ;;  %v3329_v53 = vrot.slane %v3327_v24, 4 }
 0x10a   : > { %v8109_v13 = vpop.f32.mrf.mxu3  ;;  %v3316_v0 = vrot.slane %v3314_v62, 4  ;;  %v8144_v22 = vrot.slane %v3323_v36, 5  ;;  %v3025_v5 = vld [vmem:[#allocation2 + $0x8c] sm:$0x1]  ;;  %v1689_v30 = vshrl.u32 %v1374_v59, 16 }
 0x10b   : > { %8946 = vst [vmem:[#allocation15_spill] sm:$0xff] %v8109_v13  ;;  %v1687_v37 = vsel %vm7769_vm10, %v1682_v46, %v1686_v44  ;;  %v1702_v46 = vshrl.u32 %v1375_v61, 16  ;;  %v2369_v44 = vunpack.c.l.b16 %v2290_v3 }
 0x10c   : > { %v8120_v52 = vpop.f32.mrf.mxu0  ;;  %v1846_v24 = vunpack.c.l.b16 %v1687_v37  ;;  %v3330_v3 = vor.u32 %v3329_v53, %v8144_v22 }
 0x10d   : > { %2510 = vmatmul.bf16.gmra.mxu2 %v2390_v50  ;;  %v902_v50 = vsel %vm7726_vm7, %v697_v10, %v901_v40  ;;  %v1677_v10 = vsel %vm7769_vm10, %v1672_v45, %v8100_v56  ;;  %v6983_v56 = vld [vmem:[%s8920_s1 + $0x210] sm:$0xff]  ;;  %v1698_v45 = vshll.u32 %v1375_v61, 16  ;;  %v3515_v40 = vpack.c.b16 %v3493_v32, %v3492_v9 }
 0x10e   : > { %v1951_v25 = vpop.f32.mrf.mxu1  ;;  %903 = vst [vmem:[#allocation2 + $0x98] sm:$0x1] %v902_v50  ;;  %5760 = vmatpush.bf16.msra.mxu0 %v6983_v56  ;;  %v1845_v36 = vunpack.c.l.b16 %v1677_v10  ;;  %v3333_v61 = vshll.u32 %v3025_v5, 16  ;;  %v1704_v32 = vrot.slane %v1702_v46, 4  ;;  %v714_v10 = vrot.slane %v7501_v47, 4 }
 0x10f   : > { %2888 = vmatmul.bf16.gmra.mxu3 %v6917_v49  ;;  %v8123_v54 = vadd.f32 %v1951_v25, %v7967_v60  ;;  %v2287_v60 = vsel %vm7785_vm13, %v6362_v48, %v2286_v63  ;;  %v3319_v48 = vrot.slane %v3317_v16, 5  ;;  %v1692_v25 = vshll.u32 %v1374_v59, 16  ;;  %v2122_v59 = vld [vmem:[#allocation2 + $0x80] sm:$0x1]  ;;  %v3027_v5 = vld [vmem:[#allocation2 + $0x94] sm:$0xf] }
 0x110   : > { %v2471_v1 = vpop.f32.mrf.mxu2  ;;  %v2368_v62 = vunpack.c.l.b16 %v2287_v60  ;;  %v8162_v9 = vrot.slane %v1698_v45, 5  ;;  %v2296_v53 = vrot.slane %v2122_v59, 5  ;;  %v3331_v45 = vrot.slane %v3330_v3, 4  ;;  %v908_v59 = vld [vmem:[#allocation2 + $0xa4] sm:$0x1] }
 0x111   : > { %v2551_v49 = vadd.f32 %v2471_v1, %v2026_v43  ;;  %1990 = vmatmul.bf16.gmra.mxu1 %v1866_v58  ;;  %v8142_v58 = vld [vmem:[#allocation2 + $0x7c] sm:$0xf]  ;;  %v6943_v43 = vld [vmem:[%s8920_s1 + $0x150] sm:$0xff]  ;;  %v3320_v60 = vor.u32 %v3319_v48, %v3316_v0  ;;  %v3335_v13 = vrot.slane %v3333_v61, 5 }
 0x112   : > { %v2849_v27 = vpop.f32.mrf.mxu3  ;;  %4113 = vmatpush.bf16.msra.mxu1 %v6943_v43  ;;  %v2293_v15 = vrot.slane %v8142_v58, 5  ;;  %v2391_v58 = vpack.c.b16 %v2369_v44, %v2368_v62  ;;  %v1376_v43 = vld [vmem:[#allocation2 + $0x8c] sm:$0x1]  ;;  %v1705_v47 = vor.u32 %v1704_v32, %v8162_v9  ;;  %v3347_v44 = vshll.u32 %v3027_v5, 16 }
 0x113   : > { %v2929_v63 = vadd.f32 %v2849_v27, %v2551_v49  ;;  %v2120_v49 = vld [vmem:[#allocation2 + $0x78] sm:$0xe]  ;;  %v1708_v39 = vshll.u32 %v1376_v43, 16 }
 0x114   : > { %v8156_v50 = vpop.f32.mrf.mxu0  ;;  %v6363_v0 = vrot.slane %v2120_v49, 9  ;;  %v2295_v48 = vrot.slane %v2293_v15, 4  ;;  %v8187_v43 = vrot.slane %v3347_v44, 5 }
 0x115   : > { %v8153_v16 = vadd.f32 %v8102_v51, %v2929_v63  ;;  %v1691_v51 = vrot.slane %v1689_v30, 4  ;;  %v1694_v63 = vrot.slane %v1692_v25, 5  ;;  %v6918_v30 = vld [vmem:[#allocation2 + $0x78] sm:$0xff]  ;;  %v3321_v25 = vrot.slane %v3320_v60, 4 }
 0x116   : > { %v1953_v8 = vpop.f32.mrf.mxu1  ;;  %v2297_v49 = vsel %vm7785_vm13, %v2295_v48, %v2296_v53  ;;  %v1710_v32 = vrot.slane %v1708_v39, 5  ;;  %v3028_v48 = vld [vmem:[#allocation2 + $0x98] sm:$0x1] }
 0x117   : > { %8947 = vst [vmem:[#allocation16_spill] sm:$0xff] %v8153_v16  ;;  %v8159_v1 = vadd.f32 %v1953_v8, %v7979_v57  ;;  %v3026_v57 = vld [vmem:[#allocation2 + $0x90] sm:$0xf]  ;;  %3639 = vmatmul.bf16.gmra.mxu0 %v3515_v40  ;;  %v1867_v8 = vpack.c.b16 %v1846_v24, %v1845_v36  ;;  %v1695_v46 = vor.u32 %v1694_v63, %v1691_v51  ;;  %v1706_v63 = vrot.slane %v1705_v47, 4 }
 0x118   : > { %v2473_v27 = vpop.f32.mrf.mxu2  ;;  %v3341_v62 = vshll.u32 %v3026_v57, 16  ;;  %v2294_v24 = vsel %vm7785_vm13, %v6363_v0, %v2293_v15  ;;  %v3326_v61 = vsel %vm7769_vm10, %v3321_v25, %v8144_v22  ;;  %v1377_v22 = vld [vmem:[#allocation2 + $0x90] sm:$0xf] }
 0x119   : > { %v2552_v37 = vadd.f32 %v2473_v27, %v8105_v31  ;;  %v3338_v31 = vshrl.u32 %v3026_v57, 16  ;;  %v3351_v27 = vshrl.u32 %v3027_v5, 16  ;;  %v1696_v51 = vrot.slane %v1695_v46, 4 }
 0x11a   : > { %v2851_v56 = vpop.f32.mrf.mxu3  ;;  %v3494_v0 = vunpack.c.l.b16 %v3326_v61  ;;  %v2371_v5 = vunpack.c.l.b16 %v2297_v49  ;;  %v1713_v25 = vshrl.u32 %v1377_v22, 16 }
 0x11b   : > { %v2930_v16 = vadd.f32 %v2851_v56, %v2552_v37  ;;  %v3340_v37 = vrot.slane %v3338_v31, 4  ;;  %v3353_v57 = vrot.slane %v3351_v27, 4  ;;  %v1701_v39 = vsel %vm7769_vm10, %v1696_v51, %v8162_v9 }
 0x11c   : > { %v8174_v60 = vpop.f32.mrf.mxu0  ;;  %v3357_v31 = vshll.u32 %v3028_v48, 16  ;;  %v3030_v48 = vld [vmem:[#allocation2 + $0xa0] sm:$0xf] }
 0x11d   : > { %2515 = vmatmul.bf16.gmra.mxu2 %v2391_v58  ;;  %v8168_v40 = vadd.f32 %v8120_v52, %v2930_v16  ;;  %v3336_v52 = vsel %vm7769_vm10, %v3331_v45, %v3335_v13  ;;  %v909_v16 = vsel %vm7726_vm7, %v714_v10, %v908_v59  ;;  %v2370_v10 = vunpack.c.l.b16 %v2294_v24 }
 0x11e   : > { %v1956_v36 = vpop.f32.mrf.mxu1  ;;  %910 = vst [vmem:[#allocation2 + $0xa4] sm:$0x1] %v909_v16  ;;  %v3495_v13 = vunpack.c.l.b16 %v3336_v52  ;;  %v1716_v45 = vshll.u32 %v1377_v22, 16  ;;  %v3354_v47 = vor.u32 %v3353_v57, %v8187_v43  ;;  %v3029_v52 = vld [vmem:[#allocation2 + $0x9c] sm:$0xf]  ;;  %v3359_v22 = vrot.slane %v3357_v31, 5 }
 0x11f   : > { %2893 = vmatmul.bf16.gmra.mxu3 %v6918_v30  ;;  %v8177_v3 = vadd.f32 %v1956_v36, %v8001_v55  ;;  %v3343_v55 = vrot.slane %v3341_v62, 5  ;;  %v1378_v30 = vld [vmem:[#allocation2 + $0x94] sm:$0xf]  ;;  %v2392_v9 = vpack.c.b16 %v2371_v5, %v2370_v10  ;;  %v3365_v10 = vshll.u32 %v3029_v52, 16 }
 0x120   : > { %v2476_v15 = vpop.f32.mrf.mxu2  ;;  %v3516_v44 = vpack.c.b16 %v3495_v13, %v3494_v0  ;;  %v1722_v36 = vshll.u32 %v1378_v30, 16  ;;  %v1726_v24 = vshrl.u32 %v1378_v30, 16  ;;  %v3355_v57 = vrot.slane %v3354_v47, 4 }
 0x121   : > { %v2553_v58 = vadd.f32 %v2476_v15, %v8123_v54  ;;  %1995 = vmatmul.bf16.gmra.mxu1 %v1867_v8  ;;  %v1711_v54 = vsel %vm7769_vm10, %v1706_v63, %v1710_v32  ;;  %v2124_v8 = vld [vmem:[#allocation2 + $0x88] sm:$0xf]  ;;  %v3344_v46 = vor.u32 %v3343_v55, %v3340_v37  ;;  %v1847_v15 = vunpack.c.l.b16 %v1701_v39  ;;  %v2123_v63 = vld [vmem:[#allocation2 + $0x84] sm:$0xe]  ;;  %v2125_v32 = vld [vmem:[#allocation2 + $0x8c] sm:$0x1] }
 0x122   : > { %v2854_v56 = vpop.f32.mrf.mxu3  ;;  %v2300_v61 = vrot.slane %v2124_v8, 5  ;;  %v1848_v51 = vunpack.c.l.b16 %v1711_v54  ;;  %v1715_v37 = vrot.slane %v1713_v25, 4  ;;  %v8204_v13 = vrot.slane %v1722_v36, 5  ;;  %v6919_v39 = vld [vmem:[#allocation2 + $0x84] sm:$0xff] }
 0x123   : > { %v2931_v53 = vadd.f32 %v2854_v56, %v2553_v58  ;;  %v3345_v55 = vrot.slane %v3344_v46, 4  ;;  %v1379_v56 = vld [vmem:[#allocation2 + $0x98] sm:$0x1]  ;;  %v731_v5 = vrot.slane %v7636_v4, 4  ;;  %v6364_v54 = vrot.slane %v2123_v63, 9 }
 0x124   : > { %v8198_v49 = vpop.f32.mrf.mxu0  ;;  %v2302_v8 = vrot.slane %v2300_v61, 4  ;;  %v1868_v25 = vpack.c.b16 %v1848_v51, %v1847_v15  ;;  %v1732_v46 = vshll.u32 %v1379_v56, 16  ;;  %v3371_v31 = vshll.u32 %v3030_v48, 16  ;;  %v915_v15 = vld [vmem:[#allocation2 + $0xb0] sm:$0x1] }
 0x125   : > { %v8196_v62 = vadd.f32 %v8156_v50, %v2931_v53  ;;  %v1718_v50 = vrot.slane %v1716_v45, 5  ;;  %v3362_v53 = vshrl.u32 %v3029_v52, 16  ;;  %v3350_v47 = vsel %vm7769_vm10, %v3345_v55, %v8187_v43  ;;  %v3031_v63 = vld [vmem:[#allocation2 + $0xa4] sm:$0x1] }
 0x126   : > { %v1958_v27 = vpop.f32.mrf.mxu1  ;;  %v3360_v4 = vsel %vm7769_vm10, %v3355_v57, %v3359_v22  ;;  %v2301_v43 = vsel %vm7785_vm13, %v6364_v54, %v2300_v61  ;;  %v1734_v57 = vrot.slane %v1732_v46, 5  ;;  %v916_v61 = vsel %vm7726_vm7, %v731_v5, %v915_v15 }
 0x127   : > { %v8201_v59 = vadd.f32 %v1958_v27, %v8018_v11  ;;  %3644 = vmatmul.bf16.gmra.mxu0 %v3516_v44  ;;  %v1728_v11 = vrot.slane %v1726_v24, 4  ;;  %v1719_v45 = vor.u32 %v1718_v50, %v1715_v37  ;;  %v3375_v44 = vshrl.u32 %v3030_v48, 16  ;;  %v6974_v50 = vld [vmem:[%s8920_s1 + $0x1c8] sm:$0xff]  ;;  %v1381_v48 = vld [vmem:[#allocation2 + $0xa0] sm:$0xf] }
 0x128   : > { %v2478_v16 = vpop.f32.mrf.mxu2  ;;  %v3364_v52 = vrot.slane %v3362_v53, 4  ;;  %v3496_v56 = vunpack.c.l.b16 %v3350_v47  ;;  %917 = vst [vmem:[#allocation2 + $0xb0] sm:$0x1] %v916_v61  ;;  %5239 = vmatpush.bf16.msra.mxu3 %v6974_v50  ;;  %v2372_v5 = vunpack.c.l.b16 %v2301_v43  ;;  %v2126_v43 = vld [vmem:[#allocation2 + $0x90] sm:$0xe] }
 0x129   : > { %v2554_v58 = vadd.f32 %v2478_v16, %v8159_v1  ;;  %v2303_v1 = vrot.slane %v2125_v32, 5  ;;  %v1729_v24 = vor.u32 %v1728_v11, %v8204_v13  ;;  %v3367_v16 = vrot.slane %v3365_v10, 5  ;;  %v1380_v11 = vld [vmem:[#allocation2 + $0x9c] sm:$0xf] }
 0x12a   : > { %v2856_v0 = vpop.f32.mrf.mxu3  ;;  %v8226_v32 = vrot.slane %v3371_v31, 5  ;;  %v3377_v37 = vrot.slane %v3375_v44, 4  ;;  %v1720_v55 = vrot.slane %v1719_v45, 4  ;;  %v1737_v46 = vshrl.u32 %v1380_v11, 16 }
 0x12b   : > { %v2932_v30 = vadd.f32 %v2856_v0, %v2554_v58  ;;  %v3497_v0 = vunpack.c.l.b16 %v3360_v4  ;;  %v1730_v10 = vrot.slane %v1729_v24, 4  ;;  %v1740_v47 = vshll.u32 %v1380_v11, 16 }
 0x12c   : > { %v3378_v54 = vor.u32 %v3377_v37, %v8226_v32  ;;  %v1746_v31 = vshll.u32 %v1381_v48, 16  ;;  %v1750_v44 = vshrl.u32 %v1381_v48, 16  ;;  %v1725_v4 = vsel %vm7769_vm10, %v1720_v55, %v8204_v13 }
 0x12d   : > { %2520 = vmatmul.bf16.gmra.mxu2 %v2392_v9  ;;  %v8211_v27 = vadd.f32 %v8174_v60, %v2932_v30  ;;  %v8216_v9 = vpop.f32.mrf.mxu0  ;;  %v6966_v60 = vld [vmem:[%s8920_s1 + $0x188] sm:$0xff]  ;;  %v8236_v30 = vld [vmem:[#allocation2 + $0x94] sm:$0xf]  ;;  %v1735_v15 = vsel %vm7769_vm10, %v1730_v10, %v1734_v57  ;;  %v1739_v61 = vrot.slane %v1737_v46, 4  ;;  %v1849_v11 = vunpack.c.l.b16 %v1725_v4  ;;  %v1382_v10 = vld [vmem:[#allocation2 + $0xa4] sm:$0x1] }
 0x12e   : > { %v1961_v36 = vpop.f32.mrf.mxu1  ;;  %4493 = vmatpush.bf16.msra.mxu2 %v6966_v60  ;;  %v2307_v24 = vrot.slane %v8236_v30, 5  ;;  %v1850_v48 = vunpack.c.l.b16 %v1735_v15 }
 0x12f   : > { %2898 = vmatmul.bf16.gmra.mxu3 %v6919_v39  ;;  %v8219_v51 = vadd.f32 %v1961_v36, %v8063_v12  ;;  %v2304_v12 = vsel %vm7785_vm13, %v2302_v8, %v2303_v1  ;;  %v3368_v39 = vor.u32 %v3367_v16, %v3364_v52  ;;  %v3381_v8 = vshll.u32 %v3031_v63, 16 }
 0x130   : > { %v2481_v58 = vpop.f32.mrf.mxu2  ;;  %v2373_v45 = vunpack.c.l.b16 %v2304_v12  ;;  %v3517_v36 = vpack.c.b16 %v3497_v0, %v3496_v56  ;;  %v3379_v63 = vrot.slane %v3378_v54, 4  ;;  %v2128_v12 = vld [vmem:[#allocation2 + $0x98] sm:$0x1]  ;;  %v1752_v56 = vrot.slane %v1750_v44, 4  ;;  %v3032_v0 = vld [vmem:[#allocation2 + $0xa8] sm:$0xf] }
 0x131   : > { %v2555_v22 = vadd.f32 %v2481_v58, %v8177_v3  ;;  %2000 = vmatmul.bf16.gmra.mxu1 %v1868_v25  ;;  %v6942_v3 = vld [vmem:[%s8920_s1 + $0x148] sm:$0xff]  ;;  %v3369_v60 = vrot.slane %v3368_v39, 4  ;;  %v3383_v37 = vrot.slane %v3381_v8, 5  ;;  %v2309_v39 = vrot.slane %v2307_v24, 4 }
 0x132   : > { %v2859_v53 = vpop.f32.mrf.mxu3  ;;  %v6982_v25 = vld [vmem:[%s8920_s1 + $0x208] sm:$0xff]  ;;  %4114 = vmatpush.bf16.msra.mxu1 %v6942_v3  ;;  %v2393_v58 = vpack.c.b16 %v2373_v45, %v2372_v5  ;;  %v2310_v54 = vrot.slane %v2128_v12, 5  ;;  %v6920_v5 = vld [vmem:[#allocation2 + $0x90] sm:$0xff]  ;;  %v8267_v45 = vld [vmem:[#allocation2 + $0xa0] sm:$0xf]  ;;  %v3389_v3 = vshll.u32 %v3032_v0, 16 }
 0x133   : > { %v2933_v1 = vadd.f32 %v2859_v53, %v2555_v22  ;;  %5761 = vmatpush.bf16.msra.mxu0 %v6982_v25  ;;  %v1742_v22 = vrot.slane %v1740_v47, 5  ;;  %v6365_v53 = vrot.slane %v2126_v43, 9  ;;  %v3384_v8 = vsel %vm7769_vm10, %v3379_v63, %v3383_v37  ;;  %v3033_v44 = vld [vmem:[#allocation2 + $0xac] sm:$0xf]  ;;  %v2129_v43 = vld [vmem:[#allocation2 + $0x9c] sm:$0xe] }
 0x134   : > { %v748_v25 = vrot.slane %v7739_v18, 4  ;;  %v8273_v4 = vunpack.c.l.b16 %v3384_v8  ;;  %v2311_v18 = vsel %vm7785_vm13, %v2309_v39, %v2310_v54  ;;  %v922_v63 = vld [vmem:[#allocation2 + $0xbc] sm:$0x1]  ;;  %v1383_v54 = vld [vmem:[#allocation2 + $0xa8] sm:$0xf] }
 0x135   : > { %v8250_v52 = vadd.f32 %v8198_v49, %v2933_v1  ;;  %v8254_v50 = vpop.f32.mrf.mxu0  ;;  %v8259_v49 = vrot.slane %v1746_v31, 5  ;;  %v1743_v46 = vor.u32 %v1742_v22, %v1739_v61  ;;  %v1756_v31 = vshll.u32 %v1382_v10, 16 }
 0x136   : > { %v1963_v16 = vpop.f32.mrf.mxu1  ;;  %v2308_v15 = vsel %vm7785_vm13, %v6365_v53, %v2307_v24  ;;  %v3395_v61 = vshll.u32 %v3033_v44, 16  ;;  %v3399_v22 = vshrl.u32 %v3033_v44, 16  ;;  %v923_v53 = vsel %vm7726_vm7, %v748_v25, %v922_v63  ;;  %v3034_v44 = vld [vmem:[#allocation2 + $0xb0] sm:$0x1] }
 0x137   : > { %v8257_v13 = vadd.f32 %v1963_v16, %v8080_v7  ;;  %3649 = vmatmul.bf16.gmra.mxu0 %v3517_v36  ;;  %v3374_v7 = vsel %vm7769_vm10, %v3369_v60, %v8226_v32  ;;  %v1753_v47 = vor.u32 %v1752_v56, %v8259_v49  ;;  %v1869_v36 = vpack.c.b16 %v1850_v48, %v1849_v11  ;;  %v7147_v56 = vld [vmem:[%s7263_s27 + $0x78] sm:$0xff]   ;;  %v2131_v48 = vld [vmem:[#allocation2 + $0xa4] sm:$0x1] }
 0x138   : > { %v2483_v55 = vpop.f32.mrf.mxu2  ;;  %v8271_v32 = vunpack.c.l.b16 %v3374_v7  ;;  %v2314_v60 = vrot.slane %v8267_v45, 5  ;;  %v1744_v24 = vrot.slane %v1743_v46, 4  ;;  %v1758_v11 = vrot.slane %v1756_v31, 5  ;;  %v1384_v7 = vld [vmem:[#allocation2 + $0xac] sm:$0xf] }
 0x139   : > { %v2556_v57 = vadd.f32 %v2483_v55, %v8201_v59  ;;  %v3386_v59 = vshrl.u32 %v3032_v0, 16  ;;  %v3391_v55 = vrot.slane %v3389_v3, 5  ;;  %924 = vst [vmem:[#allocation2 + $0xbc] sm:$0x1] %v923_v53  ;;  %v7051_v45 = vunpack.c.l.bf16 %v7147_v56 }
 0x13a   : > { %v2861_v30 = vpop.f32.mrf.mxu3  ;;  %v3518_v39 = vpack.c.b16 %v8273_v4, %v8271_v32  ;;  %v6366_v46 = vrot.slane %v2129_v43, 9  ;;  %v3401_v25 = vrot.slane %v3399_v22, 4  ;;  %v2317_v31 = vrot.slane %v2131_v48, 5 }
 0x13b   : > { %v2934_v1 = vadd.f32 %v2861_v30, %v2556_v57  ;;  %v3388_v12 = vrot.slane %v3386_v59, 4  ;;  %v1754_v57 = vrot.slane %v1753_v47, 4  ;;  %v2375_v30 = vunpack.c.l.b16 %v2311_v18 }
 0x13c   : > { %v7052_v59 = vunpack.c.h.bf16 %v7147_v56  ;;  %v8293_v47 = vrot.slane %v3395_v61, 5  ;;  %v1749_v32 = vsel %vm7769_vm10, %v1744_v24, %v8259_v49  ;;  %v7198_v56 = vld [vmem:[%s8921_s2] ss:$0 sm:$0xff]  ;;  %v3405_v24 = vshll.u32 %v3034_v44, 16 }
 0x13d   : > { %2525 = vmatmul.bf16.gmra.mxu2 %v2393_v58  ;;  %v8283_v37 = vadd.f32 %v8216_v9, %v2934_v1  ;;  %v8285_v58 = vpop.f32.mrf.mxu0  ;;  %v2374_v9 = vunpack.c.l.b16 %v2308_v15  ;;  %v1761_v1 = vshrl.u32 %v1383_v54, 16  ;;  %v1774_v15 = vshrl.u32 %v1384_v7, 16 }
 0x13e   : > { %v8275_v16 = vpop.f32.mrf.mxu1  ;;  %v1759_v4 = vsel %vm7769_vm10, %v1754_v57, %v1758_v11  ;;  %v3392_v18 = vor.u32 %v3391_v55, %v3388_v12  ;;  %v337_v48 = vmul.f32 %v7198_v56, %v7052_v59  ;;  %v3402_v49 = vor.u32 %v3401_v25, %v8293_v47  ;;  %v6921_v25 = vld [vmem:[#allocation2 + $0x9c] sm:$0xff] }
 0x13f   : > { %2903 = vmatmul.bf16.gmra.mxu3 %v6920_v5  ;;  %v1764_v5 = vshll.u32 %v1383_v54, 16  ;;  %v1763_v61 = vrot.slane %v1761_v1, 4  ;;  %v2394_v12 = vpack.c.b16 %v2375_v30, %v2374_v9  ;;  %v1776_v11 = vrot.slane %v1774_v15, 4 }
 0x140   : > { %v2486_v0 = vpop.f32.mrf.mxu2  ;;  %v3393_v1 = vrot.slane %v3392_v18, 4  ;;  %v3403_v44 = vrot.slane %v3402_v49, 4 }
 0x141   : > { %v2557_v10 = vadd.f32 %v2486_v0, %v8219_v51  ;;  %2005 = vmatmul.bf16.gmra.mxu1 %v1869_v36  ;;  %v2316_v51 = vrot.slane %v2314_v60, 4  ;;  %v1770_v36 = vshll.u32 %v1384_v7, 16  ;;  %v1766_v22 = vrot.slane %v1764_v5, 5  ;;  %v1385_v5 = vld [vmem:[#allocation2 + $0xb0] sm:$0x1] }
 0x142   : > { %v2864_v8 = vpop.f32.mrf.mxu3  ;;  %v336_v0 = vmul.f32 %v7198_v56, %v7051_v45  ;;  %v1851_v7 = vunpack.c.l.b16 %v1749_v32 }
 0x143   : > { %v2935_v3 = vadd.f32 %v2864_v8, %v2557_v10  ;;  %v8313_v55 = vrot.slane %v1770_v36, 5  ;;  %v3035_v10 = vld [vmem:[#allocation2 + $0xb4] sm:$0xf]  ;;  %v1852_v8 = vunpack.c.l.b16 %v1759_v4  ;;  %v2318_v59 = vsel %vm7785_vm13, %v2316_v51, %v2317_v31 }
 0x144   : > { %v3410_v36 = vshrl.u32 %v3035_v10, 16  ;;  %v1780_v4 = vshll.u32 %v1385_v5, 16  ;;  %v3413_v18 = vshll.u32 %v3035_v10, 16  ;;  %v2034_v51 = vadd.f32 %v8275_v16, %v7899_v23  ;;  %v6965_v16 = vld [vmem:[%s8920_s1 + $0x180] sm:$0xff] }
 0x145   : > { %v8301_v63 = vadd.f32 %v8254_v50, %v2935_v3  ;;  %v8308_v53 = vpop.f32.mrf.mxu0  ;;  %v2315_v50 = vsel %vm7785_vm13, %v6366_v46, %v2314_v60  ;;  %v1767_v3 = vor.u32 %v1766_v22, %v1763_v61  ;;  %v7199_v60 = vld [vmem:[%s8922_s3] ss:$0 sm:$0xff]  ;;  %v1777_v32 = vor.u32 %v1776_v11, %v8313_v55  ;;  %4494 = vmatpush.bf16.msra.mxu2 %v6965_v16 }
 0x146   : > { %v8303_v43 = vpop.f32.mrf.mxu1  ;;  %v371_v9 = vadd.f32 %v7199_v60, %v336_v0  ;;  %v372_v30 = vadd.f32 %v7199_v60, %v337_v48  ;;  %v2376_v15 = vunpack.c.l.b16 %v2315_v50  ;;  %v1870_v31 = vpack.c.b16 %v1852_v8, %v1851_v7  ;;  %v6973_v11 = vld [vmem:[%s8920_s1 + $0x1c0] sm:$0xff] }
 0x147   : > { %3654 = vmatmul.bf16.gmra.mxu0 %v3518_v39  ;;  %v3036_v39 = vld [vmem:[#allocation2 + $0xb8] sm:$0xf]  ;;  %v2377_v61 = vunpack.c.l.b16 %v2318_v59  ;;  %v3398_v22 = vsel %vm7769_vm10, %v3393_v1, %v8293_v47  ;;  %v1768_v0 = vrot.slane %v1767_v3, 4  ;;  %v3415_v7 = vrot.slane %v3413_v18, 5  ;;  %5240 = vmatpush.bf16.msra.mxu3 %v6973_v11  ;;  %v3037_v18 = vld [vmem:[#allocation2 + $0xbc] sm:$0x1] }
 0x148   : > { %v2488_v57 = vpop.f32.mrf.mxu2  ;;  %v403_v48 = vmax.f32 %v371_v9, 0.0  ;;  %v404_v49 = vmax.f32 %v372_v30, 0.0  ;;  %v3419_v47 = vshll.u32 %v3036_v39, 16  ;;  %v3423_v50 = vshrl.u32 %v3036_v39, 16  ;;  %v8347_v30 = vld [vmem:[#allocation2 + $0xac] sm:$0xf] }
 0x149   : > { %v2558_v54 = vadd.f32 %v2488_v57, %v8257_v13  ;;  %v3407_v13 = vrot.slane %v3405_v24, 5  ;;  %v8342_v5 = vpack.c.b16 %v2377_v61, %v2376_v15  ;;  %v3500_v3 = vunpack.c.l.b16 %v3398_v22  ;;  %v6941_v15 = vld [vmem:[%s8920_s1 + $0x140] sm:$0xff]  ;;  %v8359_v39 = vld [vmem:[#allocation2 + $0xa8] sm:$0xe] }
 0x14a   : > { %v2866_v45 = vpop.f32.mrf.mxu3  ;;  %v489_v8 = vpack.c.bf16 %v403_v48, %v403_v48  ;;  %v1773_v9 = vsel %vm7769_vm10, %v1768_v0, %v8313_v55  ;;  %4115 = vmatpush.bf16.msra.mxu1 %v6941_v15 }
 0x14b   : > { %v2936_v46 = vadd.f32 %v2866_v45, %v2558_v54  ;;  %v3408_v23 = vsel %vm7769_vm10, %v3403_v44, %v3407_v13  ;;  %v1782_v54 = vrot.slane %v1780_v4, 5  ;;  %v1386_v45 = vld [vmem:[#allocation2 + $0xb4] sm:$0xf]  ;;  %v8349_v13 = vrot.slane %v3419_v47, 5 }
 0x14c   : > { %v3501_v60 = vunpack.c.l.b16 %v3408_v23  ;;  %v750_v4 = vshrl.u32 %v489_v8, 16  ;;  %v1788_v61 = vshll.u32 %v1386_v45, 16  ;;  %v753_v48 = vshll.u32 %v489_v8, 16 }
 0x14d   : > { %2530 = vmatmul.bf16.gmra.mxu2 %v2394_v12  ;;  %v8330_v24 = vadd.f32 %v8285_v58, %v2936_v46  ;;  %v8332_v57 = vpop.f32.mrf.mxu0  ;;  %v3412_v12 = vrot.slane %v3410_v36, 4  ;;  %v1778_v58 = vrot.slane %v1777_v32, 4  ;;  %v1387_v46 = vld [vmem:[#allocation2 + $0xb8] sm:$0xf]  ;;  %v3425_v36 = vrot.slane %v3423_v50, 4  ;;  %v6981_v32 = vld [vmem:[%s8920_s1 + $0x200] sm:$0xff] }
 0x14e   : > { %v8327_v56 = vpop.f32.mrf.mxu1  ;;  %5762 = vmatpush.bf16.msra.mxu0 %v6981_v32  ;;  %v1794_v22 = vshll.u32 %v1387_v46, 16  ;;  %v752_v0 = vrot.slane %v750_v4, 7  ;;  %v2035_v23 = vadd.f32 %v8303_v43, %v7917_v6  ;;  %v3519_v16 = vpack.c.b16 %v3501_v60, %v3500_v3  ;;  %v6922_v43 = vld [vmem:[#allocation2 + $0xa8] sm:$0xff]  ;;  %v2134_v3 = vld [vmem:[#allocation2 + $0xb0] sm:$0x1] }
 0x14f   : > { %8948 = vst [vmem:[#allocation17_spill] sm:$0xff] %v8330_v24  ;;  %2908 = vmatmul.bf16.gmra.mxu3 %v6921_v25  ;;  %v490_v25 = vpack.c.bf16 %v404_v49, %v404_v49  ;;  %v1783_v55 = vsel %vm7769_vm10, %v1778_v58, %v1782_v54  ;;  %v1798_v50 = vshrl.u32 %v1387_v46, 16  ;;  %v2321_v58 = vrot.slane %v8347_v30, 5 }
 0x150   : > { %v2491_v10 = vpop.f32.mrf.mxu2  ;;  %v3426_v54 = vor.u32 %v3425_v36, %v8349_v13  ;;  %v1790_v60 = vrot.slane %v1788_v61, 5  ;;  %v8373_v46 = vrot.slane %v1794_v22, 5  ;;  %v756_v4 = vrot.slane %v752_v0, 4  ;;  %v925_v36 = vld [vmem:[#allocation2 + $0xc0] sm:$0xf] }
 0x151   : > { %v2559_v1 = vadd.f32 %v2491_v10, %v2034_v51  ;;  %2010 = vmatmul.bf16.gmra.mxu1 %v1870_v31  ;;  %v3416_v51 = vor.u32 %v3415_v7, %v3412_v12  ;;  %v1785_v31 = vshrl.u32 %v1386_v45, 16  ;;  %v758_v11 = vshrl.u32 %v490_v25, 16 }
 0x152   : > { %v2869_v59 = vpop.f32.mrf.mxu3  ;;  %v6367_v12 = vrot.slane %v8359_v39, 9  ;;  %v3429_v7 = vshll.u32 %v3037_v18, 16  ;;  %v1800_v32 = vrot.slane %v1798_v50, 4  ;;  %v761_v39 = vshll.u32 %v490_v25, 16 }
 0x153   : > { %v2937_v44 = vadd.f32 %v2869_v59, %v2559_v1  ;;  %v1854_v1 = vunpack.c.l.b16 %v1783_v55  ;;  %v3417_v45 = vrot.slane %v3416_v51, 4  ;;  %v1787_v59 = vrot.slane %v1785_v31, 4  ;;  %v1388_v55 = vld [vmem:[#allocation2 + $0xbc] sm:$0x1]  ;;  %v929_v51 = vld [vmem:[#allocation2 + $0xc8] sm:$0x1] }
 0x154   : > { %v760_v30 = vrot.slane %v758_v11, 7  ;;  %v2323_v31 = vrot.slane %v2321_v58, 4  ;;  %v1804_v50 = vshll.u32 %v1388_v55, 16  ;;  %v2135_v55 = vld [vmem:[#allocation2 + $0xb4] sm:$0xe] }
 0x155   : > { %v8362_v49 = vadd.f32 %v8308_v53, %v2937_v44  ;;  %v8368_v10 = vpop.f32.mrf.mxu0  ;;  %v1853_v53 = vunpack.c.l.b16 %v1773_v9  ;;  %v755_v44 = vor.u32 %v753_v48, %v752_v0  ;;  %v3431_v9 = vrot.slane %v3429_v7, 5 }
 0x156   : > { %v8366_v47 = vpop.f32.mrf.mxu1  ;;  %v765_v24 = vrot.slane %v760_v30, 4  ;;  %v1791_v22 = vor.u32 %v1790_v60, %v1787_v59 }
 0x157   : > { %8949 = vst [vmem:[#allocation18_spill] sm:$0xff] %v8362_v49  ;;  %3659 = vmatmul.bf16.gmra.mxu0 %v3519_v16  ;;  %v3427_v49 = vrot.slane %v3426_v54, 4  ;;  %v1871_v61 = vpack.c.b16 %v1854_v1, %v1853_v53  ;;  %v926_v48 = vsel %vm7327_vm5, %v755_v44, %v925_v36  ;;  %v1801_v16 = vor.u32 %v1800_v32, %v8373_v46 }
 0x158   : > { %v2493_v8 = vpop.f32.mrf.mxu2  ;;  %927 = vst [vmem:[#allocation2 + $0xc0] sm:$0xf] %v926_v48  ;;  %v2036_v54 = vadd.f32 %v8327_v56, %v7936_v28  ;;  %v2322_v53 = vsel %vm7785_vm13, %v6367_v12, %v2321_v58  ;;  %v1792_v56 = vrot.slane %v1791_v22, 4 }
 0x159   : > { %v2560_v6 = vadd.f32 %v2493_v8, %v2035_v23  ;;  %v2324_v23 = vrot.slane %v2134_v3, 5  ;;  %v763_v8 = vor.u32 %v761_v39, %v760_v30  ;;  %v3432_v7 = vsel %vm7769_vm10, %v3427_v49, %v3431_v9 }
 0x15a   : > { %v2871_v15 = vpop.f32.mrf.mxu3  ;;  %v3503_v59 = vunpack.c.l.b16 %v3432_v7  ;;  %v2378_v49 = vunpack.c.l.b16 %v2322_v53  ;;  %v1797_v12 = vsel %vm7769_vm10, %v1792_v56, %v8373_v46  ;;  %v6923_v53 = vld [vmem:[#allocation2 + $0xb4] sm:$0xff] }
 0x15b   : > { %v2938_v18 = vadd.f32 %v2871_v15, %v2560_v6  ;;  %v764_v11 = vsel %vm7316_vm4, %v756_v4, %v763_v8  ;;  %v2325_v17 = vsel %vm7785_vm13, %v2323_v31, %v2324_v23  ;;  %v1802_v6 = vrot.slane %v1801_v16, 4 }
 0x15c   : > { %928 = vst [vmem:[#allocation2 + $0xc4] sm:$0xf] %v764_v11  ;;  %v2379_v3 = vunpack.c.l.b16 %v2325_v17  ;;  %v1855_v8 = vunpack.c.l.b16 %v1797_v12 }
 0x15d   : > { %2535 = vmatmul.bf16.gmra.mxu2 %v8342_v5  ;;  %v8379_v0 = vadd.f32 %v8332_v57, %v2938_v18  ;;  %v930_v5 = vsel %vm7726_vm7, %v765_v24, %v929_v51  ;;  %v8390_v42 = vpop.f32.mrf.mxu0  ;;  %v3422_v57 = vsel %vm7769_vm10, %v3417_v45, %v8349_v13  ;;  %v1806_v13 = vrot.slane %v1804_v50, 5  ;;  %v2136_v45 = vld [vmem:[#allocation2 + $0xb8] sm:$0xf] }
 0x15e   : > { %v8381_v25 = vpop.f32.mrf.mxu1  ;;  %931 = vst [vmem:[#allocation2 + $0xc8] sm:$0x1] %v930_v5  ;;  %v3502_v1 = vunpack.c.l.b16 %v3422_v57  ;;  %v2328_v58 = vrot.slane %v2136_v45, 5  ;;  %v2037_v18 = vadd.f32 %v8366_v47, %v7969_v26  ;;  %v2396_v46 = vpack.c.b16 %v2379_v3, %v2378_v49  ;;  %v4641_v45 = vld [vmem:[#allocation2 + $0x1c] sm:$0xf] }
 0x15f   : > { %2913 = vmatmul.bf16.gmra.mxu3 %v6922_v43  ;;  %v3038_v60 = vld [vmem:[#allocation2 + $0xc0] sm:$0xf]  ;;  %v1807_v4 = vsel %vm7769_vm10, %v1802_v6, %v1806_v13  ;;  %v6368_v26 = vrot.slane %v2135_v55, 9  ;;  %v4640_v13 = vld [vmem:[#allocation2 + $0x18] sm:$0xf]  ;;  %v4730_v55 = vshll.u32 %v4641_v45, 16 }
 0x160   : > { %v2496_v38 = vpop.f32.mrf.mxu2  ;;  %v3520_v15 = vpack.c.b16 %v3503_v59, %v3502_v1  ;;  %v3434_v39 = vshrl.u32 %v3038_v60, 16  ;;  %v3437_v36 = vshll.u32 %v3038_v60, 16  ;;  %v1856_v11 = vunpack.c.l.b16 %v1807_v4  ;;  %v3739_v3 = vld [vmem:[#allocation2 + $0xc] sm:$0xe] }
 0x161   : > { %v2561_v28 = vadd.f32 %v2496_v38, %v2036_v54  ;;  %2015 = vmatmul.bf16.gmra.mxu1 %v1871_v61  ;;  %v2137_v61 = vld [vmem:[#allocation2 + $0xbc] sm:$0x1]  ;;  %v2330_v47 = vrot.slane %v2328_v58, 4  ;;  %v2329_v49 = vsel %vm7785_vm13, %v6368_v26, %v2328_v58  ;;  %v2038_v60 = vadd.f32 %v8381_v25, %v7982_v21  ;;  %v4642_v26 = vld [vmem:[#allocation2 + $0x20] sm:$0x1] }
 0x162   : > { %v2874_v24 = vpop.f32.mrf.mxu3  ;;  %v3436_v22 = vrot.slane %v3434_v39, 4  ;;  %v3439_v48 = vrot.slane %v3437_v36, 5  ;;  %v2331_v17 = vrot.slane %v2137_v61, 5  ;;  %v1872_v59 = vpack.c.b16 %v1856_v11, %v1855_v8  ;;  %v3741_v36 = vld [vmem:[#allocation2 + $0x14] sm:$0x1] }
 0x163   : > { %v2939_v43 = vadd.f32 %v2874_v24, %v2561_v28  ;;  %v3039_v30 = vld [vmem:[#allocation2 + $0xc4] sm:$0xf]  ;;  %v3740_v24 = vld [vmem:[#allocation2 + $0x10] sm:$0xf]  ;;  %v4724_v58 = vshll.u32 %v4640_v13, 16  ;;  %v6577_v21 = vrot.slane %v3739_v3, 9 }
 0x164   : > { %v3443_v31 = vshll.u32 %v3039_v30, 16  ;;  %v3440_v7 = vor.u32 %v3439_v48, %v3436_v22  ;;  %v3869_v12 = vrot.slane %v3740_v24, 5  ;;  %v2332_v4 = vsel %vm7785_vm13, %v2330_v47, %v2331_v17  ;;  %v5386_v24 = vld [vmem:[#allocation2 + $0x18] sm:$0xe] }
 0x165   : > { %v8405_v44 = vadd.f32 %v8368_v10, %v2939_v43  ;;  %v8413_v9 = vpop.f32.mrf.mxu0  ;;  %v3040_v51 = vld [vmem:[#allocation2 + $0xc8] sm:$0x1]  ;;  %v3447_v10 = vshrl.u32 %v3039_v30, 16  ;;  %v3872_v61 = vrot.slane %v3741_v36, 5  ;;  %v2380_v48 = vunpack.c.l.b16 %v2329_v49  ;;  %v5388_v49 = vld [vmem:[#allocation2 + $0x20] sm:$0x1] }
 0x166   : > { %v8407_v32 = vpop.f32.mrf.mxu1  ;;  %v3453_v16 = vshll.u32 %v3040_v51, 16  ;;  %v3445_v5 = vrot.slane %v3443_v31, 5  ;;  %v3441_v1 = vrot.slane %v3440_v7, 4  ;;  %v4734_v51 = vshrl.u32 %v4641_v45, 16  ;;  %v6924_v36 = vld [vmem:[#allocation2 + $0xc0] sm:$0xff] }
 0x167   : > { %v3449_v54 = vrot.slane %v3447_v10, 4  ;;  %3664 = vmatmul.bf16.gmra.mxu0 %v3520_v15  ;;  %v3871_v8 = vrot.slane %v3869_v12, 4  ;;  %v4726_v11 = vrot.slane %v4724_v58, 5  ;;  %v4740_v45 = vshll.u32 %v4642_v26, 16 }
 0x168   : > { %v2498_v23 = vpop.f32.mrf.mxu2  ;;  %v3455_v56 = vrot.slane %v3453_v16, 5  ;;  %v3446_v30 = vsel %vm7769_vm10, %v3441_v1, %v3445_v5  ;;  %v2381_v16 = vunpack.c.l.b16 %v2332_v4  ;;  %v2039_v1 = vadd.f32 %v8407_v32, %v8009_v20  ;;  %v3743_v20 = vld [vmem:[#allocation2 + $0x1c] sm:$0xf] }
 0x169   : > { %v2562_v50 = vadd.f32 %v2498_v23, %v2037_v18  ;;  %v3450_v28 = vor.u32 %v3449_v54, %v3445_v5  ;;  %v3504_v10 = vunpack.c.l.b16 %v3446_v30  ;;  %v8427_v5 = vrot.slane %v4730_v55, 5 }
 0x16a   : > { %v2876_v57 = vpop.f32.mrf.mxu3  ;;  %v4736_v54 = vrot.slane %v4734_v51, 4  ;;  %v4742_v55 = vrot.slane %v4740_v45, 5 }
 0x16b   : > { %v2940_v38 = vadd.f32 %v2876_v57, %v2562_v50  ;;  %v3451_v6 = vrot.slane %v3450_v28, 4  ;;  %v5387_v57 = vld [vmem:[#allocation2 + $0x1c] sm:$0xf]  ;;  %v3870_v28 = vsel %vm7785_vm13, %v6577_v21, %v3869_v12  ;;  %v6801_v12 = vrot.slane %v5386_v24, 9 }
 0x16d   : > { %2540 = vmatmul.bf16.gmra.mxu2 %v2396_v46  ;;  %v3627_v15 = vpop.f32.mrf.mxu0  ;;  %v3456_v39 = vsel %vm7769_vm10, %v3451_v6, %v3455_v56  ;;  %v4721_v46 = vshrl.u32 %v4640_v13, 16  ;;  %v8430_v47 = vadd.f32 %v8390_v42, %v2940_v38  ;;  %v3873_v56 = vsel %vm7785_vm13, %v3871_v8, %v3872_v61  ;;  %v4644_v8 = vld [vmem:[#allocation2 + $0x28] sm:$0xf] }
 0x16e   : > { %v8415_v43 = vpop.f32.mrf.mxu1  ;;  %v3505_v23 = vunpack.c.l.b16 %v3456_v39  ;;  %v5516_v6 = vrot.slane %v5387_v57, 5  ;;  %v2397_v38 = vpack.c.b16 %v2381_v16, %v2380_v48  ;;  %v3997_v4 = vunpack.c.l.b16 %v3873_v56  ;;  %v3742_v16 = vld [vmem:[#allocation2 + $0x18] sm:$0xe] }
 0x16f   : > { %2918 = vmatmul.bf16.gmra.mxu3 %v6923_v53  ;;  %v4723_v50 = vrot.slane %v4721_v46, 4  ;;  %v5519_v46 = vrot.slane %v5388_v49, 5  ;;  %v2040_v61 = vadd.f32 %v8415_v43, %v8025_v41  ;;  %v4754_v43 = vshll.u32 %v4644_v8, 16 }
 0x170   : > { %v2501_v18 = vpop.f32.mrf.mxu2  ;;  %v3521_v53 = vpack.c.b16 %v3505_v23, %v3504_v10  ;;  %v3876_v10 = vrot.slane %v3743_v20, 5  ;;  %v4643_v23 = vld [vmem:[#allocation2 + $0x24] sm:$0xf]  ;;  %v6578_v24 = vrot.slane %v3742_v16, 9 }
 0x171   : > { %v2563_v31 = vadd.f32 %v2501_v18, %v2038_v60  ;;  %2020 = vmatmul.bf16.gmra.mxu1 %v1872_v59  ;;  %v4727_v13 = vor.u32 %v4726_v11, %v4723_v50  ;;  %v3996_v60 = vunpack.c.l.b16 %v3870_v28  ;;  %v5518_v18 = vrot.slane %v5516_v6, 4  ;;  %v3744_v50 = vld [vmem:[#allocation2 + $0x20] sm:$0x1] }
 0x172   : > { %v2879_v25 = vpop.f32.mrf.mxu3  ;;  %v4748_v41 = vshll.u32 %v4643_v23, 16 }
 0x173   : > { %v2941_v22 = vadd.f32 %v2879_v25, %v2563_v31  ;;  %v4728_v32 = vrot.slane %v4727_v13, 4  ;;  %v4028_v51 = vpack.c.b16 %v3997_v4, %v3996_v60  ;;  %v5517_v31 = vsel %vm7785_vm13, %v6801_v12, %v5516_v6 }
 0x174   : > { %v5520_v48 = vsel %vm7785_vm13, %v5518_v18, %v5519_v46  ;;  %v5643_v57 = vunpack.c.l.b16 %v5517_v31  ;;  %v3879_v6 = vrot.slane %v3744_v50, 5  ;;  %v4750_v49 = vrot.slane %v4748_v41, 5  ;;  %v4645_v46 = vld [vmem:[#allocation2 + $0x2c] sm:$0x1]  ;;  %v6949_v31 = vld [vmem:[#allocation2 + $0x18] sm:$0xff] }
 0x175   : > { %v8433_v7 = vadd.f32 %v8413_v9, %v2941_v22  ;;  %v3630_v59 = vpop.f32.mrf.mxu0  ;;  %v4737_v9 = vor.u32 %v4736_v54, %v8427_v5  ;;  %v5644_v56 = vunpack.c.l.b16 %v5520_v48  ;;  %v3877_v12 = vsel %vm7785_vm13, %v6578_v24, %v3876_v10 }
 0x176   : > { %v8435_v17 = vpop.f32.mrf.mxu1  ;;  %v4764_v16 = vshll.u32 %v4645_v46, 16 }
 0x177   : > { %3669 = vmatmul.bf16.gmra.mxu0 %v3521_v53  ;;  %v4738_v58 = vrot.slane %v4737_v9, 4  ;;  %v4745_v53 = vshrl.u32 %v4643_v23, 16  ;;  %v5390_v9 = vld [vmem:[#allocation2 + $0x28] sm:$0xf]  ;;  %v5675_v60 = vpack.c.b16 %v5644_v56, %v5643_v57  ;;  %v3998_v23 = vunpack.c.l.b16 %v3877_v12 }
 0x178   : > { %v2503_v42 = vpop.f32.mrf.mxu2 }
 0x179   : > { %v2564_v3 = vadd.f32 %v2503_v42, %v2039_v1  ;;  %v4743_v54 = vsel %vm7769_vm10, %v4738_v58, %v4742_v55  ;;  %v3878_v1 = vrot.slane %v3876_v10, 4  ;;  %v5391_v55 = vld [vmem:[#allocation2 + $0x2c] sm:$0x1] }
 0x17a   : > { %v2881_v30 = vpop.f32.mrf.mxu3  ;;  %v5122_v45 = vunpack.c.l.b16 %v4743_v54  ;;  %v3746_v54 = vld [vmem:[#allocation2 + $0x28] sm:$0xf] }
 0x17b   : > { %v2942_v39 = vadd.f32 %v2881_v30, %v2564_v3  ;;  %v3880_v30 = vsel %vm7785_vm13, %v3878_v1, %v3879_v6  ;;  %v4766_v6 = vrot.slane %v4764_v16, 5 }
 0x17d   : > { %2545 = vmatmul.bf16.gmra.mxu2 %v2397_v38  ;;  %v8446_v21 = vadd.f32 %v3627_v15, %v2942_v39  ;;  %v3632_v22 = vpop.f32.mrf.mxu0  ;;  %v4733_v15 = vsel %vm7769_vm10, %v4728_v32, %v8427_v5  ;;  %v4758_v38 = vshrl.u32 %v4644_v8, 16  ;;  %v4747_v5 = vrot.slane %v4745_v53, 4  ;;  %v5389_v32 = vld [vmem:[#allocation2 + $0x24] sm:$0xe] }
 0x17e   : > { %v8448_v25 = vpop.f32.mrf.mxu1  ;;  %v5121_v13 = vunpack.c.l.b16 %v4733_v15  ;;  %v8467_v39 = vrot.slane %v4754_v43, 5  ;;  %v3999_v8 = vunpack.c.l.b16 %v3880_v30  ;;  %v6802_v50 = vrot.slane %v5389_v32, 9  ;;  %v5393_v32 = vld [vmem:[#allocation2 + $0x34] sm:$0xf] }
 0x17f   : > { %2923 = vmatmul.bf16.gmra.mxu3 %v6924_v36  ;;  %v2041_v36 = vadd.f32 %v8435_v17, %v8055_v34  ;;  %v4760_v20 = vrot.slane %v4758_v38, 4  ;;  %v4751_v48 = vor.u32 %v4750_v49, %v4747_v5  ;;  %v5526_v15 = vrot.slane %v5391_v55, 5  ;;  %v3745_v38 = vld [vmem:[#allocation2 + $0x24] sm:$0xe]  ;;  %v4646_v5 = vld [vmem:[#allocation2 + $0x30] sm:$0xf] }
 0x180   : > { %v2506_v11 = vpop.f32.mrf.mxu2  ;;  %v4029_v57 = vpack.c.b16 %v3999_v8, %v3998_v23  ;;  %v2042_v56 = vadd.f32 %v8448_v25, %v7946_v2  ;;  %v4647_v49 = vld [vmem:[#allocation2 + $0x34] sm:$0xf]  ;;  %v6579_v30 = vrot.slane %v3745_v38, 9 }
 0x181   : > { %v2565_v26 = vadd.f32 %v2506_v11, %v2040_v61  ;;  %4116 = vmatmul.bf16.vlgmr.msra.gmra.mxu1 %v4028_v51  ;;  %v5153_v61 = vpack.c.b16 %v5122_v45, %v5121_v13  ;;  %v4761_v34 = vor.u32 %v4760_v20, %v8467_v39  ;;  %v4752_v41 = vrot.slane %v4751_v48, 4 }
 0x182   : > { %v2884_v28 = vpop.f32.mrf.mxu3  ;;  %v4778_v55 = vshll.u32 %v4647_v49, 16 }
 0x183   : > { %v2943_v42 = vadd.f32 %v2884_v28, %v2565_v26  ;;  %v3883_v28 = vrot.slane %v3746_v54, 5  ;;  %v4762_v1 = vrot.slane %v4761_v34, 4  ;;  %v4757_v46 = vsel %vm7769_vm10, %v4752_v41, %v8467_v39  ;;  %v5392_v34 = vld [vmem:[#allocation2 + $0x30] sm:$0xe] }
 0x184   : > { %v5530_v39 = vrot.slane %v5393_v32, 5  ;;  %v6803_v38 = vrot.slane %v5392_v34, 9 }
 0x185   : > { %v8459_v3 = vadd.f32 %v3630_v59, %v2943_v42  ;;  %v3635_v18 = vpop.f32.mrf.mxu0  ;;  %v5523_v59 = vrot.slane %v5390_v9, 5  ;;  %v4767_v20 = vsel %vm7769_vm10, %v4762_v1, %v4766_v6  ;;  %v4648_v6 = vld [vmem:[#allocation2 + $0x38] sm:$0x1] }
 0x186   : > { %v8461_v4 = vpop.f32.mrf.mxu1 }
 0x187   : > { %5763 = vmatmul.bf16.vlgmr.msra.gmra.mxu0 %v5675_v60  ;;  %v5525_v17 = vrot.slane %v5523_v59, 4  ;;  %v5524_v43 = vsel %vm7785_vm13, %v6802_v50, %v5523_v59  ;;  %v4769_v59 = vshrl.u32 %v4646_v5, 16  ;;  %v2043_v48 = vadd.f32 %v8461_v4, %v7972_v33 }
 0x188   : > { %v2508_v58 = vpop.f32.mrf.mxu2  ;;  %v5645_v45 = vunpack.c.l.b16 %v5524_v43  ;;  %v5123_v50 = vunpack.c.l.b16 %v4757_v46  ;;  %v4649_v46 = vld [vmem:[#allocation2 + $0x3c] sm:$0xf] }
 0x189   : > { %v2566_v51 = vadd.f32 %v2508_v58, %v2041_v36  ;;  %v5527_v42 = vsel %vm7785_vm13, %v5525_v17, %v5526_v15  ;;  %v3885_v36 = vrot.slane %v3883_v28, 4  ;;  %v4772_v58 = vshll.u32 %v4646_v5, 16  ;;  %v5394_v17 = vld [vmem:[#allocation2 + $0x38] sm:$0x1] }
 0x18a   : > { %v2886_v10 = vpop.f32.mrf.mxu3  ;;  %v5646_v12 = vunpack.c.l.b16 %v5527_v42  ;;  %v4771_v15 = vrot.slane %v4769_v59, 4  ;;  %v5533_v33 = vrot.slane %v5394_v17, 5  ;;  %v3748_v59 = vld [vmem:[#allocation2 + $0x30] sm:$0xe] }
 0x18b   : > { %v2944_v11 = vadd.f32 %v2886_v10, %v2566_v51  ;;  %v4782_v51 = vshrl.u32 %v4647_v49, 16  ;;  %v3884_v10 = vsel %vm7785_vm13, %v6579_v30, %v3883_v28  ;;  %v4774_v54 = vrot.slane %v4772_v58, 5  ;;  %v3750_v58 = vld [vmem:[#allocation2 + $0x38] sm:$0x1] }
 0x18c   : > { %v5676_v23 = vpack.c.b16 %v5646_v12, %v5645_v45  ;;  %v4000_v28 = vunpack.c.l.b16 %v3884_v10  ;;  %v4788_v49 = vshll.u32 %v4648_v6, 16  ;;  %v6580_v34 = vrot.slane %v3748_v59, 9  ;;  %v4651_v59 = vld [vmem:[#allocation2 + $0x44] sm:$0x1] }
 0x18d   : > { %4495 = vmatmul.bf16.vlgmr.msra.gmra.mxu2 %v6949_v31  ;;  %v8472_v26 = vadd.f32 %v3632_v22, %v2944_v11  ;;  %v3637_v24 = vpop.f32.mrf.mxu0  ;;  %v3747_v22 = vld [vmem:[#allocation2 + $0x2c] sm:$0x1]  ;;  %v5124_v11 = vunpack.c.l.b16 %v4767_v20  ;;  %v4784_v41 = vrot.slane %v4782_v51, 4  ;;  %v4775_v45 = vor.u32 %v4774_v54, %v4771_v15 }
 0x18e   : > { %v8474_v53 = vpop.f32.mrf.mxu1  ;;  %v3886_v2 = vrot.slane %v3747_v22, 5  ;;  %v5532_v22 = vrot.slane %v5530_v39, 4  ;;  %v4796_v15 = vshll.u32 %v4649_v46, 16 }
 0x18f   : > { %5241 = vmatmul.bf16.vlgmr.msra.gmra.mxu3 %v5153_v61  ;;  %v2044_v20 = vadd.f32 %v8474_v53, %v7993_v35 }
 0x190   : > { %v2511_v13 = vpop.f32.mrf.mxu2  ;;  %v3887_v61 = vsel %vm7785_vm13, %v3885_v36, %v3886_v2  ;;  %v5531_v36 = vsel %vm7785_vm13, %v6803_v38, %v5530_v39  ;;  %v5534_v2 = vsel %vm7785_vm13, %v5532_v22, %v5533_v33  ;;  %v4798_v33 = vrot.slane %v4796_v15, 5 }
 0x191   : > { %v2567_v9 = vadd.f32 %v2511_v13, %v2042_v56  ;;  %4121 = vmatmul.bf16.gmra.mxu1 %v4029_v57  ;;  %v4780_v57 = vrot.slane %v4778_v55, 5  ;;  %v6950_v56 = vld [vmem:[#allocation2 + $0x24] sm:$0xff]  ;;  %v4001_v1 = vunpack.c.l.b16 %v3887_v61  ;;  %v5154_v13 = vpack.c.b16 %v5124_v11, %v5123_v50 }
 0x192   : > { %v2889_v60 = vpop.f32.mrf.mxu3  ;;  %v5647_v61 = vunpack.c.l.b16 %v5531_v36  ;;  %v5648_v39 = vunpack.c.l.b16 %v5534_v2  ;;  %v4793_v50 = vshrl.u32 %v4649_v46, 16  ;;  %v5397_v36 = vld [vmem:[#allocation2 + $0x44] sm:$0x1] }
 0x193   : > { %v2945_v25 = vadd.f32 %v2889_v60, %v2567_v9  ;;  %v3749_v9 = vld [vmem:[#allocation2 + $0x34] sm:$0xf]  ;;  %v4785_v5 = vor.u32 %v4784_v41, %v4780_v57  ;;  %v4030_v60 = vpack.c.b16 %v4001_v1, %v4000_v28 }
 0x194   : > { %v5677_v28 = vpack.c.b16 %v5648_v39, %v5647_v61  ;;  %v4795_v22 = vrot.slane %v4793_v50, 4  ;;  %v4812_v39 = vshll.u32 %v4651_v59, 16 }
 0x195   : > { %v8487_v31 = vadd.f32 %v3635_v18, %v2945_v25  ;;  %v3640_v16 = vpop.f32.mrf.mxu0  ;;  %v3890_v25 = vrot.slane %v3749_v9, 5  ;;  %v4786_v51 = vrot.slane %v4785_v5, 4 }
 0x196   : > { %v8489_v8 = vpop.f32.mrf.mxu1 }
 0x197   : > { %5768 = vmatmul.bf16.gmra.mxu0 %v5676_v23  ;;  %v4790_v23 = vrot.slane %v4788_v49, 5  ;;  %v3892_v17 = vrot.slane %v3890_v25, 4 }
 0x198   : > { %v2513_v18 = vpop.f32.mrf.mxu2 }
 0x199   : > { %v2568_v43 = vadd.f32 %v2513_v18, %v2043_v48  ;;  %v4650_v48 = vld [vmem:[#allocation2 + $0x40] sm:$0xf]  ;;  %v3893_v18 = vrot.slane %v3750_v58, 5  ;;  %v4791_v54 = vsel %vm7769_vm10, %v4786_v51, %v4790_v23  ;;  %v5540_v23 = vrot.slane %v5397_v36, 5 }
 0x19a   : > { %v2891_v42 = vpop.f32.mrf.mxu3  ;;  %v4802_v41 = vshll.u32 %v4650_v48, 16  ;;  %v5126_v9 = vunpack.c.l.b16 %v4791_v54  ;;  %v8950_v54 = vld [vmem:[#allocation8_spill] sm:$0xff] }
 0x19b   : > { %v2946_v4 = vadd.f32 %v2891_v42, %v2568_v43  ;;  %v4806_v43 = vshrl.u32 %v4650_v48, 16  ;;  %v3891_v42 = vsel %vm7785_vm13, %v6580_v34, %v3890_v25  ;;  %v3894_v38 = vsel %vm7785_vm13, %v3892_v17, %v3893_v18  ;;  %v6951_v25 = vld [vmem:[#allocation2 + $0x30] sm:$0xff]  ;;  %v4652_v48 = vld [vmem:[#allocation2 + $0x48] sm:$0xf] }
 0x19c   : > { %v8523_v49 = vrot.slane %v4802_v41, 5  ;;  %v4002_v46 = vunpack.c.l.b16 %v3891_v42  ;;  %v4820_v42 = vshll.u32 %v4652_v48, 16 }
 0x19d   : > { %4500 = vmatmul.bf16.gmra.mxu2 %v6950_v56  ;;  %v8497_v12 = vadd.f32 %v3637_v24, %v2946_v4  ;;  %v3642_v32 = vpop.f32.mrf.mxu0  ;;  %v4776_v24 = vrot.slane %v4775_v45, 4  ;;  %v5396_v56 = vld [vmem:[#allocation2 + $0x40] sm:$0xf]  ;;  %v5395_v45 = vld [vmem:[#allocation2 + $0x3c] sm:$0xe] }
 0x19e   : > { %v8499_v30 = vpop.f32.mrf.mxu1 }
 0x19f   : > { %5246 = vmatmul.bf16.gmra.mxu3 %v5154_v13  ;;  %v4781_v53 = vsel %vm7769_vm10, %v4776_v24, %v4780_v57  ;;  %v2045_v57 = vadd.f32 %v8489_v8, %v8012_v29  ;;  %v6804_v29 = vrot.slane %v5395_v45, 9  ;;  %v2046_v41 = vadd.f32 %v8499_v30, %v8950_v54 }
 0x1a0   : > { %v2516_v55 = vpop.f32.mrf.mxu2  ;;  %v5125_v13 = vunpack.c.l.b16 %v4781_v53 }
 0x1a1   : > { %v2569_v10 = vadd.f32 %v2516_v55, %v2044_v20  ;;  %4126 = vmatmul.bf16.gmra.mxu1 %v4030_v60  ;;  %v4808_v60 = vrot.slane %v4806_v43, 4  ;;  %v4003_v20 = vunpack.c.l.b16 %v3894_v38  ;;  %v4799_v55 = vor.u32 %v4798_v33, %v4795_v22 }
 0x1a2   : > { %v2894_v11 = vpop.f32.mrf.mxu3  ;;  %v5155_v24 = vpack.c.b16 %v5126_v9, %v5125_v13  ;;  %v4814_v33 = vrot.slane %v4812_v39, 5 }
 0x1a3   : > { %v2947_v35 = vadd.f32 %v2894_v11, %v2569_v10  ;;  %v3752_v10 = vld [vmem:[#allocation2 + $0x40] sm:$0xf]  ;;  %v4809_v61 = vor.u32 %v4808_v60, %v8523_v49  ;;  %v4031_v50 = vpack.c.b16 %v4003_v20, %v4002_v46  ;;  %v4653_v11 = vld [vmem:[#allocation2 + $0x4c] sm:$0xf]  ;;  %v4800_v18 = vrot.slane %v4799_v55, 4 }
 0x1a4   : > { %v3897_v53 = vrot.slane %v3752_v10, 5  ;;  %v4830_v13 = vshrl.u32 %v4653_v11, 16  ;;  %v4822_v20 = vrot.slane %v4820_v42, 5  ;;  %v6952_v42 = vld [vmem:[#allocation2 + $0x3c] sm:$0xff] }
 0x1a5   : > { %v8511_v1 = vadd.f32 %v3640_v16, %v2947_v35  ;;  %v8521_v4 = vpop.f32.mrf.mxu0  ;;  %v5537_v16 = vrot.slane %v5396_v56, 5  ;;  %v3751_v35 = vld [vmem:[#allocation2 + $0x3c] sm:$0xe]  ;;  %v4810_v22 = vrot.slane %v4809_v61, 4  ;;  %v4805_v59 = vsel %vm7769_vm10, %v4800_v18, %v8523_v49 }
 0x1a6   : > { %v8513_v6 = vpop.f32.mrf.mxu1  ;;  %v6581_v45 = vrot.slane %v3751_v35, 9  ;;  %v3899_v60 = vrot.slane %v3897_v53, 4 }
 0x1a7   : > { %5773 = vmatmul.bf16.gmra.mxu0 %v5677_v28  ;;  %v5539_v51 = vrot.slane %v5537_v16, 4  ;;  %v5538_v15 = vsel %vm7785_vm13, %v6804_v29, %v5537_v16  ;;  %v3753_v28 = vld [vmem:[#allocation2 + $0x44] sm:$0x1]  ;;  %v4832_v29 = vrot.slane %v4830_v13, 4 }
 0x1a8   : > { %v2518_v5 = vpop.f32.mrf.mxu2  ;;  %v3900_v36 = vrot.slane %v3753_v28, 5 }
 0x1a9   : > { %v2570_v2 = vadd.f32 %v2518_v5, %v2045_v57  ;;  %v5541_v56 = vsel %vm7785_vm13, %v5539_v51, %v5540_v23  ;;  %v4826_v57 = vshll.u32 %v4653_v11, 16  ;;  %v5649_v5 = vunpack.c.l.b16 %v5538_v15  ;;  %v5398_v51 = vld [vmem:[#allocation2 + $0x48] sm:$0xe] }
 0x1aa   : > { %v2896_v58 = vpop.f32.mrf.mxu3  ;;  %v5650_v30 = vunpack.c.l.b16 %v5541_v56  ;;  %v3901_v49 = vsel %vm7785_vm13, %v3899_v60, %v3900_v36  ;;  %v5127_v15 = vunpack.c.l.b16 %v4805_v59  ;;  %v6805_v28 = vrot.slane %v5398_v51, 9  ;;  %v4656_v59 = vld [vmem:[#allocation2 + $0x58] sm:$0xf]  ;;  %v3756_v51 = vld [vmem:[#allocation2 + $0x50] sm:$0x1] }
 0x1ab   : > { %v2948_v8 = vadd.f32 %v2896_v58, %v2570_v2  ;;  %v5399_v2 = vld [vmem:[#allocation2 + $0x4c] sm:$0xf]  ;;  %v4815_v58 = vsel %vm7769_vm10, %v4810_v22, %v4814_v33  ;;  %v8543_v55 = vrot.slane %v4826_v57, 5 }
 0x1ac   : > { %v5544_v23 = vrot.slane %v5399_v2, 5  ;;  %v5678_v61 = vpack.c.b16 %v5650_v30, %v5649_v5  ;;  %v5128_v35 = vunpack.c.l.b16 %v4815_v58  ;;  %v8952_v58 = vld [vmem:[#allocation12_spill] sm:$0xff] }
 0x1ad   : > { %4505 = vmatmul.bf16.gmra.mxu2 %v6951_v25  ;;  %v8526_v34 = vadd.f32 %v3642_v32, %v2948_v8  ;;  %v8534_v43 = vpop.f32.mrf.mxu0  ;;  %v4817_v32 = vshrl.u32 %v4652_v48, 16  ;;  %v3898_v8 = vsel %vm7785_vm13, %v6581_v45, %v3897_v53  ;;  %v5400_v48 = vld [vmem:[#allocation2 + $0x50] sm:$0x1]  ;;  %v4833_v56 = vor.u32 %v4832_v29, %v8543_v55 }
 0x1ae   : > { %v8528_v17 = vpop.f32.mrf.mxu1  ;;  %v5546_v22 = vrot.slane %v5544_v23, 4  ;;  %v5547_v33 = vrot.slane %v5400_v48, 5  ;;  %v5545_v60 = vsel %vm7785_vm13, %v6805_v28, %v5544_v23 }
 0x1af   : > { %5251 = vmatmul.bf16.gmra.mxu3 %v5155_v24  ;;  %v4819_v46 = vrot.slane %v4817_v32, 4  ;;  %v4654_v24 = vld [vmem:[#allocation2 + $0x50] sm:$0x1]  ;;  %v2048_v29 = vadd.f32 %v8528_v17, %v8952_v58 }
 0x1b0   : > { %v2521_v38 = vpop.f32.mrf.mxu2  ;;  %v5548_v36 = vsel %vm7785_vm13, %v5546_v22, %v5547_v33 }
 0x1b1   : > { %v2571_v9 = vadd.f32 %v2521_v38, %v2046_v41  ;;  %4131 = vmatmul.bf16.gmra.mxu1 %v4031_v50  ;;  %v8951_v50 = vld [vmem:[#allocation10_spill] sm:$0xff]  ;;  %v4823_v53 = vor.u32 %v4822_v20, %v4819_v46  ;;  %v4004_v41 = vunpack.c.l.b16 %v3898_v8  ;;  %v4005_v38 = vunpack.c.l.b16 %v3901_v49  ;;  %v4655_v20 = vld [vmem:[#allocation2 + $0x54] sm:$0xf] }
 0x1b2   : > { %v2899_v16 = vpop.f32.mrf.mxu3  ;;  %v2047_v11 = vadd.f32 %v8513_v6, %v8951_v50  ;;  %v3755_v6 = vld [vmem:[#allocation2 + $0x4c] sm:$0xf]  ;;  %v5651_v49 = vunpack.c.l.b16 %v5545_v60  ;;  %v5652_v48 = vunpack.c.l.b16 %v5548_v36  ;;  %v5401_v60 = vld [vmem:[#allocation2 + $0x54] sm:$0xe] }
 0x1b3   : > { %v2949_v25 = vadd.f32 %v2899_v16, %v2571_v9  ;;  %v5156_v9 = vpack.c.b16 %v5128_v35, %v5127_v15  ;;  %v4824_v45 = vrot.slane %v4823_v53, 4  ;;  %v4834_v16 = vrot.slane %v4833_v56, 4 }
 0x1b4   : > { %v4032_v30 = vpack.c.b16 %v4005_v38, %v4004_v41  ;;  %v3904_v46 = vrot.slane %v3755_v6, 5  ;;  %v4844_v15 = vshll.u32 %v4655_v20, 16  ;;  %v4850_v35 = vshll.u32 %v4656_v59, 16 }
 0x1b5   : > { %v8548_v10 = vadd.f32 %v8521_v4, %v2949_v25  ;;  %v3650_v18 = vpop.f32.mrf.mxu0  ;;  %v4836_v4 = vshll.u32 %v4654_v24, 16  ;;  %v3754_v24 = vld [vmem:[#allocation2 + $0x48] sm:$0xe]  ;;  %v4829_v23 = vsel %vm7769_vm10, %v4824_v45, %v8543_v55  ;;  %v3907_v41 = vrot.slane %v3756_v51, 5 }
 0x1b6   : > { %v8550_v39 = vpop.f32.mrf.mxu1  ;;  %v6582_v53 = vrot.slane %v3754_v24, 9  ;;  %v4854_v56 = vshrl.u32 %v4656_v59, 16  ;;  %v5129_v28 = vunpack.c.l.b16 %v4829_v23  ;;  %v5679_v55 = vpack.c.b16 %v5652_v48, %v5651_v49  ;;  %v5403_v59 = vld [vmem:[#allocation2 + $0x5c] sm:$0x1] }
 0x1b7   : > { %5778 = vmatmul.bf16.gmra.mxu0 %v5678_v61  ;;  %v4838_v5 = vrot.slane %v4836_v4, 5  ;;  %v4846_v22 = vrot.slane %v4844_v15, 5  ;;  %v8581_v6 = vrot.slane %v4850_v35, 5  ;;  %v6806_v49 = vrot.slane %v5401_v60, 9  ;;  %v3758_v15 = vld [vmem:[#allocation2 + $0x58] sm:$0xf] }
 0x1b8   : > { %v2523_v54 = vpop.f32.mrf.mxu2  ;;  %v4856_v45 = vrot.slane %v4854_v56, 4  ;;  %v3911_v56 = vrot.slane %v3758_v15, 5 }
 0x1b9   : > { %v2572_v32 = vadd.f32 %v2523_v54, %v2047_v11  ;;  %v4841_v11 = vshrl.u32 %v4655_v20, 16  ;;  %v3906_v54 = vrot.slane %v3904_v46, 4 }
 0x1ba   : > { %v2901_v57 = vpop.f32.mrf.mxu3 }
 0x1bb   : > { %v2950_v13 = vadd.f32 %v2901_v57, %v2572_v32  ;;  %v4843_v38 = vrot.slane %v4841_v11, 4  ;;  %v5554_v11 = vrot.slane %v5403_v59, 5 }
 0x1bd   : > { %4510 = vmatmul.bf16.gmra.mxu2 %v6952_v42  ;;  %v8562_v2 = vadd.f32 %v8534_v43, %v2950_v13  ;;  %v3652_v8 = vpop.f32.mrf.mxu0  ;;  %v4839_v43 = vsel %vm7769_vm10, %v4834_v16, %v4838_v5  ;;  %v5402_v42 = vld [vmem:[#allocation2 + $0x58] sm:$0xf]  ;;  %v3905_v13 = vsel %vm7785_vm13, %v6582_v53, %v3904_v46  ;;  %v8953_v16 = vld [vmem:[#allocation14_spill] sm:$0xff]  ;;  %v4847_v23 = vor.u32 %v4846_v22, %v4843_v38  ;;  %v3757_v22 = vld [vmem:[#allocation2 + $0x54] sm:$0xe] }
 0x1be   : > { %v8564_v25 = vpop.f32.mrf.mxu1  ;;  %v5130_v32 = vunpack.c.l.b16 %v4839_v43  ;;  %v2049_v5 = vadd.f32 %v8550_v39, %v8953_v16  ;;  %v5551_v36 = vrot.slane %v5402_v42, 5  ;;  %v4006_v24 = vunpack.c.l.b16 %v3905_v13  ;;  %v4658_v16 = vld [vmem:[#allocation2 + $0x60] sm:$0xf] }
 0x1bf   : > { %5256 = vmatmul.bf16.gmra.mxu3 %v5156_v9  ;;  %v3908_v9 = vsel %vm7785_vm13, %v3906_v54, %v3907_v41  ;;  %v4857_v43 = vor.u32 %v4856_v45, %v8581_v6  ;;  %v4848_v54 = vrot.slane %v4847_v23, 4 }
 0x1c0   : > { %v2526_v61 = vpop.f32.mrf.mxu2  ;;  %v4007_v51 = vunpack.c.l.b16 %v3908_v9  ;;  %v5553_v39 = vrot.slane %v5551_v36, 4  ;;  %v5552_v41 = vsel %vm7785_vm13, %v6806_v49, %v5551_v36 }
 0x1c1   : > { %v2573_v50 = vadd.f32 %v2526_v61, %v2048_v29  ;;  %4136 = vmatmul.bf16.gmra.mxu1 %v4032_v30  ;;  %v6953_v29 = vld [vmem:[#allocation2 + $0x48] sm:$0xff]  ;;  %v5157_v61 = vpack.c.b16 %v5130_v32, %v5129_v28  ;;  %v4858_v42 = vrot.slane %v4857_v43, 4  ;;  %v5653_v45 = vunpack.c.l.b16 %v5552_v41 }
 0x1c2   : > { %v2904_v17 = vpop.f32.mrf.mxu3  ;;  %v4033_v35 = vpack.c.b16 %v4007_v51, %v4006_v24  ;;  %v5555_v38 = vsel %vm7785_vm13, %v5553_v39, %v5554_v11  ;;  %v5405_v24 = vld [vmem:[#allocation2 + $0x64] sm:$0xf]  ;;  %v4865_v51 = vshrl.u32 %v4658_v16, 16 }
 0x1c3   : > { %v2951_v4 = vadd.f32 %v2904_v17, %v2573_v50  ;;  %v5654_v36 = vunpack.c.l.b16 %v5555_v38  ;;  %v8955_v11 = vld [vmem:[#allocation5_spill] sm:$0xff] }
 0x1c5   : > { %v8573_v33 = vadd.f32 %v3650_v18, %v2951_v4  ;;  %v3655_v30 = vpop.f32.mrf.mxu0  ;;  %v4657_v18 = vld [vmem:[#allocation2 + $0x5c] sm:$0x1]  ;;  %v5680_v49 = vpack.c.b16 %v5654_v36, %v5653_v45  ;;  %v4660_v45 = vld [vmem:[#allocation2 + $0x68] sm:$0x1] }
 0x1c6   : > { %v8575_v57 = vpop.f32.mrf.mxu1  ;;  %v4860_v50 = vshll.u32 %v4657_v18, 16  ;;  %v8954_v4 = vld [vmem:[#allocation4_spill] sm:$0xff]  ;;  %v3913_v18 = vrot.slane %v3911_v56, 4 }
 0x1c7   : > { %5783 = vmatmul.bf16.gmra.mxu0 %v5679_v55  ;;  %v2050_v28 = vadd.f32 %v8564_v25, %v8954_v4  ;;  %v2051_v15 = vadd.f32 %v8575_v57, %v8955_v11  ;;  %v5404_v4 = vld [vmem:[#allocation2 + $0x60] sm:$0xe] }
 0x1c8   : > { %v2528_v20 = vpop.f32.mrf.mxu2  ;;  %v4862_v55 = vrot.slane %v4860_v50, 5 }
 0x1c9   : > { %v2574_v58 = vadd.f32 %v2528_v20, %v2049_v5  ;;  %v4659_v5 = vld [vmem:[#allocation2 + $0x64] sm:$0xf]  ;;  %v6583_v20 = vrot.slane %v3757_v22, 9 }
 0x1ca   : > { %v2906_v46 = vpop.f32.mrf.mxu3  ;;  %v4878_v23 = vshrl.u32 %v4659_v5, 16 }
 0x1cb   : > { %v2952_v48 = vadd.f32 %v2906_v46, %v2574_v58  ;;  %v4853_v58 = vsel %vm7769_vm10, %v4848_v54, %v8581_v6  ;;  %v4868_v46 = vshll.u32 %v4658_v16, 16  ;;  %v3912_v50 = vsel %vm7785_vm13, %v6583_v20, %v3911_v56 }
 0x1cc   : > { %v5558_v6 = vrot.slane %v5405_v24, 5  ;;  %v5131_v54 = vunpack.c.l.b16 %v4853_v58  ;;  %v4880_v22 = vrot.slane %v4878_v23, 4  ;;  %v4008_v56 = vunpack.c.l.b16 %v3912_v50  ;;  %v8956_v50 = vld [vmem:[#allocation6_spill] sm:$0xff] }
 0x1cd   : > { %4515 = vmatmul.bf16.gmra.mxu2 %v6953_v29  ;;  %v8586_v17 = vadd.f32 %v3652_v8, %v2952_v48  ;;  %v3657_v32 = vpop.f32.mrf.mxu0  ;;  %v3759_v8 = vld [vmem:[#allocation2 + $0x5c] sm:$0x1]  ;;  %v4863_v29 = vsel %vm7769_vm10, %v4858_v42, %v4862_v55  ;;  %v4867_v42 = vrot.slane %v4865_v51, 4  ;;  %v4870_v55 = vrot.slane %v4868_v46, 5 }
 0x1ce   : > { %v8588_v53 = vpop.f32.mrf.mxu1  ;;  %v3914_v25 = vrot.slane %v3759_v8, 5  ;;  %v5132_v41 = vunpack.c.l.b16 %v4863_v29  ;;  %v4884_v58 = vshll.u32 %v4660_v45, 16 }
 0x1cf   : > { %5261 = vmatmul.bf16.gmra.mxu3 %v5157_v61  ;;  %v4874_v61 = vshll.u32 %v4659_v5, 16  ;;  %v6807_v5 = vrot.slane %v5404_v4, 9 }
 0x1d0   : > { %v2531_v13 = vpop.f32.mrf.mxu2  ;;  %v3915_v39 = vsel %vm7785_vm13, %v3913_v18, %v3914_v25  ;;  %v5158_v20 = vpack.c.b16 %v5132_v41, %v5131_v54  ;;  %v3761_v18 = vld [vmem:[#allocation2 + $0x64] sm:$0xf]  ;;  %v4871_v25 = vor.u32 %v4870_v55, %v4867_v42  ;;  %v3762_v54 = vld [vmem:[#allocation2 + $0x68] sm:$0x1]  ;;  %v4662_v55 = vld [vmem:[#allocation2 + $0x70] sm:$0xf] }
 0x1d1   : > { %v2575_v9 = vadd.f32 %v2531_v13, %v2050_v28  ;;  %4141 = vmatmul.bf16.gmra.mxu1 %v4033_v35  ;;  %v5406_v28 = vld [vmem:[#allocation2 + $0x68] sm:$0x1]  ;;  %v4876_v38 = vrot.slane %v4874_v61, 5  ;;  %v6954_v13 = vld [vmem:[#allocation2 + $0x54] sm:$0xff]  ;;  %v5559_v46 = vsel %vm7785_vm13, %v6807_v5, %v5558_v6  ;;  %v3918_v23 = vrot.slane %v3761_v18, 5 }
 0x1d2   : > { %v2909_v60 = vpop.f32.mrf.mxu3  ;;  %v5561_v57 = vrot.slane %v5406_v28, 5  ;;  %v4886_v28 = vrot.slane %v4884_v58, 5  ;;  %v5655_v42 = vunpack.c.l.b16 %v5559_v46 }
 0x1d3   : > { %v2953_v59 = vadd.f32 %v2909_v60, %v2575_v9  ;;  %v4009_v9 = vunpack.c.l.b16 %v3915_v39  ;;  %v5560_v60 = vrot.slane %v5558_v6, 4  ;;  %v2052_v39 = vadd.f32 %v8588_v53, %v8956_v50 }
 0x1d5   : > { %v8601_v43 = vadd.f32 %v3655_v30, %v2953_v59  ;;  %v3660_v35 = vpop.f32.mrf.mxu0  ;;  %v4881_v59 = vor.u32 %v4880_v22, %v4876_v38  ;;  %v4034_v29 = vpack.c.b16 %v4009_v9, %v4008_v56  ;;  %v5562_v61 = vsel %vm7785_vm13, %v5560_v60, %v5561_v57 }
 0x1d6   : > { %v8603_v48 = vpop.f32.mrf.mxu1  ;;  %v5656_v6 = vunpack.c.l.b16 %v5562_v61  ;;  %v3920_v56 = vrot.slane %v3918_v23, 4  ;;  %v3921_v9 = vrot.slane %v3762_v54, 5  ;;  %v4898_v60 = vshll.u32 %v4662_v55, 16 }
 0x1d7   : > { %5788 = vmatmul.bf16.gmra.mxu0 %v5680_v49  ;;  %v4661_v49 = vld [vmem:[#allocation2 + $0x6c] sm:$0xf]  ;;  %v4882_v4 = vrot.slane %v4881_v59, 4  ;;  %v4902_v57 = vshrl.u32 %v4662_v55, 16 }
 0x1d8   : > { %v2533_v30 = vpop.f32.mrf.mxu2  ;;  %v4889_v22 = vshrl.u32 %v4661_v49, 16  ;;  %v4892_v45 = vshll.u32 %v4661_v49, 16  ;;  %v3922_v58 = vsel %vm7785_vm13, %v3920_v56, %v3921_v9 }
 0x1d9   : > { %v2576_v8 = vadd.f32 %v2533_v30, %v2051_v15  ;;  %v3760_v15 = vld [vmem:[#allocation2 + $0x60] sm:$0xe]  ;;  %v4887_v5 = vsel %vm7769_vm10, %v4882_v4, %v4886_v28  ;;  %v5409_v4 = vld [vmem:[#allocation2 + $0x74] sm:$0x1] }
 0x1da   : > { %v2911_v16 = vpop.f32.mrf.mxu3  ;;  %v4894_v46 = vrot.slane %v4892_v45, 5  ;;  %v6955_v28 = vld [vmem:[#allocation2 + $0x60] sm:$0xff]  ;;  %v5568_v9 = vrot.slane %v5409_v4, 5  ;;  %v3764_v45 = vld [vmem:[#allocation2 + $0x70] sm:$0xf] }
 0x1db   : > { %v2954_v36 = vadd.f32 %v2911_v16, %v2576_v8 }
 0x1dd   : > { %4520 = vmatmul.bf16.gmra.mxu2 %v6954_v13  ;;  %v8611_v24 = vadd.f32 %v3657_v32, %v2954_v36  ;;  %v3662_v11 = vpop.f32.mrf.mxu0  ;;  %v4872_v32 = vrot.slane %v4871_v25, 4  ;;  %v6584_v13 = vrot.slane %v3760_v15, 9  ;;  %v5408_v36 = vld [vmem:[#allocation2 + $0x70] sm:$0xf]  ;;  %v5407_v15 = vld [vmem:[#allocation2 + $0x6c] sm:$0xe] }
 0x1de   : > { %v8613_v51 = vpop.f32.mrf.mxu1 }
 0x1df   : > { %5266 = vmatmul.bf16.gmra.mxu3 %v5158_v20  ;;  %v4877_v16 = vsel %vm7769_vm10, %v4872_v32, %v4876_v38  ;;  %v5681_v20 = vpack.c.b16 %v5656_v6, %v5655_v42  ;;  %v3919_v59 = vsel %vm7785_vm13, %v6584_v13, %v3918_v23  ;;  %v8957_v38 = vld [vmem:[#allocation7_spill] sm:$0xff]  ;;  %v4904_v32 = vrot.slane %v4902_v57, 4  ;;  %v4665_v57 = vld [vmem:[#allocation2 + $0x7c] sm:$0xf] }
 0x1e0   : > { %v2536_v41 = vpop.f32.mrf.mxu2  ;;  %v2053_v61 = vadd.f32 %v8603_v48, %v8957_v38  ;;  %v5133_v50 = vunpack.c.l.b16 %v4877_v16  ;;  %v4011_v42 = vunpack.c.l.b16 %v3922_v58  ;;  %v4663_v6 = vld [vmem:[#allocation2 + $0x74] sm:$0x1]  ;;  %v6808_v48 = vrot.slane %v5407_v15, 9  ;;  %v8958_v38 = vld [vmem:[#allocation9_spill] sm:$0xff] }
 0x1e1   : > { %v2577_v30 = vadd.f32 %v2536_v41, %v2052_v39  ;;  %4146 = vmatmul.bf16.gmra.mxu1 %v4034_v29  ;;  %v4891_v29 = vrot.slane %v4889_v22, 4  ;;  %v5134_v39 = vunpack.c.l.b16 %v4887_v5  ;;  %v8637_v41 = vrot.slane %v4898_v60, 5  ;;  %v4664_v5 = vld [vmem:[#allocation2 + $0x78] sm:$0xf]  ;;  %v3765_v15 = vld [vmem:[#allocation2 + $0x74] sm:$0x1] }
 0x1e2   : > { %v2914_v8 = vpop.f32.mrf.mxu3  ;;  %v4908_v16 = vshll.u32 %v4663_v6, 16 }
 0x1e3   : > { %v2955_v53 = vadd.f32 %v2914_v8, %v2577_v30  ;;  %v4010_v30 = vunpack.c.l.b16 %v3919_v59  ;;  %v4895_v22 = vor.u32 %v4894_v46, %v4891_v29  ;;  %v5159_v13 = vpack.c.b16 %v5134_v39, %v5133_v50  ;;  %v3763_v29 = vld [vmem:[#allocation2 + $0x6c] sm:$0xe] }
 0x1e4   : > { %v3925_v46 = vrot.slane %v3764_v45, 5 }
 0x1e5   : > { %v8625_v18 = vadd.f32 %v3660_v35, %v2955_v53  ;;  %v8635_v49 = vpop.f32.mrf.mxu0  ;;  %v5565_v35 = vrot.slane %v5408_v36, 5  ;;  %v4905_v53 = vor.u32 %v4904_v32, %v8637_v41  ;;  %v4035_v60 = vpack.c.b16 %v4011_v42, %v4010_v30 }
 0x1e6   : > { %v8627_v25 = vpop.f32.mrf.mxu1  ;;  %v4896_v58 = vrot.slane %v4895_v22, 4  ;;  %v4926_v30 = vshrl.u32 %v4665_v57, 16  ;;  %v6585_v42 = vrot.slane %v3763_v29, 9  ;;  %v3927_v22 = vrot.slane %v3925_v46, 4 }
 0x1e7   : > { %5793 = vmatmul.bf16.gmra.mxu0 %v5681_v20  ;;  %v5567_v56 = vrot.slane %v5565_v35, 4  ;;  %v5566_v20 = vsel %vm7785_vm13, %v6808_v48, %v5565_v35  ;;  %v4906_v4 = vrot.slane %v4905_v53, 4  ;;  %v3928_v48 = vrot.slane %v3765_v15, 5  ;;  %v8960_v15 = vld [vmem:[#allocation11_spill] sm:$0xff] }
 0x1e8   : > { %v2538_v54 = vpop.f32.mrf.mxu2 }
 0x1e9   : > { %v2578_v23 = vadd.f32 %v2538_v54, %v2053_v61  ;;  %v2054_v61 = vadd.f32 %v8613_v51, %v8958_v38  ;;  %v5569_v39 = vsel %vm7785_vm13, %v5567_v56, %v5568_v9  ;;  %v4916_v54 = vshll.u32 %v4664_v5, 16 }
 0x1ea   : > { %v2916_v55 = vpop.f32.mrf.mxu3  ;;  %v5658_v51 = vunpack.c.l.b16 %v5569_v39  ;;  %v4901_v9 = vsel %vm7769_vm10, %v4896_v58, %v8637_v41  ;;  %v3929_v41 = vsel %vm7785_vm13, %v3927_v22, %v3928_v48  ;;  %v5412_v58 = vld [vmem:[#allocation2 + $0x80] sm:$0x1] }
 0x1eb   : > { %v2956_v8 = vadd.f32 %v2916_v55, %v2578_v23  ;;  %v4910_v23 = vrot.slane %v4908_v16, 5  ;;  %v5657_v55 = vunpack.c.l.b16 %v5566_v20  ;;  %v4918_v56 = vrot.slane %v4916_v54, 5  ;;  %v5410_v20 = vld [vmem:[#allocation2 + $0x78] sm:$0xe] }
 0x1ed   : > { %4525 = vmatmul.bf16.gmra.mxu2 %v6955_v28  ;;  %v8640_v36 = vadd.f32 %v3662_v11, %v2956_v8  ;;  %v8648_v50 = vpop.f32.mrf.mxu0  ;;  %v4913_v11 = vshrl.u32 %v4664_v5, 16  ;;  %v4922_v28 = vshll.u32 %v4665_v57, 16  ;;  %v5411_v8 = vld [vmem:[#allocation2 + $0x7c] sm:$0xf]  ;;  %v4911_v53 = vsel %vm7769_vm10, %v4906_v4, %v4910_v23  ;;  %v4666_v57 = vld [vmem:[#allocation2 + $0x80] sm:$0x1] }
 0x1ee   : > { %v8642_v59 = vpop.f32.mrf.mxu1  ;;  %v4928_v5 = vrot.slane %v4926_v30, 4  ;;  %v5572_v29 = vrot.slane %v5411_v8, 5  ;;  %v5136_v4 = vunpack.c.l.b16 %v4911_v53  ;;  %v5575_v8 = vrot.slane %v5412_v58, 5  ;;  %v8962_v58 = vld [vmem:[#allocation13_spill] sm:$0xff] }
 0x1ef   : > { %5271 = vmatmul.bf16.gmra.mxu3 %v5159_v13  ;;  %v4915_v45 = vrot.slane %v4913_v11, 4  ;;  %v8657_v16 = vrot.slane %v4922_v28, 5  ;;  %v2055_v11 = vadd.f32 %v8627_v25, %v8960_v15  ;;  %v3767_v25 = vld [vmem:[#allocation2 + $0x7c] sm:$0xf] }
 0x1f0   : > { %v2541_v32 = vpop.f32.mrf.mxu2 }
 0x1f1   : > { %v2579_v35 = vadd.f32 %v2541_v32, %v2054_v61  ;;  %4151 = vmatmul.bf16.gmra.mxu1 %v4035_v60  ;;  %v3926_v60 = vsel %vm7785_vm13, %v6585_v42, %v3925_v46  ;;  %v5682_v61 = vpack.c.b16 %v5658_v51, %v5657_v55  ;;  %v5135_v32 = vunpack.c.l.b16 %v4901_v9 }
 0x1f2   : > { %v2919_v6 = vpop.f32.mrf.mxu3  ;;  %v4919_v46 = vor.u32 %v4918_v56, %v4915_v45  ;;  %v4012_v28 = vunpack.c.l.b16 %v3926_v60  ;;  %v4929_v30 = vor.u32 %v4928_v5, %v8657_v16  ;;  %v4013_v55 = vunpack.c.l.b16 %v3929_v41  ;;  %v4668_v41 = vld [vmem:[#allocation2 + $0x88] sm:$0xf] }
 0x1f3   : > { %v2957_v13 = vadd.f32 %v2919_v6, %v2579_v35  ;;  %v6809_v35 = vrot.slane %v5410_v20, 9  ;;  %v6956_v6 = vld [vmem:[#allocation2 + $0x6c] sm:$0xff]  ;;  %v5574_v51 = vrot.slane %v5572_v29, 4  ;;  %v3932_v20 = vrot.slane %v3767_v25, 5 }
 0x1f4   : > { %v4920_v15 = vrot.slane %v4919_v46, 4  ;;  %v4930_v9 = vrot.slane %v4929_v30, 4  ;;  %v4036_v45 = vpack.c.b16 %v4013_v55, %v4012_v28  ;;  %v3768_v46 = vld [vmem:[#allocation2 + $0x80] sm:$0x1] }
 0x1f5   : > { %v8662_v38 = vadd.f32 %v8635_v49, %v2957_v13  ;;  %v3670_v54 = vpop.f32.mrf.mxu0  ;;  %v4932_v49 = vshll.u32 %v4666_v57, 16  ;;  %v5160_v13 = vpack.c.b16 %v5136_v4, %v5135_v32  ;;  %v5573_v56 = vsel %vm7785_vm13, %v6809_v35, %v5572_v29  ;;  %v3766_v4 = vld [vmem:[#allocation2 + $0x78] sm:$0xe] }
 0x1f6   : > { %v8664_v39 = vpop.f32.mrf.mxu1  ;;  %v5576_v5 = vsel %vm7785_vm13, %v5574_v51, %v5575_v8  ;;  %v4925_v29 = vsel %vm7769_vm10, %v4920_v15, %v8657_v16  ;;  %v5659_v28 = vunpack.c.l.b16 %v5573_v56  ;;  %v6586_v55 = vrot.slane %v3766_v4, 9 }
 0x1f7   : > { %8959 = vst [vmem:[#allocation8_spill] sm:$0xff] %v8662_v38  ;;  %5798 = vmatmul.bf16.gmra.mxu0 %v5682_v61  ;;  %v4934_v53 = vrot.slane %v4932_v49, 5  ;;  %v4667_v61 = vld [vmem:[#allocation2 + $0x84] sm:$0xf]  ;;  %v5660_v30 = vunpack.c.l.b16 %v5576_v5  ;;  %v3934_v51 = vrot.slane %v3932_v20, 4  ;;  %v3935_v8 = vrot.slane %v3768_v46, 5 }
 0x1f8   : > { %v2543_v23 = vpop.f32.mrf.mxu2  ;;  %v4937_v35 = vshrl.u32 %v4667_v61, 16  ;;  %v5413_v46 = vld [vmem:[#allocation2 + $0x84] sm:$0xe]  ;;  %v4676_v38 = vld [vmem:[#allocation2 + $0xa8] sm:$0xf] }
 0x1f9   : > { %v2580_v42 = vadd.f32 %v2543_v23, %v2055_v11  ;;  %v2056_v11 = vadd.f32 %v8642_v59, %v8962_v58  ;;  %v5414_v58 = vld [vmem:[#allocation2 + $0x88] sm:$0xf]  ;;  %v5683_v16 = vpack.c.b16 %v5660_v30, %v5659_v28  ;;  %v3936_v56 = vsel %vm7785_vm13, %v3934_v51, %v3935_v8  ;;  %v6957_v30 = vld [vmem:[#allocation2 + $0x78] sm:$0xff] }
 0x1fa   : > { %v2921_v22 = vpop.f32.mrf.mxu3  ;;  %v4939_v15 = vrot.slane %v4937_v35, 4 }
 0x1fb   : > { %v2958_v48 = vadd.f32 %v2921_v22, %v2580_v42  ;;  %v4940_v42 = vshll.u32 %v4667_v61, 16  ;;  %v4950_v22 = vshrl.u32 %v4668_v41, 16 }
 0x1fd   : > { %4530 = vmatmul.bf16.gmra.mxu2 %v6956_v6  ;;  %v8676_v60 = vadd.f32 %v8648_v50, %v2958_v48  ;;  %v3672_v32 = vpop.f32.mrf.mxu0  ;;  %v4935_v50 = vsel %vm7769_vm10, %v4930_v9, %v4934_v53  ;;  %v4946_v6 = vshll.u32 %v4668_v41, 16  ;;  %v4952_v61 = vrot.slane %v4950_v22, 4  ;;  %v8964_v41 = vld [vmem:[#allocation15_spill] sm:$0xff] }
 0x1fe   : > { %v8678_v57 = vpop.f32.mrf.mxu1  ;;  %v5138_v25 = vunpack.c.l.b16 %v4935_v50  ;;  %v5415_v50 = vld [vmem:[#allocation2 + $0x8c] sm:$0x1] }
 0x1ff   : > { %8961 = vst [vmem:[#allocation10_spill] sm:$0xff] %v8676_v60  ;;  %5276 = vmatmul.bf16.gmra.mxu3 %v5160_v13  ;;  %v5137_v13 = vunpack.c.l.b16 %v4925_v29  ;;  %v4942_v60 = vrot.slane %v4940_v42, 5  ;;  %v8695_v5 = vrot.slane %v4946_v6, 5  ;;  %v4669_v29 = vld [vmem:[#allocation2 + $0x8c] sm:$0x1]  ;;  %v5582_v22 = vrot.slane %v5415_v50, 5 }
 0x200   : > { %v2546_v23 = vpop.f32.mrf.mxu2 }
 0x201   : > { %v2581_v49 = vadd.f32 %v2546_v23, %v2056_v11  ;;  %4156 = vmatmul.bf16.gmra.mxu1 %v4036_v45  ;;  %v3933_v45 = vsel %vm7785_vm13, %v6586_v55, %v3932_v20  ;;  %v2057_v11 = vadd.f32 %v8664_v39, %v8964_v41  ;;  %v5579_v23 = vrot.slane %v5414_v58, 5  ;;  %v4670_v41 = vld [vmem:[#allocation2 + $0x90] sm:$0xf] }
 0x202   : > { %v2924_v59 = vpop.f32.mrf.mxu3  ;;  %v4015_v20 = vunpack.c.l.b16 %v3936_v56  ;;  %v5161_v42 = vpack.c.b16 %v5138_v25, %v5137_v13  ;;  %v4943_v6 = vor.u32 %v4942_v60, %v4939_v15  ;;  %v6810_v55 = vrot.slane %v5413_v46, 9  ;;  %v3769_v46 = vld [vmem:[#allocation2 + $0x84] sm:$0xe] }
 0x203   : > { %v2959_v48 = vadd.f32 %v2924_v59, %v2581_v49  ;;  %v4014_v49 = vunpack.c.l.b16 %v3933_v45  ;;  %v4953_v59 = vor.u32 %v4952_v61, %v8695_v5  ;;  %v4956_v39 = vshll.u32 %v4669_v29, 16 }
 0x204   : > { %v5581_v8 = vrot.slane %v5579_v23, 4  ;;  %v4944_v56 = vrot.slane %v4943_v6, 4  ;;  %v5580_v60 = vsel %vm7785_vm13, %v6810_v55, %v5579_v23  ;;  %v4961_v50 = vshrl.u32 %v4670_v41, 16 }
 0x205   : > { %v8687_v9 = vadd.f32 %v3670_v54, %v2959_v48  ;;  %v8699_v4 = vpop.f32.mrf.mxu0  ;;  %v3770_v48 = vld [vmem:[#allocation2 + $0x88] sm:$0xf]  ;;  %v4037_v58 = vpack.c.b16 %v4015_v20, %v4014_v49  ;;  %v4958_v15 = vrot.slane %v4956_v39, 5  ;;  %v8966_v49 = vld [vmem:[#allocation16_spill] sm:$0xff]  ;;  %v5661_v23 = vunpack.c.l.b16 %v5580_v60 }
 0x206   : > { %v8689_v53 = vpop.f32.mrf.mxu1  ;;  %v3939_v13 = vrot.slane %v3770_v48, 5  ;;  %v5583_v61 = vsel %vm7785_vm13, %v5581_v8, %v5582_v22  ;;  %v4197_v20 = vadd.f32 %v8678_v57, %v8966_v49  ;;  %v6587_v6 = vrot.slane %v3769_v46, 9  ;;  %v5417_v22 = vld [vmem:[#allocation2 + $0x94] sm:$0xf] }
 0x207   : > { %8963 = vst [vmem:[#allocation12_spill] sm:$0xff] %v8687_v9  ;;  %5803 = vmatmul.bf16.gmra.mxu0 %v5683_v16  ;;  %v4671_v9 = vld [vmem:[#allocation2 + $0x94] sm:$0xf]  ;;  %v4954_v16 = vrot.slane %v4953_v59, 4  ;;  %v4949_v39 = vsel %vm7769_vm10, %v4944_v56, %v8695_v5  ;;  %v5586_v5 = vrot.slane %v5417_v22, 5 }
 0x208   : > { %v2548_v54 = vpop.f32.mrf.mxu2  ;;  %v3941_v59 = vrot.slane %v3939_v13, 4  ;;  %v3773_v22 = vld [vmem:[#allocation2 + $0x94] sm:$0xf] }
 0x209   : > { %v2582_v28 = vadd.f32 %v2548_v54, %v2057_v11  ;;  %v3771_v54 = vld [vmem:[#allocation2 + $0x8c] sm:$0x1]  ;;  %v4959_v8 = vsel %vm7769_vm10, %v4954_v16, %v4958_v15  ;;  %v4198_v16 = vadd.f32 %v8689_v53, %v8168_v40  ;;  %v5588_v40 = vrot.slane %v5586_v5, 4 }
 0x20a   : > { %v2926_v35 = vpop.f32.mrf.mxu3  ;;  %v3942_v55 = vrot.slane %v3771_v54, 5  ;;  %v4672_v54 = vld [vmem:[#allocation2 + $0x98] sm:$0x1] }
 0x20b   : > { %v2960_v51 = vadd.f32 %v2926_v35, %v2582_v28  ;;  %v4970_v28 = vshll.u32 %v4671_v9, 16 }
 0x20c   : > { %v3943_v46 = vsel %vm7785_vm13, %v3941_v59, %v3942_v55  ;;  %v4980_v59 = vshll.u32 %v4672_v54, 16 }
 0x20d   : > { %4535 = vmatmul.bf16.gmra.mxu2 %v6957_v30  ;;  %v8702_v11 = vadd.f32 %v3672_v32, %v2960_v51  ;;  %v5766_v25 = vpop.f32.mrf.mxu0  ;;  %v4964_v32 = vshll.u32 %v4670_v41, 16  ;;  %v4974_v30 = vshrl.u32 %v4671_v9, 16  ;;  %v4963_v9 = vrot.slane %v4961_v50, 4 }
 0x20e   : > { %v8704_v45 = vpop.f32.mrf.mxu1  ;;  %v8717_v41 = vrot.slane %v4970_v28, 5  ;;  %v5140_v50 = vunpack.c.l.b16 %v4959_v8  ;;  %v5418_v28 = vld [vmem:[#allocation2 + $0x98] sm:$0x1] }
 0x20f   : > { %8965 = vst [vmem:[#allocation14_spill] sm:$0xff] %v8702_v11  ;;  %5281 = vmatmul.bf16.gmra.mxu3 %v5161_v42  ;;  %v5662_v42 = vunpack.c.l.b16 %v5583_v61  ;;  %v4966_v48 = vrot.slane %v4964_v32, 5  ;;  %v4976_v57 = vrot.slane %v4974_v30, 4  ;;  %v3940_v61 = vsel %vm7785_vm13, %v6587_v6, %v3939_v13  ;;  %v5416_v32 = vld [vmem:[#allocation2 + $0x90] sm:$0xe] }
 0x210   : > { %v4496_v29 = vpop.f32.mrf.mxu2  ;;  %v4017_v6 = vunpack.c.l.b16 %v3943_v46  ;;  %v5589_v53 = vrot.slane %v5418_v28, 5  ;;  %v4674_v46 = vld [vmem:[#allocation2 + $0xa0] sm:$0xf] }
 0x211   : > { %4161 = vmatmul.bf16.gmra.mxu1 %v4037_v58  ;;  %v4576_v51 = vadd.f32 %v4496_v29, %v4197_v20  ;;  %v5684_v58 = vpack.c.b16 %v5662_v42, %v5661_v23  ;;  %v5139_v29 = vunpack.c.l.b16 %v4949_v39  ;;  %v4967_v49 = vor.u32 %v4966_v48, %v4963_v9  ;;  %v6958_v23 = vld [vmem:[#allocation2 + $0x84] sm:$0xff] }
 0x212   : > { %v5242_v35 = vpop.f32.mrf.mxu3  ;;  %v4977_v20 = vor.u32 %v4976_v57, %v8717_v41  ;;  %v4016_v42 = vunpack.c.l.b16 %v3940_v61  ;;  %v4673_v61 = vld [vmem:[#allocation2 + $0x9c] sm:$0xf]  ;;  %v5590_v54 = vsel %vm7785_vm13, %v5588_v40, %v5589_v53 }
 0x213   : > { %v5322_v56 = vadd.f32 %v5242_v35, %v4576_v51  ;;  %v6811_v35 = vrot.slane %v5416_v32, 9  ;;  %v5162_v8 = vpack.c.b16 %v5140_v50, %v5139_v29  ;;  %v4968_v11 = vrot.slane %v4967_v49, 4  ;;  %v3772_v49 = vld [vmem:[#allocation2 + $0x90] sm:$0xe] }
 0x214   : > { %v4038_v48 = vpack.c.b16 %v4017_v6, %v4016_v42  ;;  %v4978_v57 = vrot.slane %v4977_v20, 4  ;;  %v3774_v20 = vld [vmem:[#allocation2 + $0x98] sm:$0x1]  ;;  %v4998_v42 = vshrl.u32 %v4674_v46, 16  ;;  %v5664_v40 = vunpack.c.l.b16 %v5590_v54 }
 0x215   : > { %v8727_v15 = vpop.f32.mrf.mxu0  ;;  %v5844_v51 = vadd.f32 %v8699_v4, %v5322_v56  ;;  %v4199_v4 = vadd.f32 %v8704_v45, %v8196_v62  ;;  %v3946_v56 = vrot.slane %v3773_v22, 5  ;;  %v4985_v62 = vshrl.u32 %v4673_v61, 16 }
 0x216   : > { %v8719_v60 = vpop.f32.mrf.mxu1  ;;  %v4988_v45 = vshll.u32 %v4673_v61, 16  ;;  %v6588_v53 = vrot.slane %v3772_v49, 9 }
 0x217   : > { %5808 = vmatmul.bf16.gmra.mxu0 %v5684_v58  ;;  %v6041_v29 = vmul.f32 %v5844_v51, %v5844_v51  ;;  %v4200_v49 = vadd.f32 %v8719_v60, %v8211_v27 }
 0x218   : > { %v4498_v30 = vpop.f32.mrf.mxu2  ;;  %v4990_v61 = vrot.slane %v4988_v45, 5  ;;  %v3947_v54 = vsel %vm7785_vm13, %v6588_v53, %v3946_v56 }
 0x219   : > { %v4577_v13 = vadd.f32 %v4498_v30, %v4198_v16  ;;  %v4982_v16 = vrot.slane %v4980_v59, 5  ;;  %v4973_v59 = vsel %vm7769_vm10, %v4968_v11, %v8717_v41 }
 0x21a   : > { %v5244_v55 = vpop.f32.mrf.mxu3 }
 0x21b   : > { %v5323_v39 = vadd.f32 %v5244_v55, %v4577_v13  ;;  %v4983_v22 = vsel %vm7769_vm10, %v4978_v57, %v4982_v16 }
 0x21c   : > { %v5142_v11 = vunpack.c.l.b16 %v4983_v22  ;;  %v3776_v22 = vld [vmem:[#allocation2 + $0xa0] sm:$0xf] }
 0x21d   : > { %v5845_v9 = vadd.f32 %v5766_v25, %v5323_v39  ;;  %4540 = vmatmul.bf16.gmra.mxu2 %v6958_v23  ;;  %v5587_v25 = vsel %vm7785_vm13, %v6811_v35, %v5586_v5  ;;  %v5771_v30 = vpop.f32.mrf.mxu0  ;;  %v4994_v23 = vshll.u32 %v4674_v46, 16  ;;  %v3949_v39 = vrot.slane %v3774_v20, 5 }
 0x21e   : > { %v8740_v58 = vpop.f32.mrf.mxu1  ;;  %v5663_v55 = vunpack.c.l.b16 %v5587_v25 }
 0x21f   : > { %v7056_v50 = vpack.c.bf16 %v5845_v9, %v5844_v51  ;;  %v6004_v32 = vadd.f32 %v5845_v9, %v5844_v51  ;;  %v6042_v28 = vmul.f32 %v5845_v9, %v5845_v9  ;;  %5286 = vmatmul.bf16.gmra.mxu3 %v5162_v8  ;;  %v3948_v51 = vrot.slane %v3946_v56, 4 }
 0x220   : > { %v4501_v13 = vpop.f32.mrf.mxu2  ;;  %v4987_v9 = vrot.slane %v4985_v62, 4  ;;  %v8752_v46 = vrot.slane %v4994_v23, 5  ;;  %v5685_v41 = vpack.c.b16 %v5664_v40, %v5663_v55  ;;  %v6959_v55 = vld [vmem:[#allocation2 + $0x90] sm:$0xff] }
 0x221   : > { %7057 = vst [vmem:[%s8736_s30] sm:$0xff] %v7056_v50   ;;  %v6073_v5 = vadd.f32 %v6042_v28, %v6041_v29  ;;  %v4578_v6 = vadd.f32 %v4501_v13, %v4199_v4  ;;  %4166 = vmatmul.bf16.gmra.mxu1 %v4038_v48  ;;  %v5000_v4 = vrot.slane %v4998_v42, 4  ;;  %v5420_v48 = vld [vmem:[#allocation2 + $0xa0] sm:$0xf]  ;;  %v5141_v50 = vunpack.c.l.b16 %v4973_v59  ;;  %v4675_v13 = vld [vmem:[#allocation2 + $0xa4] sm:$0x1] }
 0x222   : > { %v5247_v35 = vpop.f32.mrf.mxu3  ;;  %v3950_v28 = vsel %vm7785_vm13, %v3948_v51, %v3949_v39  ;;  %v5593_v62 = vrot.slane %v5420_v48, 5  ;;  %v4991_v23 = vor.u32 %v4990_v61, %v4987_v9  ;;  %v5004_v53 = vshll.u32 %v4675_v13, 16 }
 0x223   : > { %v5324_v8 = vadd.f32 %v5247_v35, %v4578_v6  ;;  %v5001_v42 = vor.u32 %v5000_v4, %v8752_v46  ;;  %v5421_v6 = vld [vmem:[#allocation2 + $0xa4] sm:$0x1]  ;;  %v4018_v35 = vunpack.c.l.b16 %v3947_v54  ;;  %v4019_v40 = vunpack.c.l.b16 %v3950_v28 }
 0x224   : > { %v5163_v60 = vpack.c.b16 %v5142_v11, %v5141_v50  ;;  %v5595_v39 = vrot.slane %v5593_v62, 4  ;;  %v4992_v61 = vrot.slane %v4991_v23, 4  ;;  %v4201_v54 = vadd.f32 %v8740_v58, %v8250_v52  ;;  %v3777_v23 = vld [vmem:[#allocation2 + $0xa4] sm:$0x1] }
 0x225   : > { %v5846_v29 = vadd.f32 %v8727_v15, %v5324_v8  ;;  %v8763_v20 = vpop.f32.mrf.mxu0  ;;  %v5419_v15 = vld [vmem:[#allocation2 + $0x9c] sm:$0xe]  ;;  %v5596_v8 = vrot.slane %v5421_v6, 5  ;;  %v4039_v9 = vpack.c.b16 %v4019_v40, %v4018_v35  ;;  %v5002_v4 = vrot.slane %v5001_v42, 4 }
 0x226   : > { %v8755_v25 = vpop.f32.mrf.mxu1  ;;  %v6812_v51 = vrot.slane %v5419_v15, 9  ;;  %v3953_v11 = vrot.slane %v3776_v22, 5  ;;  %v5009_v52 = vshrl.u32 %v4676_v38, 16  ;;  %v5012_v58 = vshll.u32 %v4676_v38, 16  ;;  %v5423_v22 = vld [vmem:[#allocation2 + $0xac] sm:$0xf] }
 0x227   : > { %v6005_v57 = vadd.f32 %v6004_v32, %v5846_v29  ;;  %v6043_v16 = vmul.f32 %v5846_v29, %v5846_v29  ;;  %5813 = vmatmul.bf16.gmra.mxu0 %v5685_v41  ;;  %v5006_v41 = vrot.slane %v5004_v53, 5  ;;  %v5597_v15 = vsel %vm7785_vm13, %v5595_v39, %v5596_v8 }
 0x228   : > { %v4503_v45 = vpop.f32.mrf.mxu2  ;;  %v5594_v50 = vsel %vm7785_vm13, %v6812_v51, %v5593_v62  ;;  %v5666_v40 = vunpack.c.l.b16 %v5597_v15  ;;  %v3955_v53 = vrot.slane %v3953_v11, 4  ;;  %v3956_v51 = vrot.slane %v3777_v23, 5  ;;  %v4678_v15 = vld [vmem:[#allocation2 + $0xb0] sm:$0x1] }
 0x229   : > { %v6074_v59 = vadd.f32 %v6073_v5, %v6043_v16  ;;  %v4579_v56 = vadd.f32 %v4503_v45, %v4200_v49  ;;  %v4677_v5 = vld [vmem:[#allocation2 + $0xac] sm:$0xf]  ;;  %v3775_v45 = vld [vmem:[#allocation2 + $0x9c] sm:$0xe]  ;;  %v5007_v38 = vsel %vm7769_vm10, %v5002_v4, %v5006_v41  ;;  %v5014_v39 = vrot.slane %v5012_v58, 5 }
 0x22a   : > { %v5249_v32 = vpop.f32.mrf.mxu3  ;;  %v5018_v6 = vshll.u32 %v4677_v5, 16  ;;  %v5424_v58 = vld [vmem:[#allocation2 + $0xb0] sm:$0x1] }
 0x22b   : > { %v5325_v27 = vadd.f32 %v5249_v32, %v4579_v56  ;;  %v5022_v56 = vshrl.u32 %v4677_v5, 16  ;;  %v6589_v32 = vrot.slane %v3775_v45, 9  ;;  %v5600_v45 = vrot.slane %v5423_v22, 5 }
 0x22c   : > { %v8780_v8 = vrot.slane %v5018_v6, 5 }
 0x22d   : > { %v5847_v48 = vadd.f32 %v5771_v30, %v5325_v27  ;;  %4545 = vmatmul.bf16.gmra.mxu2 %v6959_v55  ;;  %v5776_v13 = vpop.f32.mrf.mxu0 }
 0x22e   : > { %v8768_v28 = vpop.f32.mrf.mxu1 }
 0x22f   : > { %v7061_v16 = vpack.c.bf16 %v5847_v48, %v5846_v29  ;;  %v6006_v49 = vadd.f32 %v6005_v57, %v5847_v48  ;;  %v6044_v30 = vmul.f32 %v5847_v48, %v5847_v48  ;;  %5291 = vmatmul.bf16.gmra.mxu3 %v5163_v60  ;;  %v4997_v29 = vsel %vm7769_vm10, %v4992_v61, %v8752_v46 }
 0x230   : > { %v4506_v42 = vpop.f32.mrf.mxu2  ;;  %v5665_v57 = vunpack.c.l.b16 %v5594_v50  ;;  %v5011_v60 = vrot.slane %v5009_v52, 4  ;;  %v5144_v46 = vunpack.c.l.b16 %v5007_v38  ;;  %v3957_v50 = vsel %vm7785_vm13, %v3955_v53, %v3956_v51  ;;  %v3779_v53 = vld [vmem:[#allocation2 + $0xac] sm:$0xf] }
 0x231   : > { %7148 = vst [vmem:[%s8736_s30 + $0x8] sm:$0xff] %v7061_v16   ;;  %v6075_v55 = vadd.f32 %v6074_v59, %v6044_v30  ;;  %v4580_v35 = vadd.f32 %v4506_v42, %v4201_v54  ;;  %4171 = vmatmul.bf16.gmra.mxu1 %v4039_v9  ;;  %v5024_v59 = vrot.slane %v5022_v56, 4  ;;  %v5143_v9 = vunpack.c.l.b16 %v4997_v29  ;;  %v6960_v56 = vld [vmem:[#allocation2 + $0x9c] sm:$0xff] }
 0x232   : > { %v5252_v62 = vpop.f32.mrf.mxu3  ;;  %v5686_v61 = vpack.c.b16 %v5666_v40, %v5665_v57  ;;  %v3954_v54 = vsel %vm7785_vm13, %v6589_v32, %v3953_v11  ;;  %v4202_v16 = vadd.f32 %v8755_v25, %v8283_v37  ;;  %v5015_v42 = vor.u32 %v5014_v39, %v5011_v60  ;;  %v4679_v39 = vld [vmem:[#allocation2 + $0xb4] sm:$0xf] }
 0x233   : > { %v5326_v27 = vadd.f32 %v5252_v62, %v4580_v35  ;;  %v5025_v52 = vor.u32 %v5024_v59, %v8780_v8  ;;  %v4020_v35 = vunpack.c.l.b16 %v3954_v54  ;;  %v4021_v29 = vunpack.c.l.b16 %v3957_v50 }
 0x234   : > { %v5028_v57 = vshll.u32 %v4678_v15, 16  ;;  %v5164_v25 = vpack.c.b16 %v5144_v46, %v5143_v9  ;;  %v5602_v40 = vrot.slane %v5600_v45, 4  ;;  %v5603_v32 = vrot.slane %v5424_v58, 5  ;;  %v3778_v15 = vld [vmem:[#allocation2 + $0xa8] sm:$0xe] }
 0x235   : > { %v5848_v48 = vadd.f32 %v8763_v20, %v5326_v27  ;;  %v8791_v30 = vpop.f32.mrf.mxu0  ;;  %v5422_v20 = vld [vmem:[#allocation2 + $0xa8] sm:$0xe]  ;;  %v4040_v27 = vpack.c.b16 %v4021_v29, %v4020_v35  ;;  %v5016_v38 = vrot.slane %v5015_v42, 4  ;;  %v5026_v60 = vrot.slane %v5025_v52, 4 }
 0x236   : > { %v8783_v5 = vpop.f32.mrf.mxu1  ;;  %v6813_v62 = vrot.slane %v5422_v20, 9  ;;  %v4203_v59 = vadd.f32 %v8768_v28, %v8301_v63  ;;  %v3960_v46 = vrot.slane %v3779_v53, 5  ;;  %v3780_v20 = vld [vmem:[#allocation2 + $0xb0] sm:$0x1]  ;;  %v5033_v63 = vshrl.u32 %v4679_v39, 16 }
 0x237   : > { %v6007_v4 = vadd.f32 %v6006_v49, %v5848_v48  ;;  %v6045_v41 = vmul.f32 %v5848_v48, %v5848_v48  ;;  %5818 = vmatmul.bf16.gmra.mxu0 %v5686_v61  ;;  %v5030_v61 = vrot.slane %v5028_v57, 5  ;;  %v5036_v28 = vshll.u32 %v4679_v39, 16 }
 0x238   : > { %v4508_v23 = vpop.f32.mrf.mxu2  ;;  %v5601_v9 = vsel %vm7785_vm13, %v6813_v62, %v5600_v45  ;;  %v6590_v35 = vrot.slane %v3778_v15, 9  ;;  %v3962_v29 = vrot.slane %v3960_v46, 4 }
 0x239   : > { %v6076_v6 = vadd.f32 %v6075_v55, %v6045_v41  ;;  %v4581_v11 = vadd.f32 %v4508_v23, %v4202_v16  ;;  %v4680_v55 = vld [vmem:[#allocation2 + $0xb8] sm:$0xf]  ;;  %v5604_v16 = vsel %vm7785_vm13, %v5602_v40, %v5603_v32  ;;  %v5031_v62 = vsel %vm7769_vm10, %v5026_v60, %v5030_v61  ;;  %v8967_v61 = vld [vmem:[#allocation17_spill] sm:$0xff] }
 0x23a   : > { %v5254_v49 = vpop.f32.mrf.mxu3  ;;  %v5042_v42 = vshll.u32 %v4680_v55, 16  ;;  %v5046_v52 = vshrl.u32 %v4680_v55, 16  ;;  %v5426_v32 = vld [vmem:[#allocation2 + $0xb8] sm:$0xf]  ;;  %v3961_v39 = vsel %vm7785_vm13, %v6590_v35, %v3960_v46 }
 0x23b   : > { %v5327_v37 = vadd.f32 %v5254_v49, %v4581_v11  ;;  %v3963_v49 = vrot.slane %v3780_v20, 5 }
 0x23c   : > { %v8808_v40 = vrot.slane %v5042_v42, 5  ;;  %v6961_v42 = vld [vmem:[#allocation2 + $0xa8] sm:$0xff] }
 0x23d   : > { %v5849_v51 = vadd.f32 %v5776_v13, %v5327_v37  ;;  %4550 = vmatmul.bf16.gmra.mxu2 %v6960_v56  ;;  %v5781_v41 = vpop.f32.mrf.mxu0  ;;  %v5668_v56 = vunpack.c.l.b16 %v5604_v16  ;;  %v5035_v37 = vrot.slane %v5033_v63, 4  ;;  %v3964_v55 = vsel %vm7785_vm13, %v3962_v29, %v3963_v49  ;;  %v5427_v63 = vld [vmem:[#allocation2 + $0xbc] sm:$0x1]  ;;  %v3782_v29 = vld [vmem:[#allocation2 + $0xb8] sm:$0xf] }
 0x23e   : > { %v8796_v22 = vpop.f32.mrf.mxu1  ;;  %v5607_v16 = vrot.slane %v5426_v32, 5  ;;  %v5610_v35 = vrot.slane %v5427_v63, 5 }
 0x23f   : > { %v7066_v54 = vpack.c.bf16 %v5849_v51, %v5848_v48  ;;  %v6008_v50 = vadd.f32 %v6007_v4, %v5849_v51  ;;  %v6046_v13 = vmul.f32 %v5849_v51, %v5849_v51  ;;  %5296 = vmatmul.bf16.gmra.mxu3 %v5164_v25  ;;  %v5021_v48 = vsel %vm7769_vm10, %v5016_v38, %v8780_v8 }
 0x240   : > { %v4511_v23 = vpop.f32.mrf.mxu2  ;;  %v5667_v4 = vunpack.c.l.b16 %v5601_v9  ;;  %v5038_v25 = vrot.slane %v5036_v28, 5  ;;  %v5145_v51 = vunpack.c.l.b16 %v5021_v48  ;;  %v5146_v8 = vunpack.c.l.b16 %v5031_v62 }
 0x241   : > { %7149 = vst [vmem:[%s8736_s30 + $0x10] sm:$0xff] %v7066_v54   ;;  %v6077_v58 = vadd.f32 %v6076_v6, %v6046_v13  ;;  %v4582_v11 = vadd.f32 %v4511_v23, %v4203_v59  ;;  %4176 = vmatmul.bf16.gmra.mxu1 %v4040_v27  ;;  %v5048_v6 = vrot.slane %v5046_v52, 4  ;;  %v4204_v9 = vadd.f32 %v8783_v5, %v8967_v61  ;;  %v4681_v13 = vld [vmem:[#allocation2 + $0xbc] sm:$0x1] }
 0x242   : > { %v5257_v45 = vpop.f32.mrf.mxu3  ;;  %v5687_v27 = vpack.c.b16 %v5668_v56, %v5667_v4  ;;  %v5039_v20 = vor.u32 %v5038_v25, %v5035_v37  ;;  %v4022_v52 = vunpack.c.l.b16 %v3961_v39  ;;  %v5052_v48 = vshll.u32 %v4681_v13, 16  ;;  %v4682_v25 = vld [vmem:[#allocation2 + $0xc0] sm:$0xf] }
 0x243   : > { %v5328_v57 = vadd.f32 %v5257_v45, %v4582_v11  ;;  %v5049_v23 = vor.u32 %v5048_v6, %v8808_v40  ;;  %v4023_v11 = vunpack.c.l.b16 %v3964_v55  ;;  %v5165_v45 = vpack.c.b16 %v5146_v8, %v5145_v51  ;;  %v8968_v6 = vld [vmem:[#allocation18_spill] sm:$0xff]  ;;  %v3781_v8 = vld [vmem:[#allocation2 + $0xb4] sm:$0xe] }
 0x244   : > { %v5609_v56 = vrot.slane %v5607_v16, 4  ;;  %v5040_v62 = vrot.slane %v5039_v20, 4  ;;  %v4205_v32 = vadd.f32 %v8796_v22, %v8968_v6  ;;  %v3967_v55 = vrot.slane %v3782_v29, 5 }
 0x245   : > { %v5850_v53 = vadd.f32 %v8791_v30, %v5328_v57  ;;  %v8819_v54 = vpop.f32.mrf.mxu0  ;;  %v5425_v30 = vld [vmem:[#allocation2 + $0xb4] sm:$0xe]  ;;  %v4041_v57 = vpack.c.b16 %v4023_v11, %v4022_v52  ;;  %v5050_v37 = vrot.slane %v5049_v23, 4  ;;  %v5057_v22 = vshrl.u32 %v4682_v25, 16 }
 0x246   : > { %v8811_v38 = vpop.f32.mrf.mxu1  ;;  %v6814_v4 = vrot.slane %v5425_v30, 9  ;;  %v5611_v13 = vsel %vm7785_vm13, %v5609_v56, %v5610_v35  ;;  %v3783_v30 = vld [vmem:[#allocation2 + $0xbc] sm:$0x1]  ;;  %v5060_v20 = vshll.u32 %v4682_v25, 16  ;;  %v3969_v11 = vrot.slane %v3967_v55, 4 }
 0x247   : > { %v6009_v60 = vadd.f32 %v6008_v50, %v5850_v53  ;;  %v6047_v59 = vmul.f32 %v5850_v53, %v5850_v53  ;;  %5823 = vmatmul.bf16.gmra.mxu0 %v5687_v27  ;;  %v5054_v27 = vrot.slane %v5052_v48, 5  ;;  %v5059_v56 = vrot.slane %v5057_v22, 4  ;;  %v4684_v25 = vld [vmem:[#allocation2 + $0xc8] sm:$0x1] }
 0x248   : > { %v4513_v15 = vpop.f32.mrf.mxu2  ;;  %v5608_v51 = vsel %vm7785_vm13, %v6814_v4, %v5607_v16  ;;  %v6591_v16 = vrot.slane %v3781_v8, 9  ;;  %v5045_v4 = vsel %vm7769_vm10, %v5040_v62, %v8808_v40  ;;  %v5062_v35 = vrot.slane %v5060_v20, 5  ;;  %v5428_v62 = vld [vmem:[#allocation2 + $0xc0] sm:$0xe] }
 0x249   : > { %v6078_v28 = vadd.f32 %v6077_v58, %v6047_v59  ;;  %v4583_v46 = vadd.f32 %v4513_v15, %v4204_v9  ;;  %v4683_v58 = vld [vmem:[#allocation2 + $0xc4] sm:$0xf]  ;;  %v4206_v8 = vadd.f32 %v8811_v38, %v8379_v0  ;;  %v5076_v22 = vshll.u32 %v4684_v25, 16 }
 0x24a   : > { %v5259_v50 = vpop.f32.mrf.mxu3  ;;  %v5066_v23 = vshll.u32 %v4683_v58, 16  ;;  %v5070_v63 = vshrl.u32 %v4683_v58, 16  ;;  %v5147_v58 = vunpack.c.l.b16 %v5045_v4  ;;  %v3785_v38 = vld [vmem:[#allocation2 + $0xc4] sm:$0xf] }
 0x24b   : > { %v5329_v5 = vadd.f32 %v5259_v50, %v4583_v46  ;;  %v3970_v50 = vrot.slane %v3783_v30, 5  ;;  %v5063_v30 = vor.u32 %v5062_v35, %v5059_v56  ;;  %v3974_v35 = vrot.slane %v3785_v38, 5 }
 0x24c   : > { %v5072_v29 = vrot.slane %v5070_v63, 4  ;;  %v6962_v63 = vld [vmem:[#allocation2 + $0xb4] sm:$0xff] }
 0x24d   : > { %v5851_v49 = vadd.f32 %v5781_v41, %v5329_v5  ;;  %4555 = vmatmul.bf16.gmra.mxu2 %v6961_v42  ;;  %v5786_v9 = vpop.f32.mrf.mxu0  ;;  %v5055_v5 = vsel %vm7769_vm10, %v5050_v37, %v5054_v27  ;;  %v3971_v40 = vsel %vm7785_vm13, %v3969_v11, %v3970_v50  ;;  %v5064_v11 = vrot.slane %v5063_v30, 4 }
 0x24e   : > { %v8824_v39 = vpop.f32.mrf.mxu1  ;;  %v3976_v30 = vrot.slane %v3974_v35, 4 }
 0x24f   : > { %v7071_v59 = vpack.c.bf16 %v5851_v49, %v5850_v53  ;;  %v6010_v41 = vadd.f32 %v6009_v60, %v5851_v49  ;;  %v6048_v61 = vmul.f32 %v5851_v49, %v5851_v49  ;;  %5301 = vmatmul.bf16.gmra.mxu3 %v5165_v45  ;;  %v5669_v53 = vunpack.c.l.b16 %v5608_v51  ;;  %v5429_v45 = vld [vmem:[#allocation2 + $0xc4] sm:$0xf] }
 0x250   : > { %v4516_v15 = vpop.f32.mrf.mxu2  ;;  %v5670_v60 = vunpack.c.l.b16 %v5611_v13  ;;  %v5614_v37 = vrot.slane %v5429_v45, 5 }
 0x251   : > { %7150 = vst [vmem:[%s8736_s30 + $0x18] sm:$0xff] %v7071_v59   ;;  %v6079_v46 = vadd.f32 %v6078_v28, %v6048_v61  ;;  %v4584_v42 = vadd.f32 %v4516_v15, %v4205_v32  ;;  %4181 = vmatmul.bf16.gmra.mxu1 %v4041_v57  ;;  %v8836_v28 = vrot.slane %v5066_v23, 5  ;;  %v3968_v57 = vsel %vm7785_vm13, %v6591_v16, %v3967_v55  ;;  %v5430_v61 = vld [vmem:[#allocation2 + $0xc8] sm:$0x1] }
 0x252   : > { %v5262_v52 = vpop.f32.mrf.mxu3  ;;  %v5688_v6 = vpack.c.b16 %v5670_v60, %v5669_v53  ;;  %v4024_v55 = vunpack.c.l.b16 %v3968_v57  ;;  %v6815_v16 = vrot.slane %v5428_v62, 9  ;;  %v5617_v53 = vrot.slane %v5430_v61, 5  ;;  %v3786_v62 = vld [vmem:[#allocation2 + $0xc8] sm:$0x1] }
 0x253   : > { %v5330_v48 = vadd.f32 %v5262_v52, %v4584_v42  ;;  %v5073_v15 = vor.u32 %v5072_v29, %v8836_v28  ;;  %v4025_v42 = vunpack.c.l.b16 %v3971_v40  ;;  %v4685_v29 = vld [vmem:[#allocation2 + $0xcc] sm:$0xf]  ;;  %v3784_v40 = vld [vmem:[#allocation2 + $0xc0] sm:$0xe] }
 0x255   : > { %v5852_v49 = vadd.f32 %v8819_v54, %v5330_v48  ;;  %v5789_v59 = vpop.f32.mrf.mxu0  ;;  %v5148_v54 = vunpack.c.l.b16 %v5055_v5  ;;  %v5074_v50 = vrot.slane %v5073_v15, 4  ;;  %v5078_v48 = vrot.slane %v5076_v22, 5 }
 0x256   : > { %v8841_v32 = vpop.f32.mrf.mxu1  ;;  %v4042_v5 = vpack.c.b16 %v4025_v42, %v4024_v55  ;;  %v6592_v55 = vrot.slane %v3784_v40, 9  ;;  %v3977_v15 = vrot.slane %v3786_v62, 5  ;;  %v5084_v22 = vshll.u32 %v4685_v29, 16 }
 0x257   : > { %v6011_v27 = vadd.f32 %v6010_v41, %v5852_v49  ;;  %v6049_v51 = vmul.f32 %v5852_v49, %v5852_v49  ;;  %5828 = vmatmul.bf16.gmra.mxu0 %v5688_v6  ;;  %v5616_v41 = vrot.slane %v5614_v37, 4  ;;  %v5166_v0 = vpack.c.b16 %v5148_v54, %v5147_v58 }
 0x258   : > { %v4518_v13 = vpop.f32.mrf.mxu2  ;;  %v4207_v6 = vadd.f32 %v8824_v39, %v8405_v44  ;;  %v5081_v44 = vshrl.u32 %v4685_v29, 16 }
 0x259   : > { %v6080_v20 = vadd.f32 %v6079_v46, %v6049_v51  ;;  %v4585_v23 = vadd.f32 %v4518_v13, %v4206_v8  ;;  %v5615_v46 = vsel %vm7785_vm13, %v6815_v16, %v5614_v37  ;;  %v5618_v56 = vsel %vm7785_vm13, %v5616_v41, %v5617_v53  ;;  %v4686_v13 = vld [vmem:[#allocation2 + $0xd0] sm:$0xf] }
 0x25a   : > { %v5264_v52 = vpop.f32.mrf.mxu3  ;;  %v5069_v37 = vsel %vm7769_vm10, %v5064_v11, %v8836_v28  ;;  %v5079_v8 = vsel %vm7769_vm10, %v5074_v50, %v5078_v48  ;;  %v5671_v54 = vunpack.c.l.b16 %v5615_v46  ;;  %v5672_v61 = vunpack.c.l.b16 %v5618_v56  ;;  %v5432_v28 = vld [vmem:[#allocation2 + $0xd0] sm:$0xf] }
 0x25b   : > { %v5331_v60 = vadd.f32 %v5264_v52, %v4585_v23  ;;  %v5094_v42 = vshrl.u32 %v4686_v13, 16  ;;  %v5149_v52 = vunpack.c.l.b16 %v5069_v37  ;;  %v5150_v41 = vunpack.c.l.b16 %v5079_v8  ;;  %v4687_v37 = vld [vmem:[#allocation2 + $0xd4] sm:$0x1] }
 0x25c   : > { %v5689_v53 = vpack.c.b16 %v5672_v61, %v5671_v54  ;;  %v5083_v38 = vrot.slane %v5081_v44, 4  ;;  %v5086_v11 = vrot.slane %v5084_v22, 5  ;;  %v5621_v46 = vrot.slane %v5432_v28, 5 }
 0x25d   : > { %v5853_v4 = vadd.f32 %v5786_v9, %v5331_v60  ;;  %4560 = vmatmul.bf16.gmra.mxu2 %v6962_v63  ;;  %v5791_v9 = vpop.f32.mrf.mxu0  ;;  %v5090_v63 = vshll.u32 %v4686_v13, 16  ;;  %v5167_v61 = vpack.c.b16 %v5150_v41, %v5149_v52  ;;  %v5100_v44 = vshll.u32 %v4687_v37, 16 }
 0x25e   : > { %v8850_v45 = vpop.f32.mrf.mxu1 }
 0x25f   : > { %v7076_v57 = vpack.c.bf16 %v5853_v4, %v5852_v49  ;;  %v6012_v25 = vadd.f32 %v6011_v27, %v5853_v4  ;;  %v6050_v58 = vmul.f32 %v5853_v4, %v5853_v4  ;;  %5306 = vmatmul.bf16.gmra.mxu3 %v5166_v0  ;;  %v3978_v0 = vsel %vm7785_vm13, %v3976_v30, %v3977_v15 }
 0x260   : > { %v4521_v51 = vpop.f32.mrf.mxu2  ;;  %v4208_v4 = vadd.f32 %v8841_v32, %v8430_v47  ;;  %v5092_v29 = vrot.slane %v5090_v63, 5  ;;  %v5623_v47 = vrot.slane %v5621_v46, 4 }
 0x261   : > { %7151 = vst [vmem:[%s8736_s30 + $0x20] sm:$0xff] %v7076_v57   ;;  %v6081_v49 = vadd.f32 %v6080_v20, %v6050_v58  ;;  %v4586_v27 = vadd.f32 %v4521_v51, %v4207_v6  ;;  %4186 = vmatmul.bf16.gmra.mxu1 %v4042_v5  ;;  %v3975_v20 = vsel %vm7785_vm13, %v6592_v55, %v3974_v35  ;;  %v5096_v57 = vrot.slane %v5094_v42, 4  ;;  %v5433_v58 = vld [vmem:[#allocation2 + $0xd4] sm:$0x1]  ;;  %v6963_v35 = vld [vmem:[#allocation2 + $0xc0] sm:$0xff] }
 0x262   : > { %v5267_v39 = vpop.f32.mrf.mxu3  ;;  %v4026_v62 = vunpack.c.l.b16 %v3975_v20  ;;  %v4027_v51 = vunpack.c.l.b16 %v3978_v0  ;;  %v5624_v32 = vrot.slane %v5433_v58, 5 }
 0x263   : > { %v5332_v23 = vadd.f32 %v5267_v39, %v4586_v27  ;;  %v5097_v13 = vor.u32 %v5096_v57, %v5092_v29 }
 0x264   : > { %v4043_v55 = vpack.c.b16 %v4027_v51, %v4026_v62  ;;  %v5625_v52 = vsel %vm7785_vm13, %v5623_v47, %v5624_v32  ;;  %v6964_v51 = vld [vmem:[#allocation2 + $0xcc] sm:$0xff] }
 0x265   : > { %v5854_v16 = vadd.f32 %v5789_v59, %v5332_v23  ;;  %v5794_v5 = vpop.f32.mrf.mxu0  ;;  %v5431_v59 = vld [vmem:[#allocation2 + $0xcc] sm:$0xe]  ;;  %v5098_v41 = vrot.slane %v5097_v13, 4 }
 0x266   : > { %v8862_v60 = vpop.f32.mrf.mxu1  ;;  %v6816_v54 = vrot.slane %v5431_v59, 9 }
 0x267   : > { %v6013_v50 = vadd.f32 %v6012_v25, %v5854_v16  ;;  %v6051_v48 = vmul.f32 %v5854_v16, %v5854_v16  ;;  %5833 = vmatmul.bf16.gmra.mxu0 %v5689_v53  ;;  %v5087_v25 = vor.u32 %v5086_v11, %v5083_v38  ;;  %v5102_v53 = vrot.slane %v5100_v44, 5 }
 0x268   : > { %v4523_v56 = vpop.f32.mrf.mxu2  ;;  %v5622_v22 = vsel %vm7785_vm13, %v6816_v54, %v5621_v46  ;;  %v5674_v38 = vunpack.c.l.b16 %v5625_v52  ;;  %v4210_v57 = vadd.f32 %v8862_v60, %v8446_v21 }
 0x269   : > { %v6082_v6 = vadd.f32 %v6081_v49, %v6051_v48  ;;  %v4587_v40 = vadd.f32 %v4523_v56, %v4208_v4  ;;  %v4209_v49 = vadd.f32 %v8850_v45, %v8433_v7  ;;  %v5088_v15 = vrot.slane %v5087_v25, 4 }
 0x26a   : > { %v5269_v8 = vpop.f32.mrf.mxu3  ;;  %v5673_v45 = vunpack.c.l.b16 %v5622_v22 }
 0x26b   : > { %v5333_v27 = vadd.f32 %v5269_v8, %v4587_v40 }
 0x26c   : > { %v5690_v4 = vpack.c.b16 %v5674_v38, %v5673_v45 }
 0x26d   : > { %v5855_v39 = vadd.f32 %v5791_v9, %v5333_v27  ;;  %4565 = vmatmul.bf16.gmra.mxu2 %v6963_v35  ;;  %v5796_v28 = vpop.f32.mrf.mxu0 }
 0x26e   : > { %v4152_v30 = vpop.f32.mrf.mxu1 }
 0x26f   : > { %v7081_v23 = vpack.c.bf16 %v5855_v39, %v5854_v16  ;;  %v6014_v63 = vadd.f32 %v6013_v50, %v5855_v39  ;;  %v6052_v42 = vmul.f32 %v5855_v39, %v5855_v39  ;;  %5311 = vmatmul.bf16.gmra.mxu3 %v5167_v61  ;;  %v5093_v16 = vsel %vm7769_vm10, %v5088_v15, %v5092_v29 }
 0x270   : > { %v4526_v9 = vpop.f32.mrf.mxu2  ;;  %v5103_v50 = vsel %vm7769_vm10, %v5098_v41, %v5102_v53  ;;  %v5151_v14 = vunpack.c.l.b16 %v5093_v16  ;;  %v4211_v61 = vadd.f32 %v4152_v30, %v8459_v3 }
 0x271   : > { %7152 = vst [vmem:[%s8736_s30 + $0x28] sm:$0xff] %v7081_v23   ;;  %v6083_v20 = vadd.f32 %v6082_v6, %v6052_v42  ;;  %v4588_v0 = vadd.f32 %v4526_v9, %v4209_v49  ;;  %4191 = vmatmul.bf16.gmra.mxu1 %v4043_v55  ;;  %v5152_v6 = vunpack.c.l.b16 %v5103_v50 }
 0x272   : > { %v5272_v7 = vpop.f32.mrf.mxu3 }
 0x273   : > { %v5334_v11 = vadd.f32 %v5272_v7, %v4588_v0  ;;  %v5168_v37 = vpack.c.b16 %v5152_v6, %v5151_v14 }
 0x275   : > { %v5856_v48 = vadd.f32 %v5794_v5, %v5334_v11  ;;  %v5799_v58 = vpop.f32.mrf.mxu0 }
 0x276   : > { %v4154_v59 = vpop.f32.mrf.mxu1 }
 0x277   : > { %v6015_v46 = vadd.f32 %v6014_v63, %v5856_v48  ;;  %v6053_v56 = vmul.f32 %v5856_v48, %v5856_v48  ;;  %5838 = vmatmul.bf16.gmra.mxu0 %v5690_v4  ;;  %v4212_v22 = vadd.f32 %v4154_v59, %v8472_v26 }
 0x278   : > { %v4528_v40 = vpop.f32.mrf.mxu2 }
 0x279   : > { %v6084_v35 = vadd.f32 %v6083_v20, %v6053_v56  ;;  %v4589_v62 = vadd.f32 %v4528_v40, %v4210_v57 }
 0x27a   : > { %v5274_v29 = vpop.f32.mrf.mxu3 }
 0x27b   : > { %v5335_v19 = vadd.f32 %v5274_v29, %v4589_v62 }
 0x27d   : > { %v5857_v5 = vadd.f32 %v5796_v28, %v5335_v19  ;;  %4570 = vmatmul.bf16.gmra.mxu2 %v6964_v51  ;;  %v5801_v21 = vpop.f32.mrf.mxu0 }
 0x27e   : > { %v4157_v8 = vpop.f32.mrf.mxu1 }
 0x27f   : > { %v7086_v25 = vpack.c.bf16 %v5857_v5, %v5856_v48  ;;  %v6016_v54 = vadd.f32 %v6015_v46, %v5857_v5  ;;  %v6054_v27 = vmul.f32 %v5857_v5, %v5857_v5  ;;  %5316 = vmatmul.bf16.gmra.mxu3 %v5168_v37  ;;  %v4213_v0 = vadd.f32 %v4157_v8, %v8487_v31 }
 0x280   : > { %v4531_v60 = vpop.f32.mrf.mxu2 }
 0x281   : > { %7153 = vst [vmem:[%s8736_s30 + $0x30] sm:$0xff] %v7086_v25   ;;  %v6085_v47 = vadd.f32 %v6084_v35, %v6054_v27  ;;  %v4590_v32 = vadd.f32 %v4531_v60, %v4211_v61 }
 0x282   : > { %v5277_v13 = vpop.f32.mrf.mxu3 }
 0x283   : > { %v5336_v44 = vadd.f32 %v5277_v13, %v4590_v32 }
 0x285   : > { %v5858_v39 = vadd.f32 %v5799_v58, %v5336_v44  ;;  %v5804_v23 = vpop.f32.mrf.mxu0 }
 0x286   : > { %v4159_v55 = vpop.f32.mrf.mxu1 }
 0x287   : > { %v6017_v49 = vadd.f32 %v6016_v54, %v5858_v39  ;;  %v6055_v15 = vmul.f32 %v5858_v39, %v5858_v39  ;;  %v4214_v59 = vadd.f32 %v4159_v55, %v8497_v12 }
 0x288   : > { %v4533_v63 = vpop.f32.mrf.mxu2 }
 0x289   : > { %v6086_v42 = vadd.f32 %v6085_v47, %v6055_v15  ;;  %v4591_v28 = vadd.f32 %v4533_v63, %v4212_v22 }
 0x28a   : > { %v5279_v3 = vpop.f32.mrf.mxu3 }
 0x28b   : > { %v5337_v30 = vadd.f32 %v5279_v3, %v4591_v28 }
 0x28d   : > { %v5859_v52 = vadd.f32 %v5801_v21, %v5337_v30  ;;  %v5806_v7 = vpop.f32.mrf.mxu0 }
 0x28e   : > { %v4162_v9 = vpop.f32.mrf.mxu1 }
 0x28f   : > { %v7091_v41 = vpack.c.bf16 %v5859_v52, %v5858_v39  ;;  %v6018_v53 = vadd.f32 %v6017_v49, %v5859_v52  ;;  %v6056_v20 = vmul.f32 %v5859_v52, %v5859_v52  ;;  %v4215_v19 = vadd.f32 %v4162_v9, %v8511_v1 }
 0x290   : > { %v4536_v45 = vpop.f32.mrf.mxu2 }
 0x291   : > { %7154 = vst [vmem:[%s8736_s30 + $0x38] sm:$0xff] %v7091_v41   ;;  %v6087_v38 = vadd.f32 %v6086_v42, %v6056_v20  ;;  %v4592_v11 = vadd.f32 %v4536_v45, %v4213_v0 }
 0x292   : > { %v5282_v16 = vpop.f32.mrf.mxu3 }
 0x293   : > { %v5338_v26 = vadd.f32 %v5282_v16, %v4592_v11 }
 0x295   : > { %v5860_v50 = vadd.f32 %v5804_v23, %v5338_v26  ;;  %v5809_v46 = vpop.f32.mrf.mxu0 }
 0x296   : > { %v4164_v48 = vpop.f32.mrf.mxu1 }
 0x297   : > { %v6019_v14 = vadd.f32 %v6018_v53, %v5860_v50  ;;  %v6057_v4 = vmul.f32 %v5860_v50, %v5860_v50  ;;  %v4216_v47 = vadd.f32 %v4164_v48, %v8526_v34 }
 0x298   : > { %v4538_v56 = vpop.f32.mrf.mxu2 }
 0x299   : > { %v6088_v57 = vadd.f32 %v6087_v38, %v6057_v4  ;;  %v4593_v58 = vadd.f32 %v4538_v56, %v4214_v59 }
 0x29a   : > { %v5284_v6 = vpop.f32.mrf.mxu3 }
 0x29b   : > { %v5339_v31 = vadd.f32 %v5284_v6, %v4593_v58 }
 0x29d   : > { %v5861_v40 = vadd.f32 %v5806_v7, %v5339_v31  ;;  %v5811_v37 = vpop.f32.mrf.mxu0 }
 0x29e   : > { %v4167_v35 = vpop.f32.mrf.mxu1 }
 0x29f   : > { %v7096_v62 = vpack.c.bf16 %v5861_v40, %v5860_v50  ;;  %v6020_v51 = vadd.f32 %v6019_v14, %v5861_v40  ;;  %v6058_v29 = vmul.f32 %v5861_v40, %v5861_v40  ;;  %v4217_v42 = vadd.f32 %v4167_v35, %v8548_v10 }
 0x2a0   : > { %v4541_v5 = vpop.f32.mrf.mxu2 }
 0x2a1   : > { %7155 = vst [vmem:[%s8736_s30 + $0x40] sm:$0xff] %v7096_v62   ;;  %v6089_v8 = vadd.f32 %v6088_v57, %v6058_v29  ;;  %v4594_v25 = vadd.f32 %v4541_v5, %v4215_v19 }
 0x2a2   : > { %v5287_v54 = vpop.f32.mrf.mxu3 }
 0x2a3   : > { %v5340_v12 = vadd.f32 %v5287_v54, %v4594_v25 }
 0x2a5   : > { %v5862_v27 = vadd.f32 %v5809_v46, %v5340_v12  ;;  %v5814_v32 = vpop.f32.mrf.mxu0 }
 0x2a6   : > { %v4169_v61 = vpop.f32.mrf.mxu1 }
 0x2a7   : > { %v6021_v21 = vadd.f32 %v6020_v51, %v5862_v27  ;;  %v6059_v60 = vmul.f32 %v5862_v27, %v5862_v27  ;;  %v4218_v7 = vadd.f32 %v4169_v61, %v8562_v2 }
 0x2a8   : > { %v4543_v13 = vpop.f32.mrf.mxu2 }
 0x2a9   : > { %v6090_v44 = vadd.f32 %v6089_v8, %v6059_v60  ;;  %v4595_v39 = vadd.f32 %v4543_v13, %v4216_v47 }
 0x2aa   : > { %v5289_v55 = vpop.f32.mrf.mxu3 }
 0x2ab   : > { %v5341_v1 = vadd.f32 %v5289_v55, %v4595_v39 }
 0x2ad   : > { %v5863_v49 = vadd.f32 %v5811_v37, %v5341_v1  ;;  %v5816_v28 = vpop.f32.mrf.mxu0 }
 0x2ae   : > { %v4172_v15 = vpop.f32.mrf.mxu1 }
 0x2af   : > { %v7101_v22 = vpack.c.bf16 %v5863_v49, %v5862_v27  ;;  %v6022_v23 = vadd.f32 %v6021_v21, %v5863_v49  ;;  %v6060_v63 = vmul.f32 %v5863_v49, %v5863_v49  ;;  %v4219_v46 = vadd.f32 %v4172_v15, %v8573_v33 }
 0x2b0   : > { %v4546_v3 = vpop.f32.mrf.mxu2 }
 0x2b1   : > { %7156 = vst [vmem:[%s8736_s30 + $0x48] sm:$0xff] %v7101_v22   ;;  %v6091_v30 = vadd.f32 %v6090_v44, %v6060_v63  ;;  %v4596_v52 = vadd.f32 %v4546_v3, %v4217_v42 }
 0x2b2   : > { %v5292_v9 = vpop.f32.mrf.mxu3 }
 0x2b3   : > { %v5342_v34 = vadd.f32 %v5292_v9, %v4596_v52 }
 0x2b5   : > { %v5864_v41 = vadd.f32 %v5814_v32, %v5342_v34  ;;  %v5819_v45 = vpop.f32.mrf.mxu0 }
 0x2b6   : > { %v4174_v53 = vpop.f32.mrf.mxu1 }
 0x2b7   : > { %v6023_v20 = vadd.f32 %v6022_v23, %v5864_v41  ;;  %v6061_v0 = vmul.f32 %v5864_v41, %v5864_v41  ;;  %v4220_v51 = vadd.f32 %v4174_v53, %v8586_v17 }
 0x2b8   : > { %v4548_v38 = vpop.f32.mrf.mxu2 }
 0x2b9   : > { %v6092_v11 = vadd.f32 %v6091_v30, %v6061_v0  ;;  %v4597_v16 = vadd.f32 %v4548_v38, %v4218_v7 }
 0x2ba   : > { %v5294_v26 = vpop.f32.mrf.mxu3 }
 0x2bb   : > { %v5343_v10 = vadd.f32 %v5294_v26, %v4597_v16 }
 0x2bd   : > { %v5865_v50 = vadd.f32 %v5816_v28, %v5343_v10  ;;  %v5821_v56 = vpop.f32.mrf.mxu0 }
 0x2be   : > { %v4177_v48 = vpop.f32.mrf.mxu1 }
 0x2bf   : > { %v7106_v14 = vpack.c.bf16 %v5865_v50, %v5864_v41  ;;  %v6024_v4 = vadd.f32 %v6023_v20, %v5865_v50  ;;  %v6062_v59 = vmul.f32 %v5865_v50, %v5865_v50  ;;  %v4221_v21 = vadd.f32 %v4177_v48, %v8601_v43 }
 0x2c0   : > { %v4551_v57 = vpop.f32.mrf.mxu2 }
 0x2c1   : > { %7157 = vst [vmem:[%s8736_s30 + $0x50] sm:$0xff] %v7106_v14   ;;  %v6093_v58 = vadd.f32 %v6092_v11, %v6062_v59  ;;  %v4598_v6 = vadd.f32 %v4551_v57, %v4219_v46 }
 0x2c2   : > { %v5297_v31 = vpop.f32.mrf.mxu3 }
 0x2c3   : > { %v5344_v2 = vadd.f32 %v5297_v31, %v4598_v6  ;;  %v8969_v6 = vld [vmem:[#allocation8_spill] sm:$0xff] }
 0x2c5   : > { %v5866_v40 = vadd.f32 %v5819_v45, %v5344_v2  ;;  %v5824_v29 = vpop.f32.mrf.mxu0 }
 0x2c6   : > { %v4179_v37 = vpop.f32.mrf.mxu1 }
 0x2c7   : > { %v6025_v35 = vadd.f32 %v6024_v4, %v5866_v40  ;;  %v6063_v62 = vmul.f32 %v5866_v40, %v5866_v40  ;;  %v4222_v15 = vadd.f32 %v4179_v37, %v8611_v24 }
 0x2c8   : > { %v4553_v19 = vpop.f32.mrf.mxu2 }
 0x2c9   : > { %v6094_v5 = vadd.f32 %v6093_v58, %v6063_v62  ;;  %v4599_v8 = vadd.f32 %v4553_v19, %v4220_v51 }
 0x2ca   : > { %v5299_v25 = vpop.f32.mrf.mxu3 }
 0x2cb   : > { %v5345_v33 = vadd.f32 %v5299_v25, %v4599_v8 }
 0x2cd   : > { %v5867_v54 = vadd.f32 %v5821_v56, %v5345_v33  ;;  %v5826_v47 = vpop.f32.mrf.mxu0 }
 0x2ce   : > { %v4182_v17 = vpop.f32.mrf.mxu1 }
 0x2cf   : > { %v7111_v12 = vpack.c.bf16 %v5867_v54, %v5866_v40  ;;  %v6026_v27 = vadd.f32 %v6025_v35, %v5867_v54  ;;  %v6064_v61 = vmul.f32 %v5867_v54, %v5867_v54  ;;  %v4223_v41 = vadd.f32 %v4182_v17, %v8625_v18 }
 0x2d0   : > { %v4556_v60 = vpop.f32.mrf.mxu2 }
 0x2d1   : > { %7158 = vst [vmem:[%s8736_s30 + $0x58] sm:$0xff] %v7111_v12   ;;  %v6095_v32 = vadd.f32 %v6094_v5, %v6064_v61  ;;  %v4600_v13 = vadd.f32 %v4556_v60, %v4221_v21  ;;  %v8970_v5 = vld [vmem:[#allocation10_spill] sm:$0xff] }
 0x2d2   : > { %v5302_v44 = vpop.f32.mrf.mxu3 }
 0x2d3   : > { %v5346_v39 = vadd.f32 %v5302_v44, %v4600_v13  ;;  %v8971_v44 = vld [vmem:[#allocation12_spill] sm:$0xff] }
 0x2d5   : > { %v5868_v55 = vadd.f32 %v5824_v29, %v5346_v39  ;;  %v5829_v28 = vpop.f32.mrf.mxu0 }
 0x2d6   : > { %v4184_v3 = vpop.f32.mrf.mxu1 }
 0x2d7   : > { %v6027_v1 = vadd.f32 %v6026_v27, %v5868_v55  ;;  %v6065_v49 = vmul.f32 %v5868_v55, %v5868_v55  ;;  %v4224_v10 = vadd.f32 %v4184_v3, %v8640_v36 }
 0x2d8   : > { %v4558_v22 = vpop.f32.mrf.mxu2 }
 0x2d9   : > { %v6096_v23 = vadd.f32 %v6095_v32, %v6065_v49  ;;  %v4601_v63 = vadd.f32 %v4558_v22, %v4222_v15 }
 0x2da   : > { %v5304_v42 = vpop.f32.mrf.mxu3 }
 0x2db   : > { %v5347_v43 = vadd.f32 %v5304_v42, %v4601_v63 }
 0x2dd   : > { %v5869_v30 = vadd.f32 %v5826_v47, %v5347_v43  ;;  %v5831_v24 = vpop.f32.mrf.mxu0  ;;  %v8972_v43 = vld [vmem:[#allocation14_spill] sm:$0xff] }
 0x2de   : > { %v4187_v11 = vpop.f32.mrf.mxu1 }
 0x2df   : > { %v7116_v52 = vpack.c.bf16 %v5869_v30, %v5868_v55  ;;  %v6028_v9 = vadd.f32 %v6027_v1, %v5869_v30  ;;  %v6066_v34 = vmul.f32 %v5869_v30, %v5869_v30  ;;  %v4225_v31 = vadd.f32 %v4187_v11, %v8969_v6 }
 0x2e0   : > { %v4561_v53 = vpop.f32.mrf.mxu2 }
 0x2e1   : > { %7159 = vst [vmem:[%s8736_s30 + $0x60] sm:$0xff] %v7116_v52   ;;  %v6097_v20 = vadd.f32 %v6096_v23, %v6066_v34  ;;  %v4602_v0 = vadd.f32 %v4561_v53, %v4223_v41 }
 0x2e2   : > { %v5307_v7 = vpop.f32.mrf.mxu3 }
 0x2e3   : > { %v5348_v45 = vadd.f32 %v5307_v7, %v4602_v0 }
 0x2e5   : > { %v5870_v38 = vadd.f32 %v5829_v28, %v5348_v45  ;;  %v5834_v46 = vpop.f32.mrf.mxu0 }
 0x2e6   : > { %v4189_v40 = vpop.f32.mrf.mxu1 }
 0x2e7   : > { %v6029_v16 = vadd.f32 %v6028_v9, %v5870_v38  ;;  %v6067_v26 = vmul.f32 %v5870_v38, %v5870_v38  ;;  %v4226_v8 = vadd.f32 %v4189_v40, %v8970_v5 }
 0x2e8   : > { %v4563_v50 = vpop.f32.mrf.mxu2 }
 0x2e9   : > { %v6098_v48 = vadd.f32 %v6097_v20, %v6067_v26  ;;  %v4603_v14 = vadd.f32 %v4563_v50, %v4224_v10 }
 0x2ea   : > { %v5309_v4 = vpop.f32.mrf.mxu3 }
 0x2eb   : > { %v5349_v59 = vadd.f32 %v5309_v4, %v4603_v14 }
 0x2ed   : > { %v5871_v18 = vadd.f32 %v5831_v24, %v5349_v59  ;;  %v5836_v25 = vpop.f32.mrf.mxu0 }
 0x2ee   : > { %v4192_v61 = vpop.f32.mrf.mxu1 }
 0x2ef   : > { %v7121_v56 = vpack.c.bf16 %v5871_v18, %v5870_v38  ;;  %v6030_v57 = vadd.f32 %v6029_v16, %v5871_v18  ;;  %v6068_v58 = vmul.f32 %v5871_v18, %v5871_v18  ;;  %v4227_v17 = vadd.f32 %v4192_v61, %v8971_v44 }
 0x2f0   : > { %v4566_v2 = vpop.f32.mrf.mxu2 }
 0x2f1   : > { %7160 = vst [vmem:[%s8736_s30 + $0x68] sm:$0xff] %v7121_v56   ;;  %v6099_v35 = vadd.f32 %v6098_v48, %v6068_v58  ;;  %v4604_v62 = vadd.f32 %v4566_v2, %v4225_v31 }
 0x2f2   : > { %v5312_v51 = vpop.f32.mrf.mxu3 }
 0x2f3   : > { %v5350_v29 = vadd.f32 %v5312_v51, %v4604_v62 }
 0x2f5   : > { %v5872_v36 = vadd.f32 %v5834_v46, %v5350_v29  ;;  %v5839_v49 = vpop.f32.mrf.mxu0 }
 0x2f6   : > { %v4194_v23 = vpop.f32.mrf.mxu1 }
 0x2f7   : > { %v6031_v19 = vadd.f32 %v6030_v57, %v5872_v36  ;;  %v6069_v37 = vmul.f32 %v5872_v36, %v5872_v36  ;;  %v4228_v3 = vadd.f32 %v4194_v23, %v8972_v43 }
 0x2f8   : > { %v4568_v33 = vpop.f32.mrf.mxu2 }
 0x2f9   : > { %v6100_v54 = vadd.f32 %v6099_v35, %v6069_v37  ;;  %v4605_v12 = vadd.f32 %v4568_v33, %v4226_v8 }
 0x2fa   : > { %v5314_v27 = vpop.f32.mrf.mxu3 }
 0x2fb   : > { %v5351_v21 = vadd.f32 %v5314_v27, %v4605_v12 }
 0x2fd   : > { %v5873_v60 = vadd.f32 %v5836_v25, %v5351_v21  ;;  %v5841_v53 = vpop.f32.mrf.mxu0 }
 0x2ff   : > { %v7126_v47 = vpack.c.bf16 %v5873_v60, %v5872_v36  ;;  %v6032_v32 = vadd.f32 %v6031_v19, %v5873_v60  ;;  %v6070_v13 = vmul.f32 %v5873_v60, %v5873_v60 }
 0x300   : > { %v4571_v39 = vpop.f32.mrf.mxu2 }
 0x301   : > { %7161 = vst [vmem:[%s8736_s30 + $0x70] sm:$0xff] %v7126_v47   ;;  %v6101_v55 = vadd.f32 %v6100_v54, %v6070_v13  ;;  %v4606_v1 = vadd.f32 %v4571_v39, %v4227_v17 }
 0x302   : > { %v5317_v15 = vpop.f32.mrf.mxu3 }
 0x303   : > { %v5352_v22 = vadd.f32 %v5317_v15, %v4606_v1 }
 0x305   : > { %v5874_v63 = vadd.f32 %v5839_v49, %v5352_v22 }
 0x307   : > { %v6033_v42 = vadd.f32 %v6032_v32, %v5874_v63  ;;  %v6071_v28 = vmul.f32 %v5874_v63, %v5874_v63 }
 0x308   : > { %v4573_v30 = vpop.f32.mrf.mxu2 }
 0x309   : > { %v6102_v52 = vadd.f32 %v6101_v55, %v6071_v28  ;;  %v4607_v9 = vadd.f32 %v4573_v30, %v4228_v3 }
 0x30a   : > { %v5319_v34 = vpop.f32.mrf.mxu3 }
 0x30b   : > { %v5353_v41 = vadd.f32 %v5319_v34, %v4607_v9 }
 0x30d   : > { %v5875_v20 = vadd.f32 %v5841_v53, %v5353_v41 }
 0x30f   : > { %v7131_v0 = vpack.c.bf16 %v5875_v20, %v5874_v63  ;;  %v6034_v7 = vadd.f32 %v6033_v42, %v5875_v20  ;;  %v6072_v45 = vmul.f32 %v5875_v20, %v5875_v20 }
 0x311   : > { %7162 = vst [vmem:[%s8736_s30 + $0x78] sm:$0xff] %v7131_v0   ;;  %v6035_v24 = vrot.slane %v6034_v7, 4  ;;  %v6103_v38 = vadd.f32 %v6102_v52, %v6072_v45 }
 0x313   : > { %v6036_v11 = vadd.f32 %v6035_v24, %v6034_v7  ;;  %v6104_v16 = vrot.slane %v6103_v38, 4 }
 0x315   : > { %v6037_v26 = vrot.slane %v6036_v11, 2  ;;  %v6105_v10 = vadd.f32 %v6104_v16, %v6103_v38 }
 0x317   : > { %v6038_v50 = vadd.f32 %v6037_v26, %v6036_v11  ;;  %v6106_v48 = vrot.slane %v6105_v10, 2 }
 0x319   : > { %v6039_v14 = vrot.slane %v6038_v50, 1  ;;  %v6107_v4 = vadd.f32 %v6106_v48, %v6105_v10 }
 0x31b   : > { %v6108_v59 = vrot.slane %v6107_v4, 1  ;;  %v6040_v18 = vadd.f32 %v6039_v14, %v6038_v50 }
 0x31d   : > { %v6109_v46 = vadd.f32 %v6108_v59, %v6107_v4 }
 0x31f   : > { %v6111_v56 = vsel %vm822_vm6, %v6040_v18, %v6109_v46 }
 0x320   : > { %6112 = vst [vmem:[%s235_s8] sm:$0x3] %v6111_v56 }
 0x321 PF: > { %s16_s18 = sadd.s32 1, %s7206_s18  }
 0x322   : > { %p13_p4 = scmp.ge.s32.totalorder %s16_s18, 4  }
 0x324   :  { %15 = sbr.rel (!%p13_p4) target bundleno = 1 (0x1), region = 88 }

</bundles_post_ra>
